<compile_context>
chip_gen: v6e
topology: v6e:2x2x1
jax: 0.10.0
libtpu: 0.0.40
codegen_flags: <defaults>
</compile_context>

<pallas_src>
import jax
import jax.numpy as jnp
from jax import lax
from jax.experimental import pallas as pl
from jax.experimental.pallas import tpu as pltpu

# ----------------------------- model config -----------------------------
D = 768          # hidden size (fixed by Linear(768, 1))
H = 12           # attention heads
HD = D // H      # head dim = 64
FFN = 3072       # feed-forward dim
LAYERS = 6       # distilbert-base-uncased depth (synthetic weights)
CH = 768         # FFN streaming chunk width
NC = FFN // CH   # 4 FFN chunks per layer
VOCAB = 1000     # synthetic vocab
MAXPOS = 512
EPS = 1e-12

B = 2            # batch
S = 8            # sequence length
M = B * S        # flattened tokens


# ----------------------------- fused encoder kernel ------------------------------
def _encoder_kernel(x_ref, mask_ref, embg_ref, embb_ref,
                    wqkv_ref, bqkv_ref, wo_ref, bo_ref, ln1g_ref, ln1b_ref,
                    w1_ref, b1_ref, w2_ref, b2_ref, ln2g_ref, ln2b_ref,
                    woutt_ref, bout_ref,
                    o_ref,
                    h_scr, qkv_scr, ctx_scr, ffn_scr):
    l = pl.program_id(0)
    s = pl.program_id(1)
    last_step = pl.num_programs(1) - 1
    scale = 1.0 / (HD ** 0.5)

    def _ln(x, g, b):
        mu = jnp.mean(x, axis=-1, keepdims=True)
        xc = x - mu
        var = jnp.mean(xc * xc, axis=-1, keepdims=True)
        return xc * lax.rsqrt(var + EPS) * g + b

    # --- embeddings add + LayerNorm: only once, very first grid step ---
    @pl.when((l == 0) & (s == 0))
    def _():
        h_scr[...] = _ln(x_ref[...], embg_ref[...], embb_ref[...])

    # --- phase 0 of each layer: multi-head self attention ---
    @pl.when(s == 0)
    def _():
        h = h_scr[...]                                   # (M, D) f32, VMEM-resident
        hb = h.astype(jnp.bfloat16)

        # fused QKV projection -> VMEM scratch (keeps the (M,3D) f32 out of vregs)
        qkv_scr[...] = (jnp.dot(hb, wqkv_ref[...],
                                preferred_element_type=jnp.float32) + bqkv_ref[...])

        mask = mask_ref[...]                             # (M, M) additive (block-diag + pad)
        for hh in range(H):                              # 12 heads; both batches per matmul
            c0 = hh * HD
            q = qkv_scr[:, c0:c0 + HD]                   # (M, HD) slice-load from VMEM
            k = qkv_scr[:, D + c0:D + c0 + HD]
            v = qkv_scr[:, 2 * D + c0:2 * D + c0 + HD]
            # contract last dims directly (q @ k^T) -- no explicit transpose
            sc = lax.dot_general(q, k, (((1,), (1,)), ((), ())),
                                 preferred_element_type=jnp.float32) * scale + mask
            sc = sc - jnp.max(sc, axis=-1, keepdims=True)
            p = jnp.exp(sc)
            p = p / jnp.sum(p, axis=-1, keepdims=True)   # exact divide
            ctx_scr[:, c0:c0 + HD] = jnp.dot(p, v, preferred_element_type=jnp.float32)

        attn = (jnp.dot(ctx_scr[...].astype(jnp.bfloat16), wo_ref[...],
                        preferred_element_type=jnp.float32) + bo_ref[...])
        h_scr[...] = _ln(h + attn, ln1g_ref[...], ln1b_ref[...])
        ffn_scr[...] = jnp.zeros_like(ffn_scr)

    # --- phases 1..NC: one FFN chunk per grid step (weights streamed per chunk) ---
    @pl.when(s > 0)
    def _():
        hb = h_scr[...].astype(jnp.bfloat16)
        a = (jnp.dot(hb, w1_ref[...], preferred_element_type=jnp.float32) + b1_ref[...])
        # TODO(synk): HF DistilBERT uses the exact (erf) GELU; tanh approximation used here.
        a = jax.nn.gelu(a, approximate=True)
        ffn_scr[...] += jnp.dot(a.astype(jnp.bfloat16), w2_ref[...],
                                preferred_element_type=jnp.float32)

    # --- finalize layer on the last FFN chunk ---
    @pl.when(s == last_step)
    def _():
        h_scr[...] = _ln(h_scr[...] + ffn_scr[...] + b2_ref[...],
                         ln2g_ref[...], ln2b_ref[...])

    # --- epilogue: Dropout(0.5) eval-mode identity; Linear(768,1) as row reduction ---
    @pl.when((s == last_step) & (l == pl.num_programs(0) - 1))
    def _():
        h = h_scr[...]
        o_ref[...] = jnp.sum(h * woutt_ref[...], axis=-1, keepdims=True) + bout_ref[...]


def fused_encoder(x0, add_mask, params):
    def const_spec(shape):
        return pl.BlockSpec(shape, lambda l, s: (0, 0))

    def layer_spec(shape):
        # fetched once per layer; prefetched during the previous layer's last FFN step
        return pl.BlockSpec((pl.Squeezed(),) + shape, lambda l, s: (l, 0, 0))

    def chunk_spec(shape):
        # chunk c is consumed at grid step s=c+1; lagging index_map => its DMA overlaps
        # the previous step's compute (attention for c=0, previous chunk otherwise)
        return pl.BlockSpec((pl.Squeezed(), pl.Squeezed()) + shape,
                            lambda l, s: (l, jnp.maximum(s - 1, 0), 0, 0))

    in_specs = [
        const_spec((M, D)),            # x0 (word + pos embeddings, summed)
        const_spec((M, M)),            # additive attention mask (block-diag + padding)
        const_spec((1, D)),            # emb LN gamma
        const_spec((1, D)),            # emb LN beta
        layer_spec((D, 3 * D)),        # wqkv  (bf16)
        layer_spec((1, 3 * D)),        # bqkv
        layer_spec((D, D)),            # wo    (bf16)
        layer_spec((1, D)),            # bo
        layer_spec((1, D)),            # ln1 gamma
        layer_spec((1, D)),            # ln1 beta
        chunk_spec((D, CH)),           # w1 chunk (bf16)
        chunk_spec((1, CH)),           # b1 chunk
        chunk_spec((CH, D)),           # w2 chunk (bf16)
        layer_spec((1, D)),            # b2
        layer_spec((1, D)),            # ln2 gamma
        layer_spec((1, D)),            # ln2 beta
        const_spec((1, D)),            # out_w (transposed to a row vector)
        const_spec((1, 1)),            # out_b
    ]
    return pl.pallas_call(
        _encoder_kernel,
        out_shape=jax.ShapeDtypeStruct((M, 1), jnp.float32),
        grid_spec=pltpu.PrefetchScalarGridSpec(
            num_scalar_prefetch=0,
            grid=(LAYERS, NC + 1),
            in_specs=in_specs,
            out_specs=pl.BlockSpec((M, 1), lambda l, s: (0, 0)),
            scratch_shapes=[
                pltpu.VMEM((M, D), jnp.float32),       # h  (resident activations)
                pltpu.VMEM((M, 3 * D), jnp.float32),   # qkv
                pltpu.VMEM((M, D), jnp.float32),       # attention context
                pltpu.VMEM((M, D), jnp.float32),       # FFN accumulator
            ],
        ),
        compiler_params=pltpu.CompilerParams(
            dimension_semantics=("arbitrary", "arbitrary"),
            # ~14 MiB double-buffered weight plan; explicit raise above v5e's 16 MiB
            # default scoped VMEM, comfortable headroom under v7x's 64 MiB/TC.
            vmem_limit_bytes=32 * 1024 * 1024,
        ),
    )(x0, add_mask,
      params["emb_ln_g"], params["emb_ln_b"],
      params["wqkv"], params["bqkv"], params["wo"], params["bo"],
      params["ln1_g"], params["ln1_b"],
      params["w1"], params["b1"], params["w2"], params["b2"],
      params["ln2_g"], params["ln2_b"],
      params["out_w_t"], params["out_b"])


# ----------------------------- parameter construction ----------------------------
def init_params(key):
    def nrm(k, shape, scale=0.02):
        return scale * jax.random.normal(k, shape, dtype=jnp.float32)

    keys = jax.random.split(key, 4)
    lkeys = jax.random.split(keys[3], LAYERS)

    wqkv, wo, w1, w2 = [], [], [], []
    for lk in lkeys:
        ks = jax.random.split(lk, 6)
        wqkv.append(jnp.concatenate(
            [nrm(ks[0], (D, D)), nrm(ks[1], (D, D)), nrm(ks[2], (D, D))], axis=1))
        wo.append(nrm(ks[3], (D, D)))
        w1.append(nrm(ks[4], (D, FFN)))
        w2.append(nrm(ks[5], (FFN, D)))

    w1 = jnp.stack(w1)                                           # (L, D, FFN)
    w2 = jnp.stack(w2)                                           # (L, FFN, D)
    # pre-chunk FFN weights so each grid step streams one (D,CH)/(CH,D) block
    w1c = w1.reshape(LAYERS, D, NC, CH).transpose(0, 2, 1, 3)    # (L, NC, D, CH)
    w2c = w2.reshape(LAYERS, NC, CH, D)                          # (L, NC, CH, D)

    params = {
        "word_emb": nrm(keys[0], (VOCAB, D)),
        "pos_emb": nrm(keys[1], (MAXPOS, D)),
        "emb_ln_g": jnp.ones((1, D), jnp.float32),
        "emb_ln_b": jnp.zeros((1, D), jnp.float32),
        # fused / stacked per-layer weights; matmul weights stored as bf16
        "wqkv": jnp.stack(wqkv).astype(jnp.bfloat16),            # (L, D, 3D)
        "bqkv": jnp.zeros((LAYERS, 1, 3 * D), jnp.float32),
        "wo": jnp.stack(wo).astype(jnp.bfloat16),                # (L, D, D)
        "bo": jnp.zeros((LAYERS, 1, D), jnp.float32),
        "ln1_g": jnp.ones((LAYERS, 1, D), jnp.float32),
        "ln1_b": jnp.zeros((LAYERS, 1, D), jnp.float32),
        "w1": w1c.astype(jnp.bfloat16),                          # (L, NC, D, CH)
        "b1": jnp.zeros((LAYERS, NC, 1, CH), jnp.float32),
        "w2": w2c.astype(jnp.bfloat16),                          # (L, NC, CH, D)
        "b2": jnp.zeros((LAYERS, 1, D), jnp.float32),
        "ln2_g": jnp.ones((LAYERS, 1, D), jnp.float32),
        "ln2_b": jnp.zeros((LAYERS, 1, D), jnp.float32),
        "out_w_t": nrm(keys[2], (1, D)),                         # Linear(768,1) weight^T
        "out_b": jnp.zeros((1, 1), jnp.float32),
    }
    return params


# ----------------------------- forward pass ---------------------------------------
def pos_model_forward(params, input_ids, attn_mask):
    # embedding gathers stay in XLA (glue); everything downstream is one fused kernel
    word_e = jnp.take(params["word_emb"], input_ids.reshape(-1), axis=0)   # (M, D)
    pos_ids = jnp.tile(jnp.arange(S, dtype=jnp.int32), (B,))
    pos_e = jnp.take(params["pos_emb"], pos_ids, axis=0)                   # (M, D)
    x0 = word_e + pos_e

    # combined (M, M) additive mask: no cross-batch attention + key-padding mask
    tok_batch = jnp.arange(M, dtype=jnp.int32) // S
    same_batch = tok_batch[:, None] == tok_batch[None, :]
    key_valid = attn_mask.reshape(-1)[None, :] > 0
    add_mask = jnp.where(same_batch & key_valid, 0.0, -1e9).astype(jnp.float32)

    logits = fused_encoder(x0, add_mask, params)                           # (M, 1)
    return logits.reshape(B, S, 1)


# ----------------------------- main ------------------------------------------------
if __name__ == "__main__":
    key = jax.random.PRNGKey(0)
    pkey, ikey = jax.random.split(key)
    params = init_params(pkey)

    input_ids = jax.random.randint(ikey, (B, S), 0, VOCAB, dtype=jnp.int32)
    attn_mask = jnp.ones((B, S), dtype=jnp.int32).at[1, 6:].set(0)  # pad last 2 tokens of batch 1

    fwd = jax.jit(pos_model_forward)
    out = fwd(params, input_ids, attn_mask)
    jax.block_until_ready(out)
    assert out.shape == (B, S, 1) and out.dtype == jnp.float32
    assert bool(jnp.all(jnp.isfinite(out)))
    print("KERNEL_OK")
</pallas_src>

<mosaic_0001>
module attributes {stable_mosaic.version = 11 : i64} {
  func.func @_encoder_kernel(%arg0: i32, %arg1: i32, %arg2: memref<16x768xf32, #tpu.memory_space<vmem>>, %arg3: memref<16x16xf32, #tpu.memory_space<vmem>>, %arg4: memref<1x768xf32, #tpu.memory_space<vmem>>, %arg5: memref<1x768xf32, #tpu.memory_space<vmem>>, %arg6: memref<1x768x2304xbf16, #tpu.memory_space<vmem>>, %arg7: memref<1x1x2304xf32, #tpu.memory_space<vmem>>, %arg8: memref<1x768x768xbf16, #tpu.memory_space<vmem>>, %arg9: memref<1x1x768xf32, #tpu.memory_space<vmem>>, %arg10: memref<1x1x768xf32, #tpu.memory_space<vmem>>, %arg11: memref<1x1x768xf32, #tpu.memory_space<vmem>>, %arg12: memref<1x1x768x768xbf16, #tpu.memory_space<vmem>>, %arg13: memref<1x1x1x768xf32, #tpu.memory_space<vmem>>, %arg14: memref<1x1x768x768xbf16, #tpu.memory_space<vmem>>, %arg15: memref<1x1x768xf32, #tpu.memory_space<vmem>>, %arg16: memref<1x1x768xf32, #tpu.memory_space<vmem>>, %arg17: memref<1x1x768xf32, #tpu.memory_space<vmem>>, %arg18: memref<1x768xf32, #tpu.memory_space<vmem>>, %arg19: memref<1x1xf32, #tpu.memory_space<vmem>>, %arg20: memref<16x1xf32, #tpu.memory_space<vmem>>, %arg21: memref<16x768xf32, #tpu.memory_space<vmem>>, %arg22: memref<16x2304xf32, #tpu.memory_space<vmem>>, %arg23: memref<16x768xf32, #tpu.memory_space<vmem>>, %arg24: memref<16x768xf32, #tpu.memory_space<vmem>>) attributes {dimension_semantics = [#tpu.dimension_semantics<arbitrary>, #tpu.dimension_semantics<arbitrary>], iteration_bounds = array<i64: 6, 5>, scalar_prefetch = 0 : i64, scratch_operands = 4 : i64, tpu.core_type = #tpu.core_type<tc>, window_params = [{pipeline_mode = #tpu.pipeline_mode<synchronous>, transform_indices = @transform_0, window_bounds = array<i64: 16, 768>}, {pipeline_mode = #tpu.pipeline_mode<synchronous>, transform_indices = @transform_1, window_bounds = array<i64: 16, 16>}, {pipeline_mode = #tpu.pipeline_mode<synchronous>, transform_indices = @transform_2, window_bounds = array<i64: 1, 768>}, {pipeline_mode = #tpu.pipeline_mode<synchronous>, transform_indices = @transform_3, window_bounds = array<i64: 1, 768>}, {transform_indices = @transform_4, window_bounds = array<i64: 1, 768, 2304>}, {transform_indices = @transform_5, window_bounds = array<i64: 1, 1, 2304>}, {transform_indices = @transform_6, window_bounds = array<i64: 1, 768, 768>}, {transform_indices = @transform_7, window_bounds = array<i64: 1, 1, 768>}, {transform_indices = @transform_8, window_bounds = array<i64: 1, 1, 768>}, {transform_indices = @transform_9, window_bounds = array<i64: 1, 1, 768>}, {transform_indices = @transform_10, window_bounds = array<i64: 1, 1, 768, 768>}, {transform_indices = @transform_11, window_bounds = array<i64: 1, 1, 1, 768>}, {transform_indices = @transform_12, window_bounds = array<i64: 1, 1, 768, 768>}, {transform_indices = @transform_13, window_bounds = array<i64: 1, 1, 768>}, {transform_indices = @transform_14, window_bounds = array<i64: 1, 1, 768>}, {transform_indices = @transform_15, window_bounds = array<i64: 1, 1, 768>}, {pipeline_mode = #tpu.pipeline_mode<synchronous>, transform_indices = @transform_16, window_bounds = array<i64: 1, 768>}, {pipeline_mode = #tpu.pipeline_mode<synchronous>, transform_indices = @transform_17, window_bounds = array<i64: 1, 1>}, {pipeline_mode = #tpu.pipeline_mode<synchronous>, transform_indices = @transform_18, window_bounds = array<i64: 16, 1>}]} {
    %c0_i32 = arith.constant 0 : i32
    %0 = arith.cmpi eq, %arg0, %c0_i32 : i32
    %c0_i32_0 = arith.constant 0 : i32
    %1 = arith.cmpi eq, %arg1, %c0_i32_0 : i32
    %2 = arith.andi %0, %1 : i1
    %3 = arith.extui %2 : i1 to i32
    %c0_i32_1 = arith.constant 0 : i32
    %4 = arith.cmpi ne, %3, %c0_i32_1 : i32
    scf.if %4 {
      %c0 = arith.constant 0 : index
      %c0_9 = arith.constant 0 : index
      %19 = vector.load %arg2[%c0, %c0_9] : memref<16x768xf32, #tpu.memory_space<vmem>>, vector<16x768xf32>
      %c0_10 = arith.constant 0 : index
      %c0_11 = arith.constant 0 : index
      %20 = vector.load %arg4[%c0_10, %c0_11] : memref<1x768xf32, #tpu.memory_space<vmem>>, vector<1x768xf32>
      %c0_12 = arith.constant 0 : index
      %c0_13 = arith.constant 0 : index
      %21 = vector.load %arg5[%c0_12, %c0_13] : memref<1x768xf32, #tpu.memory_space<vmem>>, vector<1x768xf32>
      %cst = arith.constant dense<0.000000e+00> : vector<16xf32>
      %22 = vector.multi_reduction <add>, %19, %cst [1] : vector<16x768xf32> to vector<16xf32>
      %23 = vector.shape_cast %22 : vector<16xf32> to vector<16x1xf32>
      %cst_14 = arith.constant 7.680000e+02 : f32
      %24 = vector.broadcast %cst_14 : f32 to vector<16x1xf32>
      %25 = arith.divf %23, %24 : vector<16x1xf32>
      %26 = vector.broadcast %25 : vector<16x1xf32> to vector<16x768xf32>
      %27 = arith.subf %19, %26 : vector<16x768xf32>
      %28 = arith.mulf %27, %27 : vector<16x768xf32>
      %cst_15 = arith.constant dense<0.000000e+00> : vector<16xf32>
      %29 = vector.multi_reduction <add>, %28, %cst_15 [1] : vector<16x768xf32> to vector<16xf32>
      %30 = vector.shape_cast %29 : vector<16xf32> to vector<16x1xf32>
      %cst_16 = arith.constant 7.680000e+02 : f32
      %31 = vector.broadcast %cst_16 : f32 to vector<16x1xf32>
      %32 = arith.divf %30, %31 : vector<16x1xf32>
      %cst_17 = arith.constant 9.99999996E-13 : f32
      %33 = vector.broadcast %cst_17 : f32 to vector<16x1xf32>
      %34 = arith.addf %32, %33 : vector<16x1xf32>
      %35 = math.rsqrt %34 : vector<16x1xf32>
      %36 = vector.broadcast %35 : vector<16x1xf32> to vector<16x768xf32>
      %37 = arith.mulf %27, %36 : vector<16x768xf32>
      %38 = vector.broadcast %20 : vector<1x768xf32> to vector<16x768xf32>
      %39 = arith.mulf %37, %38 : vector<16x768xf32>
      %40 = vector.broadcast %21 : vector<1x768xf32> to vector<16x768xf32>
      %41 = arith.addf %39, %40 : vector<16x768xf32>
      %c0_18 = arith.constant 0 : index
      %c0_19 = arith.constant 0 : index
      %42 = vector.load %arg21[%c0_18, %c0_19] : memref<16x768xf32, #tpu.memory_space<vmem>>, vector<16x768xf32>
      tpu.vector_store %arg21[%c0_18, %c0_19], %41 {strides = array<i32>} : memref<16x768xf32, #tpu.memory_space<vmem>>, vector<16x768xf32>,
    } else {
    }
    %c0_i32_2 = arith.constant 0 : i32
    %5 = arith.cmpi eq, %arg1, %c0_i32_2 : i32
    %6 = arith.extui %5 : i1 to i32
    %c0_i32_3 = arith.constant 0 : i32
    %7 = arith.cmpi ne, %6, %c0_i32_3 : i32
    scf.if %7 {
      %c0 = arith.constant 0 : index
      %c0_9 = arith.constant 0 : index
      %19 = vector.load %arg21[%c0, %c0_9] : memref<16x768xf32, #tpu.memory_space<vmem>>, vector<16x768xf32>
      %20 = arith.truncf %19 : vector<16x768xf32> to vector<16x768xbf16>
      %c0_10 = arith.constant 0 : index
      %c0_11 = arith.constant 0 : index
      %c0_12 = arith.constant 0 : index
      %21 = vector.load %arg6[%c0_10, %c0_11, %c0_12] : memref<1x768x2304xbf16, #tpu.memory_space<vmem>>, vector<1x768x2304xbf16>
      %22 = vector.shape_cast %21 : vector<1x768x2304xbf16> to vector<768x2304xbf16>
      %cst = arith.constant dense<0.000000e+00> : vector<16x2304xf32>
      %23 = tpu.matmul %20, %22, %cst {dimension_numbers = #tpu.dot_dimension_numbers<[1], [0], [0], [1], [0, 0, 1, 1], [], []>} : vector<16x768xbf16>, vector<768x2304xbf16>, vector<16x2304xf32> -> vector<16x2304xf32>
      %c0_13 = arith.constant 0 : index
      %c0_14 = arith.constant 0 : index
      %c0_15 = arith.constant 0 : index
      %24 = vector.load %arg7[%c0_13, %c0_14, %c0_15] : memref<1x1x2304xf32, #tpu.memory_space<vmem>>, vector<1x1x2304xf32>
      %25 = vector.shape_cast %24 : vector<1x1x2304xf32> to vector<1x2304xf32>
      %26 = vector.broadcast %25 : vector<1x2304xf32> to vector<16x2304xf32>
      %27 = arith.addf %23, %26 : vector<16x2304xf32>
      %c0_16 = arith.constant 0 : index
      %c0_17 = arith.constant 0 : index
      %28 = vector.load %arg22[%c0_16, %c0_17] : memref<16x2304xf32, #tpu.memory_space<vmem>>, vector<16x2304xf32>
      tpu.vector_store %arg22[%c0_16, %c0_17], %27 {strides = array<i32>} : memref<16x2304xf32, #tpu.memory_space<vmem>>, vector<16x2304xf32>,
      %c0_18 = arith.constant 0 : index
      %c0_19 = arith.constant 0 : index
      %29 = vector.load %arg3[%c0_18, %c0_19] : memref<16x16xf32, #tpu.memory_space<vmem>>, vector<16x16xf32>
      %c0_20 = arith.constant 0 : index
      %c0_21 = arith.constant 0 : index
      %30 = vector.load %arg22[%c0_20, %c0_21] : memref<16x2304xf32, #tpu.memory_space<vmem>>, vector<16x64xf32>
      %c0_22 = arith.constant 0 : index
      %c768 = arith.constant 768 : index
      %31 = vector.load %arg22[%c0_22, %c768] : memref<16x2304xf32, #tpu.memory_space<vmem>>, vector<16x64xf32>
      %c0_23 = arith.constant 0 : index
      %c1536 = arith.constant 1536 : index
      %32 = vector.load %arg22[%c0_23, %c1536] : memref<16x2304xf32, #tpu.memory_space<vmem>>, vector<16x64xf32>
      %cst_24 = arith.constant dense<0.000000e+00> : vector<16x16xf32>
      %33 = tpu.matmul %30, %31, %cst_24 {dimension_numbers = #tpu.dot_dimension_numbers<[1], [1], [0], [0], [0, 0, 1, 0], [], []>} : vector<16x64xf32>, vector<16x64xf32>, vector<16x16xf32> -> vector<16x16xf32>
      %cst_25 = arith.constant 1.250000e-01 : f32
      %34 = vector.broadcast %cst_25 : f32 to vector<16x16xf32>
      %35 = arith.mulf %33, %34 : vector<16x16xf32>
      %36 = arith.addf %35, %29 : vector<16x16xf32>
      %cst_26 = arith.constant dense<0xFF800000> : vector<16xf32>
      %37 = vector.multi_reduction <maximumf>, %36, %cst_26 [1] : vector<16x16xf32> to vector<16xf32>
      %38 = vector.shape_cast %37 : vector<16xf32> to vector<16x1xf32>
      %39 = vector.broadcast %38 : vector<16x1xf32> to vector<16x16xf32>
      %40 = arith.subf %36, %39 : vector<16x16xf32>
      %41 = math.exp %40 : vector<16x16xf32>
      %cst_27 = arith.constant dense<0.000000e+00> : vector<16xf32>
      %42 = vector.multi_reduction <add>, %41, %cst_27 [1] : vector<16x16xf32> to vector<16xf32>
      %43 = vector.shape_cast %42 : vector<16xf32> to vector<16x1xf32>
      %44 = vector.broadcast %43 : vector<16x1xf32> to vector<16x16xf32>
      %45 = arith.divf %41, %44 : vector<16x16xf32>
      %cst_28 = arith.constant dense<0.000000e+00> : vector<16x64xf32>
      %46 = tpu.matmul %45, %32, %cst_28 {dimension_numbers = #tpu.dot_dimension_numbers<[1], [0], [0], [1], [0, 0, 1, 1], [], []>} : vector<16x16xf32>, vector<16x64xf32>, vector<16x64xf32> -> vector<16x64xf32>
      %c0_29 = arith.constant 0 : index
      %c0_30 = arith.constant 0 : index
      %47 = vector.load %arg23[%c0_29, %c0_30] : memref<16x768xf32, #tpu.memory_space<vmem>>, vector<16x64xf32>
      tpu.vector_store %arg23[%c0_29, %c0_30], %46 {strides = array<i32>} : memref<16x768xf32, #tpu.memory_space<vmem>>, vector<16x64xf32>,
      %c0_31 = arith.constant 0 : index
      %c64 = arith.constant 64 : index
      %48 = vector.load %arg22[%c0_31, %c64] : memref<16x2304xf32, #tpu.memory_space<vmem>>, vector<16x64xf32>
      %c0_32 = arith.constant 0 : index
      %c832 = arith.constant 832 : index
      %49 = vector.load %arg22[%c0_32, %c832] : memref<16x2304xf32, #tpu.memory_space<vmem>>, vector<16x64xf32>
      %c0_33 = arith.constant 0 : index
      %c1600 = arith.constant 1600 : index
      %50 = vector.load %arg22[%c0_33, %c1600] : memref<16x2304xf32, #tpu.memory_space<vmem>>, vector<16x64xf32>
      %cst_34 = arith.constant dense<0.000000e+00> : vector<16x16xf32>
      %51 = tpu.matmul %48, %49, %cst_34 {dimension_numbers = #tpu.dot_dimension_numbers<[1], [1], [0], [0], [0, 0, 1, 0], [], []>} : vector<16x64xf32>, vector<16x64xf32>, vector<16x16xf32> -> vector<16x16xf32>
      %cst_35 = arith.constant 1.250000e-01 : f32
      %52 = vector.broadcast %cst_35 : f32 to vector<16x16xf32>
      %53 = arith.mulf %51, %52 : vector<16x16xf32>
      %54 = arith.addf %53, %29 : vector<16x16xf32>
      %cst_36 = arith.constant dense<0xFF800000> : vector<16xf32>
      %55 = vector.multi_reduction <maximumf>, %54, %cst_36 [1] : vector<16x16xf32> to vector<16xf32>
      %56 = vector.shape_cast %55 : vector<16xf32> to vector<16x1xf32>
      %57 = vector.broadcast %56 : vector<16x1xf32> to vector<16x16xf32>
      %58 = arith.subf %54, %57 : vector<16x16xf32>
      %59 = math.exp %58 : vector<16x16xf32>
      %cst_37 = arith.constant dense<0.000000e+00> : vector<16xf32>
      %60 = vector.multi_reduction <add>, %59, %cst_37 [1] : vector<16x16xf32> to vector<16xf32>
      %61 = vector.shape_cast %60 : vector<16xf32> to vector<16x1xf32>
      %62 = vector.broadcast %61 : vector<16x1xf32> to vector<16x16xf32>
      %63 = arith.divf %59, %62 : vector<16x16xf32>
      %cst_38 = arith.constant dense<0.000000e+00> : vector<16x64xf32>
      %64 = tpu.matmul %63, %50, %cst_38 {dimension_numbers = #tpu.dot_dimension_numbers<[1], [0], [0], [1], [0, 0, 1, 1], [], []>} : vector<16x16xf32>, vector<16x64xf32>, vector<16x64xf32> -> vector<16x64xf32>
      %c0_39 = arith.constant 0 : index
      %c64_40 = arith.constant 64 : index
      %65 = vector.load %arg23[%c0_39, %c64_40] : memref<16x768xf32, #tpu.memory_space<vmem>>, vector<16x64xf32>
      tpu.vector_store %arg23[%c0_39, %c64_40], %64 {strides = array<i32>} : memref<16x768xf32, #tpu.memory_space<vmem>>, vector<16x64xf32>,
      %c0_41 = arith.constant 0 : index
      %c128 = arith.constant 128 : index
      %66 = vector.load %arg22[%c0_41, %c128] : memref<16x2304xf32, #tpu.memory_space<vmem>>, vector<16x64xf32>
      %c0_42 = arith.constant 0 : index
      %c896 = arith.constant 896 : index
      %67 = vector.load %arg22[%c0_42, %c896] : memref<16x2304xf32, #tpu.memory_space<vmem>>, vector<16x64xf32>
      %c0_43 = arith.constant 0 : index
      %c1664 = arith.constant 1664 : index
      %68 = vector.load %arg22[%c0_43, %c1664] : memref<16x2304xf32, #tpu.memory_space<vmem>>, vector<16x64xf32>
      %cst_44 = arith.constant dense<0.000000e+00> : vector<16x16xf32>
      %69 = tpu.matmul %66, %67, %cst_44 {dimension_numbers = #tpu.dot_dimension_numbers<[1], [1], [0], [0], [0, 0, 1, 0], [], []>} : vector<16x64xf32>, vector<16x64xf32>, vector<16x16xf32> -> vector<16x16xf32>
      %cst_45 = arith.constant 1.250000e-01 : f32
      %70 = vector.broadcast %cst_45 : f32 to vector<16x16xf32>
      %71 = arith.mulf %69, %70 : vector<16x16xf32>
      %72 = arith.addf %71, %29 : vector<16x16xf32>
      %cst_46 = arith.constant dense<0xFF800000> : vector<16xf32>
      %73 = vector.multi_reduction <maximumf>, %72, %cst_46 [1] : vector<16x16xf32> to vector<16xf32>
      %74 = vector.shape_cast %73 : vector<16xf32> to vector<16x1xf32>
      %75 = vector.broadcast %74 : vector<16x1xf32> to vector<16x16xf32>
      %76 = arith.subf %72, %75 : vector<16x16xf32>
      %77 = math.exp %76 : vector<16x16xf32>
      %cst_47 = arith.constant dense<0.000000e+00> : vector<16xf32>
      %78 = vector.multi_reduction <add>, %77, %cst_47 [1] : vector<16x16xf32> to vector<16xf32>
      %79 = vector.shape_cast %78 : vector<16xf32> to vector<16x1xf32>
      %80 = vector.broadcast %79 : vector<16x1xf32> to vector<16x16xf32>
      %81 = arith.divf %77, %80 : vector<16x16xf32>
      %cst_48 = arith.constant dense<0.000000e+00> : vector<16x64xf32>
      %82 = tpu.matmul %81, %68, %cst_48 {dimension_numbers = #tpu.dot_dimension_numbers<[1], [0], [0], [1], [0, 0, 1, 1], [], []>} : vector<16x16xf32>, vector<16x64xf32>, vector<16x64xf32> -> vector<16x64xf32>
      %c0_49 = arith.constant 0 : index
      %c128_50 = arith.constant 128 : index
      %83 = vector.load %arg23[%c0_49, %c128_50] : memref<16x768xf32, #tpu.memory_space<vmem>>, vector<16x64xf32>
      tpu.vector_store %arg23[%c0_49, %c128_50], %82 {strides = array<i32>} : memref<16x768xf32, #tpu.memory_space<vmem>>, vector<16x64xf32>,
      %c0_51 = arith.constant 0 : index
      %c192 = arith.constant 192 : index
      %84 = vector.load %arg22[%c0_51, %c192] : memref<16x2304xf32, #tpu.memory_space<vmem>>, vector<16x64xf32>
      %c0_52 = arith.constant 0 : index
      %c960 = arith.constant 960 : index
      %85 = vector.load %arg22[%c0_52, %c960] : memref<16x2304xf32, #tpu.memory_space<vmem>>, vector<16x64xf32>
      %c0_53 = arith.constant 0 : index
      %c1728 = arith.constant 1728 : index
      %86 = vector.load %arg22[%c0_53, %c1728] : memref<16x2304xf32, #tpu.memory_space<vmem>>, vector<16x64xf32>
      %cst_54 = arith.constant dense<0.000000e+00> : vector<16x16xf32>
      %87 = tpu.matmul %84, %85, %cst_54 {dimension_numbers = #tpu.dot_dimension_numbers<[1], [1], [0], [0], [0, 0, 1, 0], [], []>} : vector<16x64xf32>, vector<16x64xf32>, vector<16x16xf32> -> vector<16x16xf32>
      %cst_55 = arith.constant 1.250000e-01 : f32
      %88 = vector.broadcast %cst_55 : f32 to vector<16x16xf32>
      %89 = arith.mulf %87, %88 : vector<16x16xf32>
      %90 = arith.addf %89, %29 : vector<16x16xf32>
      %cst_56 = arith.constant dense<0xFF800000> : vector<16xf32>
      %91 = vector.multi_reduction <maximumf>, %90, %cst_56 [1] : vector<16x16xf32> to vector<16xf32>
      %92 = vector.shape_cast %91 : vector<16xf32> to vector<16x1xf32>
      %93 = vector.broadcast %92 : vector<16x1xf32> to vector<16x16xf32>
      %94 = arith.subf %90, %93 : vector<16x16xf32>
      %95 = math.exp %94 : vector<16x16xf32>
      %cst_57 = arith.constant dense<0.000000e+00> : vector<16xf32>
      %96 = vector.multi_reduction <add>, %95, %cst_57 [1] : vector<16x16xf32> to vector<16xf32>
      %97 = vector.shape_cast %96 : vector<16xf32> to vector<16x1xf32>
      %98 = vector.broadcast %97 : vector<16x1xf32> to vector<16x16xf32>
      %99 = arith.divf %95, %98 : vector<16x16xf32>
      %cst_58 = arith.constant dense<0.000000e+00> : vector<16x64xf32>
      %100 = tpu.matmul %99, %86, %cst_58 {dimension_numbers = #tpu.dot_dimension_numbers<[1], [0], [0], [1], [0, 0, 1, 1], [], []>} : vector<16x16xf32>, vector<16x64xf32>, vector<16x64xf32> -> vector<16x64xf32>
      %c0_59 = arith.constant 0 : index
      %c192_60 = arith.constant 192 : index
      %101 = vector.load %arg23[%c0_59, %c192_60] : memref<16x768xf32, #tpu.memory_space<vmem>>, vector<16x64xf32>
      tpu.vector_store %arg23[%c0_59, %c192_60], %100 {strides = array<i32>} : memref<16x768xf32, #tpu.memory_space<vmem>>, vector<16x64xf32>,
      %c0_61 = arith.constant 0 : index
      %c256 = arith.constant 256 : index
      %102 = vector.load %arg22[%c0_61, %c256] : memref<16x2304xf32, #tpu.memory_space<vmem>>, vector<16x64xf32>
      %c0_62 = arith.constant 0 : index
      %c1024 = arith.constant 1024 : index
      %103 = vector.load %arg22[%c0_62, %c1024] : memref<16x2304xf32, #tpu.memory_space<vmem>>, vector<16x64xf32>
      %c0_63 = arith.constant 0 : index
      %c1792 = arith.constant 1792 : index
      %104 = vector.load %arg22[%c0_63, %c1792] : memref<16x2304xf32, #tpu.memory_space<vmem>>, vector<16x64xf32>
      %cst_64 = arith.constant dense<0.000000e+00> : vector<16x16xf32>
      %105 = tpu.matmul %102, %103, %cst_64 {dimension_numbers = #tpu.dot_dimension_numbers<[1], [1], [0], [0], [0, 0, 1, 0], [], []>} : vector<16x64xf32>, vector<16x64xf32>, vector<16x16xf32> -> vector<16x16xf32>
      %cst_65 = arith.constant 1.250000e-01 : f32
      %106 = vector.broadcast %cst_65 : f32 to vector<16x16xf32>
      %107 = arith.mulf %105, %106 : vector<16x16xf32>
      %108 = arith.addf %107, %29 : vector<16x16xf32>
      %cst_66 = arith.constant dense<0xFF800000> : vector<16xf32>
      %109 = vector.multi_reduction <maximumf>, %108, %cst_66 [1] : vector<16x16xf32> to vector<16xf32>
      %110 = vector.shape_cast %109 : vector<16xf32> to vector<16x1xf32>
      %111 = vector.broadcast %110 : vector<16x1xf32> to vector<16x16xf32>
      %112 = arith.subf %108, %111 : vector<16x16xf32>
      %113 = math.exp %112 : vector<16x16xf32>
      %cst_67 = arith.constant dense<0.000000e+00> : vector<16xf32>
      %114 = vector.multi_reduction <add>, %113, %cst_67 [1] : vector<16x16xf32> to vector<16xf32>
      %115 = vector.shape_cast %114 : vector<16xf32> to vector<16x1xf32>
      %116 = vector.broadcast %115 : vector<16x1xf32> to vector<16x16xf32>
      %117 = arith.divf %113, %116 : vector<16x16xf32>
      %cst_68 = arith.constant dense<0.000000e+00> : vector<16x64xf32>
      %118 = tpu.matmul %117, %104, %cst_68 {dimension_numbers = #tpu.dot_dimension_numbers<[1], [0], [0], [1], [0, 0, 1, 1], [], []>} : vector<16x16xf32>, vector<16x64xf32>, vector<16x64xf32> -> vector<16x64xf32>
      %c0_69 = arith.constant 0 : index
      %c256_70 = arith.constant 256 : index
      %119 = vector.load %arg23[%c0_69, %c256_70] : memref<16x768xf32, #tpu.memory_space<vmem>>, vector<16x64xf32>
      tpu.vector_store %arg23[%c0_69, %c256_70], %118 {strides = array<i32>} : memref<16x768xf32, #tpu.memory_space<vmem>>, vector<16x64xf32>,
      %c0_71 = arith.constant 0 : index
      %c320 = arith.constant 320 : index
      %120 = vector.load %arg22[%c0_71, %c320] : memref<16x2304xf32, #tpu.memory_space<vmem>>, vector<16x64xf32>
      %c0_72 = arith.constant 0 : index
      %c1088 = arith.constant 1088 : index
      %121 = vector.load %arg22[%c0_72, %c1088] : memref<16x2304xf32, #tpu.memory_space<vmem>>, vector<16x64xf32>
      %c0_73 = arith.constant 0 : index
      %c1856 = arith.constant 1856 : index
      %122 = vector.load %arg22[%c0_73, %c1856] : memref<16x2304xf32, #tpu.memory_space<vmem>>, vector<16x64xf32>
      %cst_74 = arith.constant dense<0.000000e+00> : vector<16x16xf32>
      %123 = tpu.matmul %120, %121, %cst_74 {dimension_numbers = #tpu.dot_dimension_numbers<[1], [1], [0], [0], [0, 0, 1, 0], [], []>} : vector<16x64xf32>, vector<16x64xf32>, vector<16x16xf32> -> vector<16x16xf32>
      %cst_75 = arith.constant 1.250000e-01 : f32
      %124 = vector.broadcast %cst_75 : f32 to vector<16x16xf32>
      %125 = arith.mulf %123, %124 : vector<16x16xf32>
      %126 = arith.addf %125, %29 : vector<16x16xf32>
      %cst_76 = arith.constant dense<0xFF800000> : vector<16xf32>
      %127 = vector.multi_reduction <maximumf>, %126, %cst_76 [1] : vector<16x16xf32> to vector<16xf32>
      %128 = vector.shape_cast %127 : vector<16xf32> to vector<16x1xf32>
      %129 = vector.broadcast %128 : vector<16x1xf32> to vector<16x16xf32>
      %130 = arith.subf %126, %129 : vector<16x16xf32>
      %131 = math.exp %130 : vector<16x16xf32>
      %cst_77 = arith.constant dense<0.000000e+00> : vector<16xf32>
      %132 = vector.multi_reduction <add>, %131, %cst_77 [1] : vector<16x16xf32> to vector<16xf32>
      %133 = vector.shape_cast %132 : vector<16xf32> to vector<16x1xf32>
      %134 = vector.broadcast %133 : vector<16x1xf32> to vector<16x16xf32>
      %135 = arith.divf %131, %134 : vector<16x16xf32>
      %cst_78 = arith.constant dense<0.000000e+00> : vector<16x64xf32>
      %136 = tpu.matmul %135, %122, %cst_78 {dimension_numbers = #tpu.dot_dimension_numbers<[1], [0], [0], [1], [0, 0, 1, 1], [], []>} : vector<16x16xf32>, vector<16x64xf32>, vector<16x64xf32> -> vector<16x64xf32>
      %c0_79 = arith.constant 0 : index
      %c320_80 = arith.constant 320 : index
      %137 = vector.load %arg23[%c0_79, %c320_80] : memref<16x768xf32, #tpu.memory_space<vmem>>, vector<16x64xf32>
      tpu.vector_store %arg23[%c0_79, %c320_80], %136 {strides = array<i32>} : memref<16x768xf32, #tpu.memory_space<vmem>>, vector<16x64xf32>,
      %c0_81 = arith.constant 0 : index
      %c384 = arith.constant 384 : index
      %138 = vector.load %arg22[%c0_81, %c384] : memref<16x2304xf32, #tpu.memory_space<vmem>>, vector<16x64xf32>
      %c0_82 = arith.constant 0 : index
      %c1152 = arith.constant 1152 : index
      %139 = vector.load %arg22[%c0_82, %c1152] : memref<16x2304xf32, #tpu.memory_space<vmem>>, vector<16x64xf32>
      %c0_83 = arith.constant 0 : index
      %c1920 = arith.constant 1920 : index
      %140 = vector.load %arg22[%c0_83, %c1920] : memref<16x2304xf32, #tpu.memory_space<vmem>>, vector<16x64xf32>
      %cst_84 = arith.constant dense<0.000000e+00> : vector<16x16xf32>
      %141 = tpu.matmul %138, %139, %cst_84 {dimension_numbers = #tpu.dot_dimension_numbers<[1], [1], [0], [0], [0, 0, 1, 0], [], []>} : vector<16x64xf32>, vector<16x64xf32>, vector<16x16xf32> -> vector<16x16xf32>
      %cst_85 = arith.constant 1.250000e-01 : f32
      %142 = vector.broadcast %cst_85 : f32 to vector<16x16xf32>
      %143 = arith.mulf %141, %142 : vector<16x16xf32>
      %144 = arith.addf %143, %29 : vector<16x16xf32>
      %cst_86 = arith.constant dense<0xFF800000> : vector<16xf32>
      %145 = vector.multi_reduction <maximumf>, %144, %cst_86 [1] : vector<16x16xf32> to vector<16xf32>
      %146 = vector.shape_cast %145 : vector<16xf32> to vector<16x1xf32>
      %147 = vector.broadcast %146 : vector<16x1xf32> to vector<16x16xf32>
      %148 = arith.subf %144, %147 : vector<16x16xf32>
      %149 = math.exp %148 : vector<16x16xf32>
      %cst_87 = arith.constant dense<0.000000e+00> : vector<16xf32>
      %150 = vector.multi_reduction <add>, %149, %cst_87 [1] : vector<16x16xf32> to vector<16xf32>
      %151 = vector.shape_cast %150 : vector<16xf32> to vector<16x1xf32>
      %152 = vector.broadcast %151 : vector<16x1xf32> to vector<16x16xf32>
      %153 = arith.divf %149, %152 : vector<16x16xf32>
      %cst_88 = arith.constant dense<0.000000e+00> : vector<16x64xf32>
      %154 = tpu.matmul %153, %140, %cst_88 {dimension_numbers = #tpu.dot_dimension_numbers<[1], [0], [0], [1], [0, 0, 1, 1], [], []>} : vector<16x16xf32>, vector<16x64xf32>, vector<16x64xf32> -> vector<16x64xf32>
      %c0_89 = arith.constant 0 : index
      %c384_90 = arith.constant 384 : index
      %155 = vector.load %arg23[%c0_89, %c384_90] : memref<16x768xf32, #tpu.memory_space<vmem>>, vector<16x64xf32>
      tpu.vector_store %arg23[%c0_89, %c384_90], %154 {strides = array<i32>} : memref<16x768xf32, #tpu.memory_space<vmem>>, vector<16x64xf32>,
      %c0_91 = arith.constant 0 : index
      %c448 = arith.constant 448 : index
      %156 = vector.load %arg22[%c0_91, %c448] : memref<16x2304xf32, #tpu.memory_space<vmem>>, vector<16x64xf32>
      %c0_92 = arith.constant 0 : index
      %c1216 = arith.constant 1216 : index
      %157 = vector.load %arg22[%c0_92, %c1216] : memref<16x2304xf32, #tpu.memory_space<vmem>>, vector<16x64xf32>
      %c0_93 = arith.constant 0 : index
      %c1984 = arith.constant 1984 : index
      %158 = vector.load %arg22[%c0_93, %c1984] : memref<16x2304xf32, #tpu.memory_space<vmem>>, vector<16x64xf32>
      %cst_94 = arith.constant dense<0.000000e+00> : vector<16x16xf32>
      %159 = tpu.matmul %156, %157, %cst_94 {dimension_numbers = #tpu.dot_dimension_numbers<[1], [1], [0], [0], [0, 0, 1, 0], [], []>} : vector<16x64xf32>, vector<16x64xf32>, vector<16x16xf32> -> vector<16x16xf32>
      %cst_95 = arith.constant 1.250000e-01 : f32
      %160 = vector.broadcast %cst_95 : f32 to vector<16x16xf32>
      %161 = arith.mulf %159, %160 : vector<16x16xf32>
      %162 = arith.addf %161, %29 : vector<16x16xf32>
      %cst_96 = arith.constant dense<0xFF800000> : vector<16xf32>
      %163 = vector.multi_reduction <maximumf>, %162, %cst_96 [1] : vector<16x16xf32> to vector<16xf32>
      %164 = vector.shape_cast %163 : vector<16xf32> to vector<16x1xf32>
      %165 = vector.broadcast %164 : vector<16x1xf32> to vector<16x16xf32>
      %166 = arith.subf %162, %165 : vector<16x16xf32>
      %167 = math.exp %166 : vector<16x16xf32>
      %cst_97 = arith.constant dense<0.000000e+00> : vector<16xf32>
      %168 = vector.multi_reduction <add>, %167, %cst_97 [1] : vector<16x16xf32> to vector<16xf32>
      %169 = vector.shape_cast %168 : vector<16xf32> to vector<16x1xf32>
      %170 = vector.broadcast %169 : vector<16x1xf32> to vector<16x16xf32>
      %171 = arith.divf %167, %170 : vector<16x16xf32>
      %cst_98 = arith.constant dense<0.000000e+00> : vector<16x64xf32>
      %172 = tpu.matmul %171, %158, %cst_98 {dimension_numbers = #tpu.dot_dimension_numbers<[1], [0], [0], [1], [0, 0, 1, 1], [], []>} : vector<16x16xf32>, vector<16x64xf32>, vector<16x64xf32> -> vector<16x64xf32>
      %c0_99 = arith.constant 0 : index
      %c448_100 = arith.constant 448 : index
      %173 = vector.load %arg23[%c0_99, %c448_100] : memref<16x768xf32, #tpu.memory_space<vmem>>, vector<16x64xf32>
      tpu.vector_store %arg23[%c0_99, %c448_100], %172 {strides = array<i32>} : memref<16x768xf32, #tpu.memory_space<vmem>>, vector<16x64xf32>,
      %c0_101 = arith.constant 0 : index
      %c512 = arith.constant 512 : index
      %174 = vector.load %arg22[%c0_101, %c512] : memref<16x2304xf32, #tpu.memory_space<vmem>>, vector<16x64xf32>
      %c0_102 = arith.constant 0 : index
      %c1280 = arith.constant 1280 : index
      %175 = vector.load %arg22[%c0_102, %c1280] : memref<16x2304xf32, #tpu.memory_space<vmem>>, vector<16x64xf32>
      %c0_103 = arith.constant 0 : index
      %c2048 = arith.constant 2048 : index
      %176 = vector.load %arg22[%c0_103, %c2048] : memref<16x2304xf32, #tpu.memory_space<vmem>>, vector<16x64xf32>
      %cst_104 = arith.constant dense<0.000000e+00> : vector<16x16xf32>
      %177 = tpu.matmul %174, %175, %cst_104 {dimension_numbers = #tpu.dot_dimension_numbers<[1], [1], [0], [0], [0, 0, 1, 0], [], []>} : vector<16x64xf32>, vector<16x64xf32>, vector<16x16xf32> -> vector<16x16xf32>
      %cst_105 = arith.constant 1.250000e-01 : f32
      %178 = vector.broadcast %cst_105 : f32 to vector<16x16xf32>
      %179 = arith.mulf %177, %178 : vector<16x16xf32>
      %180 = arith.addf %179, %29 : vector<16x16xf32>
      %cst_106 = arith.constant dense<0xFF800000> : vector<16xf32>
      %181 = vector.multi_reduction <maximumf>, %180, %cst_106 [1] : vector<16x16xf32> to vector<16xf32>
      %182 = vector.shape_cast %181 : vector<16xf32> to vector<16x1xf32>
      %183 = vector.broadcast %182 : vector<16x1xf32> to vector<16x16xf32>
      %184 = arith.subf %180, %183 : vector<16x16xf32>
      %185 = math.exp %184 : vector<16x16xf32>
      %cst_107 = arith.constant dense<0.000000e+00> : vector<16xf32>
      %186 = vector.multi_reduction <add>, %185, %cst_107 [1] : vector<16x16xf32> to vector<16xf32>
      %187 = vector.shape_cast %186 : vector<16xf32> to vector<16x1xf32>
      %188 = vector.broadcast %187 : vector<16x1xf32> to vector<16x16xf32>
      %189 = arith.divf %185, %188 : vector<16x16xf32>
      %cst_108 = arith.constant dense<0.000000e+00> : vector<16x64xf32>
      %190 = tpu.matmul %189, %176, %cst_108 {dimension_numbers = #tpu.dot_dimension_numbers<[1], [0], [0], [1], [0, 0, 1, 1], [], []>} : vector<16x16xf32>, vector<16x64xf32>, vector<16x64xf32> -> vector<16x64xf32>
      %c0_109 = arith.constant 0 : index
      %c512_110 = arith.constant 512 : index
      %191 = vector.load %arg23[%c0_109, %c512_110] : memref<16x768xf32, #tpu.memory_space<vmem>>, vector<16x64xf32>
      tpu.vector_store %arg23[%c0_109, %c512_110], %190 {strides = array<i32>} : memref<16x768xf32, #tpu.memory_space<vmem>>, vector<16x64xf32>,
      %c0_111 = arith.constant 0 : index
      %c576 = arith.constant 576 : index
      %192 = vector.load %arg22[%c0_111, %c576] : memref<16x2304xf32, #tpu.memory_space<vmem>>, vector<16x64xf32>
      %c0_112 = arith.constant 0 : index
      %c1344 = arith.constant 1344 : index
      %193 = vector.load %arg22[%c0_112, %c1344] : memref<16x2304xf32, #tpu.memory_space<vmem>>, vector<16x64xf32>
      %c0_113 = arith.constant 0 : index
      %c2112 = arith.constant 2112 : index
      %194 = vector.load %arg22[%c0_113, %c2112] : memref<16x2304xf32, #tpu.memory_space<vmem>>, vector<16x64xf32>
      %cst_114 = arith.constant dense<0.000000e+00> : vector<16x16xf32>
      %195 = tpu.matmul %192, %193, %cst_114 {dimension_numbers = #tpu.dot_dimension_numbers<[1], [1], [0], [0], [0, 0, 1, 0], [], []>} : vector<16x64xf32>, vector<16x64xf32>, vector<16x16xf32> -> vector<16x16xf32>
      %cst_115 = arith.constant 1.250000e-01 : f32
      %196 = vector.broadcast %cst_115 : f32 to vector<16x16xf32>
      %197 = arith.mulf %195, %196 : vector<16x16xf32>
      %198 = arith.addf %197, %29 : vector<16x16xf32>
      %cst_116 = arith.constant dense<0xFF800000> : vector<16xf32>
      %199 = vector.multi_reduction <maximumf>, %198, %cst_116 [1] : vector<16x16xf32> to vector<16xf32>
      %200 = vector.shape_cast %199 : vector<16xf32> to vector<16x1xf32>
      %201 = vector.broadcast %200 : vector<16x1xf32> to vector<16x16xf32>
      %202 = arith.subf %198, %201 : vector<16x16xf32>
      %203 = math.exp %202 : vector<16x16xf32>
      %cst_117 = arith.constant dense<0.000000e+00> : vector<16xf32>
      %204 = vector.multi_reduction <add>, %203, %cst_117 [1] : vector<16x16xf32> to vector<16xf32>
      %205 = vector.shape_cast %204 : vector<16xf32> to vector<16x1xf32>
      %206 = vector.broadcast %205 : vector<16x1xf32> to vector<16x16xf32>
      %207 = arith.divf %203, %206 : vector<16x16xf32>
      %cst_118 = arith.constant dense<0.000000e+00> : vector<16x64xf32>
      %208 = tpu.matmul %207, %194, %cst_118 {dimension_numbers = #tpu.dot_dimension_numbers<[1], [0], [0], [1], [0, 0, 1, 1], [], []>} : vector<16x16xf32>, vector<16x64xf32>, vector<16x64xf32> -> vector<16x64xf32>
      %c0_119 = arith.constant 0 : index
      %c576_120 = arith.constant 576 : index
      %209 = vector.load %arg23[%c0_119, %c576_120] : memref<16x768xf32, #tpu.memory_space<vmem>>, vector<16x64xf32>
      tpu.vector_store %arg23[%c0_119, %c576_120], %208 {strides = array<i32>} : memref<16x768xf32, #tpu.memory_space<vmem>>, vector<16x64xf32>,
      %c0_121 = arith.constant 0 : index
      %c640 = arith.constant 640 : index
      %210 = vector.load %arg22[%c0_121, %c640] : memref<16x2304xf32, #tpu.memory_space<vmem>>, vector<16x64xf32>
      %c0_122 = arith.constant 0 : index
      %c1408 = arith.constant 1408 : index
      %211 = vector.load %arg22[%c0_122, %c1408] : memref<16x2304xf32, #tpu.memory_space<vmem>>, vector<16x64xf32>
      %c0_123 = arith.constant 0 : index
      %c2176 = arith.constant 2176 : index
      %212 = vector.load %arg22[%c0_123, %c2176] : memref<16x2304xf32, #tpu.memory_space<vmem>>, vector<16x64xf32>
      %cst_124 = arith.constant dense<0.000000e+00> : vector<16x16xf32>
      %213 = tpu.matmul %210, %211, %cst_124 {dimension_numbers = #tpu.dot_dimension_numbers<[1], [1], [0], [0], [0, 0, 1, 0], [], []>} : vector<16x64xf32>, vector<16x64xf32>, vector<16x16xf32> -> vector<16x16xf32>
      %cst_125 = arith.constant 1.250000e-01 : f32
      %214 = vector.broadcast %cst_125 : f32 to vector<16x16xf32>
      %215 = arith.mulf %213, %214 : vector<16x16xf32>
      %216 = arith.addf %215, %29 : vector<16x16xf32>
      %cst_126 = arith.constant dense<0xFF800000> : vector<16xf32>
      %217 = vector.multi_reduction <maximumf>, %216, %cst_126 [1] : vector<16x16xf32> to vector<16xf32>
      %218 = vector.shape_cast %217 : vector<16xf32> to vector<16x1xf32>
      %219 = vector.broadcast %218 : vector<16x1xf32> to vector<16x16xf32>
      %220 = arith.subf %216, %219 : vector<16x16xf32>
      %221 = math.exp %220 : vector<16x16xf32>
      %cst_127 = arith.constant dense<0.000000e+00> : vector<16xf32>
      %222 = vector.multi_reduction <add>, %221, %cst_127 [1] : vector<16x16xf32> to vector<16xf32>
      %223 = vector.shape_cast %222 : vector<16xf32> to vector<16x1xf32>
      %224 = vector.broadcast %223 : vector<16x1xf32> to vector<16x16xf32>
      %225 = arith.divf %221, %224 : vector<16x16xf32>
      %cst_128 = arith.constant dense<0.000000e+00> : vector<16x64xf32>
      %226 = tpu.matmul %225, %212, %cst_128 {dimension_numbers = #tpu.dot_dimension_numbers<[1], [0], [0], [1], [0, 0, 1, 1], [], []>} : vector<16x16xf32>, vector<16x64xf32>, vector<16x64xf32> -> vector<16x64xf32>
      %c0_129 = arith.constant 0 : index
      %c640_130 = arith.constant 640 : index
      %227 = vector.load %arg23[%c0_129, %c640_130] : memref<16x768xf32, #tpu.memory_space<vmem>>, vector<16x64xf32>
      tpu.vector_store %arg23[%c0_129, %c640_130], %226 {strides = array<i32>} : memref<16x768xf32, #tpu.memory_space<vmem>>, vector<16x64xf32>,
      %c0_131 = arith.constant 0 : index
      %c704 = arith.constant 704 : index
      %228 = vector.load %arg22[%c0_131, %c704] : memref<16x2304xf32, #tpu.memory_space<vmem>>, vector<16x64xf32>
      %c0_132 = arith.constant 0 : index
      %c1472 = arith.constant 1472 : index
      %229 = vector.load %arg22[%c0_132, %c1472] : memref<16x2304xf32, #tpu.memory_space<vmem>>, vector<16x64xf32>
      %c0_133 = arith.constant 0 : index
      %c2240 = arith.constant 2240 : index
      %230 = vector.load %arg22[%c0_133, %c2240] : memref<16x2304xf32, #tpu.memory_space<vmem>>, vector<16x64xf32>
      %cst_134 = arith.constant dense<0.000000e+00> : vector<16x16xf32>
      %231 = tpu.matmul %228, %229, %cst_134 {dimension_numbers = #tpu.dot_dimension_numbers<[1], [1], [0], [0], [0, 0, 1, 0], [], []>} : vector<16x64xf32>, vector<16x64xf32>, vector<16x16xf32> -> vector<16x16xf32>
      %cst_135 = arith.constant 1.250000e-01 : f32
      %232 = vector.broadcast %cst_135 : f32 to vector<16x16xf32>
      %233 = arith.mulf %231, %232 : vector<16x16xf32>
      %234 = arith.addf %233, %29 : vector<16x16xf32>
      %cst_136 = arith.constant dense<0xFF800000> : vector<16xf32>
      %235 = vector.multi_reduction <maximumf>, %234, %cst_136 [1] : vector<16x16xf32> to vector<16xf32>
      %236 = vector.shape_cast %235 : vector<16xf32> to vector<16x1xf32>
      %237 = vector.broadcast %236 : vector<16x1xf32> to vector<16x16xf32>
      %238 = arith.subf %234, %237 : vector<16x16xf32>
      %239 = math.exp %238 : vector<16x16xf32>
      %cst_137 = arith.constant dense<0.000000e+00> : vector<16xf32>
      %240 = vector.multi_reduction <add>, %239, %cst_137 [1] : vector<16x16xf32> to vector<16xf32>
      %241 = vector.shape_cast %240 : vector<16xf32> to vector<16x1xf32>
      %242 = vector.broadcast %241 : vector<16x1xf32> to vector<16x16xf32>
      %243 = arith.divf %239, %242 : vector<16x16xf32>
      %cst_138 = arith.constant dense<0.000000e+00> : vector<16x64xf32>
      %244 = tpu.matmul %243, %230, %cst_138 {dimension_numbers = #tpu.dot_dimension_numbers<[1], [0], [0], [1], [0, 0, 1, 1], [], []>} : vector<16x16xf32>, vector<16x64xf32>, vector<16x64xf32> -> vector<16x64xf32>
      %c0_139 = arith.constant 0 : index
      %c704_140 = arith.constant 704 : index
      %245 = vector.load %arg23[%c0_139, %c704_140] : memref<16x768xf32, #tpu.memory_space<vmem>>, vector<16x64xf32>
      tpu.vector_store %arg23[%c0_139, %c704_140], %244 {strides = array<i32>} : memref<16x768xf32, #tpu.memory_space<vmem>>, vector<16x64xf32>,
      %c0_141 = arith.constant 0 : index
      %c0_142 = arith.constant 0 : index
      %246 = vector.load %arg23[%c0_141, %c0_142] : memref<16x768xf32, #tpu.memory_space<vmem>>, vector<16x768xf32>
      %247 = arith.truncf %246 : vector<16x768xf32> to vector<16x768xbf16>
      %c0_143 = arith.constant 0 : index
      %c0_144 = arith.constant 0 : index
      %c0_145 = arith.constant 0 : index
      %248 = vector.load %arg8[%c0_143, %c0_144, %c0_145] : memref<1x768x768xbf16, #tpu.memory_space<vmem>>, vector<1x768x768xbf16>
      %249 = vector.shape_cast %248 : vector<1x768x768xbf16> to vector<768x768xbf16>
      %cst_146 = arith.constant dense<0.000000e+00> : vector<16x768xf32>
      %250 = tpu.matmul %247, %249, %cst_146 {dimension_numbers = #tpu.dot_dimension_numbers<[1], [0], [0], [1], [0, 0, 1, 1], [], []>} : vector<16x768xbf16>, vector<768x768xbf16>, vector<16x768xf32> -> vector<16x768xf32>
      %c0_147 = arith.constant 0 : index
      %c0_148 = arith.constant 0 : index
      %c0_149 = arith.constant 0 : index
      %251 = vector.load %arg9[%c0_147, %c0_148, %c0_149] : memref<1x1x768xf32, #tpu.memory_space<vmem>>, vector<1x1x768xf32>
      %252 = vector.shape_cast %251 : vector<1x1x768xf32> to vector<1x768xf32>
      %253 = vector.broadcast %252 : vector<1x768xf32> to vector<16x768xf32>
      %254 = arith.addf %250, %253 : vector<16x768xf32>
      %255 = arith.addf %19, %254 : vector<16x768xf32>
      %c0_150 = arith.constant 0 : index
      %c0_151 = arith.constant 0 : index
      %c0_152 = arith.constant 0 : index
      %256 = vector.load %arg10[%c0_150, %c0_151, %c0_152] : memref<1x1x768xf32, #tpu.memory_space<vmem>>, vector<1x1x768xf32>
      %257 = vector.shape_cast %256 : vector<1x1x768xf32> to vector<1x768xf32>
      %c0_153 = arith.constant 0 : index
      %c0_154 = arith.constant 0 : index
      %c0_155 = arith.constant 0 : index
      %258 = vector.load %arg11[%c0_153, %c0_154, %c0_155] : memref<1x1x768xf32, #tpu.memory_space<vmem>>, vector<1x1x768xf32>
      %259 = vector.shape_cast %258 : vector<1x1x768xf32> to vector<1x768xf32>
      %cst_156 = arith.constant dense<0.000000e+00> : vector<16xf32>
      %260 = vector.multi_reduction <add>, %255, %cst_156 [1] : vector<16x768xf32> to vector<16xf32>
      %261 = vector.shape_cast %260 : vector<16xf32> to vector<16x1xf32>
      %cst_157 = arith.constant 7.680000e+02 : f32
      %262 = vector.broadcast %cst_157 : f32 to vector<16x1xf32>
      %263 = arith.divf %261, %262 : vector<16x1xf32>
      %264 = vector.broadcast %263 : vector<16x1xf32> to vector<16x768xf32>
      %265 = arith.subf %255, %264 : vector<16x768xf32>
      %266 = arith.mulf %265, %265 : vector<16x768xf32>
      %cst_158 = arith.constant dense<0.000000e+00> : vector<16xf32>
      %267 = vector.multi_reduction <add>, %266, %cst_158 [1] : vector<16x768xf32> to vector<16xf32>
      %268 = vector.shape_cast %267 : vector<16xf32> to vector<16x1xf32>
      %cst_159 = arith.constant 7.680000e+02 : f32
      %269 = vector.broadcast %cst_159 : f32 to vector<16x1xf32>
      %270 = arith.divf %268, %269 : vector<16x1xf32>
      %cst_160 = arith.constant 9.99999996E-13 : f32
      %271 = vector.broadcast %cst_160 : f32 to vector<16x1xf32>
      %272 = arith.addf %270, %271 : vector<16x1xf32>
      %273 = math.rsqrt %272 : vector<16x1xf32>
      %274 = vector.broadcast %273 : vector<16x1xf32> to vector<16x768xf32>
      %275 = arith.mulf %265, %274 : vector<16x768xf32>
      %276 = vector.broadcast %257 : vector<1x768xf32> to vector<16x768xf32>
      %277 = arith.mulf %275, %276 : vector<16x768xf32>
      %278 = vector.broadcast %259 : vector<1x768xf32> to vector<16x768xf32>
      %279 = arith.addf %277, %278 : vector<16x768xf32>
      %c0_161 = arith.constant 0 : index
      %c0_162 = arith.constant 0 : index
      %280 = vector.load %arg21[%c0_161, %c0_162] : memref<16x768xf32, #tpu.memory_space<vmem>>, vector<16x768xf32>
      tpu.vector_store %arg21[%c0_161, %c0_162], %279 {strides = array<i32>} : memref<16x768xf32, #tpu.memory_space<vmem>>, vector<16x768xf32>,
      %cst_163 = arith.constant 0.000000e+00 : f32
      %281 = vector.broadcast %cst_163 : f32 to vector<16x768xf32>
      %c0_164 = arith.constant 0 : index
      %c0_165 = arith.constant 0 : index
      %282 = vector.load %arg24[%c0_164, %c0_165] : memref<16x768xf32, #tpu.memory_space<vmem>>, vector<16x768xf32>
      tpu.vector_store %arg24[%c0_164, %c0_165], %281 {strides = array<i32>} : memref<16x768xf32, #tpu.memory_space<vmem>>, vector<16x768xf32>,
    } else {
    }
    %c0_i32_4 = arith.constant 0 : i32
    %8 = arith.cmpi sgt, %arg1, %c0_i32_4 : i32
    %9 = arith.extui %8 : i1 to i32
    %c0_i32_5 = arith.constant 0 : i32
    %10 = arith.cmpi ne, %9, %c0_i32_5 : i32
    scf.if %10 {
      %c0 = arith.constant 0 : index
      %c0_9 = arith.constant 0 : index
      %19 = vector.load %arg21[%c0, %c0_9] : memref<16x768xf32, #tpu.memory_space<vmem>>, vector<16x768xf32>
      %20 = arith.truncf %19 : vector<16x768xf32> to vector<16x768xbf16>
      %c0_10 = arith.constant 0 : index
      %c0_11 = arith.constant 0 : index
      %c0_12 = arith.constant 0 : index
      %c0_13 = arith.constant 0 : index
      %21 = vector.load %arg12[%c0_10, %c0_11, %c0_12, %c0_13] : memref<1x1x768x768xbf16, #tpu.memory_space<vmem>>, vector<1x1x768x768xbf16>
      %22 = vector.shape_cast %21 : vector<1x1x768x768xbf16> to vector<768x768xbf16>
      %cst = arith.constant dense<0.000000e+00> : vector<16x768xf32>
      %23 = tpu.matmul %20, %22, %cst {dimension_numbers = #tpu.dot_dimension_numbers<[1], [0], [0], [1], [0, 0, 1, 1], [], []>} : vector<16x768xbf16>, vector<768x768xbf16>, vector<16x768xf32> -> vector<16x768xf32>
      %c0_14 = arith.constant 0 : index
      %c0_15 = arith.constant 0 : index
      %c0_16 = arith.constant 0 : index
      %c0_17 = arith.constant 0 : index
      %24 = vector.load %arg13[%c0_14, %c0_15, %c0_16, %c0_17] : memref<1x1x1x768xf32, #tpu.memory_space<vmem>>, vector<1x1x1x768xf32>
      %25 = vector.shape_cast %24 : vector<1x1x1x768xf32> to vector<1x768xf32>
      %26 = vector.broadcast %25 : vector<1x768xf32> to vector<16x768xf32>
      %27 = arith.addf %23, %26 : vector<16x768xf32>
      %28 = arith.mulf %27, %27 : vector<16x768xf32>
      %29 = arith.mulf %27, %28 : vector<16x768xf32>
      %cst_18 = arith.constant 4.471500e-02 : f32
      %30 = vector.broadcast %cst_18 : f32 to vector<16x768xf32>
      %31 = arith.mulf %30, %29 : vector<16x768xf32>
      %32 = arith.addf %27, %31 : vector<16x768xf32>
      %cst_19 = arith.constant 0.797884583 : f32
      %33 = vector.broadcast %cst_19 : f32 to vector<16x768xf32>
      %34 = arith.mulf %33, %32 : vector<16x768xf32>
      %35 = math.tanh %34 : vector<16x768xf32>
      %cst_20 = arith.constant 1.000000e+00 : f32
      %36 = vector.broadcast %cst_20 : f32 to vector<16x768xf32>
      %37 = arith.addf %36, %35 : vector<16x768xf32>
      %cst_21 = arith.constant 5.000000e-01 : f32
      %38 = vector.broadcast %cst_21 : f32 to vector<16x768xf32>
      %39 = arith.mulf %38, %37 : vector<16x768xf32>
      %40 = arith.mulf %27, %39 : vector<16x768xf32>
      %c0_22 = arith.constant 0 : index
      %c0_23 = arith.constant 0 : index
      %41 = vector.load %arg24[%c0_22, %c0_23] : memref<16x768xf32, #tpu.memory_space<vmem>>, vector<16x768xf32>
      %42 = arith.truncf %40 : vector<16x768xf32> to vector<16x768xbf16>
      %c0_24 = arith.constant 0 : index
      %c0_25 = arith.constant 0 : index
      %c0_26 = arith.constant 0 : index
      %c0_27 = arith.constant 0 : index
      %43 = vector.load %arg14[%c0_24, %c0_25, %c0_26, %c0_27] : memref<1x1x768x768xbf16, #tpu.memory_space<vmem>>, vector<1x1x768x768xbf16>
      %44 = vector.shape_cast %43 : vector<1x1x768x768xbf16> to vector<768x768xbf16>
      %cst_28 = arith.constant dense<0.000000e+00> : vector<16x768xf32>
      %45 = tpu.matmul %42, %44, %cst_28 {dimension_numbers = #tpu.dot_dimension_numbers<[1], [0], [0], [1], [0, 0, 1, 1], [], []>} : vector<16x768xbf16>, vector<768x768xbf16>, vector<16x768xf32> -> vector<16x768xf32>
      %46 = arith.addf %41, %45 : vector<16x768xf32>
      %c0_29 = arith.constant 0 : index
      %c0_30 = arith.constant 0 : index
      %47 = vector.load %arg24[%c0_29, %c0_30] : memref<16x768xf32, #tpu.memory_space<vmem>>, vector<16x768xf32>
      tpu.vector_store %arg24[%c0_29, %c0_30], %46 {strides = array<i32>} : memref<16x768xf32, #tpu.memory_space<vmem>>, vector<16x768xf32>,
    } else {
    }
    %c4_i32 = arith.constant 4 : i32
    %11 = arith.cmpi eq, %arg1, %c4_i32 : i32
    %12 = arith.extui %11 : i1 to i32
    %c0_i32_6 = arith.constant 0 : i32
    %13 = arith.cmpi ne, %12, %c0_i32_6 : i32
    scf.if %13 {
      %c0 = arith.constant 0 : index
      %c0_9 = arith.constant 0 : index
      %19 = vector.load %arg21[%c0, %c0_9] : memref<16x768xf32, #tpu.memory_space<vmem>>, vector<16x768xf32>
      %c0_10 = arith.constant 0 : index
      %c0_11 = arith.constant 0 : index
      %20 = vector.load %arg24[%c0_10, %c0_11] : memref<16x768xf32, #tpu.memory_space<vmem>>, vector<16x768xf32>
      %21 = arith.addf %19, %20 : vector<16x768xf32>
      %c0_12 = arith.constant 0 : index
      %c0_13 = arith.constant 0 : index
      %c0_14 = arith.constant 0 : index
      %22 = vector.load %arg15[%c0_12, %c0_13, %c0_14] : memref<1x1x768xf32, #tpu.memory_space<vmem>>, vector<1x1x768xf32>
      %23 = vector.shape_cast %22 : vector<1x1x768xf32> to vector<1x768xf32>
      %24 = vector.broadcast %23 : vector<1x768xf32> to vector<16x768xf32>
      %25 = arith.addf %21, %24 : vector<16x768xf32>
      %c0_15 = arith.constant 0 : index
      %c0_16 = arith.constant 0 : index
      %c0_17 = arith.constant 0 : index
      %26 = vector.load %arg16[%c0_15, %c0_16, %c0_17] : memref<1x1x768xf32, #tpu.memory_space<vmem>>, vector<1x1x768xf32>
      %27 = vector.shape_cast %26 : vector<1x1x768xf32> to vector<1x768xf32>
      %c0_18 = arith.constant 0 : index
      %c0_19 = arith.constant 0 : index
      %c0_20 = arith.constant 0 : index
      %28 = vector.load %arg17[%c0_18, %c0_19, %c0_20] : memref<1x1x768xf32, #tpu.memory_space<vmem>>, vector<1x1x768xf32>
      %29 = vector.shape_cast %28 : vector<1x1x768xf32> to vector<1x768xf32>
      %cst = arith.constant dense<0.000000e+00> : vector<16xf32>
      %30 = vector.multi_reduction <add>, %25, %cst [1] : vector<16x768xf32> to vector<16xf32>
      %31 = vector.shape_cast %30 : vector<16xf32> to vector<16x1xf32>
      %cst_21 = arith.constant 7.680000e+02 : f32
      %32 = vector.broadcast %cst_21 : f32 to vector<16x1xf32>
      %33 = arith.divf %31, %32 : vector<16x1xf32>
      %34 = vector.broadcast %33 : vector<16x1xf32> to vector<16x768xf32>
      %35 = arith.subf %25, %34 : vector<16x768xf32>
      %36 = arith.mulf %35, %35 : vector<16x768xf32>
      %cst_22 = arith.constant dense<0.000000e+00> : vector<16xf32>
      %37 = vector.multi_reduction <add>, %36, %cst_22 [1] : vector<16x768xf32> to vector<16xf32>
      %38 = vector.shape_cast %37 : vector<16xf32> to vector<16x1xf32>
      %cst_23 = arith.constant 7.680000e+02 : f32
      %39 = vector.broadcast %cst_23 : f32 to vector<16x1xf32>
      %40 = arith.divf %38, %39 : vector<16x1xf32>
      %cst_24 = arith.constant 9.99999996E-13 : f32
      %41 = vector.broadcast %cst_24 : f32 to vector<16x1xf32>
      %42 = arith.addf %40, %41 : vector<16x1xf32>
      %43 = math.rsqrt %42 : vector<16x1xf32>
      %44 = vector.broadcast %43 : vector<16x1xf32> to vector<16x768xf32>
      %45 = arith.mulf %35, %44 : vector<16x768xf32>
      %46 = vector.broadcast %27 : vector<1x768xf32> to vector<16x768xf32>
      %47 = arith.mulf %45, %46 : vector<16x768xf32>
      %48 = vector.broadcast %29 : vector<1x768xf32> to vector<16x768xf32>
      %49 = arith.addf %47, %48 : vector<16x768xf32>
      %c0_25 = arith.constant 0 : index
      %c0_26 = arith.constant 0 : index
      %50 = vector.load %arg21[%c0_25, %c0_26] : memref<16x768xf32, #tpu.memory_space<vmem>>, vector<16x768xf32>
      tpu.vector_store %arg21[%c0_25, %c0_26], %49 {strides = array<i32>} : memref<16x768xf32, #tpu.memory_space<vmem>>, vector<16x768xf32>,
    } else {
    }
    %c4_i32_7 = arith.constant 4 : i32
    %14 = arith.cmpi eq, %arg1, %c4_i32_7 : i32
    %c5_i32 = arith.constant 5 : i32
    %15 = arith.cmpi eq, %arg0, %c5_i32 : i32
    %16 = arith.andi %14, %15 : i1
    %17 = arith.extui %16 : i1 to i32
    %c0_i32_8 = arith.constant 0 : i32
    %18 = arith.cmpi ne, %17, %c0_i32_8 : i32
    scf.if %18 {
      %c0 = arith.constant 0 : index
      %c0_9 = arith.constant 0 : index
      %19 = vector.load %arg21[%c0, %c0_9] : memref<16x768xf32, #tpu.memory_space<vmem>>, vector<16x768xf32>
      %c0_10 = arith.constant 0 : index
      %c0_11 = arith.constant 0 : index
      %20 = vector.load %arg18[%c0_10, %c0_11] : memref<1x768xf32, #tpu.memory_space<vmem>>, vector<1x768xf32>
      %21 = vector.broadcast %20 : vector<1x768xf32> to vector<16x768xf32>
      %22 = arith.mulf %19, %21 : vector<16x768xf32>
      %cst = arith.constant dense<0.000000e+00> : vector<16xf32>
      %23 = vector.multi_reduction <add>, %22, %cst [1] : vector<16x768xf32> to vector<16xf32>
      %24 = vector.shape_cast %23 : vector<16xf32> to vector<16x1xf32>
      %c0_12 = arith.constant 0 : index
      %c0_13 = arith.constant 0 : index
      %25 = vector.load %arg19[%c0_12, %c0_13] : memref<1x1xf32, #tpu.memory_space<vmem>>, vector<1x1xf32>
      %26 = vector.broadcast %25 : vector<1x1xf32> to vector<16x1xf32>
      %27 = arith.addf %24, %26 : vector<16x1xf32>
      %c0_14 = arith.constant 0 : index
      %c0_15 = arith.constant 0 : index
      %28 = vector.load %arg20[%c0_14, %c0_15] : memref<16x1xf32, #tpu.memory_space<vmem>>, vector<16x1xf32>
      tpu.vector_store %arg20[%c0_14, %c0_15], %27 {strides = array<i32>} : memref<16x1xf32, #tpu.memory_space<vmem>>, vector<16x1xf32>,
    } else {
    }
    return
  }
  func.func @transform_0(%arg0: i32, %arg1: i32) -> (i32, i32) {
    %c0_i32 = arith.constant 0 : i32
    %c0_i32_0 = arith.constant 0 : i32
    %c0_i32_1 = arith.constant 0 : i32
    return %c0_i32, %c0_i32_0 : i32, i32
  }
  func.func @transform_1(%arg0: i32, %arg1: i32) -> (i32, i32) {
    %c0_i32 = arith.constant 0 : i32
    %c0_i32_0 = arith.constant 0 : i32
    %c0_i32_1 = arith.constant 0 : i32
    return %c0_i32, %c0_i32_0 : i32, i32
  }
  func.func @transform_2(%arg0: i32, %arg1: i32) -> (i32, i32) {
    %c0_i32 = arith.constant 0 : i32
    %c0_i32_0 = arith.constant 0 : i32
    %c0_i32_1 = arith.constant 0 : i32
    return %c0_i32, %c0_i32_0 : i32, i32
  }
  func.func @transform_3(%arg0: i32, %arg1: i32) -> (i32, i32) {
    %c0_i32 = arith.constant 0 : i32
    %c0_i32_0 = arith.constant 0 : i32
    %c0_i32_1 = arith.constant 0 : i32
    return %c0_i32, %c0_i32_0 : i32, i32
  }
  func.func @transform_4(%arg0: i32, %arg1: i32) -> (i32, i32, i32) {
    %c0_i32 = arith.constant 0 : i32
    %c0_i32_0 = arith.constant 0 : i32
    %c0_i32_1 = arith.constant 0 : i32
    return %arg0, %c0_i32, %c0_i32_0 : i32, i32, i32
  }
  func.func @transform_5(%arg0: i32, %arg1: i32) -> (i32, i32, i32) {
    %c0_i32 = arith.constant 0 : i32
    %c0_i32_0 = arith.constant 0 : i32
    %c0_i32_1 = arith.constant 0 : i32
    return %arg0, %c0_i32, %c0_i32_0 : i32, i32, i32
  }
  func.func @transform_6(%arg0: i32, %arg1: i32) -> (i32, i32, i32) {
    %c0_i32 = arith.constant 0 : i32
    %c0_i32_0 = arith.constant 0 : i32
    %c0_i32_1 = arith.constant 0 : i32
    return %arg0, %c0_i32, %c0_i32_0 : i32, i32, i32
  }
  func.func @transform_7(%arg0: i32, %arg1: i32) -> (i32, i32, i32) {
    %c0_i32 = arith.constant 0 : i32
    %c0_i32_0 = arith.constant 0 : i32
    %c0_i32_1 = arith.constant 0 : i32
    return %arg0, %c0_i32, %c0_i32_0 : i32, i32, i32
  }
  func.func @transform_8(%arg0: i32, %arg1: i32) -> (i32, i32, i32) {
    %c0_i32 = arith.constant 0 : i32
    %c0_i32_0 = arith.constant 0 : i32
    %c0_i32_1 = arith.constant 0 : i32
    return %arg0, %c0_i32, %c0_i32_0 : i32, i32, i32
  }
  func.func @transform_9(%arg0: i32, %arg1: i32) -> (i32, i32, i32) {
    %c0_i32 = arith.constant 0 : i32
    %c0_i32_0 = arith.constant 0 : i32
    %c0_i32_1 = arith.constant 0 : i32
    return %arg0, %c0_i32, %c0_i32_0 : i32, i32, i32
  }
  func.func @transform_10(%arg0: i32, %arg1: i32) -> (i32, i32, i32, i32) {
    %c1_i32 = arith.constant 1 : i32
    %0 = arith.subi %arg1, %c1_i32 : i32
    %c0_i32 = arith.constant 0 : i32
    %1 = arith.maxsi %0, %c0_i32 : i32
    %c0_i32_0 = arith.constant 0 : i32
    %c0_i32_1 = arith.constant 0 : i32
    %c0_i32_2 = arith.constant 0 : i32
    return %arg0, %1, %c0_i32_0, %c0_i32_1 : i32, i32, i32, i32
  }
  func.func @transform_11(%arg0: i32, %arg1: i32) -> (i32, i32, i32, i32) {
    %c1_i32 = arith.constant 1 : i32
    %0 = arith.subi %arg1, %c1_i32 : i32
    %c0_i32 = arith.constant 0 : i32
    %1 = arith.maxsi %0, %c0_i32 : i32
    %c0_i32_0 = arith.constant 0 : i32
    %c0_i32_1 = arith.constant 0 : i32
    %c0_i32_2 = arith.constant 0 : i32
    return %arg0, %1, %c0_i32_0, %c0_i32_1 : i32, i32, i32, i32
  }
  func.func @transform_12(%arg0: i32, %arg1: i32) -> (i32, i32, i32, i32) {
    %c1_i32 = arith.constant 1 : i32
    %0 = arith.subi %arg1, %c1_i32 : i32
    %c0_i32 = arith.constant 0 : i32
    %1 = arith.maxsi %0, %c0_i32 : i32
    %c0_i32_0 = arith.constant 0 : i32
    %c0_i32_1 = arith.constant 0 : i32
    %c0_i32_2 = arith.constant 0 : i32
    return %arg0, %1, %c0_i32_0, %c0_i32_1 : i32, i32, i32, i32
  }
  func.func @transform_13(%arg0: i32, %arg1: i32) -> (i32, i32, i32) {
    %c0_i32 = arith.constant 0 : i32
    %c0_i32_0 = arith.constant 0 : i32
    %c0_i32_1 = arith.constant 0 : i32
    return %arg0, %c0_i32, %c0_i32_0 : i32, i32, i32
  }
  func.func @transform_14(%arg0: i32, %arg1: i32) -> (i32, i32, i32) {
    %c0_i32 = arith.constant 0 : i32
    %c0_i32_0 = arith.constant 0 : i32
    %c0_i32_1 = arith.constant 0 : i32
    return %arg0, %c0_i32, %c0_i32_0 : i32, i32, i32
  }
  func.func @transform_15(%arg0: i32, %arg1: i32) -> (i32, i32, i32) {
    %c0_i32 = arith.constant 0 : i32
    %c0_i32_0 = arith.constant 0 : i32
    %c0_i32_1 = arith.constant 0 : i32
    return %arg0, %c0_i32, %c0_i32_0 : i32, i32, i32
  }
  func.func @transform_16(%arg0: i32, %arg1: i32) -> (i32, i32) {
    %c0_i32 = arith.constant 0 : i32
    %c0_i32_0 = arith.constant 0 : i32
    %c0_i32_1 = arith.constant 0 : i32
    return %c0_i32, %c0_i32_0 : i32, i32
  }
  func.func @transform_17(%arg0: i32, %arg1: i32) -> (i32, i32) {
    %c0_i32 = arith.constant 0 : i32
    %c0_i32_0 = arith.constant 0 : i32
    %c0_i32_1 = arith.constant 0 : i32
    return %c0_i32, %c0_i32_0 : i32, i32
  }
  func.func @transform_18(%arg0: i32, %arg1: i32) -> (i32, i32) {
    %c0_i32 = arith.constant 0 : i32
    %c0_i32_0 = arith.constant 0 : i32
    %c0_i32_1 = arith.constant 0 : i32
    return %c0_i32, %c0_i32_0 : i32, i32
  }
}

</mosaic_0001>

<bundles_post_ra>
// kernel: pos_model_forward.1
= control target key start
LH: loop header
LB: loop body
LE: loop exit
PB: predicated region body
PF: predicated region fallthrough
CT: control target
= control target key end

     0   :  { %s26703_s0 = inlined_call_operand.vmem [shape: f32[16,768], index: 0, kind: input, shape index: {}]   ;;  %s26704_s1 = inlined_call_operand.vmem [shape: f32[16,16], index: 1, kind: input, shape index: {}]   ;;  %s26705_s2 = inlined_call_operand.hbm [shape: f32[1,768], index: 2, kind: input, shape index: {}]   ;;  %s26706_s3 = inlined_call_operand.hbm [shape: f32[1,768], index: 3, kind: input, shape index: {}]   ;;  %s26707_s4 = inlined_call_operand.hbm [shape: bf16[6,768,2304], index: 4, kind: input, shape index: {}]   ;;  %s26708_s5 = inlined_call_operand.hbm [shape: f32[6,1,2304], index: 5, kind: input, shape index: {}]   ;;  %s26709_s6 = inlined_call_operand.hbm [shape: bf16[6,768,768], index: 6, kind: input, shape index: {}]   ;;  %s26710_s7 = inlined_call_operand.hbm [shape: f32[6,1,768], index: 7, kind: input, shape index: {}]   ;;  %s26711_s8 = inlined_call_operand.hbm [shape: f32[6,1,768], index: 8, kind: input, shape index: {}]   ;;  %s26712_s9 = inlined_call_operand.hbm [shape: f32[6,1,768], index: 9, kind: input, shape index: {}]   ;;  %s26713_s10 = inlined_call_operand.hbm [shape: bf16[6,4,768,768], index: 10, kind: input, shape index: {}]   ;;  %s26714_s11 = inlined_call_operand.hbm [shape: f32[6,4,1,768], index: 11, kind: input, shape index: {}]   ;;  %s26715_s12 = inlined_call_operand.hbm [shape: bf16[6,4,768,768], index: 12, kind: input, shape index: {}]   ;;  %s26716_s13 = inlined_call_operand.hbm [shape: f32[6,1,768], index: 13, kind: input, shape index: {}]   ;;  %s26717_s14 = inlined_call_operand.hbm [shape: f32[6,1,768], index: 14, kind: input, shape index: {}]   ;;  %s26718_s15 = inlined_call_operand.hbm [shape: f32[6,1,768], index: 15, kind: input, shape index: {}]   ;;  %s26719_s16 = inlined_call_operand.hbm [shape: f32[1,768], index: 16, kind: input, shape index: {}]   ;;  %s26720_s17 = inlined_call_operand.<no memory space> [shape: f32[1,1], index: 17, kind: input, shape index: {}]   ;;  %s26721_s18 = inlined_call_operand.vmem [shape: f32[16,1], index: 18, kind: output, shape index: {}]  }
   0x1   :  { %26753 = sst [smem:[#allocation45_spill]] %s26703_s0  ;;  %v23_v0 = vstv %s26720_s17 }
   0x2   :  { %26754 = sst [smem:[#allocation46_spill]] %s26704_s1  ;;  %24 = vst [vmem:[#allocation6] sm:$0x1] %v23_v0 }
   0x3   :  { %26755 = sst [smem:[#allocation47_spill]] %s26705_s2 }
   0x4   :  { %26756 = sst [smem:[#allocation48_spill]] %s26706_s3 }
   0x5   :  { %26757 = sst [smem:[#allocation49_spill]] %s26707_s4 }
   0x6   :  { %26758 = sst [smem:[#allocation50_spill]] %s26708_s5 }
   0x7   :  { %26759 = sst [smem:[#allocation51_spill]] %s26709_s6 }
   0x8   :  { %26760 = sst [smem:[#allocation52_spill]] %s26710_s7 }
   0x9   :  { %26761 = sst [smem:[#allocation53_spill]] %s26711_s8 }
   0xa   :  { %26762 = sst [smem:[#allocation54_spill]] %s26712_s9 }
   0xb   :  { %26763 = sst [smem:[#allocation55_spill]] %s26713_s10 }
   0xc   :  { %26764 = sst [smem:[#allocation56_spill]] %s26714_s11 }
   0xd   :  { %26765 = sst [smem:[#allocation57_spill]] %s26715_s12 }
   0xe   :  { %26766 = sst [smem:[#allocation58_spill]] %s26717_s14 }
   0xf   :  { %26767 = sst [smem:[#allocation59_spill]] %s26718_s15 }
  0x10   :  { %26768 = sst [smem:[#allocation60_spill]] %s26719_s16 }
  0x11   :  { %26769 = sst [smem:[#allocation61_spill]] %s26721_s18 }
  0x12   :  { %25 = vsyncpa [#allocation8], 0 }
  0x13   :  { %26 = vsyncpa [#allocation10], 0  ;;  %s23424_s29 = smov 0   ;;  %s23426_s30 = smov 0  }
  0x14   :  { %s23428_s0 = smov 0   ;;  %s23430_s19 = smov 0  }
  0x15   :  { %s23432_s1 = smov 0   ;;  %s23434_s20 = smov 0  }
  0x16   :  { %s23436_s21 = smov 0   ;;  %s23438_s22 = smov 0  }
  0x17   :  { %s23440_s17 = smov 0   ;;  %s23442_s2 = smov 0  }
  0x18   :  { %s23444_s23 = smov 0  }
  0x19 LB: > { %26770 = sst [smem:[#allocation30_spill]] %s23267_s30  ;;  %s26726_s24 = sadd.s32 4294967295, %s23303_s23   ;;  %s23303_s23 = sphi %s23444_s23, %s32_s23   ;;  %s23299_s2 = sphi %s23442_s2, %s26846_s2   ;;  %s23295_s17 = sphi %s23440_s17, %s26840_s17   ;;  %s23291_s22 = sphi %s23438_s22, %s26845_s22   ;;  %s23287_s21 = sphi %s23436_s21, %s26839_s21   ;;  %s23283_s20 = sphi %s23434_s20, %s26844_s20   ;;  %s23279_s1 = sphi %s23432_s1, %s26837_s1   ;;  %s23275_s19 = sphi %s23430_s19, %s26836_s19   ;;  %s23271_s0 = sphi %s23428_s0, %s26843_s0   ;;  %s23267_s30 = sphi %s23426_s30, %s26842_s30   ;;  %s23263_s29 = sphi %s23424_s29, %s26834_s29  }
  0x1a   : > { %26771 = sst [smem:[#allocation31_spill]] %s23279_s1  ;;  %s41_s25 = sadd.s32 1, %s23295_s17 }
  0x1b   : > { %26772 = sst [smem:[#allocation32_spill]] %s23283_s20  ;;  %p42_p0 = scmp.ge.s32.totalorder %s41_s25, 5 }
  0x1c   : > { %26773 = sst [smem:[#allocation33_spill]] %s23287_s21  ;;  %s44_s26 = sadd.s32 1, %s23299_s2 }
  0x1d   : > { %26774 = sst [smem:[#allocation34_spill]] %s23291_s22  ;;  %s135_s27 = sadd.s32 1, %s23283_s20 }
  0x1e   : > { %26775 = sst [smem:[#allocation35_spill]] %s23295_s17  ;;  %p142_p1 = scmp.ne.s32.totalorder %s23283_s20, %s23279_s1 }
  0x1f   : > { %26776 = sst [smem:[#allocation36_spill]] %s23303_s23  ;;  %s26848_s25 = smov (%p42_p0, %s41_s25), 0 }
  0x20   : > { %26777 = sst [smem:[#allocation37_spill]] %s26848_s25  ;;  %s26850_s26 = smov (!%p42_p0, %s44_s26), %s23299_s2 }
  0x21   : > { %p143_p2 = scmp.eq.s32.totalorder %s23303_s23, 0  ;;  %p148_p3 = scmp.ne.s32.totalorder %s23279_s1, %s23275_s19 }
  0x22   : > { %p46_p4 = scmp.ge.s32.totalorder %s26850_s26, 6  ;;  %p23490_p5 = scmp.eq.s32.totalorder %s26726_s24, 0 }
  0x23   : > { %p23496_p6 = por %p143_p2, %p142_p1  ;;  %s17780_s21 = sadd.s32 4294967295, %s23295_s17 }
  0x24   : > { %s26778_s28 = scalar_select %p23490_p5, 1, 0 }
  0x25   : > { %s26852_s26 = smov (%p46_p4, %s26850_s26), 0  ;;  %p23505_p7 = por %p23490_p5, %p148_p3 }
  0x26   : > { %26779 = sst [smem:[#allocation38_spill]] %s26778_s28  ;;  %p289_p8 = scmp.gt.s32.totalorder %s17780_s21, 0 }
  0x27   : > { %26781 = sst [smem:[#allocation39_spill]] %s26852_s26  ;;  %s132_s24 = ssub.s32 %s23299_s2, %s26852_s26 }
  0x28   : > { %s26782_s19 = scalar_select %p23505_p7, 1, 0 }
  0x29   : > { %s17781_s22 = sadd.s32 4294967295, %s26848_s25  ;;  %p133_p9 = scmp.eq.s32.totalorder %s132_s24, 0 }
  0x2a   : > { %26783 = sst [smem:[#allocation40_spill]] %s26782_s19  ;;  %p292_p10 = scmp.gt.s32.totalorder %s17781_s22, 0 }
  0x2b   : > { %s26854_s21 = smov (!%p289_p8, %s17780_s21), 0  ;;  %s299_s1 = sadd.s32 1, %s23271_s0 }
  0x2c   : > { %s23515_s17 = scalar_select %p133_p9, %s23283_s20, %s135_s27  }
  0x2d   : > { %s26856_s22 = smov (!%p292_p10, %s17781_s22), 0  ;;  %p306_p11 = scmp.ne.s32.totalorder %s23271_s0, %s23267_s30 }
  0x2e   : > { %26784 = sst [smem:[#allocation41_spill]] %s23515_s17  ;;  %s295_s15 = ssub.s32 %s26854_s21, %s26856_s22 }
  0x2f   : > { %p312_p12 = scmp.ne.s32.totalorder %s23267_s30, %s23263_s29  ;;  %s296_s19 = sor.u32 %s295_s15, %s132_s24 }
  0x30   : > { %p23525_p13 = por %p306_p11, %p143_p2  ;;  %p297_p0 = scmp.eq.s32.totalorder %s296_s19, 0 }
  0x31   : > { %p23531_p1 = por %p312_p12, %p23490_p5  ;;  %p17786_p3 = scmp.ge.s32.totalorder %s23303_s23, 1 }
  0x32   : > { %s26785_s26 = scalar_select %p23525_p13, 1, 0 }
  0x33   : > { %s26786_s25 = scalar_select %p23531_p1, 1, 0 }
  0x34   : > { %p532_p4 = scmp.lt.s32.totalorder %s23303_s23, 31  ;;  %s23305_s15 = smov [#allocation9]  }
  0x35   : > { %26787 = sst [smem:[#allocation42_spill]] %s26786_s25  ;;  %s562_s29 = sshll.u32 %s23305_s15, 4  ;;  %s563_s29 = int_to_ptr.vmem [resolvable:$true] %s562_s29 }
  0x36   : > { %s23538_s27 = scalar_select %p297_p0, %s23271_s0, %s299_s1  }
  0x37   : > { %p23540_p8 = pnand %p17786_p3, %p532_p4  ;;  %s23306_s24 = smov [#allocation7]  }
  0x38   : > { %26788 = sst [smem:[#allocation43_spill]] %s23538_s27  ;;  %s551_s1 = sshll.u32 %s23306_s24, 4  ;;  %s552_s1 = int_to_ptr.vmem [resolvable:$true] %s551_s1 }
  0x39   : > { %s26789_s17 = scalar_select %p23540_p8, 1, 0 }
  0x3a   : > { %p19949_p2 = pneg %p23540_p8  ;;  %s22814_s19 = scalar_lea.vmem %s563_s29, 96 }
  0x3b   : > { %26790 = sst [smem:[#allocation44_spill]] %s26789_s17  ;;  %p22815_p11 = scmp.ne.s32.totalorder %s563_s29, %s22814_s19 }
  0x3c   : > { %p23548_p9 = pnand %p19949_p2, %p23490_p5  ;;  %p22822_p3 = scmp.lt.s32.totalorder %s563_s29, %s563_s29 }
  0x3d   : > { %p22823_p4 = scmp.lt.s32.totalorder %s22814_s19, %s22814_s19 }
  0x3e   : > { %p22805_p10 = pneg %p23548_p9 }
  0x3f   : > { %p22824_p1 = por %p22823_p4, %p22822_p3 }
  0x40   : > { %p22817_p12 = pnand %p22815_p11, %p22805_p10 }
  0x42   : > { %p22818_p0 = pneg %p22817_p12 }
  0x44   : > { %p22825_p7 = pnand %p22824_p1, %p22818_p0 }
  0x46   : > { %22828 = shalt.err (!%p22825_p7)
}
  0x47   : > { %s26792_s3 = sld [smem:[#allocation48_spill]]  ;;  %s22840_s24 = scalar_lea.vmem %s552_s1, 96 }
  0x48   : > { %p22841_p2 = scmp.ne.s32.totalorder %s552_s1, %s22840_s24  ;;  %p22848_p12 = scmp.lt.s32.totalorder %s552_s1, %s552_s1 }
  0x49   : > { %p22849_p8 = scmp.lt.s32.totalorder %s22840_s24, %s22840_s24 }
  0x4a   : > { %p22843_p5 = pnand %p22841_p2, %p22805_p10 }
  0x4b   : > { %p22850_p13 = por %p22849_p8, %p22848_p12 }
  0x4c   : > { %p22844_p11 = pneg %p22843_p5 }
  0x4d   : > { %19955 = dma.hbm_to_vmem [thread:$0]  (!%p23548_p9), %s26792_s3, 96, %s563_s29, [#allocation10]  }
  0x4e   : > { %p22851_p3 = pnand %p22850_p13, %p22844_p11 }
  0x50   : > { %22854 = shalt.err (!%p22851_p3)
}
  0x51   : > { %s26793_s30 = sld [smem:[#allocation47_spill]]  ;;  %s23307_s27 = smov [#allocation23]  }
  0x52   : > { %s573_s29 = sshll.u32 %s23307_s27, 4  ;;  %s574_s29 = int_to_ptr.vmem [resolvable:$true] %s573_s29 }
  0x53   : > { %s22866_s15 = scalar_lea.vmem %s574_s29, 96  ;;  %p22874_p0 = scmp.lt.s32.totalorder %s574_s29, %s574_s29 }
  0x54   : > { %p22867_p7 = scmp.ne.s32.totalorder %s574_s29, %s22866_s15  ;;  %p22875_p8 = scmp.lt.s32.totalorder %s22866_s15, %s22866_s15 }
  0x56   : > { %p22869_p5 = pnand %p22867_p7, %p22805_p10  ;;  %p22876_p13 = por %p22875_p8, %p22874_p0 }
  0x57   : > { %19952 = dma.hbm_to_vmem [thread:$0]  (!%p23548_p9), %s26793_s30, 96, %s552_s1, [#allocation8]  }
  0x58   : > { %p22870_p1 = pneg %p22869_p5 }
  0x5a   : > { %p22877_p4 = pnand %p22876_p13, %p22870_p1 }
  0x5c   : > { %22880 = shalt.err (!%p22877_p4)
}
  0x5d   : > { %s26794_s16 = sld [smem:[#allocation60_spill]]  ;;  %p17790_p2 = scmp.ge.s32.totalorder %s23303_s23, 30 }
  0x5e   : > { %s587_s30 = sand.u32 (!%p17790_p2), 1, %s23303_s23   ;;  %s23581_s1 = sand.u32 (!%p17790_p2), 1, %s23283_s20  }
  0x5f   : > { %583 = sbr.rel (%p17790_p2) target bundleno = 269 (0x10d), region = 40  ;;  %s26795_s4 = sld [smem:[#allocation49_spill]] (!%p17790_p2) }
  0x60   : > { %s19880_s19 = smul.u32 (!%p17790_p2), 6912, %s23581_s1  ;;  %s23308_s20 = smov (!%p17790_p2), [#allocation11]  }
  0x61   : > { %s19881_s27 = smul.u32 (!%p17790_p2), 110592, %s23299_s2  ;;  %s22897_s23 = sshll.u32 (!%p17790_p2), %s23308_s20, 4  ;;  %s22898_s23 = int_to_ptr.vmem [resolvable:$false] %s22897_s23 }
  0x62   : > { %s591_s24 = scalar_lea.vmem (!%p17790_p2), [#allocation11], %s19880_s19  ;;  %s23589_s25 = smul.u32 (!%p17790_p2), 6, %s23581_s1 }
  0x63   : > { %19958 = dma.hbm_to_vmem [thread:$0]  (!%p23548_p9), %s26794_s16, 96, %s574_s29, [#allocation10]  }
  0x64   : > { %s598_s29 = sshll.u32 %s591_s24, 4  ;;  %s23591_s16 = scalar_lea.sflag [#allocation8], %s587_s30  ;;  %s599_s29 = int_to_ptr.vmem [resolvable:$true] %s598_s29 }
  0x65   : > { %s597_s3 = scalar_lea.hbm %s26795_s4, %s19881_s27  ;;  %s22893_s28 = scalar_lea.vmem %s599_s29, 110592 }
  0x66   : > { %p22894_p9 = scmp.ne.s32.totalorder %s599_s29, %s22893_s28  ;;  %s22899_s17 = scalar_lea.vmem %s22898_s23, 221184 }
  0x67   : > { %p22900_p12 = scmp.lt.s32.totalorder %s599_s29, %s22898_s23  ;;  %p22901_p3 = scmp.lt.s32.totalorder %s22899_s17, %s22893_s28 }
  0x68   : > { %p22895_p10 = pnand %p22894_p9, %p23496_p6 }
  0x69   : > { %p22902_p7 = por %p22901_p3, %p22900_p12 }
  0x6a   : > { %p22896_p11 = pneg %p22895_p10 }
  0x6c   : > { %p22903_p5 = pnand %p22902_p7, %p22896_p11 }
  0x6e   : > { %22906 = shalt.err (!%p22903_p5)
}
  0x6f   : > { %s23309_s19 = smov 1152   ;;  %s23310_s30 = smov 72  }
  0x70   : > { %19919 = dma.hbm_to_vmem [thread:$0]  (%p23496_p6), %s597_s3, 110592, %s599_s29, %s23591_s16, %s23309_s19, %s23309_s19, %s23310_s30  }
  0x71   : > { %s19882_s27 = smul.u32 18, %s23581_s1  ;;  %s26796_s5 = sld [smem:[#allocation50_spill]] }
  0x72   : > { %s19883_s15 = smul.u32 288, %s23299_s2  ;;  %s23311_s14 = smov [#allocation12]  }
  0x73   : > { %s19884_s20 = smul.u32 2304, %s23581_s1  ;;  %s612_s23 = scalar_lea.vmem [#allocation12], %s19882_s27 }
  0x74   : > { %s620_s28 = sshll.u32 %s612_s23, 4  ;;  %s22923_s11 = sshll.u32 %s23311_s14, 4  ;;  %s621_s28 = int_to_ptr.vmem [resolvable:$true] %s620_s28  ;;  %s22924_s11 = int_to_ptr.vmem [resolvable:$false] %s22923_s11 }
  0x75   : > { %s22919_s4 = scalar_lea.vmem %s621_s28, 288  ;;  %s22925_s12 = scalar_lea.vmem %s22924_s11, 576 }
  0x76   : > { %p22920_p1 = scmp.ne.s32.totalorder %s621_s28, %s22919_s4  ;;  %p22926_p13 = scmp.lt.s32.totalorder %s621_s28, %s22924_s11 }
  0x77   : > { %s618_s17 = scalar_lea.hbm %s26796_s5, %s19883_s15  ;;  %p22927_p4 = scmp.lt.s32.totalorder %s22925_s12, %s22919_s4 }
  0x78   : > { %p22921_p0 = pnand %p22920_p1, %p23496_p6 }
  0x79   : > { %p22928_p2 = por %p22927_p4, %p22926_p13 }
  0x7a   : > { %p22922_p8 = pneg %p22921_p0 }
  0x7c   : > { %p22929_p9 = pnand %p22928_p2, %p22922_p8 }
  0x7e   : > { %22932 = shalt.err (!%p22929_p9)
}
  0x7f   : > { %19920 = dma.hbm_to_vmem [thread:$0]  (%p23496_p6), %s618_s17, 288, %s621_s28, %s23591_s16  }
  0x80   : > { %s19885_s3 = smul.u32 36864, %s23299_s2  ;;  %s631_s1 = scalar_lea.vmem [#allocation13], %s19884_s20 }
  0x81   : > { %s638_s29 = sshll.u32 %s631_s1, 4  ;;  %s26797_s6 = sld [smem:[#allocation51_spill]]  ;;  %s639_s29 = int_to_ptr.vmem [resolvable:$true] %s638_s29 }
  0x82   : > { %s23614_s11 = smul.u32 96, %s23299_s2  ;;  %s22945_s4 = scalar_lea.vmem %s639_s29, 36864 }
  0x83   : > { %p22946_p10 = scmp.ne.s32.totalorder %s639_s29, %s22945_s4  ;;  %s23312_s12 = smov [#allocation13]  }
  0x84   : > { %s22949_s27 = sshll.u32 %s23312_s12, 4  ;;  %s22950_s27 = int_to_ptr.vmem [resolvable:$false] %s22949_s27 }
  0x85   : > { %p22947_p11 = pnand %p22946_p10, %p23496_p6  ;;  %s22951_s15 = scalar_lea.vmem %s22950_s27, 73728 }
  0x86   : > { %p22952_p3 = scmp.lt.s32.totalorder %s639_s29, %s22950_s27  ;;  %p22953_p7 = scmp.lt.s32.totalorder %s22951_s15, %s22945_s4 }
  0x87   : > { %s637_s30 = scalar_lea.hbm %s26797_s6, %s19885_s3  ;;  %p22948_p12 = pneg %p22947_p11 }
  0x88   : > { %p22954_p5 = por %p22953_p7, %p22952_p3 }
  0x8a   : > { %p22955_p1 = pnand %p22954_p5, %p22948_p12 }
  0x8c   : > { %22958 = shalt.err (!%p22955_p1)
}
  0x8d   : > { %s26749_s20 = smov 384   ;;  %s26751_s22 = smov 24  }
  0x8e   : > { %19921 = dma.hbm_to_vmem [thread:$0]  (%p23496_p6), %s637_s30, 36864, %s639_s29, %s23591_s16, %s26749_s20, %s26749_s20, %s26751_s22  }
  0x8f   : > { %s26798_s7 = sld [smem:[#allocation52_spill]]  ;;  %s652_s28 = scalar_lea.vmem [#allocation14], %s23589_s25 }
  0x90   : > { %s660_s3 = sshll.u32 %s652_s28, 4  ;;  %s23315_s19 = smov [#allocation14]   ;;  %s661_s3 = int_to_ptr.vmem [resolvable:$true] %s660_s3 }
  0x91   : > { %s22971_s1 = scalar_lea.vmem %s661_s3, 96  ;;  %s22975_s14 = sshll.u32 %s23315_s19, 4  ;;  %s22976_s14 = int_to_ptr.vmem [resolvable:$false] %s22975_s14 }
  0x92   : > { %p22972_p0 = scmp.ne.s32.totalorder %s661_s3, %s22971_s1  ;;  %s22977_s4 = scalar_lea.vmem %s22976_s14, 192 }
  0x93   : > { %p22978_p4 = scmp.lt.s32.totalorder %s661_s3, %s22976_s14  ;;  %p22979_p2 = scmp.lt.s32.totalorder %s22977_s4, %s22971_s1 }
  0x94   : > { %p22973_p8 = pnand %p22972_p0, %p23496_p6 }
  0x95   : > { %s658_s23 = scalar_lea.hbm %s26798_s7, %s23614_s11  ;;  %p22980_p9 = por %p22979_p2, %p22978_p4 }
  0x96   : > { %p22974_p13 = pneg %p22973_p8 }
  0x98   : > { %p22981_p10 = pnand %p22980_p9, %p22974_p13 }
  0x9a   : > { %22984 = shalt.err (!%p22981_p10)
}
  0x9b   : > { %19922 = dma.hbm_to_vmem [thread:$0]  (%p23496_p6), %s658_s23, 96, %s661_s3, %s23591_s16  }
  0x9c   : > { %s26799_s8 = sld [smem:[#allocation53_spill]]  ;;  %s671_s27 = scalar_lea.vmem [#allocation15], %s23589_s25 }
  0x9d   : > { %s679_s15 = sshll.u32 %s671_s27, 4  ;;  %s23316_s17 = smov [#allocation15]   ;;  %s680_s15 = int_to_ptr.vmem [resolvable:$true] %s679_s15 }
  0x9e   : > { %s22997_s24 = scalar_lea.vmem %s680_s15, 96  ;;  %s23001_s28 = sshll.u32 %s23316_s17, 4  ;;  %s23002_s28 = int_to_ptr.vmem [resolvable:$false] %s23001_s28 }
  0x9f   : > { %p22998_p11 = scmp.ne.s32.totalorder %s680_s15, %s22997_s24  ;;  %s23003_s1 = scalar_lea.vmem %s23002_s28, 192 }
  0xa0   : > { %p23004_p7 = scmp.lt.s32.totalorder %s680_s15, %s23002_s28  ;;  %p23005_p5 = scmp.lt.s32.totalorder %s23003_s1, %s22997_s24 }
  0xa1   : > { %p22999_p12 = pnand %p22998_p11, %p23496_p6 }
  0xa2   : > { %s677_s12 = scalar_lea.hbm %s26799_s8, %s23614_s11  ;;  %p23006_p1 = por %p23005_p5, %p23004_p7 }
  0xa3   : > { %p23000_p3 = pneg %p22999_p12 }
  0xa5   : > { %p23007_p0 = pnand %p23006_p1, %p23000_p3 }
  0xa7   : > { %23010 = shalt.err (!%p23007_p0)
}
  0xa8   : > { %19923 = dma.hbm_to_vmem [thread:$0]  (%p23496_p6), %s677_s12, 96, %s680_s15, %s23591_s16  }
  0xa9   : > { %s26800_s9 = sld [smem:[#allocation54_spill]]  ;;  %s690_s14 = scalar_lea.vmem [#allocation16], %s23589_s25 }
  0xaa   : > { %s698_s4 = sshll.u32 %s690_s14, 4  ;;  %s707_s29 = sand.u32 1, %s23271_s0   ;;  %s699_s4 = int_to_ptr.vmem [resolvable:$true] %s698_s4 }
  0xab   : > { %s23023_s30 = scalar_lea.vmem %s699_s4, 96  ;;  %s23317_s27 = smov [#allocation16]  }
  0xac   : > { %p23024_p8 = scmp.ne.s32.totalorder %s699_s4, %s23023_s30  ;;  %s23027_s24 = sshll.u32 %s23317_s27, 4  ;;  %s23028_s24 = int_to_ptr.vmem [resolvable:$false] %s23027_s24 }
  0xad   : > { %s23029_s17 = scalar_lea.vmem %s23028_s24, 192  ;;  %p23030_p2 = scmp.lt.s32.totalorder %s699_s4, %s23028_s24 }
  0xae   : > { %p23025_p13 = pnand %p23024_p8, %p23496_p6  ;;  %p23031_p9 = scmp.lt.s32.totalorder %s23029_s17, %s23023_s30 }
  0xaf   : > { %s696_s19 = scalar_lea.hbm %s26800_s9, %s23614_s11 }
  0xb0   : > { %p23026_p4 = pneg %p23025_p13  ;;  %p23032_p10 = por %p23031_p9, %p23030_p2 }
  0xb2   : > { %p23033_p11 = pnand %p23032_p10, %p23026_p4 }
  0xb4   : > { %23036 = shalt.err (!%p23033_p11)
}
  0xb5   : > { %19924 = dma.hbm_to_vmem [thread:$0]  (%p23496_p6), %s696_s19, 96, %s699_s4, %s23591_s16  }
  0xb6   : > { %s23655_s12 = smul.u32 2304, %s707_s29  ;;  %s26801_s10 = sld [smem:[#allocation55_spill]] }
  0xb7   : > { %s19893_s15 = smul.u32 576, %s26854_s21  ;;  %p26802_p3 = scmp.ne.s32.totalorder %s26785_s26, 0 }
  0xb8   : > { %s19894_s3 = smul.u32 2304, %s23299_s2  ;;  %s709_s14 = scalar_lea.vmem [#allocation17], %s23655_s12 }
  0xb9   : > { %s721_s30 = sshll.u32 %s709_s14, 4  ;;  %s19895_s27 = smul.u32 6, %s707_s29  ;;  %s722_s30 = int_to_ptr.vmem [resolvable:$true] %s721_s30 }
  0xba   : > { %s718_s24 = sadd.s32 %s19894_s3, %s19893_s15  ;;  %s19896_s19 = smul.u32 6, %s26854_s21 }
  0xbb   : > { %s17798_s17 = sshll.u32 %s718_s24, 6  ;;  %s23049_s4 = scalar_lea.vmem %s722_s30, 36864 }
  0xbc   : > { %s720_s5 = scalar_lea.hbm %s26801_s10, %s17798_s17  ;;  %p23050_p12 = scmp.ne.s32.totalorder %s722_s30, %s23049_s4 }
  0xbd   : > { %s23318_s6 = smov [#allocation17]  }
  0xbe   : > { %p23051_p7 = pnand %p23050_p12, %p26802_p3  ;;  %s23053_s28 = sshll.u32 %s23318_s6, 4  ;;  %s23054_s28 = int_to_ptr.vmem [resolvable:$false] %s23053_s28 }
  0xbf   : > { %s23055_s1 = scalar_lea.vmem %s23054_s28, 73728  ;;  %p23056_p1 = scmp.lt.s32.totalorder %s722_s30, %s23054_s28 }
  0xc0   : > { %p23052_p5 = pneg %p23051_p7  ;;  %p23057_p0 = scmp.lt.s32.totalorder %s23055_s1, %s23049_s4 }
  0xc2   : > { %p23058_p8 = por %p23057_p0, %p23056_p1 }
  0xc4   : > { %p23059_p13 = pnand %p23058_p8, %p23052_p5 }
  0xc6   : > { %23062 = shalt.err (!%p23059_p13)
}
  0xc7   : > { %s26803_s29 = smov 24   ;;  %s26804_s20 = smov 384  }
  0xc8   : > { %19925 = dma.hbm_to_vmem [thread:$0]  (%p26802_p3), %s720_s5, 36864, %s722_s30, %s23591_s16, %s26804_s20, %s26804_s20, %s26803_s29  }
  0xc9   : > { %s19897_s21 = smul.u32 24, %s23299_s2  ;;  %s735_s22 = scalar_lea.vmem [#allocation18], %s19895_s27 }
  0xca   : > { %s748_s6 = sshll.u32 %s735_s22, 4  ;;  %s26805_s24 = sld [smem:[#allocation57_spill]]  ;;  %s749_s6 = int_to_ptr.vmem [resolvable:$true] %s748_s6 }
  0xcb   : > { %s744_s15 = sadd.s32 %s19897_s21, %s19896_s19  ;;  %s759_s1 = scalar_lea.vmem [#allocation19], %s23655_s12 }
  0xcc   : > { %s17800_s28 = sshll.u32 %s744_s15, 4  ;;  %s771_s23 = sshll.u32 %s759_s1, 4  ;;  %s23686_s23 = int_to_ptr.vmem [resolvable:$true] %s771_s23 }
  0xcd   : > { %s26806_s9 = sld [smem:[#allocation56_spill]]  ;;  %s23075_s5 = scalar_lea.vmem %s749_s6, 96 }
  0xce   : > { %p23076_p4 = scmp.ne.s32.totalorder %s749_s6, %s23075_s5  ;;  %s23319_s30 = smov [#allocation18]  }
  0xcf   : > { %s23079_s27 = sshll.u32 %s23319_s30, 4  ;;  %s23080_s27 = int_to_ptr.vmem [resolvable:$false] %s23079_s27 }
  0xd0   : > { %s23680_s4 = scalar_lea.hbm %s26805_s24, %s17798_s17  ;;  %p23077_p2 = pnand %p23076_p4, %p26802_p3 }
  0xd1   : > { %s23081_s19 = scalar_lea.vmem %s23080_s27, 192  ;;  %p23082_p10 = scmp.lt.s32.totalorder %s749_s6, %s23080_s27 }
  0xd2   : > { %p23078_p9 = pneg %p23077_p2  ;;  %p23083_p11 = scmp.lt.s32.totalorder %s23081_s19, %s23075_s5 }
  0xd3   : > { %s746_s10 = scalar_lea.hbm %s26806_s9, %s17800_s28 }
  0xd4   : > { %p23084_p12 = por %p23083_p11, %p23082_p10 }
  0xd6   : > { %p23085_p7 = pnand %p23084_p12, %p23078_p9 }
  0xd8   : > { %23088 = shalt.err (!%p23085_p7)
}
  0xd9   : > { %19926 = dma.hbm_to_vmem [thread:$0]  (%p26802_p3), %s746_s10, 96, %s749_s6, %s23591_s16  }
  0xda   : > { %s23101_s7 = scalar_lea.vmem %s23686_s23, 36864  ;;  %s23320_s8 = smov [#allocation19]  }
  0xdb   : > { %p23102_p5 = scmp.ne.s32.totalorder %s23686_s23, %s23101_s7  ;;  %s23105_s9 = sshll.u32 %s23320_s8, 4  ;;  %s23106_s9 = int_to_ptr.vmem [resolvable:$false] %s23105_s9 }
  0xdc   : > { %s23107_s12 = scalar_lea.vmem %s23106_s9, 73728  ;;  %p23108_p8 = scmp.lt.s32.totalorder %s23686_s23, %s23106_s9 }
  0xdd   : > { %p23103_p1 = pnand %p23102_p5, %p26802_p3  ;;  %p23109_p13 = scmp.lt.s32.totalorder %s23107_s12, %s23101_s7 }
  0xdf   : > { %p23104_p0 = pneg %p23103_p1  ;;  %p23110_p4 = por %p23109_p13, %p23108_p8 }
  0xe1   : > { %p23111_p2 = pnand %p23110_p4, %p23104_p0 }
  0xe3   : > { %23114 = shalt.err (!%p23111_p2)
}
  0xe4   : > { %19927 = dma.hbm_to_vmem [thread:$0]  (%p26802_p3), %s23680_s4, 36864, %s23686_s23, %s23591_s16, %s26804_s20, %s26804_s20, %s26803_s29  }
  0xe5   : > { %s785_s10 = scalar_lea.vmem [#allocation20], %s23589_s25  ;;  %s26807_s6 = sld [smem:[#allocation58_spill]] }
  0xe6   : > { %s793_s17 = sshll.u32 %s785_s10, 4  ;;  %s23321_s26 = smov [#allocation20]   ;;  %s794_s17 = int_to_ptr.vmem [resolvable:$true] %s793_s17 }
  0xe7   : > { %s23127_s3 = scalar_lea.vmem %s794_s17, 96  ;;  %s23131_s14 = sshll.u32 %s23321_s26, 4  ;;  %s23132_s14 = int_to_ptr.vmem [resolvable:$false] %s23131_s14 }
  0xe8   : > { %p23128_p9 = scmp.ne.s32.totalorder %s794_s17, %s23127_s3  ;;  %s23133_s24 = scalar_lea.vmem %s23132_s14, 192 }
  0xe9   : > { %p23134_p12 = scmp.lt.s32.totalorder %s794_s17, %s23132_s14  ;;  %p23135_p7 = scmp.lt.s32.totalorder %s23133_s24, %s23127_s3 }
  0xea   : > { %p23129_p10 = pnand %p23128_p9, %p23496_p6 }
  0xeb   : > { %s810_s15 = scalar_lea.hbm %s26807_s6, %s23614_s11  ;;  %p23136_p5 = por %p23135_p7, %p23134_p12 }
  0xec   : > { %p23130_p11 = pneg %p23129_p10 }
  0xee   : > { %p23137_p3 = pnand %p23136_p5, %p23130_p11 }
  0xf0   : > { %23140 = shalt.err (!%p23137_p3)
}
  0xf1   : > { %s26808_s20 = scalar_lea.hbm %s26716_s13, %s23614_s11  ;;  %s804_s4 = scalar_lea.vmem [#allocation21], %s23589_s25 }
  0xf2   : > { %19928 = dma.hbm_to_vmem [thread:$0]  (%p23496_p6), %s26808_s20, 96, %s794_s17, %s23591_s16  }
  0xf3   : > { %s812_s28 = sshll.u32 %s804_s4, 4  ;;  %s26809_s30 = sld [smem:[#allocation59_spill]]  ;;  %s813_s28 = int_to_ptr.vmem [resolvable:$true] %s812_s28 }
  0xf4   : > { %s23153_s7 = scalar_lea.vmem %s813_s28, 96  ;;  %s23322_s8 = smov [#allocation21]  }
  0xf5   : > { %p23154_p1 = scmp.ne.s32.totalorder %s813_s28, %s23153_s7  ;;  %s23157_s9 = sshll.u32 %s23322_s8, 4  ;;  %s23158_s9 = int_to_ptr.vmem [resolvable:$false] %s23157_s9 }
  0xf6   : > { %s23159_s12 = scalar_lea.vmem %s23158_s9, 192  ;;  %p23160_p13 = scmp.lt.s32.totalorder %s813_s28, %s23158_s9 }
  0xf7   : > { %p23155_p0 = pnand %p23154_p1, %p23496_p6  ;;  %p23161_p4 = scmp.lt.s32.totalorder %s23159_s12, %s23153_s7 }
  0xf9   : > { %s829_s19 = scalar_lea.hbm %s26809_s30, %s23614_s11  ;;  %p23156_p8 = pneg %p23155_p0 }
  0xfa   : > { %p23162_p2 = por %p23161_p4, %p23160_p13 }
  0xfc   : > { %p23163_p9 = pnand %p23162_p2, %p23156_p8 }
  0xfe   : > { %23166 = shalt.err (!%p23163_p9)
}
  0xff   : > { %19929 = dma.hbm_to_vmem [thread:$0]  (%p23496_p6), %s810_s15, 96, %s813_s28, %s23591_s16  }
 0x100   : > { %s823_s21 = scalar_lea.vmem [#allocation22], %s23589_s25  ;;  %s23323_s26 = smov [#allocation22]  }
 0x101   : > { %s831_s22 = sshll.u32 %s823_s21, 4  ;;  %s23183_s14 = sshll.u32 %s23323_s26, 4  ;;  %s832_s22 = int_to_ptr.vmem [resolvable:$true] %s831_s22  ;;  %s23184_s14 = int_to_ptr.vmem [resolvable:$false] %s23183_s14 }
 0x102   : > { %s23179_s3 = scalar_lea.vmem %s832_s22, 96  ;;  %s23185_s24 = scalar_lea.vmem %s23184_s14, 192 }
 0x103   : > { %p23180_p10 = scmp.ne.s32.totalorder %s832_s22, %s23179_s3  ;;  %p23186_p7 = scmp.lt.s32.totalorder %s832_s22, %s23184_s14 }
 0x104   : > { %p23187_p5 = scmp.lt.s32.totalorder %s23185_s24, %s23179_s3 }
 0x105   : > { %p23181_p11 = pnand %p23180_p10, %p23496_p6 }
 0x106   : > { %p23188_p3 = por %p23187_p5, %p23186_p7 }
 0x107   : > { %p23182_p12 = pneg %p23181_p11 }
 0x109   : > { %p23189_p1 = pnand %p23188_p3, %p23182_p12 }
 0x10b   : > { %23192 = shalt.err (!%p23189_p1)
}
 0x10c   : > { %19930 = dma.hbm_to_vmem [thread:$0]  (%p23496_p6), %s829_s19, 96, %s832_s22, %s23591_s16  }
 0x10d PF: > { %s26811_s23 = sld [smem:[#allocation44_spill]] }
 0x113   : > { %p26812_p0 = scmp.ne.s32.totalorder %s26811_s23, 0 }
 0x114   : > { %s26813_s29 = sld [smem:[#allocation38_spill]] (!%p26812_p0) }
 0x115   : > { %840 = sbr.rel (%p26812_p0) target bundleno = 7846 (0x1ea6), region = 92 }
 0x11a   : > { %p26814_p8 = scmp.ne.s32.totalorder %s26813_s29, 0 }
 0x11c   : > { %23238 = dma.done.wait (%p26814_p8), [#allocation8], 96  }
 0x11d   : > { %23240 = vsyncadd (%p26814_p8), [#allocation8], 4294967200 }
 0x11e   : > { %23242 = dma.done.wait (%p26814_p8), [#allocation10], 96  }
 0x11f   : > { %23244 = vsyncadd (%p26814_p8), [#allocation10], 4294967200  ;;  %s26815_s18 = sld [smem:[#allocation36_spill]] }
 0x120   : > { %s26817_s11 = sld [smem:[#allocation31_spill]] }
 0x121   : > { %s26818_s16 = sld [smem:[#allocation40_spill]] }
 0x125   : > { %s26816_s20 = sadd.s32 4294967295, %s26815_s18  }
 0x126   : > { %s850_s4 = sand.u32 1, %s26816_s20   ;;  %s852_s28 = sand.u32 1, %s26817_s11  }
 0x127   : > { %s19907_s1 = smul.u32 6912, %s852_s28  ;;  %s851_s5 = scalar_lea.sflag [#allocation8], %s850_s4 }
 0x128   : > { %p26819_p6 = scmp.ne.s32.totalorder %s26818_s16, 0 }
 0x129   : > { %s23760_s30 = scalar_lea.vmem [#allocation11], %s19907_s1 }
 0x12a   : > { %23246 = dma.done.wait (%p26819_p6), %s851_s5, 148032  }
 0x12b   : > { %23248 = vsyncadd (%p26819_p6), %s851_s5, 4294819264  ;;  %s26820_s19 = sld [smem:[#allocation30_spill]]  ;;  %s19908_s8 = smul.u32 18, %s852_s28 }
 0x12c   : > { %s26821_s7 = sld [smem:[#allocation42_spill]]  ;;  %s19909_s12 = smul.u32 2304, %s852_s28 }
 0x12d   : > { %s23767_s10 = smul.u32 6, %s852_s28  ;;  %s23769_s21 = scalar_lea.vmem [#allocation12], %s19908_s8 }
 0x12e   : > { %s23771_s22 = scalar_lea.vmem [#allocation13], %s19909_s12 }
 0x12f   : > { %s881_s3 = scalar_lea.vmem [#allocation14], %s23767_s10  ;;  %s890_s26 = scalar_lea.vmem [#allocation15], %s23767_s10 }
 0x130   : > { %s899_s14 = scalar_lea.vmem [#allocation16], %s23767_s10 }
 0x131   : > { %s906_s9 = sand.u32 1, %s26820_s19  }
 0x132   : > { %s19911_s17 = smul.u32 2304, %s906_s9  ;;  %p26822_p13 = scmp.ne.s32.totalorder %s26821_s7, 0 }
 0x134   : > { %s23776_s24 = scalar_lea.vmem [#allocation17], %s19911_s17 }
 0x135   : > { %23250 = dma.done.wait (%p26822_p13), %s851_s5, 73824  }
 0x136   : > { %23252 = vsyncadd (%p26822_p13), %s851_s5, 4294893472  ;;  %s23782_s25 = smul.u32 6, %s906_s9  ;;  %s23785_s23 = scalar_lea.vmem [#allocation19], %s19911_s17 }
 0x137   : > { %s935_s18 = scalar_lea.vmem [#allocation20], %s23767_s10 }
 0x138   : > { %s917_s15 = scalar_lea.vmem [#allocation18], %s23782_s25 }
 0x139   : > { %23254 = dma.done.wait (%p26819_p6), %s851_s5, 288  }
 0x13a   : > { %23256 = vsyncadd (%p26819_p6), %s851_s5, 4294967008  ;;  %s944_s20 = scalar_lea.vmem [#allocation21], %s23767_s10  ;;  %s953_s11 = scalar_lea.vmem [#allocation22], %s23767_s10 }
 0x13b   : > { %23258 = dma.done.wait (%p26814_p8), [#allocation10], 96  }
 0x13c   : > { %23260 = vsyncadd (%p26814_p8), [#allocation10], 4294967200  ;;  %s26823_s4 = sld [smem:[#allocation34_spill]] }
 0x13d   : > { %s26824_s28 = sld [smem:[#allocation33_spill]] }
 0x142   : > { %p1069_p4 = scmp.eq.s32.totalorder %s26823_s4, 0 }
 0x143   : > { %p1070_p2 = scmp.eq.s32.totalorder %s26824_s28, 0 }
 0x145   : > { %p1071_p9 = pnand %p1070_p2, %p1069_p4 }
 0x146   : > { %s26825_s16 = sld [smem:[#allocation45_spill]] (!%p1071_p9) }
 0x147   : > { %1074 = sbr.rel (%p1071_p9) target bundleno = 667 (0x29b), region = 156 }
 0x14c   : > { %v1075_v1 = vld [vmem:[%s26825_s16] sm:$0xff]  ;;  %v1076_v2 = vld [vmem:[%s26825_s16 + $0x8] sm:$0xff]  ;;  %v1077_v3 = vld [vmem:[%s26825_s16 + $0x10] sm:$0xff]  ;;  %v1163_v0 = vlaneseq }
 0x14d   : > { %v1078_v4 = vld [vmem:[%s26825_s16 + $0x18] sm:$0xff]  ;;  %v1089_v5 = vadd.f32 %v1076_v2, %v1075_v1  ;;  %v1081_v6 = vld [vmem:[%s26825_s16 + $0x30] sm:$0xff]  ;;  %v1083_v8 = vld [vmem:[%s26825_s16 + $0x40] sm:$0xff] }
 0x14e   : > { %v1082_v7 = vld [vmem:[%s26825_s16 + $0x38] sm:$0xff]  ;;  %v1079_v11 = vld [vmem:[%s26825_s16 + $0x20] sm:$0xff]  ;;  %v1084_v12 = vld [vmem:[%s26825_s16 + $0x48] sm:$0xff] }
 0x14f   : > { %v1090_v9 = vadd.f32 %v1089_v5, %v1077_v3  ;;  %v1096_v10 = vadd.f32 %v1082_v7, %v1081_v6  ;;  %v1080_v15 = vld [vmem:[%s26825_s16 + $0x28] sm:$0xff]  ;;  %v1085_v16 = vld [vmem:[%s26825_s16 + $0x50] sm:$0xff]  ;;  %v1086_v19 = vld [vmem:[%s26825_s16 + $0x58] sm:$0xff] }
 0x151   : > { %v1091_v13 = vadd.f32 %v1090_v9, %v1078_v4  ;;  %v1097_v14 = vadd.f32 %v1096_v10, %v1083_v8 }
 0x153   : > { %v1092_v17 = vadd.f32 %v1091_v13, %v1079_v11  ;;  %v1098_v18 = vadd.f32 %v1097_v14, %v1084_v12 }
 0x155   : > { %v1093_v20 = vadd.f32 %v1092_v17, %v1080_v15  ;;  %v1099_v21 = vadd.f32 %v1098_v18, %v1085_v16 }
 0x157   : > { %1094 = vadd.xlane.f32.xlu0 %v1093_v20  ;;  %v1100_v22 = vadd.f32 %v1099_v21, %v1086_v19 }
 0x15b   : > { %1101 = vadd.xlane.f32.xlu0 %v1100_v22 }
 0x1e0   : > { %v1095_v23 = vpop.xlane.xlu0 %1094 }
 0x1e1   : > { %v1104_v24 = vmul.f32 0.0013020834, %v1095_v23 }
 0x1e3   : > { %v23836_v25 = vsub.f32 %v1075_v1, %v1104_v24  ;;  %v23838_v26 = vsub.f32 %v1076_v2, %v1104_v24  ;;  %v23840_v27 = vsub.f32 %v1077_v3, %v1104_v24  ;;  %v23842_v29 = vsub.f32 %v1078_v4, %v1104_v24 }
 0x1e4   : > { %v1102_v28 = vpop.xlane.xlu0 %1101  ;;  %v23848_v33 = vsub.f32 %v1079_v11, %v1104_v24  ;;  %v1111_v39 = vsub.f32 %v1080_v15, %v1104_v24  ;;  %v1164_v4 = vshrl.u32 %v1163_v0, 7 }
 0x1e5   : > { %v1105_v30 = vmul.f32 0.0013020834, %v1102_v28  ;;  %v1118_v31 = vmul.f32 %v23836_v25, %v23836_v25  ;;  %v1119_v32 = vmul.f32 %v23838_v26, %v23838_v26  ;;  %v1120_v34 = vmul.f32 %v23840_v27, %v23840_v27 }
 0x1e6   : > { %v1121_v40 = vmul.f32 %v23842_v29, %v23842_v29  ;;  %v1122_v45 = vmul.f32 %v23848_v33, %v23848_v33  ;;  %v1123_v50 = vmul.f32 %v1111_v39, %v1111_v39  ;;  %v1165_v5 = vsub.s32 0, %v1164_v4 }
 0x1e7   : > { %v1130_v35 = vadd.f32 %v1119_v32, %v1118_v31  ;;  %v23852_v36 = vsub.f32 %v1081_v6, %v1105_v30  ;;  %v23854_v37 = vsub.f32 %v1082_v7, %v1105_v30  ;;  %v23856_v38 = vsub.f32 %v1083_v8, %v1105_v30  ;;  %v1087_v7 = vld [vmem:[#allocation7] sm:$0x3f] }
 0x1e8   : > { %v23860_v42 = vsub.f32 %v1084_v12, %v1105_v30  ;;  %v23868_v47 = vsub.f32 %v1085_v16, %v1105_v30  ;;  %v23872_v52 = vsub.f32 %v1086_v19, %v1105_v30  ;;  %v1169_v6 = vsub.s32 1, %v1164_v4  ;;  %v1088_v12 = vld [vmem:[#allocation9] sm:$0x3f] }
 0x1e9   : > { %v1131_v41 = vadd.f32 %v1130_v35, %v1120_v34  ;;  %v1124_v43 = vmul.f32 %v23852_v36, %v23852_v36  ;;  %v1125_v44 = vmul.f32 %v23854_v37, %v23854_v37  ;;  %v1126_v48 = vmul.f32 %v23856_v38, %v23856_v38 }
 0x1ea   : > { %v1127_v53 = vmul.f32 %v23860_v42, %v23860_v42  ;;  %v1128_v56 = vmul.f32 %v23868_v47, %v23868_v47  ;;  %v1129_v58 = vmul.f32 %v23872_v52, %v23872_v52  ;;  %v1173_v8 = vsub.s32 2, %v1164_v4 }
 0x1eb   : > { %v1132_v46 = vadd.f32 %v1131_v41, %v1121_v40  ;;  %v1137_v49 = vadd.f32 %v1125_v44, %v1124_v43  ;;  %v1177_v9 = vsub.s32 3, %v1164_v4  ;;  %v1181_v10 = vsub.s32 4, %v1164_v4 }
 0x1ec   : > { %v1185_v11 = vsub.s32 5, %v1164_v4  ;;  %v1166_v13 = vrot.slane %v1087_v7, %v1165_v5  ;;  %v1170_v14 = vrot.slane %v1087_v7, %v1169_v6  ;;  %v1174_v15 = vrot.slane %v1087_v7, %v1173_v8 }
 0x1ed   : > { %v1133_v51 = vadd.f32 %v1132_v46, %v1122_v45  ;;  %v1138_v54 = vadd.f32 %v1137_v49, %v1126_v48  ;;  %v1178_v16 = vrot.slane %v1087_v7, %v1177_v9  ;;  %v1182_v17 = vrot.slane %v1087_v7, %v1181_v10 }
 0x1ee   : > { %v1186_v18 = vrot.slane %v1087_v7, %v1185_v11  ;;  %v1209_v20 = vrot.slane %v1088_v12, %v1165_v5  ;;  %v1213_v21 = vrot.slane %v1088_v12, %v1169_v6  ;;  %v1217_v22 = vrot.slane %v1088_v12, %v1173_v8 }
 0x1ef   : > { %v1134_v55 = vadd.f32 %v1133_v51, %v1123_v50  ;;  %v1139_v57 = vadd.f32 %v1138_v54, %v1127_v53  ;;  %v1221_v23 = vrot.slane %v1088_v12, %v1177_v9  ;;  %v1225_v32 = vrot.slane %v1088_v12, %v1181_v10 }
 0x1f0   : > { %v1229_v34 = vrot.slane %v1088_v12, %v1185_v11 }
 0x1f1   : > { %1135 = vadd.xlane.f32.xlu1 %v1134_v55  ;;  %v1140_v59 = vadd.f32 %v1139_v57, %v1128_v56 }
 0x1f3   : > { %v1141_v60 = vadd.f32 %v1140_v59, %v1129_v58 }
 0x1f5   : > { %1142 = vadd.xlane.f32.xlu1 %v1141_v60 }
 0x27a   : > { %v1136_v61 = vpop.xlane.xlu1 %1135 }
 0x27b   : > { %v1144_v62 = vmul.f32 0.0013020834, %v1136_v61 }
 0x27d   : > { %v1146_v63 = vadd.f32 1e-12, %v1144_v62 }
 0x27e   : > { %v1143_v1 = vpop.xlane.xlu1 %1142 }
 0x27f   : > { %20062 = vrsqrt.f32 %v1146_v63  ;;  %v1145_v2 = vmul.f32 0.0013020834, %v1143_v1 }
 0x281   : > { %v1147_v3 = vadd.f32 1e-12, %v1145_v2 }
 0x283   : > { %20064 = vrsqrt.f32 %v1147_v3 }
 0x28c   : > { %v20063_v19 = vpop.eup %20062 }
 0x28d   : > { %v1150_v24 = vmul.f32 %v20063_v19, %v23836_v25  ;;  %v1151_v28 = vmul.f32 %v20063_v19, %v23838_v26  ;;  %v1152_v30 = vmul.f32 %v20063_v19, %v23840_v27  ;;  %v1153_v31 = vmul.f32 %v20063_v19, %v23842_v29 }
 0x28e   : > { %v1154_v35 = vmul.f32 %v20063_v19, %v23848_v33  ;;  %v1155_v40 = vmul.f32 %v20063_v19, %v1111_v39 }
 0x28f   : > { %v1193_v41 = vmul.f32 %v1166_v13, %v1150_v24  ;;  %v1194_v43 = vmul.f32 %v1170_v14, %v1151_v28  ;;  %v1195_v44 = vmul.f32 %v1174_v15, %v1152_v30  ;;  %v1196_v45 = vmul.f32 %v1178_v16, %v1153_v31 }
 0x290   : > { %v20065_v46 = vpop.eup %20064  ;;  %v1197_v48 = vmul.f32 %v1182_v17, %v1154_v35  ;;  %v1198_v49 = vmul.f32 %v1186_v18, %v1155_v40 }
 0x291   : > { %v1236_v50 = vadd.f32 %v1209_v20, %v1193_v41  ;;  %v1237_v25 = vadd.f32 %v1213_v21, %v1194_v43  ;;  %v1238_v51 = vadd.f32 %v1217_v22, %v1195_v44  ;;  %v1239_v26 = vadd.f32 %v1221_v23, %v1196_v45 }
 0x292   : > { %v1240_v53 = vadd.f32 %v1225_v32, %v1197_v48  ;;  %v1241_v27 = vadd.f32 %v1229_v34, %v1198_v49  ;;  %v1156_v29 = vmul.f32 %v20065_v46, %v23852_v36  ;;  %v1157_v54 = vmul.f32 %v20065_v46, %v23854_v37 }
 0x293   : > { %1248 = vst [vmem:[#allocation2 + $0x30] sm:$0xff] %v1236_v50  ;;  %1249 = vst [vmem:[#allocation2] sm:$0xff] %v1237_v25  ;;  %v1158_v33 = vmul.f32 %v20065_v46, %v23856_v38  ;;  %v1159_v39 = vmul.f32 %v20065_v46, %v23860_v42  ;;  %v1160_v55 = vmul.f32 %v20065_v46, %v23868_v47 }
 0x294   : > { %1250 = vst [vmem:[#allocation2 + $0x58] sm:$0xff] %v1238_v51  ;;  %1251 = vst [vmem:[#allocation2 + $0x18] sm:$0xff] %v1239_v26  ;;  %v1161_v56 = vmul.f32 %v20065_v46, %v23872_v52  ;;  %v1199_v57 = vmul.f32 %v1166_v13, %v1156_v29  ;;  %v1200_v58 = vmul.f32 %v1170_v14, %v1157_v54 }
 0x295   : > { %1252 = vst [vmem:[#allocation2 + $0x50] sm:$0xff] %v1240_v53  ;;  %1253 = vst [vmem:[#allocation2 + $0x20] sm:$0xff] %v1241_v27  ;;  %v1201_v59 = vmul.f32 %v1174_v15, %v1158_v33  ;;  %v1202_v36 = vmul.f32 %v1178_v16, %v1159_v39  ;;  %v1203_v60 = vmul.f32 %v1182_v17, %v1160_v55 }
 0x296   : > { %v1204_v37 = vmul.f32 %v1186_v18, %v1161_v56  ;;  %v1242_v61 = vadd.f32 %v1209_v20, %v1199_v57  ;;  %v1243_v62 = vadd.f32 %v1213_v21, %v1200_v58 }
 0x297   : > { %v1244_v63 = vadd.f32 %v1217_v22, %v1201_v59  ;;  %v1245_v0 = vadd.f32 %v1221_v23, %v1202_v36  ;;  %v1246_v1 = vadd.f32 %v1225_v32, %v1203_v60 }
 0x298   : > { %v1247_v38 = vadd.f32 %v1229_v34, %v1204_v37  ;;  %1254 = vst [vmem:[#allocation2 + $0x8] sm:$0xff] %v1242_v61  ;;  %1255 = vst [vmem:[#allocation2 + $0x38] sm:$0xff] %v1243_v62 }
 0x299   : > { %1256 = vst [vmem:[#allocation2 + $0x28] sm:$0xff] %v1244_v63  ;;  %1257 = vst [vmem:[#allocation2 + $0x48] sm:$0xff] %v1245_v0 }
 0x29a   : > { %1258 = vst [vmem:[#allocation2 + $0x10] sm:$0xff] %v1246_v1  ;;  %1259 = vst [vmem:[#allocation2 + $0x40] sm:$0xff] %v1247_v38 }
 0x29b PF: > { %s26826_s5 = sld [smem:[#allocation33_spill]] }
 0x2a1   : > { %p17810_p10 = scmp.ne.s32.totalorder %s26826_s5, 0 }
 0x2a2   : > { %s23324_s7 = smov (!%p17810_p10), 64   ;;  %s26827_s8 = sld [smem:[#allocation46_spill]] (!%p17810_p10) }
 0x2a3   : > { %1262 = sbr.rel (%p17810_p10) target bundleno = 6345 (0x18c9), region = 160 }
 0x2a8   : > { %v20066_v42 = vld [vmem:[%s23760_s30 + $0x3f4] ss:$72 sps:$4 sm:$0xff]   ;;  %v20070_v52 = vld [vmem:[%s23760_s30 + $0x3f0] ss:$72 sps:$4 sm:$0xff]   ;;  %v20072_v3 = vld [vmem:[%s23760_s30 + $0x364] ss:$72 sps:$4 sm:$0xff]  }
 0x2a9   : > { %v20068_v47 = vld [vmem:[%s23760_s30 + $0xcf4] ss:$72 sps:$4 sm:$0xff]   ;;  %6561 = vmatprep.subr.bf16.mxu0 %v20066_v42  ;;  %v20071_v2 = vld [vmem:[%s23760_s30 + $0xcf0] ss:$72 sps:$4 sm:$0xff]   ;;  %v20074_v4 = vld [vmem:[%s23760_s30 + $0xc64] ss:$72 sps:$4 sm:$0xff]  }
 0x2aa   : > { %6604 = vmatprep.subr.bf16.mxu1 %v20068_v47  ;;  %6562 = vmatpush1.bf16.msra.mxu0 %v20070_v52  ;;  %v20076_v5 = vld [vmem:[%s23760_s30 + $0x360] ss:$72 sps:$4 sm:$0xff]   ;;  %v20078_v7 = vld [vmem:[%s23760_s30 + $0x2d4] ss:$72 sps:$4 sm:$0xff]   ;;  %v20082_v9 = vld [vmem:[%s23760_s30 + $0x2d0] ss:$72 sps:$4 sm:$0xff]  }
 0x2ab   : > { %6605 = vmatpush1.bf16.msra.mxu1 %v20071_v2  ;;  %6563 = vmatprep.subr.bf16.mxu0 %v20072_v3  ;;  %v20077_v6 = vld [vmem:[%s23760_s30 + $0xc60] ss:$72 sps:$4 sm:$0xff]   ;;  %v20080_v8 = vld [vmem:[%s23760_s30 + $0xbd4] ss:$72 sps:$4 sm:$0xff]   ;;  %v20083_v10 = vld [vmem:[%s23760_s30 + $0xbd0] ss:$72 sps:$4 sm:$0xff]  }
 0x2ac   : > { %6606 = vmatprep.subr.bf16.mxu1 %v20074_v4  ;;  %v20084_v11 = vld [vmem:[%s23760_s30 + $0x244] ss:$72 sps:$4 sm:$0xff]   ;;  %v20088_v13 = vld [vmem:[%s23760_s30 + $0x240] ss:$72 sps:$4 sm:$0xff]   ;;  %v20090_v15 = vld [vmem:[%s23760_s30 + $0x1b4] ss:$72 sps:$4 sm:$0xff]  }
 0x2ad   : > { %v20086_v12 = vld [vmem:[%s23760_s30 + $0xb44] ss:$72 sps:$4 sm:$0xff]   ;;  %v20089_v14 = vld [vmem:[%s23760_s30 + $0xb40] ss:$72 sps:$4 sm:$0xff]   ;;  %v20092_v16 = vld [vmem:[%s23760_s30 + $0xab4] ss:$72 sps:$4 sm:$0xff]  }
 0x2ae   : > { %6564 = vmatpush1.bf16.msra.mxu0 %v20076_v5  ;;  %v20094_v17 = vld [vmem:[%s23760_s30 + $0x1b0] ss:$72 sps:$4 sm:$0xff]   ;;  %v20096_v19 = vld [vmem:[%s23760_s30 + $0x124] ss:$72 sps:$4 sm:$0xff]   ;;  %v20100_v21 = vld [vmem:[%s23760_s30 + $0x120] ss:$72 sps:$4 sm:$0xff]  }
 0x2af   : > { %6607 = vmatpush1.bf16.msra.mxu1 %v20077_v6  ;;  %6565 = vmatprep.subr.bf16.mxu0 %v20078_v7  ;;  %v20095_v18 = vld [vmem:[%s23760_s30 + $0xab0] ss:$72 sps:$4 sm:$0xff]   ;;  %v20098_v20 = vld [vmem:[%s23760_s30 + $0xa24] ss:$72 sps:$4 sm:$0xff]   ;;  %v20101_v22 = vld [vmem:[%s23760_s30 + $0xa20] ss:$72 sps:$4 sm:$0xff]  }
 0x2b0   : > { %6608 = vmatprep.subr.bf16.mxu1 %v20080_v8  ;;  %v20102_v23 = vld [vmem:[%s23760_s30 + $0x94] ss:$72 sps:$4 sm:$0xff]   ;;  %v20106_v28 = vld [vmem:[%s23760_s30 + $0x90] ss:$72 sps:$4 sm:$0xff]   ;;  %v20108_v31 = vld [vmem:[%s23760_s30 + $0x4] ss:$72 sps:$4 sm:$0xff]  }
 0x2b1   : > { %v20104_v24 = vld [vmem:[%s23760_s30 + $0x994] ss:$72 sps:$4 sm:$0xff]   ;;  %v20107_v30 = vld [vmem:[%s23760_s30 + $0x990] ss:$72 sps:$4 sm:$0xff]   ;;  %v20110_v32 = vld [vmem:[%s23760_s30 + $0x904] ss:$72 sps:$4 sm:$0xff]  }
 0x2b2   : > { %6566 = vmatpush1.bf16.msra.mxu0 %v20082_v9  ;;  %v20112_v34 = vld [vmem:[%s23760_s30] ss:$72 sps:$4 sm:$0xff]   ;;  %v20114_v40 = vld [vmem:[%s23760_s30 + $0x874] ss:$72 sps:$4 sm:$0xff]   ;;  %v20118_v43 = vld [vmem:[%s23760_s30 + $0x870] ss:$72 sps:$4 sm:$0xff]  }
 0x2b3   : > { %6609 = vmatpush1.bf16.msra.mxu1 %v20083_v10  ;;  %6567 = vmatprep.subr.bf16.mxu0 %v20084_v11  ;;  %v20113_v35 = vld [vmem:[%s23760_s30 + $0x900] ss:$72 sps:$4 sm:$0xff]   ;;  %v20116_v41 = vld [vmem:[%s23760_s30 + $0x1174] ss:$72 sps:$4 sm:$0xff]   ;;  %v20119_v44 = vld [vmem:[%s23760_s30 + $0x1170] ss:$72 sps:$4 sm:$0xff]  }
 0x2b4   : > { %6610 = vmatprep.subr.bf16.mxu1 %v20086_v12  ;;  %v20120_v45 = vld [vmem:[%s23760_s30 + $0x7e4] ss:$72 sps:$4 sm:$0xff]   ;;  %v20124_v48 = vld [vmem:[%s23760_s30 + $0x7e0] ss:$72 sps:$4 sm:$0xff]   ;;  %v20126_v50 = vld [vmem:[%s23760_s30 + $0x754] ss:$72 sps:$4 sm:$0xff]  }
 0x2b5   : > { %v20122_v46 = vld [vmem:[%s23760_s30 + $0x10e4] ss:$72 sps:$4 sm:$0xff]   ;;  %v20125_v49 = vld [vmem:[%s23760_s30 + $0x10e0] ss:$72 sps:$4 sm:$0xff]   ;;  %v20128_v25 = vld [vmem:[%s23760_s30 + $0x1054] ss:$72 sps:$4 sm:$0xff]  }
 0x2b6   : > { %6568 = vmatpush1.bf16.msra.mxu0 %v20088_v13  ;;  %v20130_v51 = vld [vmem:[%s23760_s30 + $0x750] ss:$72 sps:$4 sm:$0xff]   ;;  %v20132_v53 = vld [vmem:[%s23760_s30 + $0x6c4] ss:$72 sps:$4 sm:$0xff]   ;;  %v20136_v54 = vld [vmem:[%s23760_s30 + $0x6c0] ss:$72 sps:$4 sm:$0xff]  }
 0x2b7   : > { %6611 = vmatpush1.bf16.msra.mxu1 %v20089_v14  ;;  %6569 = vmatprep.subr.bf16.mxu0 %v20090_v15  ;;  %v20131_v26 = vld [vmem:[%s23760_s30 + $0x1050] ss:$72 sps:$4 sm:$0xff]   ;;  %v20134_v27 = vld [vmem:[%s23760_s30 + $0xfc4] ss:$72 sps:$4 sm:$0xff]   ;;  %v20137_v33 = vld [vmem:[%s23760_s30 + $0xfc0] ss:$72 sps:$4 sm:$0xff]  }
 0x2b8   : > { %6612 = vmatprep.subr.bf16.mxu1 %v20092_v16  ;;  %v1264_v29 = vld [vmem:[#allocation2] sm:$0xff]  ;;  %v1270_v39 = vld [vmem:[#allocation2 + $0x38] sm:$0xff]  ;;  %v1272_v57 = vld [vmem:[#allocation2 + $0x48] sm:$0xff]  ;;  %vm7766_vm0 = vcmask 523264   ;;  %vm7858_vm1 = vcmask 130048   ;;  %vm8188_vm2 = vcmask 1048064  }
 0x2b9   : > { %v23940_v55 = vpack.c.bf16 %v1270_v39, %v1264_v29  ;;  %v1266_v56 = vld [vmem:[#allocation2 + $0x18] sm:$0xff]  ;;  %v20138_v58 = vld [vmem:[%s23760_s30 + $0x634] ss:$72 sps:$4 sm:$0xff]   ;;  %v1263_v5 = vld [vmem:[#allocation2 + $0x30] sm:$0xff] }
 0x2ba   : > { %6570 = vmatpush1.bf16.msra.mxu0 %v20094_v17  ;;  %v20140_v59 = vld [vmem:[%s23760_s30 + $0xf34] ss:$72 sps:$4 sm:$0xff]   ;;  %v23944_v36 = vpack.c.bf16 %v1272_v57, %v1266_v56  ;;  %v20142_v60 = vld [vmem:[%s23760_s30 + $0x630] ss:$72 sps:$4 sm:$0xff]   ;;  %v20144_v61 = vld [vmem:[%s23760_s30 + $0x5a4] ss:$72 sps:$4 sm:$0xff]  }
 0x2bb   : > { %6613 = vmatpush1.bf16.msra.mxu1 %v20095_v18  ;;  %6571 = vmatprep.subr.bf16.mxu0 %v20096_v19  ;;  %v20143_v37 = vld [vmem:[%s23760_s30 + $0xf30] ss:$72 sps:$4 sm:$0xff]   ;;  %v20146_v62 = vld [vmem:[%s23760_s30 + $0xea4] ss:$72 sps:$4 sm:$0xff]   ;;  %v20148_v63 = vld [vmem:[%s23760_s30 + $0x5a0] ss:$72 sps:$4 sm:$0xff]  }
 0x2bc   : > { %6614 = vmatprep.subr.bf16.mxu1 %v20098_v20  ;;  %6593 = vmatprep.mubr.bf16.mxu0 %v23940_v55  ;;  %v20149_v0 = vld [vmem:[%s23760_s30 + $0xea0] ss:$72 sps:$4 sm:$0xff]   ;;  %v20150_v1 = vld [vmem:[%s23760_s30 + $0x514] ss:$72 sps:$4 sm:$0xff]   ;;  %v20154_v42 = vld [vmem:[%s23760_s30 + $0x510] ss:$72 sps:$4 sm:$0xff]  }
 0x2bd   : > { %6636 = vmatprep.mubr.bf16.mxu1 %v23944_v36  ;;  %v20152_v38 = vld [vmem:[%s23760_s30 + $0xe14] ss:$72 sps:$4 sm:$0xff]   ;;  %v20155_v47 = vld [vmem:[%s23760_s30 + $0xe10] ss:$72 sps:$4 sm:$0xff]   ;;  %v20156_v52 = vld [vmem:[%s23760_s30 + $0x484] ss:$72 sps:$4 sm:$0xff]  }
 0x2be   : > { %6572 = vmatpush1.bf16.msra.mxu0 %v20100_v21  ;;  %v20158_v2 = vld [vmem:[%s23760_s30 + $0xd84] ss:$72 sps:$4 sm:$0xff]   ;;  %v20160_v3 = vld [vmem:[%s23760_s30 + $0x480] ss:$72 sps:$4 sm:$0xff]   ;;  %v20164_v7 = vld [vmem:[%s23760_s30 + $0x15f4] ss:$72 sps:$4 sm:$0xff]  }
 0x2bf   : > { %6615 = vmatpush1.bf16.msra.mxu1 %v20101_v22  ;;  %6573 = vmatprep.subr.bf16.mxu0 %v20102_v23  ;;  %v20161_v4 = vld [vmem:[%s23760_s30 + $0xd80] ss:$72 sps:$4 sm:$0xff]   ;;  %v20167_v10 = vld [vmem:[%s23760_s30 + $0x3fc] ss:$72 sps:$4 sm:$0xff]   ;;  %v20162_v12 = vld [vmem:[%s23760_s30 + $0x15f0] ss:$72 sps:$4 sm:$0xff]  }
 0x2c0   : > { %6616 = vmatprep.subr.bf16.mxu1 %v20104_v24  ;;  %v1269_v6 = vld [vmem:[#allocation2 + $0x8] sm:$0xff]  ;;  %v1265_v8 = vld [vmem:[#allocation2 + $0x58] sm:$0xff] }
 0x2c1   : > { %v1271_v9 = vld [vmem:[#allocation2 + $0x28] sm:$0xff]  ;;  %v23964_v11 = vpack.c.bf16 %v1269_v6, %v1263_v5  ;;  %v20170_v15 = vld [vmem:[%s23760_s30 + $0x1564] ss:$72 sps:$4 sm:$0xff]   ;;  %v20171_v18 = vld [vmem:[%s23760_s30 + $0x368] ss:$72 sps:$4 sm:$0xff]  }
 0x2c2   : > { %6574 = vmatpush1.bf16.msra.mxu0 %v20106_v28  ;;  %v20165_v13 = vld [vmem:[%s23760_s30 + $0x3f8] ss:$72 sps:$4 sm:$0xff]   ;;  %v23968_v14 = vpack.c.bf16 %v1271_v9, %v1265_v8  ;;  %v20173_v16 = vld [vmem:[%s23760_s30 + $0x36c] ss:$72 sps:$4 sm:$0xff]   ;;  %v20179_v20 = vld [vmem:[%s23760_s30 + $0x2dc] ss:$72 sps:$4 sm:$0xff]  }
 0x2c3   : > { %6617 = vmatpush1.bf16.msra.mxu1 %v20107_v30  ;;  %6575 = vmatprep.subr.bf16.mxu0 %v20108_v31  ;;  %v20168_v17 = vld [vmem:[%s23760_s30 + $0x1560] ss:$72 sps:$4 sm:$0xff]   ;;  %v20176_v19 = vld [vmem:[%s23760_s30 + $0x14d4] ss:$72 sps:$4 sm:$0xff]   ;;  %v20174_v21 = vld [vmem:[%s23760_s30 + $0x14d0] ss:$72 sps:$4 sm:$0xff]  }
 0x2c4   : > { %6618 = vmatprep.subr.bf16.mxu1 %v20110_v32  ;;  %v20177_v22 = vld [vmem:[%s23760_s30 + $0x2d8] ss:$72 sps:$4 sm:$0xff]   ;;  %v20182_v23 = vld [vmem:[%s23760_s30 + $0x1444] ss:$72 sps:$4 sm:$0xff]   ;;  %v20183_v30 = vld [vmem:[%s23760_s30 + $0x248] ss:$72 sps:$4 sm:$0xff]  }
 0x2c5   : > { %v20185_v24 = vld [vmem:[%s23760_s30 + $0x24c] ss:$72 sps:$4 sm:$0xff]   ;;  %v20180_v28 = vld [vmem:[%s23760_s30 + $0x1440] ss:$72 sps:$4 sm:$0xff]   ;;  %v20191_v32 = vld [vmem:[%s23760_s30 + $0x1bc] ss:$72 sps:$4 sm:$0xff]  }
 0x2c6   : > { %6576 = vmatpush1.bf16.msra.mxu0 %v20112_v34  ;;  %v20188_v31 = vld [vmem:[%s23760_s30 + $0x13b4] ss:$72 sps:$4 sm:$0xff]   ;;  %v20186_v34 = vld [vmem:[%s23760_s30 + $0x13b0] ss:$72 sps:$4 sm:$0xff]   ;;  %v20218_v57 = vld [vmem:[%s23760_s30 + $0x19e4] ss:$72 sps:$4 sm:$0xff]  }
 0x2c7   : > { %6619 = vmatpush1.bf16.msra.mxu1 %v20113_v35  ;;  %6577 = vmatprep.subr.bf16.mxu0 %v20114_v40  ;;  %v20189_v35 = vld [vmem:[%s23760_s30 + $0x1b8] ss:$72 sps:$4 sm:$0xff]   ;;  %v20194_v40 = vld [vmem:[%s23760_s30 + $0x1324] ss:$72 sps:$4 sm:$0xff]   ;;  %v20207_v29 = vld [vmem:[%s23760_s30 + $0x8] ss:$72 sps:$4 sm:$0xff]  }
 0x2c8   : > { %6620 = vmatprep.subr.bf16.mxu1 %v20116_v41  ;;  %v20197_v41 = vld [vmem:[%s23760_s30 + $0x12c] ss:$72 sps:$4 sm:$0xff]   ;;  %v20210_v39 = vld [vmem:[%s23760_s30 + $0x1a70] ss:$72 sps:$4 sm:$0xff]   ;;  %v20240_v6 = vld [vmem:[%s23760_s30 + $0x17a0] ss:$72 sps:$4 sm:$0xff]  }
 0x2c9   : > { %v20213_v56 = vld [vmem:[%s23760_s30 + $0x878] ss:$72 sps:$4 sm:$0xff]   ;;  %v20245_v5 = vld [vmem:[%s23760_s30 + $0x5ac] ss:$72 sps:$4 sm:$0xff]   ;;  %v20251_v9 = vld [vmem:[%s23760_s30 + $0x51c] ss:$72 sps:$4 sm:$0xff]  }
 0x2ca   : > { %6578 = vmatpush2.bf16.msra.mxu0 %v20118_v43  ;;  %v20192_v43 = vld [vmem:[%s23760_s30 + $0x1320] ss:$72 sps:$4 sm:$0xff]   ;;  %v20248_v8 = vld [vmem:[%s23760_s30 + $0x1714] ss:$72 sps:$4 sm:$0xff]  }
 0x2cb   : > { %6621 = vmatpush2.bf16.msra.mxu1 %v20119_v44  ;;  %6579 = vmatprep.subr.bf16.mxu0 %v20120_v45  ;;  %v20195_v44 = vld [vmem:[%s23760_s30 + $0x128] ss:$72 sps:$4 sm:$0xff]   ;;  %v20200_v45 = vld [vmem:[%s23760_s30 + $0x1294] ss:$72 sps:$4 sm:$0xff]  }
 0x2cc   : > { %6622 = vmatprep.subr.bf16.mxu1 %v20122_v46  ;;  %v20203_v46 = vld [vmem:[%s23760_s30 + $0x9c] ss:$72 sps:$4 sm:$0xff]  }
 0x2ce   : > { %6580 = vmatpush2.bf16.msra.mxu0 %v20124_v48  ;;  %v20198_v48 = vld [vmem:[%s23760_s30 + $0x1290] ss:$72 sps:$4 sm:$0xff]  }
 0x2cf   : > { %6623 = vmatpush2.bf16.msra.mxu1 %v20125_v49  ;;  %6581 = vmatprep.subr.bf16.mxu0 %v20126_v50  ;;  %v20201_v49 = vld [vmem:[%s23760_s30 + $0x98] ss:$72 sps:$4 sm:$0xff]   ;;  %v20206_v50 = vld [vmem:[%s23760_s30 + $0x1204] ss:$72 sps:$4 sm:$0xff]  }
 0x2d0   : > { %6624 = vmatprep.subr.bf16.mxu1 %v20128_v25  ;;  %v1268_v25 = vld [vmem:[#allocation2 + $0x20] sm:$0xff] }
 0x2d2   : > { %6582 = vmatpush2.bf16.msra.mxu0 %v20130_v51  ;;  %v1274_v51 = vld [vmem:[#allocation2 + $0x40] sm:$0xff] }
 0x2d3   : > { %6625 = vmatpush2.bf16.msra.mxu1 %v20131_v26  ;;  %6583 = vmatprep.subr.bf16.mxu0 %v20132_v53  ;;  %v20209_v26 = vld [vmem:[%s23760_s30 + $0xc] ss:$72 sps:$4 sm:$0xff]   ;;  %v23999_v53 = vpack.c.bf16 %v1274_v51, %v1268_v25  ;;  %v20285_v25 = vld [vmem:[%s23760_s30 + $0x13b8] ss:$72 sps:$4 sm:$0xff]  }
 0x2d4   : > { %6626 = vmatprep.subr.bf16.mxu1 %v20134_v27  ;;  %v20204_v27 = vld [vmem:[%s23760_s30 + $0x1200] ss:$72 sps:$4 sm:$0xff]   ;;  %v20290_v51 = vld [vmem:[%s23760_s30 + $0xa2c] ss:$72 sps:$4 sm:$0xff]  }
 0x2d6   : > { %6584 = vmatpush2.bf16.msra.mxu0 %v20136_v54  ;;  %v20212_v54 = vld [vmem:[%s23760_s30 + $0x1a74] ss:$72 sps:$4 sm:$0xff]  }
 0x2d7   : > { %6627 = vmatpush2.bf16.msra.mxu1 %v20137_v33  ;;  %6585 = vmatprep.subr.bf16.mxu0 %v20138_v58  ;;  %v20215_v33 = vld [vmem:[%s23760_s30 + $0x87c] ss:$72 sps:$4 sm:$0xff]   ;;  %v20221_v58 = vld [vmem:[%s23760_s30 + $0x7ec] ss:$72 sps:$4 sm:$0xff]  }
 0x2d8   : > { %6628 = vmatprep.subr.bf16.mxu1 %v20140_v59  ;;  %v20216_v59 = vld [vmem:[%s23760_s30 + $0x19e0] ss:$72 sps:$4 sm:$0xff]  }
 0x2da   : > { %6586 = vmatpush2.bf16.msra.mxu0 %v20142_v60  ;;  %v20219_v60 = vld [vmem:[%s23760_s30 + $0x7e8] ss:$72 sps:$4 sm:$0xff]  }
 0x2db   : > { %6629 = vmatpush2.bf16.msra.mxu1 %v20143_v37  ;;  %6587 = vmatprep.subr.bf16.mxu0 %v20144_v61  ;;  %v20224_v37 = vld [vmem:[%s23760_s30 + $0x1954] ss:$72 sps:$4 sm:$0xff]  }
 0x2dc   : > { %6630 = vmatprep.subr.bf16.mxu1 %v20146_v62  ;;  %v20227_v61 = vld [vmem:[%s23760_s30 + $0x75c] ss:$72 sps:$4 sm:$0xff]   ;;  %v20222_v62 = vld [vmem:[%s23760_s30 + $0x1950] ss:$72 sps:$4 sm:$0xff]  }
 0x2de   : > { %6588 = vmatpush2.bf16.msra.mxu0 %v20148_v63  ;;  %v20225_v63 = vld [vmem:[%s23760_s30 + $0x758] ss:$72 sps:$4 sm:$0xff]  }
 0x2df   : > { %6631 = vmatpush2.bf16.msra.mxu1 %v20149_v0  ;;  %6589 = vmatprep.subr.bf16.mxu0 %v20150_v1  ;;  %v20230_v0 = vld [vmem:[%s23760_s30 + $0x18c4] ss:$72 sps:$4 sm:$0xff]  }
 0x2e0   : > { %6632 = vmatprep.subr.bf16.mxu1 %v20152_v38  ;;  %v20233_v1 = vld [vmem:[%s23760_s30 + $0x6cc] ss:$72 sps:$4 sm:$0xff]   ;;  %v20228_v38 = vld [vmem:[%s23760_s30 + $0x18c0] ss:$72 sps:$4 sm:$0xff]  }
 0x2e2   : > { %6590 = vmatpush2.bf16.msra.mxu0 %v20154_v42  ;;  %v20231_v42 = vld [vmem:[%s23760_s30 + $0x6c8] ss:$72 sps:$4 sm:$0xff]  }
 0x2e3   : > { %6633 = vmatpush2.bf16.msra.mxu1 %v20155_v47  ;;  %6591 = vmatprep.subr.bf16.mxu0 %v20156_v52  ;;  %v20236_v47 = vld [vmem:[%s23760_s30 + $0x1834] ss:$72 sps:$4 sm:$0xff]  }
 0x2e4   : > { %6634 = vmatprep.subr.bf16.mxu1 %v20158_v2  ;;  %v20239_v52 = vld [vmem:[%s23760_s30 + $0x63c] ss:$72 sps:$4 sm:$0xff]   ;;  %v20234_v2 = vld [vmem:[%s23760_s30 + $0x1830] ss:$72 sps:$4 sm:$0xff]  }
 0x2e6   : > { %6592 = vmatpush2.bf16.msra.mxu0 %v20160_v3  ;;  %v20237_v3 = vld [vmem:[%s23760_s30 + $0x638] ss:$72 sps:$4 sm:$0xff]  }
 0x2e7   : > { %6635 = vmatpush2.bf16.msra.mxu1 %v20161_v4  ;;  %6647 = vmatprep.subr.bf16.mxu0 %v20164_v7  ;;  %v20242_v4 = vld [vmem:[%s23760_s30 + $0x17a4] ss:$72 sps:$4 sm:$0xff]   ;;  %v20243_v7 = vld [vmem:[%s23760_s30 + $0x5a8] ss:$72 sps:$4 sm:$0xff]  }
 0x2e8   : > { %6690 = vmatprep.subr.bf16.mxu1 %v20167_v10  ;;  %v20246_v10 = vld [vmem:[%s23760_s30 + $0x1710] ss:$72 sps:$4 sm:$0xff]  }
 0x2e9   : > { %6594 = vmatmul.mubr.bf16.vlgmr.msra.gmra.mxu0 %v23964_v11 }
 0x2ea   : > { %6637 = vmatmul.mubr.bf16.vlgmr.msra.gmra.mxu1 %v23968_v14  ;;  %6648 = vmatpush1.bf16.msra.mxu0 %v20162_v12  ;;  %v20249_v12 = vld [vmem:[%s23760_s30 + $0x518] ss:$72 sps:$4 sm:$0xff]  }
 0x2eb   : > { %6691 = vmatpush1.bf16.msra.mxu1 %v20165_v13  ;;  %6649 = vmatprep.subr.bf16.mxu0 %v20170_v15  ;;  %v20254_v13 = vld [vmem:[%s23760_s30 + $0x1684] ss:$72 sps:$4 sm:$0xff]  }
 0x2ec   : > { %6692 = vmatprep.subr.bf16.mxu1 %v20173_v16  ;;  %6722 = vmatprep.mubr.bf16.mxu1 %v23940_v55  ;;  %v20257_v15 = vld [vmem:[%s23760_s30 + $0x48c] ss:$72 sps:$4 sm:$0xff]   ;;  %v20252_v16 = vld [vmem:[%s23760_s30 + $0x1680] ss:$72 sps:$4 sm:$0xff]  }
 0x2ed   : > { %6679 = vmatprep.mubr.bf16.mxu0 %v23999_v53 }
 0x2ee   : > { %6650 = vmatpush1.bf16.msra.mxu0 %v20168_v17  ;;  %v20255_v17 = vld [vmem:[%s23760_s30 + $0x488] ss:$72 sps:$4 sm:$0xff]  }
 0x2ef   : > { %6693 = vmatpush1.bf16.msra.mxu1 %v20171_v18  ;;  %6651 = vmatprep.subr.bf16.mxu0 %v20176_v19  ;;  %v1267_v18 = vld [vmem:[#allocation2 + $0x50] sm:$0xff] }
 0x2f0   : > { %6694 = vmatprep.subr.bf16.mxu1 %v20179_v20  ;;  %v1273_v19 = vld [vmem:[#allocation2 + $0x10] sm:$0xff] }
 0x2f1   : > { %v20260_v20 = vld [vmem:[%s23760_s30 + $0xcfc] ss:$72 sps:$4 sm:$0xff]  }
 0x2f2   : > { %6652 = vmatpush1.bf16.msra.mxu0 %v20174_v21  ;;  %v20263_v21 = vld [vmem:[%s23760_s30 + $0x15fc] ss:$72 sps:$4 sm:$0xff]  }
 0x2f3   : > { %6695 = vmatpush1.bf16.msra.mxu1 %v20177_v22  ;;  %6653 = vmatprep.subr.bf16.mxu0 %v20182_v23  ;;  %v24038_v22 = vpack.c.bf16 %v1273_v19, %v1267_v18  ;;  %v20258_v23 = vld [vmem:[%s23760_s30 + $0xcf8] ss:$72 sps:$4 sm:$0xff]   ;;  %v20344_v18 = vld [vmem:[%s23760_s30 + $0xe1c] ss:$72 sps:$4 sm:$0xff]  }
 0x2f4   : > { %6696 = vmatprep.subr.bf16.mxu1 %v20185_v24  ;;  %v20261_v24 = vld [vmem:[%s23760_s30 + $0x15f8] ss:$72 sps:$4 sm:$0xff]   ;;  %v20347_v19 = vld [vmem:[%s23760_s30 + $0x171c] ss:$72 sps:$4 sm:$0xff]  }
 0x2f6   : > { %6654 = vmatpush1.bf16.msra.mxu0 %v20180_v28  ;;  %v20266_v28 = vld [vmem:[%s23760_s30 + $0xc6c] ss:$72 sps:$4 sm:$0xff]  }
 0x2f7   : > { %6697 = vmatpush1.bf16.msra.mxu1 %v20183_v30  ;;  %6655 = vmatprep.subr.bf16.mxu0 %v20188_v31  ;;  %v20269_v30 = vld [vmem:[%s23760_s30 + $0x156c] ss:$72 sps:$4 sm:$0xff]   ;;  %v20264_v31 = vld [vmem:[%s23760_s30 + $0xc68] ss:$72 sps:$4 sm:$0xff]  }
 0x2f8   : > { %6698 = vmatprep.subr.bf16.mxu1 %v20191_v32  ;;  %v20267_v32 = vld [vmem:[%s23760_s30 + $0x1568] ss:$72 sps:$4 sm:$0xff]  }
 0x2fa   : > { %6656 = vmatpush1.bf16.msra.mxu0 %v20186_v34  ;;  %v20272_v34 = vld [vmem:[%s23760_s30 + $0xbdc] ss:$72 sps:$4 sm:$0xff]  }
 0x2fb   : > { %6699 = vmatpush1.bf16.msra.mxu1 %v20189_v35  ;;  %6657 = vmatprep.subr.bf16.mxu0 %v20194_v40  ;;  %v20275_v35 = vld [vmem:[%s23760_s30 + $0x14dc] ss:$72 sps:$4 sm:$0xff]   ;;  %v20270_v40 = vld [vmem:[%s23760_s30 + $0xbd8] ss:$72 sps:$4 sm:$0xff]  }
 0x2fc   : > { %6700 = vmatprep.subr.bf16.mxu1 %v20197_v41  ;;  %v20273_v41 = vld [vmem:[%s23760_s30 + $0x14d8] ss:$72 sps:$4 sm:$0xff]  }
 0x2fe   : > { %6658 = vmatpush1.bf16.msra.mxu0 %v20192_v43  ;;  %v20278_v43 = vld [vmem:[%s23760_s30 + $0xb4c] ss:$72 sps:$4 sm:$0xff]  }
 0x2ff   : > { %6701 = vmatpush1.bf16.msra.mxu1 %v20195_v44  ;;  %6659 = vmatprep.subr.bf16.mxu0 %v20200_v45  ;;  %v20281_v44 = vld [vmem:[%s23760_s30 + $0x144c] ss:$72 sps:$4 sm:$0xff]   ;;  %v20276_v45 = vld [vmem:[%s23760_s30 + $0xb48] ss:$72 sps:$4 sm:$0xff]  }
 0x300   : > { %6702 = vmatprep.subr.bf16.mxu1 %v20203_v46  ;;  %v20279_v46 = vld [vmem:[%s23760_s30 + $0x1448] ss:$72 sps:$4 sm:$0xff]  }
 0x302   : > { %6660 = vmatpush1.bf16.msra.mxu0 %v20198_v48  ;;  %v20284_v48 = vld [vmem:[%s23760_s30 + $0xabc] ss:$72 sps:$4 sm:$0xff]  }
 0x303   : > { %6703 = vmatpush1.bf16.msra.mxu1 %v20201_v49  ;;  %6661 = vmatprep.subr.bf16.mxu0 %v20206_v50  ;;  %v20287_v49 = vld [vmem:[%s23760_s30 + $0x13bc] ss:$72 sps:$4 sm:$0xff]   ;;  %v20282_v50 = vld [vmem:[%s23760_s30 + $0xab8] ss:$72 sps:$4 sm:$0xff]  }
 0x304   : > { %6704 = vmatprep.subr.bf16.mxu1 %v20209_v26  ;;  %v20293_v26 = vld [vmem:[%s23760_s30 + $0x132c] ss:$72 sps:$4 sm:$0xff]  }
 0x306   : > { %6662 = vmatpush1.bf16.msra.mxu0 %v20204_v27  ;;  %v20288_v27 = vld [vmem:[%s23760_s30 + $0xa28] ss:$72 sps:$4 sm:$0xff]  }
 0x307   : > { %6705 = vmatpush1.bf16.msra.mxu1 %v20207_v29  ;;  %6663 = vmatprep.subr.bf16.mxu0 %v20212_v54  ;;  %v20291_v29 = vld [vmem:[%s23760_s30 + $0x1328] ss:$72 sps:$4 sm:$0xff]   ;;  %v20296_v54 = vld [vmem:[%s23760_s30 + $0x99c] ss:$72 sps:$4 sm:$0xff]  }
 0x308   : > { %6706 = vmatprep.subr.bf16.mxu1 %v20215_v33  ;;  %v20299_v33 = vld [vmem:[%s23760_s30 + $0x129c] ss:$72 sps:$4 sm:$0xff]  }
 0x30a   : > { %6664 = vmatpush2.bf16.msra.mxu0 %v20210_v39  ;;  %v20294_v39 = vld [vmem:[%s23760_s30 + $0x998] ss:$72 sps:$4 sm:$0xff]  }
 0x30b   : > { %6707 = vmatpush2.bf16.msra.mxu1 %v20213_v56  ;;  %6665 = vmatprep.subr.bf16.mxu0 %v20218_v57  ;;  %v20297_v56 = vld [vmem:[%s23760_s30 + $0x1298] ss:$72 sps:$4 sm:$0xff]   ;;  %v20302_v57 = vld [vmem:[%s23760_s30 + $0x90c] ss:$72 sps:$4 sm:$0xff]  }
 0x30c   : > { %6708 = vmatprep.subr.bf16.mxu1 %v20221_v58  ;;  %v20305_v58 = vld [vmem:[%s23760_s30 + $0x120c] ss:$72 sps:$4 sm:$0xff]  }
 0x30e   : > { %6666 = vmatpush2.bf16.msra.mxu0 %v20216_v59  ;;  %v20300_v59 = vld [vmem:[%s23760_s30 + $0x908] ss:$72 sps:$4 sm:$0xff]  }
 0x30f   : > { %6709 = vmatpush2.bf16.msra.mxu1 %v20219_v60  ;;  %6667 = vmatprep.subr.bf16.mxu0 %v20224_v37  ;;  %v20303_v60 = vld [vmem:[%s23760_s30 + $0x1208] ss:$72 sps:$4 sm:$0xff]   ;;  %v20308_v37 = vld [vmem:[%s23760_s30 + $0x117c] ss:$72 sps:$4 sm:$0xff]  }
 0x310   : > { %6710 = vmatprep.subr.bf16.mxu1 %v20227_v61  ;;  %v20311_v61 = vld [vmem:[%s23760_s30 + $0x1a7c] ss:$72 sps:$4 sm:$0xff]  }
 0x312   : > { %6668 = vmatpush2.bf16.msra.mxu0 %v20222_v62  ;;  %v20306_v62 = vld [vmem:[%s23760_s30 + $0x1178] ss:$72 sps:$4 sm:$0xff]  }
 0x313   : > { %6711 = vmatpush2.bf16.msra.mxu1 %v20225_v63  ;;  %6669 = vmatprep.subr.bf16.mxu0 %v20230_v0  ;;  %v20309_v63 = vld [vmem:[%s23760_s30 + $0x1a78] ss:$72 sps:$4 sm:$0xff]   ;;  %v20314_v0 = vld [vmem:[%s23760_s30 + $0x10ec] ss:$72 sps:$4 sm:$0xff]  }
 0x314   : > { %6712 = vmatprep.subr.bf16.mxu1 %v20233_v1  ;;  %v20317_v1 = vld [vmem:[%s23760_s30 + $0x19ec] ss:$72 sps:$4 sm:$0xff]  }
 0x316   : > { %6670 = vmatpush2.bf16.msra.mxu0 %v20228_v38  ;;  %v20312_v38 = vld [vmem:[%s23760_s30 + $0x10e8] ss:$72 sps:$4 sm:$0xff]  }
 0x317   : > { %6713 = vmatpush2.bf16.msra.mxu1 %v20231_v42  ;;  %6671 = vmatprep.subr.bf16.mxu0 %v20236_v47  ;;  %v20315_v42 = vld [vmem:[%s23760_s30 + $0x19e8] ss:$72 sps:$4 sm:$0xff]   ;;  %v20320_v47 = vld [vmem:[%s23760_s30 + $0x105c] ss:$72 sps:$4 sm:$0xff]  }
 0x318   : > { %6714 = vmatprep.subr.bf16.mxu1 %v20239_v52  ;;  %v20323_v52 = vld [vmem:[%s23760_s30 + $0x195c] ss:$72 sps:$4 sm:$0xff]  }
 0x31a   : > { %6672 = vmatpush2.bf16.msra.mxu0 %v20234_v2  ;;  %v20318_v2 = vld [vmem:[%s23760_s30 + $0x1058] ss:$72 sps:$4 sm:$0xff]  }
 0x31b   : > { %6715 = vmatpush2.bf16.msra.mxu1 %v20237_v3  ;;  %6673 = vmatprep.subr.bf16.mxu0 %v20242_v4  ;;  %v20321_v3 = vld [vmem:[%s23760_s30 + $0x1958] ss:$72 sps:$4 sm:$0xff]   ;;  %v20326_v4 = vld [vmem:[%s23760_s30 + $0xfcc] ss:$72 sps:$4 sm:$0xff]  }
 0x31c   : > { %6716 = vmatprep.subr.bf16.mxu1 %v20245_v5  ;;  %v20329_v5 = vld [vmem:[%s23760_s30 + $0x18cc] ss:$72 sps:$4 sm:$0xff]  }
 0x31e   : > { %6674 = vmatpush2.bf16.msra.mxu0 %v20240_v6  ;;  %v20324_v6 = vld [vmem:[%s23760_s30 + $0xfc8] ss:$72 sps:$4 sm:$0xff]  }
 0x31f   : > { %6717 = vmatpush2.bf16.msra.mxu1 %v20243_v7  ;;  %6675 = vmatprep.subr.bf16.mxu0 %v20248_v8  ;;  %v20327_v7 = vld [vmem:[%s23760_s30 + $0x18c8] ss:$72 sps:$4 sm:$0xff]   ;;  %v20332_v8 = vld [vmem:[%s23760_s30 + $0xf3c] ss:$72 sps:$4 sm:$0xff]  }
 0x320   : > { %6718 = vmatprep.subr.bf16.mxu1 %v20251_v9  ;;  %v20335_v9 = vld [vmem:[%s23760_s30 + $0x183c] ss:$72 sps:$4 sm:$0xff]  }
 0x322   : > { %6676 = vmatpush2.bf16.msra.mxu0 %v20246_v10  ;;  %v20330_v10 = vld [vmem:[%s23760_s30 + $0xf38] ss:$72 sps:$4 sm:$0xff]  }
 0x323   : > { %6719 = vmatpush2.bf16.msra.mxu1 %v20249_v12  ;;  %6677 = vmatprep.subr.bf16.mxu0 %v20254_v13  ;;  %v20333_v12 = vld [vmem:[%s23760_s30 + $0x1838] ss:$72 sps:$4 sm:$0xff]   ;;  %v20338_v13 = vld [vmem:[%s23760_s30 + $0xeac] ss:$72 sps:$4 sm:$0xff]  }
 0x324   : > { %6720 = vmatprep.subr.bf16.mxu1 %v20257_v15  ;;  %v20341_v15 = vld [vmem:[%s23760_s30 + $0x17ac] ss:$72 sps:$4 sm:$0xff]  }
 0x326   : > { %6678 = vmatpush2.bf16.msra.mxu0 %v20252_v16  ;;  %v20336_v16 = vld [vmem:[%s23760_s30 + $0xea8] ss:$72 sps:$4 sm:$0xff]  }
 0x327   : > { %6721 = vmatpush2.bf16.msra.mxu1 %v20255_v17  ;;  %6733 = vmatprep.subr.bf16.mxu0 %v20260_v20  ;;  %v20339_v17 = vld [vmem:[%s23760_s30 + $0x17a8] ss:$72 sps:$4 sm:$0xff]   ;;  %v20342_v20 = vld [vmem:[%s23760_s30 + $0xe18] ss:$72 sps:$4 sm:$0xff]  }
 0x328   : > { %6776 = vmatprep.subr.bf16.mxu1 %v20263_v21  ;;  %v20345_v21 = vld [vmem:[%s23760_s30 + $0x1718] ss:$72 sps:$4 sm:$0xff]  }
 0x329   : > { %6680 = vmatmul.mubr.bf16.vlgmr.msra.gmra.mxu0 %v24038_v22 }
 0x32a   : > { %6723 = vmatmul.mubr.bf16.vlgmr.msra.gmra.mxu1 %v23964_v11  ;;  %6734 = vmatpush1.bf16.msra.mxu0 %v20258_v23  ;;  %v20350_v23 = vld [vmem:[%s23760_s30 + $0xd8c] ss:$72 sps:$4 sm:$0xff]  }
 0x32b   : > { %6777 = vmatpush1.bf16.msra.mxu1 %v20261_v24  ;;  %6735 = vmatprep.subr.bf16.mxu0 %v20266_v28  ;;  %v20353_v24 = vld [vmem:[%s23760_s30 + $0x168c] ss:$72 sps:$4 sm:$0xff]   ;;  %v20348_v28 = vld [vmem:[%s23760_s30 + $0xd88] ss:$72 sps:$4 sm:$0xff]  }
 0x32c   : > { %6778 = vmatprep.subr.bf16.mxu1 %v20269_v30  ;;  %6765 = vmatprep.mubr.bf16.mxu0 %v23944_v36  ;;  %v20351_v30 = vld [vmem:[%s23760_s30 + $0x1688] ss:$72 sps:$4 sm:$0xff]  }
 0x32d   : > { %6808 = vmatprep.mubr.bf16.mxu1 %v23999_v53 }
 0x32e   : > { %6736 = vmatpush1.bf16.msra.mxu0 %v20264_v31  ;;  %v20356_v31 = vld [vmem:[%s23760_s30 + $0x404] ss:$72 sps:$4 sm:$0xff]  }
 0x32f   : > { %6779 = vmatpush1.bf16.msra.mxu1 %v20267_v32  ;;  %6737 = vmatprep.subr.bf16.mxu0 %v20272_v34  ;;  %v20359_v32 = vld [vmem:[%s23760_s30 + $0xd04] ss:$72 sps:$4 sm:$0xff]   ;;  %v20354_v34 = vld [vmem:[%s23760_s30 + $0x400] ss:$72 sps:$4 sm:$0xff]  }
 0x330   : > { %6780 = vmatprep.subr.bf16.mxu1 %v20275_v35  ;;  %v20357_v35 = vld [vmem:[%s23760_s30 + $0xd00] ss:$72 sps:$4 sm:$0xff]  }
 0x332   : > { %6738 = vmatpush1.bf16.msra.mxu0 %v20270_v40  ;;  %v20362_v40 = vld [vmem:[%s23760_s30 + $0x374] ss:$72 sps:$4 sm:$0xff]  }
 0x333   : > { %6781 = vmatpush1.bf16.msra.mxu1 %v20273_v41  ;;  %6739 = vmatprep.subr.bf16.mxu0 %v20278_v43  ;;  %v20365_v41 = vld [vmem:[%s23760_s30 + $0xc74] ss:$72 sps:$4 sm:$0xff]   ;;  %v20360_v43 = vld [vmem:[%s23760_s30 + $0x370] ss:$72 sps:$4 sm:$0xff]  }
 0x334   : > { %6782 = vmatprep.subr.bf16.mxu1 %v20281_v44  ;;  %v20363_v44 = vld [vmem:[%s23760_s30 + $0xc70] ss:$72 sps:$4 sm:$0xff]  }
 0x336   : > { %6740 = vmatpush1.bf16.msra.mxu0 %v20276_v45  ;;  %v20368_v45 = vld [vmem:[%s23760_s30 + $0x2e4] ss:$72 sps:$4 sm:$0xff]  }
 0x337   : > { %6783 = vmatpush1.bf16.msra.mxu1 %v20279_v46  ;;  %6741 = vmatprep.subr.bf16.mxu0 %v20284_v48  ;;  %v20371_v46 = vld [vmem:[%s23760_s30 + $0xbe4] ss:$72 sps:$4 sm:$0xff]   ;;  %v20366_v48 = vld [vmem:[%s23760_s30 + $0x2e0] ss:$72 sps:$4 sm:$0xff]  }
 0x338   : > { %6784 = vmatprep.subr.bf16.mxu1 %v20287_v49  ;;  %v20369_v49 = vld [vmem:[%s23760_s30 + $0xbe0] ss:$72 sps:$4 sm:$0xff]  }
 0x33a   : > { %6742 = vmatpush1.bf16.msra.mxu0 %v20282_v50  ;;  %v20374_v50 = vld [vmem:[%s23760_s30 + $0x254] ss:$72 sps:$4 sm:$0xff]  }
 0x33b   : > { %6785 = vmatpush1.bf16.msra.mxu1 %v20285_v25  ;;  %6743 = vmatprep.subr.bf16.mxu0 %v20290_v51  ;;  %v20377_v25 = vld [vmem:[%s23760_s30 + $0xb54] ss:$72 sps:$4 sm:$0xff]   ;;  %v20372_v51 = vld [vmem:[%s23760_s30 + $0x250] ss:$72 sps:$4 sm:$0xff]  }
 0x33c   : > { %6786 = vmatprep.subr.bf16.mxu1 %v20293_v26  ;;  %v20375_v26 = vld [vmem:[%s23760_s30 + $0xb50] ss:$72 sps:$4 sm:$0xff]  }
 0x33e   : > { %6744 = vmatpush1.bf16.msra.mxu0 %v20288_v27  ;;  %v20380_v27 = vld [vmem:[%s23760_s30 + $0x1c4] ss:$72 sps:$4 sm:$0xff]  }
 0x33f   : > { %6787 = vmatpush1.bf16.msra.mxu1 %v20291_v29  ;;  %6745 = vmatprep.subr.bf16.mxu0 %v20296_v54  ;;  %v20383_v29 = vld [vmem:[%s23760_s30 + $0xac4] ss:$72 sps:$4 sm:$0xff]   ;;  %v20378_v54 = vld [vmem:[%s23760_s30 + $0x1c0] ss:$72 sps:$4 sm:$0xff]  }
 0x340   : > { %6788 = vmatprep.subr.bf16.mxu1 %v20299_v33  ;;  %v20381_v33 = vld [vmem:[%s23760_s30 + $0xac0] ss:$72 sps:$4 sm:$0xff]  }
 0x342   : > { %6746 = vmatpush1.bf16.msra.mxu0 %v20294_v39  ;;  %v20386_v39 = vld [vmem:[%s23760_s30 + $0x134] ss:$72 sps:$4 sm:$0xff]  }
 0x343   : > { %6789 = vmatpush1.bf16.msra.mxu1 %v20297_v56  ;;  %6747 = vmatprep.subr.bf16.mxu0 %v20302_v57  ;;  %v20389_v56 = vld [vmem:[%s23760_s30 + $0xa34] ss:$72 sps:$4 sm:$0xff]   ;;  %v20384_v57 = vld [vmem:[%s23760_s30 + $0x130] ss:$72 sps:$4 sm:$0xff]  }
 0x344   : > { %6790 = vmatprep.subr.bf16.mxu1 %v20305_v58  ;;  %v20387_v58 = vld [vmem:[%s23760_s30 + $0xa30] ss:$72 sps:$4 sm:$0xff]  }
 0x346   : > { %6748 = vmatpush1.bf16.msra.mxu0 %v20300_v59  ;;  %v20392_v59 = vld [vmem:[%s23760_s30 + $0xa4] ss:$72 sps:$4 sm:$0xff]  }
 0x347   : > { %6791 = vmatpush1.bf16.msra.mxu1 %v20303_v60  ;;  %6749 = vmatprep.subr.bf16.mxu0 %v20308_v37  ;;  %v20395_v60 = vld [vmem:[%s23760_s30 + $0x9a4] ss:$72 sps:$4 sm:$0xff]   ;;  %v20390_v37 = vld [vmem:[%s23760_s30 + $0xa0] ss:$72 sps:$4 sm:$0xff]  }
 0x348   : > { %6792 = vmatprep.subr.bf16.mxu1 %v20311_v61  ;;  %v20393_v61 = vld [vmem:[%s23760_s30 + $0x9a0] ss:$72 sps:$4 sm:$0xff]  }
 0x34a   : > { %6750 = vmatpush2.bf16.msra.mxu0 %v20306_v62  ;;  %v20398_v62 = vld [vmem:[%s23760_s30 + $0x14] ss:$72 sps:$4 sm:$0xff]  }
 0x34b   : > { %6793 = vmatpush2.bf16.msra.mxu1 %v20309_v63  ;;  %6751 = vmatprep.subr.bf16.mxu0 %v20314_v0  ;;  %v20401_v63 = vld [vmem:[%s23760_s30 + $0x914] ss:$72 sps:$4 sm:$0xff]   ;;  %v20396_v0 = vld [vmem:[%s23760_s30 + $0x10] ss:$72 sps:$4 sm:$0xff]  }
 0x34c   : > { %6794 = vmatprep.subr.bf16.mxu1 %v20317_v1  ;;  %v20399_v1 = vld [vmem:[%s23760_s30 + $0x910] ss:$72 sps:$4 sm:$0xff]  }
 0x34e   : > { %6752 = vmatpush2.bf16.msra.mxu0 %v20312_v38  ;;  %v20404_v38 = vld [vmem:[%s23760_s30 + $0x884] ss:$72 sps:$4 sm:$0xff]  }
 0x34f   : > { %6795 = vmatpush2.bf16.msra.mxu1 %v20315_v42  ;;  %6753 = vmatprep.subr.bf16.mxu0 %v20320_v47  ;;  %v20407_v42 = vld [vmem:[%s23760_s30 + $0x1184] ss:$72 sps:$4 sm:$0xff]   ;;  %v20402_v47 = vld [vmem:[%s23760_s30 + $0x880] ss:$72 sps:$4 sm:$0xff]  }
 0x350   : > { %6796 = vmatprep.subr.bf16.mxu1 %v20323_v52  ;;  %v20405_v52 = vld [vmem:[%s23760_s30 + $0x1180] ss:$72 sps:$4 sm:$0xff]  }
 0x352   : > { %6754 = vmatpush2.bf16.msra.mxu0 %v20318_v2  ;;  %v20410_v2 = vld [vmem:[%s23760_s30 + $0x7f4] ss:$72 sps:$4 sm:$0xff]  }
 0x353   : > { %6797 = vmatpush2.bf16.msra.mxu1 %v20321_v3  ;;  %6755 = vmatprep.subr.bf16.mxu0 %v20326_v4  ;;  %v20413_v3 = vld [vmem:[%s23760_s30 + $0x10f4] ss:$72 sps:$4 sm:$0xff]   ;;  %v20408_v4 = vld [vmem:[%s23760_s30 + $0x7f0] ss:$72 sps:$4 sm:$0xff]  }
 0x354   : > { %6798 = vmatprep.subr.bf16.mxu1 %v20329_v5  ;;  %v20411_v5 = vld [vmem:[%s23760_s30 + $0x10f0] ss:$72 sps:$4 sm:$0xff]  }
 0x356   : > { %6756 = vmatpush2.bf16.msra.mxu0 %v20324_v6  ;;  %v20416_v6 = vld [vmem:[%s23760_s30 + $0x764] ss:$72 sps:$4 sm:$0xff]  }
 0x357   : > { %6799 = vmatpush2.bf16.msra.mxu1 %v20327_v7  ;;  %6757 = vmatprep.subr.bf16.mxu0 %v20332_v8  ;;  %v20419_v7 = vld [vmem:[%s23760_s30 + $0x1064] ss:$72 sps:$4 sm:$0xff]   ;;  %v20414_v8 = vld [vmem:[%s23760_s30 + $0x760] ss:$72 sps:$4 sm:$0xff]  }
 0x358   : > { %6800 = vmatprep.subr.bf16.mxu1 %v20335_v9  ;;  %v20417_v9 = vld [vmem:[%s23760_s30 + $0x1060] ss:$72 sps:$4 sm:$0xff]  }
 0x35a   : > { %6758 = vmatpush2.bf16.msra.mxu0 %v20330_v10  ;;  %v20422_v10 = vld [vmem:[%s23760_s30 + $0x6d4] ss:$72 sps:$4 sm:$0xff]  }
 0x35b   : > { %6801 = vmatpush2.bf16.msra.mxu1 %v20333_v12  ;;  %6759 = vmatprep.subr.bf16.mxu0 %v20338_v13  ;;  %v20425_v12 = vld [vmem:[%s23760_s30 + $0xfd4] ss:$72 sps:$4 sm:$0xff]   ;;  %v20420_v13 = vld [vmem:[%s23760_s30 + $0x6d0] ss:$72 sps:$4 sm:$0xff]  }
 0x35c   : > { %6802 = vmatprep.subr.bf16.mxu1 %v20341_v15  ;;  %v20423_v15 = vld [vmem:[%s23760_s30 + $0xfd0] ss:$72 sps:$4 sm:$0xff]  }
 0x35e   : > { %6760 = vmatpush2.bf16.msra.mxu0 %v20336_v16  ;;  %v20428_v16 = vld [vmem:[%s23760_s30 + $0x644] ss:$72 sps:$4 sm:$0xff]  }
 0x35f   : > { %6803 = vmatpush2.bf16.msra.mxu1 %v20339_v17  ;;  %6761 = vmatprep.subr.bf16.mxu0 %v20344_v18  ;;  %v20431_v17 = vld [vmem:[%s23760_s30 + $0xf44] ss:$72 sps:$4 sm:$0xff]   ;;  %v20426_v18 = vld [vmem:[%s23760_s30 + $0x640] ss:$72 sps:$4 sm:$0xff]  }
 0x360   : > { %6804 = vmatprep.subr.bf16.mxu1 %v20347_v19  ;;  %v20429_v19 = vld [vmem:[%s23760_s30 + $0xf40] ss:$72 sps:$4 sm:$0xff]  }
 0x362   : > { %6762 = vmatpush2.bf16.msra.mxu0 %v20342_v20  ;;  %v20434_v20 = vld [vmem:[%s23760_s30 + $0x5b4] ss:$72 sps:$4 sm:$0xff]  }
 0x363   : > { %6805 = vmatpush2.bf16.msra.mxu1 %v20345_v21  ;;  %6763 = vmatprep.subr.bf16.mxu0 %v20350_v23  ;;  %v20437_v21 = vld [vmem:[%s23760_s30 + $0xeb4] ss:$72 sps:$4 sm:$0xff]   ;;  %v20432_v23 = vld [vmem:[%s23760_s30 + $0x5b0] ss:$72 sps:$4 sm:$0xff]  }
 0x364   : > { %6806 = vmatprep.subr.bf16.mxu1 %v20353_v24  ;;  %v20435_v24 = vld [vmem:[%s23760_s30 + $0xeb0] ss:$72 sps:$4 sm:$0xff]  }
 0x366   : > { %6764 = vmatpush2.bf16.msra.mxu0 %v20348_v28  ;;  %v20440_v28 = vld [vmem:[%s23760_s30 + $0x524] ss:$72 sps:$4 sm:$0xff]  }
 0x367   : > { %6807 = vmatpush2.bf16.msra.mxu1 %v20351_v30  ;;  %6819 = vmatprep.subr.bf16.mxu0 %v20356_v31  ;;  %v20443_v30 = vld [vmem:[%s23760_s30 + $0xe24] ss:$72 sps:$4 sm:$0xff]   ;;  %v2151_v31 = vlaneseq }
 0x368   : > { %6862 = vmatprep.subr.bf16.mxu1 %v20359_v32  ;;  %v20438_v32 = vld [vmem:[%s23760_s30 + $0x520] ss:$72 sps:$4 sm:$0xff]  }
 0x369   : > { %6766 = vmatmul.mubr.bf16.vlgmr.msra.gmra.mxu0 %v23968_v14 }
 0x36a   : > { %6809 = vmatmul.mubr.bf16.vlgmr.msra.gmra.mxu1 %v24038_v22  ;;  %6820 = vmatpush1.bf16.msra.mxu0 %v20354_v34  ;;  %v20441_v34 = vld [vmem:[%s23760_s30 + $0xe20] ss:$72 sps:$4 sm:$0xff]  }
 0x36b   : > { %6863 = vmatpush1.bf16.msra.mxu1 %v20357_v35  ;;  %6821 = vmatprep.subr.bf16.mxu0 %v20362_v40  ;;  %v20446_v35 = vld [vmem:[%s23760_s30 + $0x494] ss:$72 sps:$4 sm:$0xff]  }
 0x36c   : > { %6864 = vmatprep.subr.bf16.mxu1 %v20365_v41  ;;  %6851 = vmatprep.mubr.bf16.mxu0 %v23940_v55  ;;  %v20449_v40 = vld [vmem:[%s23760_s30 + $0xd94] ss:$72 sps:$4 sm:$0xff]   ;;  %v24172_v41 = vshrl.u32 %v2151_v31, 7 }
 0x36d   : > { %6894 = vmatprep.mubr.bf16.mxu1 %v23944_v36  ;;  %v20515_v31 = vld [vmem:[%s23760_s30 + $0x76c] ss:$72 sps:$4 sm:$0xff]  }
 0x36e   : > { %6822 = vmatpush1.bf16.msra.mxu0 %v20360_v43  ;;  %v20444_v43 = vld [vmem:[%s23760_s30 + $0x490] ss:$72 sps:$4 sm:$0xff]  }
 0x36f   : > { %6865 = vmatpush1.bf16.msra.mxu1 %v20363_v44  ;;  %6823 = vmatprep.subr.bf16.mxu0 %v20368_v45  ;;  %v20447_v44 = vld [vmem:[%s23760_s30 + $0xd90] ss:$72 sps:$4 sm:$0xff]   ;;  %v20452_v45 = vld [vmem:[%s23760_s30 + $0x1604] ss:$72 sps:$4 sm:$0xff]  }
 0x370   : > { %6866 = vmatprep.subr.bf16.mxu1 %v20371_v46  ;;  %v20455_v46 = vld [vmem:[%s23760_s30 + $0x40c] ss:$72 sps:$4 sm:$0xff]  }
 0x372   : > { %6824 = vmatpush1.bf16.msra.mxu0 %v20366_v48  ;;  %v24179_v48 = vld [vmem:[%s23769_s21] sm:$0xff] }
 0x373   : > { %6867 = vmatpush1.bf16.msra.mxu1 %v20369_v49  ;;  %6825 = vmatprep.subr.bf16.mxu0 %v20374_v50  ;;  %v24182_v49 = vsub.s32 1, %v24172_v41  ;;  %v20450_v50 = vld [vmem:[%s23760_s30 + $0x1600] ss:$72 sps:$4 sm:$0xff]  }
 0x374   : > { %6868 = vmatprep.subr.bf16.mxu1 %v20377_v25  ;;  %v20453_v25 = vld [vmem:[%s23760_s30 + $0x408] ss:$72 sps:$4 sm:$0xff]  }
 0x376   : > { %6826 = vmatpush1.bf16.msra.mxu0 %v20372_v51  ;;  %v20458_v51 = vld [vmem:[%s23760_s30 + $0x1574] ss:$72 sps:$4 sm:$0xff]  }
 0x377   : > { %6869 = vmatpush1.bf16.msra.mxu1 %v20375_v26  ;;  %6827 = vmatprep.subr.bf16.mxu0 %v20380_v27  ;;  %v20461_v26 = vld [vmem:[%s23760_s30 + $0x37c] ss:$72 sps:$4 sm:$0xff]   ;;  %v24190_v27 = vrot.slane %v24179_v48, %v24182_v49 }
 0x378   : > { %6870 = vmatprep.subr.bf16.mxu1 %v20383_v29 }
 0x37a   : > { %6828 = vmatpush1.bf16.msra.mxu0 %v20378_v54 }
 0x37b   : > { %6871 = vmatpush1.bf16.msra.mxu1 %v20381_v33  ;;  %6829 = vmatprep.subr.bf16.mxu0 %v20386_v39  ;;  %v20456_v33 = vld [vmem:[%s23760_s30 + $0x1570] ss:$72 sps:$4 sm:$0xff]  }
 0x37c   : > { %6872 = vmatprep.subr.bf16.mxu1 %v20389_v56  ;;  %v20459_v39 = vld [vmem:[%s23760_s30 + $0x378] ss:$72 sps:$4 sm:$0xff]   ;;  %v20464_v56 = vld [vmem:[%s23760_s30 + $0x14e4] ss:$72 sps:$4 sm:$0xff]  }
 0x37e   : > { %6830 = vmatpush1.bf16.msra.mxu0 %v20384_v57 }
 0x37f   : > { %6873 = vmatpush1.bf16.msra.mxu1 %v20387_v58  ;;  %6831 = vmatprep.subr.bf16.mxu0 %v20392_v59  ;;  %v20467_v59 = vld [vmem:[%s23760_s30 + $0x2ec] ss:$72 sps:$4 sm:$0xff]  }
 0x380   : > { %6874 = vmatprep.subr.bf16.mxu1 %v20395_v60 }
 0x382   : > { %6832 = vmatpush1.bf16.msra.mxu0 %v20390_v37  ;;  %v20462_v37 = vld [vmem:[%s23760_s30 + $0x14e0] ss:$72 sps:$4 sm:$0xff]  }
 0x383   : > { %6875 = vmatpush1.bf16.msra.mxu1 %v20393_v61  ;;  %6833 = vmatprep.subr.bf16.mxu0 %v20398_v62  ;;  %v20465_v62 = vld [vmem:[%s23760_s30 + $0x2e8] ss:$72 sps:$4 sm:$0xff]  }
 0x384   : > { %6876 = vmatprep.subr.bf16.mxu1 %v20401_v63  ;;  %v20470_v63 = vld [vmem:[%s23760_s30 + $0x1454] ss:$72 sps:$4 sm:$0xff]  }
 0x386   : > { %6834 = vmatpush1.bf16.msra.mxu0 %v20396_v0  ;;  %v20473_v0 = vld [vmem:[%s23760_s30 + $0x25c] ss:$72 sps:$4 sm:$0xff]  }
 0x387   : > { %6877 = vmatpush1.bf16.msra.mxu1 %v20399_v1  ;;  %6835 = vmatprep.subr.bf16.mxu0 %v20404_v38  ;;  %v20468_v1 = vld [vmem:[%s23760_s30 + $0x1450] ss:$72 sps:$4 sm:$0xff]  }
 0x388   : > { %6878 = vmatprep.subr.bf16.mxu1 %v20407_v42  ;;  %v20471_v38 = vld [vmem:[%s23760_s30 + $0x258] ss:$72 sps:$4 sm:$0xff]   ;;  %v20476_v42 = vld [vmem:[%s23760_s30 + $0x13c4] ss:$72 sps:$4 sm:$0xff]  }
 0x38a   : > { %6836 = vmatpush2.bf16.msra.mxu0 %v20402_v47  ;;  %v20479_v47 = vld [vmem:[%s23760_s30 + $0x1cc] ss:$72 sps:$4 sm:$0xff]  }
 0x38b   : > { %6879 = vmatpush2.bf16.msra.mxu1 %v20405_v52  ;;  %6837 = vmatprep.subr.bf16.mxu0 %v20410_v2  ;;  %v20474_v52 = vld [vmem:[%s23760_s30 + $0x13c0] ss:$72 sps:$4 sm:$0xff]  }
 0x38c   : > { %6880 = vmatprep.subr.bf16.mxu1 %v20413_v3  ;;  %v20477_v2 = vld [vmem:[%s23760_s30 + $0x1c8] ss:$72 sps:$4 sm:$0xff]   ;;  %v20482_v3 = vld [vmem:[%s23760_s30 + $0x1334] ss:$72 sps:$4 sm:$0xff]  }
 0x38e   : > { %6838 = vmatpush2.bf16.msra.mxu0 %v20408_v4  ;;  %v20485_v4 = vld [vmem:[%s23760_s30 + $0x13c] ss:$72 sps:$4 sm:$0xff]  }
 0x38f   : > { %6881 = vmatpush2.bf16.msra.mxu1 %v20411_v5  ;;  %6839 = vmatprep.subr.bf16.mxu0 %v20416_v6  ;;  %v20480_v5 = vld [vmem:[%s23760_s30 + $0x1330] ss:$72 sps:$4 sm:$0xff]  }
 0x390   : > { %6882 = vmatprep.subr.bf16.mxu1 %v20419_v7  ;;  %v20483_v6 = vld [vmem:[%s23760_s30 + $0x138] ss:$72 sps:$4 sm:$0xff]   ;;  %v20488_v7 = vld [vmem:[%s23760_s30 + $0x12a4] ss:$72 sps:$4 sm:$0xff]  }
 0x392   : > { %6840 = vmatpush2.bf16.msra.mxu0 %v20414_v8  ;;  %v20491_v8 = vld [vmem:[%s23760_s30 + $0xac] ss:$72 sps:$4 sm:$0xff]  }
 0x393   : > { %6883 = vmatpush2.bf16.msra.mxu1 %v20417_v9  ;;  %6841 = vmatprep.subr.bf16.mxu0 %v20422_v10  ;;  %v20486_v9 = vld [vmem:[%s23760_s30 + $0x12a0] ss:$72 sps:$4 sm:$0xff]  }
 0x394   : > { %6884 = vmatprep.subr.bf16.mxu1 %v20425_v12  ;;  %v20489_v10 = vld [vmem:[%s23760_s30 + $0xa8] ss:$72 sps:$4 sm:$0xff]   ;;  %v20494_v12 = vld [vmem:[%s23760_s30 + $0x1214] ss:$72 sps:$4 sm:$0xff]  }
 0x396   : > { %6842 = vmatpush2.bf16.msra.mxu0 %v20420_v13  ;;  %v20497_v13 = vld [vmem:[%s23760_s30 + $0x1c] ss:$72 sps:$4 sm:$0xff]  }
 0x397   : > { %6885 = vmatpush2.bf16.msra.mxu1 %v20423_v15  ;;  %6843 = vmatprep.subr.bf16.mxu0 %v20428_v16  ;;  %v20492_v15 = vld [vmem:[%s23760_s30 + $0x1210] ss:$72 sps:$4 sm:$0xff]  }
 0x398   : > { %6886 = vmatprep.subr.bf16.mxu1 %v20431_v17  ;;  %v20495_v16 = vld [vmem:[%s23760_s30 + $0x18] ss:$72 sps:$4 sm:$0xff]   ;;  %v20500_v17 = vld [vmem:[%s23760_s30 + $0x1a84] ss:$72 sps:$4 sm:$0xff]  }
 0x39a   : > { %6844 = vmatpush2.bf16.msra.mxu0 %v20426_v18  ;;  %v20503_v18 = vld [vmem:[%s23760_s30 + $0x88c] ss:$72 sps:$4 sm:$0xff]  }
 0x39b   : > { %6887 = vmatpush2.bf16.msra.mxu1 %v20429_v19  ;;  %6845 = vmatprep.subr.bf16.mxu0 %v20434_v20  ;;  %v20498_v19 = vld [vmem:[%s23760_s30 + $0x1a80] ss:$72 sps:$4 sm:$0xff]  }
 0x39c   : > { %6888 = vmatprep.subr.bf16.mxu1 %v20437_v21  ;;  %v20501_v20 = vld [vmem:[%s23760_s30 + $0x888] ss:$72 sps:$4 sm:$0xff]   ;;  %v20506_v21 = vld [vmem:[%s23760_s30 + $0x19f4] ss:$72 sps:$4 sm:$0xff]  }
 0x39e   : > { %6846 = vmatpush2.bf16.msra.mxu0 %v20432_v23  ;;  %v20509_v23 = vld [vmem:[%s23760_s30 + $0x7fc] ss:$72 sps:$4 sm:$0xff]  }
 0x39f   : > { %6889 = vmatpush2.bf16.msra.mxu1 %v20435_v24  ;;  %6847 = vmatprep.subr.bf16.mxu0 %v20440_v28  ;;  %v20504_v24 = vld [vmem:[%s23760_s30 + $0x19f0] ss:$72 sps:$4 sm:$0xff]  }
 0x3a0   : > { %6890 = vmatprep.subr.bf16.mxu1 %v20443_v30  ;;  %v20507_v28 = vld [vmem:[%s23760_s30 + $0x7f8] ss:$72 sps:$4 sm:$0xff]   ;;  %v20512_v30 = vld [vmem:[%s23760_s30 + $0x1964] ss:$72 sps:$4 sm:$0xff]  }
 0x3a2   : > { %6848 = vmatpush2.bf16.msra.mxu0 %v20438_v32  ;;  %v20510_v32 = vld [vmem:[%s23760_s30 + $0x1960] ss:$72 sps:$4 sm:$0xff]  }
 0x3a3   : > { %6891 = vmatpush2.bf16.msra.mxu1 %v20441_v34  ;;  %6849 = vmatprep.subr.bf16.mxu0 %v20446_v35  ;;  %v20513_v34 = vld [vmem:[%s23760_s30 + $0x768] ss:$72 sps:$4 sm:$0xff]   ;;  %v20518_v35 = vld [vmem:[%s23760_s30 + $0x18d4] ss:$72 sps:$4 sm:$0xff]  }
 0x3a4   : > { %6892 = vmatprep.subr.bf16.mxu1 %v20449_v40  ;;  %v20521_v40 = vld [vmem:[%s23760_s30 + $0x6dc] ss:$72 sps:$4 sm:$0xff]  }
 0x3a6   : > { %6850 = vmatpush2.bf16.msra.mxu0 %v20444_v43  ;;  %v20516_v43 = vld [vmem:[%s23760_s30 + $0x18d0] ss:$72 sps:$4 sm:$0xff]  }
 0x3a7   : > { %6893 = vmatpush2.bf16.msra.mxu1 %v20447_v44  ;;  %6905 = vmatprep.subr.bf16.mxu0 %v20452_v45  ;;  %v20519_v44 = vld [vmem:[%s23760_s30 + $0x6d8] ss:$72 sps:$4 sm:$0xff]   ;;  %v20524_v45 = vld [vmem:[%s23760_s30 + $0x1844] ss:$72 sps:$4 sm:$0xff]  }
 0x3a8   : > { %6948 = vmatprep.subr.bf16.mxu1 %v20455_v46  ;;  %v20527_v46 = vld [vmem:[%s23760_s30 + $0x64c] ss:$72 sps:$4 sm:$0xff]  }
 0x3a9   : > { %v24192_v29 = vpop.f32.mrf.mxu0  ;;  %6852 = vmatmul.mubr.bf16.vlgmr.msra.gmra.mxu0 %v23964_v11 }
 0x3aa   : > { %6895 = vmatmul.mubr.bf16.vlgmr.msra.gmra.mxu1 %v23968_v14  ;;  %v24196_v54 = vpop.f32.mrf.mxu1  ;;  %6906 = vmatpush1.bf16.msra.mxu0 %v20450_v50  ;;  %v20522_v50 = vld [vmem:[%s23760_s30 + $0x1840] ss:$72 sps:$4 sm:$0xff]  }
 0x3ab   : > { %6949 = vmatpush1.bf16.msra.mxu1 %v20453_v25  ;;  %v6597_v57 = vpop.f32.mrf.mxu0  ;;  %6907 = vmatprep.subr.bf16.mxu0 %v20458_v51  ;;  %v20525_v25 = vld [vmem:[%s23760_s30 + $0x648] ss:$72 sps:$4 sm:$0xff]   ;;  %v20530_v51 = vld [vmem:[%s23760_s30 + $0x17b4] ss:$72 sps:$4 sm:$0xff]  }
 0x3ac   : > { %v6640_v58 = vpop.f32.mrf.mxu1  ;;  %6950 = vmatprep.subr.bf16.mxu1 %v20461_v26  ;;  %v6598_v60 = vadd.f32 %v6597_v57, %v24190_v27  ;;  %6937 = vmatprep.mubr.bf16.mxu0 %v23999_v53  ;;  %v20533_v26 = vld [vmem:[%s23760_s30 + $0x5bc] ss:$72 sps:$4 sm:$0xff]   ;;  %v20539_v57 = vld [vmem:[%s23760_s30 + $0x52c] ss:$72 sps:$4 sm:$0xff]  }
 0x3ad   : > { %6980 = vmatprep.mubr.bf16.mxu1 %v23940_v55 }
 0x3ae   : > { %v24206_v61 = vadd.f32 %v6640_v58, %v6598_v60  ;;  %6908 = vmatpush1.bf16.msra.mxu0 %v20456_v33  ;;  %v20528_v33 = vld [vmem:[%s23760_s30 + $0x17b0] ss:$72 sps:$4 sm:$0xff]   ;;  %v24256_v58 = vsub.s32 0, %v24172_v41 }
 0x3af   : > { %6951 = vmatpush1.bf16.msra.mxu1 %v20459_v39  ;;  %6909 = vmatprep.subr.bf16.mxu0 %v20464_v56  ;;  %v20531_v39 = vld [vmem:[%s23760_s30 + $0x5b8] ss:$72 sps:$4 sm:$0xff]   ;;  %v20536_v56 = vld [vmem:[%s23760_s30 + $0x1724] ss:$72 sps:$4 sm:$0xff]   ;;  %v20537_v60 = vld [vmem:[%s23760_s30 + $0x528] ss:$72 sps:$4 sm:$0xff]  }
 0x3b0   : > { %6952 = vmatprep.subr.bf16.mxu1 %v20467_v59  ;;  %v20534_v59 = vld [vmem:[%s23760_s30 + $0x1720] ss:$72 sps:$4 sm:$0xff]  }
 0x3b2   : > { %6910 = vmatpush1.bf16.msra.mxu0 %v20462_v37  ;;  %v20542_v37 = vld [vmem:[%s23760_s30 + $0x1694] ss:$72 sps:$4 sm:$0xff]  }
 0x3b3   : > { %6953 = vmatpush1.bf16.msra.mxu1 %v20465_v62  ;;  %6911 = vmatprep.subr.bf16.mxu0 %v20470_v63  ;;  %v20545_v62 = vld [vmem:[%s23760_s30 + $0x49c] ss:$72 sps:$4 sm:$0xff]   ;;  %v2154_v63 = vrot.slane %v24179_v48, %v24256_v58 }
 0x3b4   : > { %6954 = vmatprep.subr.bf16.mxu1 %v20473_v0  ;;  %v20540_v0 = vld [vmem:[%s23760_s30 + $0x1690] ss:$72 sps:$4 sm:$0xff]  }
 0x3b6   : > { %6912 = vmatpush1.bf16.msra.mxu0 %v20468_v1  ;;  %v20543_v1 = vld [vmem:[%s23760_s30 + $0x498] ss:$72 sps:$4 sm:$0xff]  }
 0x3b7   : > { %6955 = vmatpush1.bf16.msra.mxu1 %v20471_v38  ;;  %6913 = vmatprep.subr.bf16.mxu0 %v20476_v42  ;;  %v6599_v38 = vpop.f32.mrf.mxu0  ;;  %v20548_v42 = vld [vmem:[%s23760_s30 + $0xd0c] ss:$72 sps:$4 sm:$0xff]  }
 0x3b8   : > { %6956 = vmatprep.subr.bf16.mxu1 %v20479_v47  ;;  %v20551_v47 = vld [vmem:[%s23760_s30 + $0x160c] ss:$72 sps:$4 sm:$0xff]  }
 0x3b9   : > { %v24271_v48 = vpop.f32.mrf.mxu0 }
 0x3ba   : > { %6914 = vmatpush1.bf16.msra.mxu0 %v20474_v52  ;;  %v6596_v52 = vadd.f32 %v24192_v29, %v2154_v63 }
 0x3bb   : > { %6957 = vmatpush1.bf16.msra.mxu1 %v20477_v2  ;;  %6915 = vmatprep.subr.bf16.mxu0 %v20482_v3  ;;  %v20546_v2 = vld [vmem:[%s23760_s30 + $0xd08] ss:$72 sps:$4 sm:$0xff]  }
 0x3bc   : > { %6958 = vmatprep.subr.bf16.mxu1 %v20485_v4  ;;  %v20549_v3 = vld [vmem:[%s23760_s30 + $0x1608] ss:$72 sps:$4 sm:$0xff]   ;;  %v20554_v4 = vld [vmem:[%s23760_s30 + $0xc7c] ss:$72 sps:$4 sm:$0xff]  }
 0x3be   : > { %6916 = vmatpush1.bf16.msra.mxu0 %v20480_v5  ;;  %v20557_v5 = vld [vmem:[%s23760_s30 + $0x157c] ss:$72 sps:$4 sm:$0xff]  }
 0x3bf   : > { %6959 = vmatpush1.bf16.msra.mxu1 %v20483_v6  ;;  %6917 = vmatprep.subr.bf16.mxu0 %v20488_v7  ;;  %v6639_v6 = vadd.f32 %v24196_v54, %v6596_v52  ;;  %v6600_v7 = vadd.f32 %v6599_v38, %v2154_v63  ;;  %v20563_v54 = vld [vmem:[%s23760_s30 + $0x14ec] ss:$72 sps:$4 sm:$0xff]   ;;  %v20600_v63 = vld [vmem:[%s23760_s30 + $0x10f8] ss:$72 sps:$4 sm:$0xff]   ;;  %v20614_v52 = vld [vmem:[%s23760_s30 + $0xfdc] ss:$72 sps:$4 sm:$0xff]  }
 0x3c0   : > { %6960 = vmatprep.subr.bf16.mxu1 %v20491_v8  ;;  %v20552_v8 = vld [vmem:[%s23760_s30 + $0xc78] ss:$72 sps:$4 sm:$0xff]   ;;  %v20611_v38 = vld [vmem:[%s23760_s30 + $0x196c] ss:$72 sps:$4 sm:$0xff]  }
 0x3c2   : > { %6918 = vmatpush1.bf16.msra.mxu0 %v20486_v9  ;;  %v20555_v9 = vld [vmem:[%s23760_s30 + $0x1578] ss:$72 sps:$4 sm:$0xff]  }
 0x3c3   : > { %6961 = vmatpush1.bf16.msra.mxu1 %v20489_v10  ;;  %6919 = vmatprep.subr.bf16.mxu0 %v20494_v12  ;;  %v6642_v10 = vpop.f32.mrf.mxu1 }
 0x3c4   : > { %6962 = vmatprep.subr.bf16.mxu1 %v20497_v13 }
 0x3c6   : > { %6920 = vmatpush1.bf16.msra.mxu0 %v20492_v15  ;;  %v20560_v15 = vld [vmem:[%s23760_s30 + $0xbec] ss:$72 sps:$4 sm:$0xff]  }
 0x3c7   : > { %6963 = vmatpush1.bf16.msra.mxu1 %v20495_v16  ;;  %6921 = vmatprep.subr.bf16.mxu0 %v20500_v17  ;;  %v6643_v16 = vadd.f32 %v6642_v10, %v6600_v7  ;;  %v20618_v7 = vld [vmem:[%s23760_s30 + $0xf48] ss:$72 sps:$4 sm:$0xff]   ;;  %v20626_v10 = vld [vmem:[%s23760_s30 + $0xebc] ss:$72 sps:$4 sm:$0xff]  }
 0x3c8   : > { %6964 = vmatprep.subr.bf16.mxu1 %v20503_v18  ;;  %v20558_v18 = vld [vmem:[%s23760_s30 + $0xbe8] ss:$72 sps:$4 sm:$0xff]  }
 0x3ca   : > { %6922 = vmatpush2.bf16.msra.mxu0 %v20498_v19  ;;  %v20561_v19 = vld [vmem:[%s23760_s30 + $0x14e8] ss:$72 sps:$4 sm:$0xff]  }
 0x3cb   : > { %6965 = vmatpush2.bf16.msra.mxu1 %v20501_v20  ;;  %6923 = vmatprep.subr.bf16.mxu0 %v20506_v21 }
 0x3cc   : > { %6966 = vmatprep.subr.bf16.mxu1 %v20509_v23  ;;  %v20569_v23 = vld [vmem:[%s23760_s30 + $0x145c] ss:$72 sps:$4 sm:$0xff]  }
 0x3ce   : > { %6924 = vmatpush2.bf16.msra.mxu0 %v20504_v24  ;;  %v20564_v24 = vld [vmem:[%s23760_s30 + $0xb58] ss:$72 sps:$4 sm:$0xff]  }
 0x3cf   : > { %6967 = vmatpush2.bf16.msra.mxu1 %v20507_v28  ;;  %6925 = vmatprep.subr.bf16.mxu0 %v20512_v30  ;;  %v20567_v28 = vld [vmem:[%s23760_s30 + $0x1458] ss:$72 sps:$4 sm:$0xff]   ;;  %v20572_v30 = vld [vmem:[%s23760_s30 + $0xacc] ss:$72 sps:$4 sm:$0xff]  }
 0x3d0   : > { %6968 = vmatprep.subr.bf16.mxu1 %v20515_v31  ;;  %v20575_v31 = vld [vmem:[%s23760_s30 + $0x13cc] ss:$72 sps:$4 sm:$0xff]  }
 0x3d2   : > { %6926 = vmatpush2.bf16.msra.mxu0 %v20510_v32  ;;  %v20570_v32 = vld [vmem:[%s23760_s30 + $0xac8] ss:$72 sps:$4 sm:$0xff]  }
 0x3d3   : > { %6969 = vmatpush2.bf16.msra.mxu1 %v20513_v34  ;;  %6927 = vmatprep.subr.bf16.mxu0 %v20518_v35  ;;  %v20573_v34 = vld [vmem:[%s23760_s30 + $0x13c8] ss:$72 sps:$4 sm:$0xff]   ;;  %v20578_v35 = vld [vmem:[%s23760_s30 + $0xa3c] ss:$72 sps:$4 sm:$0xff]  }
 0x3d4   : > { %6970 = vmatprep.subr.bf16.mxu1 %v20521_v40  ;;  %v20581_v40 = vld [vmem:[%s23760_s30 + $0x133c] ss:$72 sps:$4 sm:$0xff]  }
 0x3d6   : > { %6928 = vmatpush2.bf16.msra.mxu0 %v20516_v43  ;;  %v20576_v43 = vld [vmem:[%s23760_s30 + $0xa38] ss:$72 sps:$4 sm:$0xff]  }
 0x3d7   : > { %6971 = vmatpush2.bf16.msra.mxu1 %v20519_v44  ;;  %6929 = vmatprep.subr.bf16.mxu0 %v20524_v45  ;;  %v20579_v44 = vld [vmem:[%s23760_s30 + $0x1338] ss:$72 sps:$4 sm:$0xff]   ;;  %v20584_v45 = vld [vmem:[%s23760_s30 + $0x9ac] ss:$72 sps:$4 sm:$0xff]  }
 0x3d8   : > { %6972 = vmatprep.subr.bf16.mxu1 %v20527_v46  ;;  %v20587_v46 = vld [vmem:[%s23760_s30 + $0x12ac] ss:$72 sps:$4 sm:$0xff]  }
 0x3da   : > { %6930 = vmatpush2.bf16.msra.mxu0 %v20522_v50  ;;  %v20582_v50 = vld [vmem:[%s23760_s30 + $0x9a8] ss:$72 sps:$4 sm:$0xff]  }
 0x3db   : > { %6973 = vmatpush2.bf16.msra.mxu1 %v20525_v25  ;;  %6931 = vmatprep.subr.bf16.mxu0 %v20530_v51  ;;  %v20585_v25 = vld [vmem:[%s23760_s30 + $0x12a8] ss:$72 sps:$4 sm:$0xff]   ;;  %v20590_v51 = vld [vmem:[%s23760_s30 + $0x91c] ss:$72 sps:$4 sm:$0xff]  }
 0x3dc   : > { %6974 = vmatprep.subr.bf16.mxu1 %v20533_v26  ;;  %v20593_v26 = vld [vmem:[%s23760_s30 + $0x121c] ss:$72 sps:$4 sm:$0xff]  }
 0x3de   : > { %6932 = vmatpush2.bf16.msra.mxu0 %v20528_v33  ;;  %v20588_v33 = vld [vmem:[%s23760_s30 + $0x918] ss:$72 sps:$4 sm:$0xff]  }
 0x3df   : > { %6975 = vmatpush2.bf16.msra.mxu1 %v20531_v39  ;;  %6933 = vmatprep.subr.bf16.mxu0 %v20536_v56  ;;  %v20591_v39 = vld [vmem:[%s23760_s30 + $0x1218] ss:$72 sps:$4 sm:$0xff]   ;;  %v20596_v56 = vld [vmem:[%s23760_s30 + $0x118c] ss:$72 sps:$4 sm:$0xff]  }
 0x3e0   : > { %6976 = vmatprep.subr.bf16.mxu1 %v20539_v57  ;;  %v20599_v57 = vld [vmem:[%s23760_s30 + $0x1a8c] ss:$72 sps:$4 sm:$0xff]  }
 0x3e2   : > { %6934 = vmatpush2.bf16.msra.mxu0 %v20534_v59  ;;  %v20594_v59 = vld [vmem:[%s23760_s30 + $0x1188] ss:$72 sps:$4 sm:$0xff]  }
 0x3e3   : > { %6977 = vmatpush2.bf16.msra.mxu1 %v20537_v60  ;;  %6935 = vmatprep.subr.bf16.mxu0 %v20542_v37  ;;  %v20597_v60 = vld [vmem:[%s23760_s30 + $0x1a88] ss:$72 sps:$4 sm:$0xff]   ;;  %v20602_v37 = vld [vmem:[%s23760_s30 + $0x10fc] ss:$72 sps:$4 sm:$0xff]  }
 0x3e4   : > { %6978 = vmatprep.subr.bf16.mxu1 %v20545_v62  ;;  %v20605_v62 = vld [vmem:[%s23760_s30 + $0x19fc] ss:$72 sps:$4 sm:$0xff]  }
 0x3e6   : > { %6936 = vmatpush2.bf16.msra.mxu0 %v20540_v0  ;;  %v20603_v0 = vld [vmem:[%s23760_s30 + $0x19f8] ss:$72 sps:$4 sm:$0xff]  }
 0x3e7   : > { %6979 = vmatpush2.bf16.msra.mxu1 %v20543_v1  ;;  %6991 = vmatprep.subr.bf16.mxu0 %v20548_v42  ;;  %v20608_v1 = vld [vmem:[%s23760_s30 + $0x106c] ss:$72 sps:$4 sm:$0xff]   ;;  %v20606_v42 = vld [vmem:[%s23760_s30 + $0x1068] ss:$72 sps:$4 sm:$0xff]  }
 0x3e8   : > { %7034 = vmatprep.subr.bf16.mxu1 %v20551_v47  ;;  %v20609_v47 = vld [vmem:[%s23760_s30 + $0x1968] ss:$72 sps:$4 sm:$0xff]  }
 0x3e9   : > { %v6681_v29 = vpop.f32.mrf.mxu0  ;;  %6938 = vmatmul.mubr.bf16.vlgmr.msra.gmra.mxu0 %v24038_v22 }
 0x3ea   : > { %6981 = vmatmul.mubr.bf16.vlgmr.msra.gmra.mxu1 %v23964_v11  ;;  %v24280_v12 = vadd.f32 %v6681_v29, %v6639_v6  ;;  %6992 = vmatpush1.bf16.msra.mxu0 %v20546_v2  ;;  %v20617_v2 = vld [vmem:[%s23760_s30 + $0x18dc] ss:$72 sps:$4 sm:$0xff]   ;;  %v20623_v6 = vld [vmem:[%s23760_s30 + $0x184c] ss:$72 sps:$4 sm:$0xff]  }
 0x3eb   : > { %7035 = vmatpush1.bf16.msra.mxu1 %v20549_v3  ;;  %v6683_v13 = vpop.f32.mrf.mxu0  ;;  %6993 = vmatprep.subr.bf16.mxu0 %v20554_v4  ;;  %v20612_v3 = vld [vmem:[%s23760_s30 + $0xfd8] ss:$72 sps:$4 sm:$0xff]   ;;  %v20629_v29 = vld [vmem:[%s23760_s30 + $0x17bc] ss:$72 sps:$4 sm:$0xff]  }
 0x3ec   : > { %7036 = vmatprep.subr.bf16.mxu1 %v20557_v5  ;;  %v24285_v17 = vadd.f32 %v6683_v13, %v24206_v61  ;;  %7972 = vrot.lane.b32.xlu1 %v24280_v12, %s23324_s7  ;;  %v20566_v61 = vld [vmem:[%s23760_s30 + $0xb5c] ss:$72 sps:$4 sm:$0xff]   ;;  %v20615_v4 = vld [vmem:[%s23760_s30 + $0x18d8] ss:$72 sps:$4 sm:$0xff]   ;;  %v20620_v5 = vld [vmem:[%s23760_s30 + $0xf4c] ss:$72 sps:$4 sm:$0xff]  }
 0x3ed   : > { %7023 = vmatprep.mubr.bf16.mxu0 %v23944_v36  ;;  %v6685_v20 = vpop.f32.mrf.mxu0  ;;  %7066 = vmatprep.mubr.bf16.mxu1 %v23999_v53 }
 0x3ee   : > { %v24293_v21 = vadd.f32 %v6685_v20, %v6643_v16  ;;  %6994 = vmatpush1.bf16.msra.mxu0 %v20552_v8  ;;  %v20621_v8 = vld [vmem:[%s23760_s30 + $0x1848] ss:$72 sps:$4 sm:$0xff]   ;;  %v20632_v16 = vld [vmem:[%s23760_s30 + $0xe2c] ss:$72 sps:$4 sm:$0xff]  }
 0x3ef   : > { %7037 = vmatpush1.bf16.msra.mxu1 %v20555_v9  ;;  %6995 = vmatprep.subr.bf16.mxu0 %v20560_v15  ;;  %v24337_v9 = vpop.f32.mrf.mxu1  ;;  %v20624_v15 = vld [vmem:[%s23760_s30 + $0xeb8] ss:$72 sps:$4 sm:$0xff]   ;;  %v20630_v20 = vld [vmem:[%s23760_s30 + $0xe28] ss:$72 sps:$4 sm:$0xff]  }
 0x3f0   : > { %7038 = vmatprep.subr.bf16.mxu1 %v20563_v54  ;;  %7974 = vrot.lane.b32.xlu1 %v24293_v21, %s23324_s7  ;;  %v20627_v54 = vld [vmem:[%s23760_s30 + $0x17b8] ss:$72 sps:$4 sm:$0xff]  }
 0x3f1   : > { %v6724_v13 = vpop.f32.mrf.mxu1 }
 0x3f2   : > { %6996 = vmatpush1.bf16.msra.mxu0 %v20558_v18  ;;  %v20635_v18 = vld [vmem:[%s23760_s30 + $0x172c] ss:$72 sps:$4 sm:$0xff]  }
 0x3f3   : > { %7039 = vmatpush1.bf16.msra.mxu1 %v20561_v19  ;;  %6997 = vmatprep.subr.bf16.mxu0 %v20566_v61  ;;  %v6726_v19 = vpop.f32.mrf.mxu1  ;;  %v20633_v61 = vld [vmem:[%s23760_s30 + $0x1728] ss:$72 sps:$4 sm:$0xff]  }
 0x3f4   : > { %7040 = vmatprep.subr.bf16.mxu1 %v20569_v23  ;;  %v24348_v23 = vsub.s32 2, %v24172_v41 }
 0x3f6   : > { %6998 = vmatpush1.bf16.msra.mxu0 %v20564_v24  ;;  %v20638_v24 = vld [vmem:[%s23760_s30 + $0xd9c] ss:$72 sps:$4 sm:$0xff]  }
 0x3f7   : > { %7041 = vmatpush1.bf16.msra.mxu1 %v20567_v28  ;;  %6999 = vmatprep.subr.bf16.mxu0 %v20572_v30  ;;  %v20641_v28 = vld [vmem:[%s23760_s30 + $0x169c] ss:$72 sps:$4 sm:$0xff]   ;;  %v24353_v30 = vsub.s32 3, %v24172_v41 }
 0x3f8   : > { %7042 = vmatprep.subr.bf16.mxu1 %v20575_v31  ;;  %v6728_v31 = vpop.f32.mrf.mxu1 }
 0x3fa   : > { %7000 = vmatpush1.bf16.msra.mxu0 %v20570_v32  ;;  %v24356_v32 = vld [vmem:[%s23769_s21] sm:$0xff] }
 0x3fb   : > { %7043 = vmatpush1.bf16.msra.mxu1 %v20573_v34  ;;  %7001 = vmatprep.subr.bf16.mxu0 %v20578_v35  ;;  %v2162_v34 = vrot.slane %v24356_v32, %v24348_v23  ;;  %v20636_v35 = vld [vmem:[%s23760_s30 + $0xd98] ss:$72 sps:$4 sm:$0xff]  }
 0x3fc   : > { %7044 = vmatprep.subr.bf16.mxu1 %v20581_v40  ;;  %v20639_v40 = vld [vmem:[%s23760_s30 + $0x1698] ss:$72 sps:$4 sm:$0xff]  }
 0x3fe   : > { %7002 = vmatpush1.bf16.msra.mxu0 %v20576_v43  ;;  %v20644_v43 = vld [vmem:[%s23760_s30 + $0x414] ss:$72 sps:$4 sm:$0xff]  }
 0x3ff   : > { %7045 = vmatpush1.bf16.msra.mxu1 %v20579_v44  ;;  %7003 = vmatprep.subr.bf16.mxu0 %v20584_v45  ;;  %v20647_v44 = vld [vmem:[%s23760_s30 + $0xd14] ss:$72 sps:$4 sm:$0xff]   ;;  %v2166_v45 = vrot.slane %v24356_v32, %v24353_v30 }
 0x400   : > { %7046 = vmatprep.subr.bf16.mxu1 %v20587_v46  ;;  %v20642_v46 = vld [vmem:[%s23760_s30 + $0x410] ss:$72 sps:$4 sm:$0xff]  }
 0x402   : > { %7004 = vmatpush1.bf16.msra.mxu0 %v20582_v50  ;;  %v20645_v50 = vld [vmem:[%s23760_s30 + $0xd10] ss:$72 sps:$4 sm:$0xff]  }
 0x403   : > { %7047 = vmatpush1.bf16.msra.mxu1 %v20585_v25  ;;  %7005 = vmatprep.subr.bf16.mxu0 %v20590_v51  ;;  %v6730_v25 = vpop.f32.mrf.mxu1  ;;  %v6725_v51 = vadd.f32 %v6724_v13, %v2162_v34  ;;  %v20662_v13 = vld [vmem:[%s23760_s30 + $0x264] ss:$72 sps:$4 sm:$0xff]  }
 0x404   : > { %7048 = vmatprep.subr.bf16.mxu1 %v20593_v26  ;;  %v24368_v26 = vpop.f32.mrf.mxu0 }
 0x406   : > { %7006 = vmatpush1.bf16.msra.mxu0 %v20588_v33  ;;  %v20650_v33 = vld [vmem:[%s23760_s30 + $0x384] ss:$72 sps:$4 sm:$0xff]  }
 0x407   : > { %7049 = vmatpush1.bf16.msra.mxu1 %v20591_v39  ;;  %7007 = vmatprep.subr.bf16.mxu0 %v20596_v56  ;;  %v20653_v39 = vld [vmem:[%s23760_s30 + $0xc84] ss:$72 sps:$4 sm:$0xff]   ;;  %v6727_v56 = vadd.f32 %v6726_v19, %v2166_v45  ;;  %v20660_v19 = vld [vmem:[%s23760_s30 + $0x260] ss:$72 sps:$4 sm:$0xff]  }
 0x408   : > { %7050 = vmatprep.subr.bf16.mxu1 %v20599_v57  ;;  %v20648_v57 = vld [vmem:[%s23760_s30 + $0x380] ss:$72 sps:$4 sm:$0xff]  }
 0x40a   : > { %7008 = vmatpush2.bf16.msra.mxu0 %v20594_v59  ;;  %v20651_v59 = vld [vmem:[%s23760_s30 + $0xc80] ss:$72 sps:$4 sm:$0xff]  }
 0x40b   : > { %7051 = vmatpush2.bf16.msra.mxu1 %v20597_v60  ;;  %7009 = vmatprep.subr.bf16.mxu0 %v20602_v37 }
 0x40c   : > { %7052 = vmatprep.subr.bf16.mxu1 %v20605_v62  ;;  %v6729_v62 = vadd.f32 %v6728_v31, %v2162_v34  ;;  %v20669_v31 = vld [vmem:[%s23760_s30 + $0xad0] ss:$72 sps:$4 sm:$0xff]   ;;  %v20674_v34 = vld [vmem:[%s23760_s30 + $0x144] ss:$72 sps:$4 sm:$0xff]  }
 0x40e   : > { %7010 = vmatpush2.bf16.msra.mxu0 %v20600_v63 }
 0x40f   : > { %7053 = vmatpush2.bf16.msra.mxu1 %v20603_v0  ;;  %7011 = vmatprep.subr.bf16.mxu0 %v20608_v1 }
 0x410   : > { %7054 = vmatprep.subr.bf16.mxu1 %v20611_v38  ;;  %v20656_v38 = vld [vmem:[%s23760_s30 + $0x2f4] ss:$72 sps:$4 sm:$0xff]  }
 0x412   : > { %7012 = vmatpush2.bf16.msra.mxu0 %v20606_v42  ;;  %v20659_v42 = vld [vmem:[%s23760_s30 + $0xbf4] ss:$72 sps:$4 sm:$0xff]  }
 0x413   : > { %7055 = vmatpush2.bf16.msra.mxu1 %v20609_v47  ;;  %7013 = vmatprep.subr.bf16.mxu0 %v20614_v52  ;;  %v6731_v47 = vadd.f32 %v6730_v25, %v2166_v45  ;;  %v20683_v45 = vld [vmem:[%s23760_s30 + $0x9b4] ss:$72 sps:$4 sm:$0xff]   ;;  %v20686_v25 = vld [vmem:[%s23760_s30 + $0x24] ss:$72 sps:$4 sm:$0xff]  }
 0x414   : > { %7056 = vmatprep.subr.bf16.mxu1 %v20617_v2 }
 0x416   : > { %7014 = vmatpush2.bf16.msra.mxu0 %v20612_v3  ;;  %v20654_v3 = vld [vmem:[%s23760_s30 + $0x2f0] ss:$72 sps:$4 sm:$0xff]  }
 0x417   : > { %7057 = vmatpush2.bf16.msra.mxu1 %v20615_v4  ;;  %7015 = vmatprep.subr.bf16.mxu0 %v20620_v5  ;;  %v20657_v4 = vld [vmem:[%s23760_s30 + $0xbf0] ss:$72 sps:$4 sm:$0xff]  }
 0x418   : > { %7058 = vmatprep.subr.bf16.mxu1 %v20623_v6 }
 0x41a   : > { %7016 = vmatpush2.bf16.msra.mxu0 %v20618_v7 }
 0x41b   : > { %7059 = vmatpush2.bf16.msra.mxu1 %v20621_v8  ;;  %7017 = vmatprep.subr.bf16.mxu0 %v20626_v10 }
 0x41c   : > { %7060 = vmatprep.subr.bf16.mxu1 %v20629_v29 }
 0x41e   : > { %7018 = vmatpush2.bf16.msra.mxu0 %v20624_v15  ;;  %v20665_v15 = vld [vmem:[%s23760_s30 + $0xb64] ss:$72 sps:$4 sm:$0xff]  }
 0x41f   : > { %7061 = vmatpush2.bf16.msra.mxu1 %v20627_v54  ;;  %7019 = vmatprep.subr.bf16.mxu0 %v20632_v16 }
 0x420   : > { %7062 = vmatprep.subr.bf16.mxu1 %v20635_v18 }
 0x422   : > { %7020 = vmatpush2.bf16.msra.mxu0 %v20630_v20  ;;  %v20663_v20 = vld [vmem:[%s23760_s30 + $0xb60] ss:$72 sps:$4 sm:$0xff]  }
 0x423   : > { %7063 = vmatpush2.bf16.msra.mxu1 %v20633_v61  ;;  %7021 = vmatprep.subr.bf16.mxu0 %v20638_v24  ;;  %v20668_v61 = vld [vmem:[%s23760_s30 + $0x1d4] ss:$72 sps:$4 sm:$0xff]  }
 0x424   : > { %7064 = vmatprep.subr.bf16.mxu1 %v20641_v28  ;;  %v20671_v24 = vld [vmem:[%s23760_s30 + $0xad4] ss:$72 sps:$4 sm:$0xff]   ;;  %v20666_v28 = vld [vmem:[%s23760_s30 + $0x1d0] ss:$72 sps:$4 sm:$0xff]  }
 0x426   : > { %7022 = vmatpush2.bf16.msra.mxu0 %v20636_v35  ;;  %v20677_v35 = vld [vmem:[%s23760_s30 + $0xa44] ss:$72 sps:$4 sm:$0xff]  }
 0x427   : > { %7065 = vmatpush2.bf16.msra.mxu1 %v20639_v40  ;;  %7077 = vmatprep.subr.bf16.mxu0 %v20644_v43  ;;  %v20672_v40 = vld [vmem:[%s23760_s30 + $0x140] ss:$72 sps:$4 sm:$0xff]  }
 0x428   : > { %7120 = vmatprep.subr.bf16.mxu1 %v20647_v44  ;;  %v20675_v43 = vld [vmem:[%s23760_s30 + $0xa40] ss:$72 sps:$4 sm:$0xff]   ;;  %v20680_v44 = vld [vmem:[%s23760_s30 + $0xb4] ss:$72 sps:$4 sm:$0xff]  }
 0x429   : > { %v6767_v60 = vpop.f32.mrf.mxu0  ;;  %7024 = vmatmul.mubr.bf16.vlgmr.msra.gmra.mxu0 %v23968_v14 }
 0x42a   : > { %7067 = vmatmul.mubr.bf16.vlgmr.msra.gmra.mxu1 %v24038_v22  ;;  %v6810_v37 = vpop.f32.mrf.mxu1  ;;  %v6768_v63 = vadd.f32 %v6767_v60, %v6725_v51  ;;  %7078 = vmatpush1.bf16.msra.mxu0 %v20642_v46  ;;  %v20678_v46 = vld [vmem:[%s23760_s30 + $0xb0] ss:$72 sps:$4 sm:$0xff]   ;;  %v20689_v51 = vld [vmem:[%s23760_s30 + $0x924] ss:$72 sps:$4 sm:$0xff]  }
 0x42b   : > { %7121 = vmatpush1.bf16.msra.mxu1 %v20645_v50  ;;  %v6769_v0 = vpop.f32.mrf.mxu0  ;;  %7079 = vmatprep.subr.bf16.mxu0 %v20650_v33  ;;  %v20681_v50 = vld [vmem:[%s23760_s30 + $0x9b0] ss:$72 sps:$4 sm:$0xff]   ;;  %v20684_v33 = vld [vmem:[%s23760_s30 + $0x20] ss:$72 sps:$4 sm:$0xff]  }
 0x42c   : > { %v6812_v1 = vpop.f32.mrf.mxu1  ;;  %7122 = vmatprep.subr.bf16.mxu1 %v20653_v39  ;;  %v6770_v52 = vadd.f32 %v6769_v0, %v6727_v56  ;;  %v24378_v2 = vadd.f32 %v6810_v37, %v6768_v63  ;;  %7109 = vmatprep.mubr.bf16.mxu0 %v23940_v55  ;;  %v20687_v39 = vld [vmem:[%s23760_s30 + $0x920] ss:$72 sps:$4 sm:$0xff]   ;;  %v20692_v56 = vld [vmem:[%s23760_s30 + $0x894] ss:$72 sps:$4 sm:$0xff]   ;;  %v20693_v60 = vld [vmem:[%s23760_s30 + $0x1190] ss:$72 sps:$4 sm:$0xff]  }
 0x42d   : > { %7152 = vmatprep.mubr.bf16.mxu1 %v23944_v36  ;;  %v6771_v5 = vpop.f32.mrf.mxu0  ;;  %v20698_v37 = vld [vmem:[%s23760_s30 + $0x804] ss:$72 sps:$4 sm:$0xff]   ;;  %v20696_v63 = vld [vmem:[%s23760_s30 + $0x800] ss:$72 sps:$4 sm:$0xff]  }
 0x42e   : > { %v6814_v6 = vpop.f32.mrf.mxu1  ;;  %v6772_v7 = vadd.f32 %v6771_v5, %v6729_v62  ;;  %v24384_v8 = vadd.f32 %v6812_v1, %v6770_v52  ;;  %7080 = vmatpush1.bf16.msra.mxu0 %v20648_v57  ;;  %v20695_v57 = vld [vmem:[%s23760_s30 + $0x1194] ss:$72 sps:$4 sm:$0xff]   ;;  %v20701_v62 = vld [vmem:[%s23760_s30 + $0x1104] ss:$72 sps:$4 sm:$0xff]   ;;  %v20699_v0 = vld [vmem:[%s23760_s30 + $0x1100] ss:$72 sps:$4 sm:$0xff]  }
 0x42f   : > { %7123 = vmatpush1.bf16.msra.mxu1 %v20651_v59  ;;  %v6773_v10 = vpop.f32.mrf.mxu0  ;;  %7081 = vmatprep.subr.bf16.mxu0 %v20656_v38  ;;  %v20690_v59 = vld [vmem:[%s23760_s30 + $0x890] ss:$72 sps:$4 sm:$0xff]   ;;  %v20704_v1 = vld [vmem:[%s23760_s30 + $0x774] ss:$72 sps:$4 sm:$0xff]   ;;  %v20710_v52 = vld [vmem:[%s23760_s30 + $0x6e4] ss:$72 sps:$4 sm:$0xff]  }
 0x430   : > { %v6816_v29 = vpop.f32.mrf.mxu1  ;;  %7124 = vmatprep.subr.bf16.mxu1 %v20659_v42  ;;  %v6774_v54 = vadd.f32 %v6773_v10, %v6731_v47  ;;  %v24388_v16 = vadd.f32 %v6814_v6, %v6772_v7  ;;  %v20707_v38 = vld [vmem:[%s23760_s30 + $0x1074] ss:$72 sps:$4 sm:$0xff]   ;;  %v20702_v42 = vld [vmem:[%s23760_s30 + $0x770] ss:$72 sps:$4 sm:$0xff]   ;;  %v20711_v5 = vld [vmem:[%s23760_s30 + $0xfe0] ss:$72 sps:$4 sm:$0xff]  }
 0x431   : > { %v20705_v47 = vld [vmem:[%s23760_s30 + $0x1070] ss:$72 sps:$4 sm:$0xff]   ;;  %v20716_v6 = vld [vmem:[%s23760_s30 + $0x654] ss:$72 sps:$4 sm:$0xff]  }
 0x432   : > { %v24390_v18 = vadd.f32 %v6816_v29, %v6774_v54  ;;  %7082 = vmatpush1.bf16.msra.mxu0 %v20654_v3  ;;  %v20713_v3 = vld [vmem:[%s23760_s30 + $0xfe4] ss:$72 sps:$4 sm:$0xff]   ;;  %v20719_v7 = vld [vmem:[%s23760_s30 + $0xf54] ss:$72 sps:$4 sm:$0xff]   ;;  %v20714_v10 = vld [vmem:[%s23760_s30 + $0x650] ss:$72 sps:$4 sm:$0xff]  }
 0x433   : > { %7125 = vmatpush1.bf16.msra.mxu1 %v20657_v4  ;;  %7083 = vmatprep.subr.bf16.mxu0 %v20662_v13  ;;  %v20708_v4 = vld [vmem:[%s23760_s30 + $0x6e0] ss:$72 sps:$4 sm:$0xff]   ;;  %v20717_v29 = vld [vmem:[%s23760_s30 + $0xf50] ss:$72 sps:$4 sm:$0xff]   ;;  %v20722_v13 = vld [vmem:[%s23760_s30 + $0x5c4] ss:$72 sps:$4 sm:$0xff]  }
 0x434   : > { %7126 = vmatprep.subr.bf16.mxu1 %v20665_v15  ;;  %v20725_v15 = vld [vmem:[%s23760_s30 + $0xec4] ss:$72 sps:$4 sm:$0xff]   ;;  %v20720_v54 = vld [vmem:[%s23760_s30 + $0x5c0] ss:$72 sps:$4 sm:$0xff]  }
 0x436   : > { %7084 = vmatpush1.bf16.msra.mxu0 %v20660_v19  ;;  %v20723_v19 = vld [vmem:[%s23760_s30 + $0xec0] ss:$72 sps:$4 sm:$0xff]  }
 0x437   : > { %7127 = vmatpush1.bf16.msra.mxu1 %v20663_v20  ;;  %7085 = vmatprep.subr.bf16.mxu0 %v20668_v61  ;;  %v20728_v20 = vld [vmem:[%s23760_s30 + $0x534] ss:$72 sps:$4 sm:$0xff]  }
 0x438   : > { %7128 = vmatprep.subr.bf16.mxu1 %v20671_v24  ;;  %v20731_v61 = vld [vmem:[%s23760_s30 + $0xe34] ss:$72 sps:$4 sm:$0xff]   ;;  %v20726_v24 = vld [vmem:[%s23760_s30 + $0x530] ss:$72 sps:$4 sm:$0xff]  }
 0x43a   : > { %7086 = vmatpush1.bf16.msra.mxu0 %v20666_v28  ;;  %v20729_v28 = vld [vmem:[%s23760_s30 + $0xe30] ss:$72 sps:$4 sm:$0xff]  }
 0x43b   : > { %7129 = vmatpush1.bf16.msra.mxu1 %v20669_v31  ;;  %7087 = vmatprep.subr.bf16.mxu0 %v20674_v34  ;;  %v20734_v31 = vld [vmem:[%s23760_s30 + $0x4a4] ss:$72 sps:$4 sm:$0xff]  }
 0x43c   : > { %7130 = vmatprep.subr.bf16.mxu1 %v20677_v35  ;;  %v20737_v34 = vld [vmem:[%s23760_s30 + $0xda4] ss:$72 sps:$4 sm:$0xff]   ;;  %v20732_v35 = vld [vmem:[%s23760_s30 + $0x4a0] ss:$72 sps:$4 sm:$0xff]  }
 0x43e   : > { %7088 = vmatpush1.bf16.msra.mxu0 %v20672_v40  ;;  %v20735_v40 = vld [vmem:[%s23760_s30 + $0xda0] ss:$72 sps:$4 sm:$0xff]  }
 0x43f   : > { %7131 = vmatpush1.bf16.msra.mxu1 %v20675_v43  ;;  %7089 = vmatprep.subr.bf16.mxu0 %v20680_v44  ;;  %v24443_v43 = vsub.s32 4, %v24172_v41  ;;  %v20740_v44 = vld [vmem:[%s23760_s30 + $0x1614] ss:$72 sps:$4 sm:$0xff]  }
 0x440   : > { %7132 = vmatprep.subr.bf16.mxu1 %v20683_v45  ;;  %v20743_v45 = vld [vmem:[%s23760_s30 + $0x41c] ss:$72 sps:$4 sm:$0xff]  }
 0x442   : > { %7090 = vmatpush1.bf16.msra.mxu0 %v20678_v46  ;;  %v20738_v46 = vld [vmem:[%s23760_s30 + $0x1610] ss:$72 sps:$4 sm:$0xff]  }
 0x443   : > { %7133 = vmatpush1.bf16.msra.mxu1 %v20681_v50  ;;  %7091 = vmatprep.subr.bf16.mxu0 %v20686_v25  ;;  %v20741_v50 = vld [vmem:[%s23760_s30 + $0x418] ss:$72 sps:$4 sm:$0xff]   ;;  %v24450_v25 = vsub.s32 5, %v24172_v41 }
 0x444   : > { %7134 = vmatprep.subr.bf16.mxu1 %v20689_v51  ;;  %v2170_v51 = vrot.slane %v24356_v32, %v24443_v43 }
 0x446   : > { %7092 = vmatpush1.bf16.msra.mxu0 %v20684_v33  ;;  %v20746_v33 = vld [vmem:[%s23760_s30 + $0x1584] ss:$72 sps:$4 sm:$0xff]  }
 0x447   : > { %7135 = vmatpush1.bf16.msra.mxu1 %v20687_v39  ;;  %7093 = vmatprep.subr.bf16.mxu0 %v20692_v56  ;;  %v20749_v39 = vld [vmem:[%s23760_s30 + $0x38c] ss:$72 sps:$4 sm:$0xff]   ;;  %v2174_v56 = vrot.slane %v24356_v32, %v24450_v25 }
 0x448   : > { %7136 = vmatprep.subr.bf16.mxu1 %v20695_v57  ;;  %v20744_v57 = vld [vmem:[%s23760_s30 + $0x1580] ss:$72 sps:$4 sm:$0xff]  }
 0x44a   : > { %7094 = vmatpush2.bf16.msra.mxu0 %v20690_v59  ;;  %v20747_v59 = vld [vmem:[%s23760_s30 + $0x388] ss:$72 sps:$4 sm:$0xff]  }
 0x44b   : > { %7137 = vmatpush2.bf16.msra.mxu1 %v20693_v60  ;;  %7095 = vmatprep.subr.bf16.mxu0 %v20698_v37 }
 0x44c   : > { %7138 = vmatprep.subr.bf16.mxu1 %v20701_v62 }
 0x44e   : > { %7096 = vmatpush2.bf16.msra.mxu0 %v20696_v63 }
 0x44f   : > { %7139 = vmatpush2.bf16.msra.mxu1 %v20699_v0  ;;  %7097 = vmatprep.subr.bf16.mxu0 %v20704_v1  ;;  %v20752_v1 = vld [vmem:[%s23760_s30 + $0x14f4] ss:$72 sps:$4 sm:$0xff]  }
 0x450   : > { %7140 = vmatprep.subr.bf16.mxu1 %v20707_v38  ;;  %v20755_v38 = vld [vmem:[%s23760_s30 + $0x2fc] ss:$72 sps:$4 sm:$0xff]  }
 0x452   : > { %7098 = vmatpush2.bf16.msra.mxu0 %v20702_v42 }
 0x453   : > { %7141 = vmatpush2.bf16.msra.mxu1 %v20705_v47  ;;  %7099 = vmatprep.subr.bf16.mxu0 %v20710_v52  ;;  %v20750_v47 = vld [vmem:[%s23760_s30 + $0x14f0] ss:$72 sps:$4 sm:$0xff]  }
 0x454   : > { %7142 = vmatprep.subr.bf16.mxu1 %v20713_v3  ;;  %v20753_v52 = vld [vmem:[%s23760_s30 + $0x2f8] ss:$72 sps:$4 sm:$0xff]  }
 0x456   : > { %7100 = vmatpush2.bf16.msra.mxu0 %v20708_v4 }
 0x457   : > { %7143 = vmatpush2.bf16.msra.mxu1 %v20711_v5  ;;  %7101 = vmatprep.subr.bf16.mxu0 %v20716_v6 }
 0x458   : > { %7144 = vmatprep.subr.bf16.mxu1 %v20719_v7 }
 0x45a   : > { %7102 = vmatpush2.bf16.msra.mxu0 %v20714_v10 }
 0x45b   : > { %7145 = vmatpush2.bf16.msra.mxu1 %v20717_v29  ;;  %7103 = vmatprep.subr.bf16.mxu0 %v20722_v13  ;;  %v20758_v29 = vld [vmem:[%s23760_s30 + $0x1464] ss:$72 sps:$4 sm:$0xff]  }
 0x45c   : > { %7146 = vmatprep.subr.bf16.mxu1 %v20725_v15  ;;  %v20761_v13 = vld [vmem:[%s23760_s30 + $0x26c] ss:$72 sps:$4 sm:$0xff]  }
 0x45e   : > { %7104 = vmatpush2.bf16.msra.mxu0 %v20720_v54 }
 0x45f   : > { %7147 = vmatpush2.bf16.msra.mxu1 %v20723_v19  ;;  %7105 = vmatprep.subr.bf16.mxu0 %v20728_v20  ;;  %v20756_v19 = vld [vmem:[%s23760_s30 + $0x1460] ss:$72 sps:$4 sm:$0xff]  }
 0x460   : > { %7148 = vmatprep.subr.bf16.mxu1 %v20731_v61  ;;  %v20759_v20 = vld [vmem:[%s23760_s30 + $0x268] ss:$72 sps:$4 sm:$0xff]   ;;  %v20764_v61 = vld [vmem:[%s23760_s30 + $0x13d4] ss:$72 sps:$4 sm:$0xff]  }
 0x462   : > { %7106 = vmatpush2.bf16.msra.mxu0 %v20726_v24  ;;  %v20767_v24 = vld [vmem:[%s23760_s30 + $0x1dc] ss:$72 sps:$4 sm:$0xff]  }
 0x463   : > { %7149 = vmatpush2.bf16.msra.mxu1 %v20729_v28  ;;  %7107 = vmatprep.subr.bf16.mxu0 %v20734_v31  ;;  %v20762_v31 = vld [vmem:[%s23760_s30 + $0x13d0] ss:$72 sps:$4 sm:$0xff]  }
 0x464   : > { %7150 = vmatprep.subr.bf16.mxu1 %v20737_v34  ;;  %v20765_v34 = vld [vmem:[%s23760_s30 + $0x1d8] ss:$72 sps:$4 sm:$0xff]  }
 0x466   : > { %7108 = vmatpush2.bf16.msra.mxu0 %v20732_v35  ;;  %v20770_v35 = vld [vmem:[%s23760_s30 + $0x1344] ss:$72 sps:$4 sm:$0xff]  }
 0x467   : > { %7151 = vmatpush2.bf16.msra.mxu1 %v20735_v40  ;;  %7163 = vmatprep.subr.bf16.mxu0 %v20740_v44  ;;  %v20773_v40 = vld [vmem:[%s23760_s30 + $0x14c] ss:$72 sps:$4 sm:$0xff]   ;;  %v20768_v44 = vld [vmem:[%s23760_s30 + $0x1340] ss:$72 sps:$4 sm:$0xff]  }
 0x468   : > { %7206 = vmatprep.subr.bf16.mxu1 %v20743_v45  ;;  %v20771_v45 = vld [vmem:[%s23760_s30 + $0x148] ss:$72 sps:$4 sm:$0xff]  }
 0x469   : > { %v6853_v60 = vpop.f32.mrf.mxu0  ;;  %7110 = vmatmul.mubr.bf16.vlgmr.msra.gmra.mxu0 %v23964_v11 }
 0x46a   : > { %7153 = vmatmul.mubr.bf16.vlgmr.msra.gmra.mxu1 %v23968_v14  ;;  %v6896_v37 = vpop.f32.mrf.mxu1  ;;  %v6854_v62 = vadd.f32 %v6853_v60, %v2170_v51  ;;  %7164 = vmatpush1.bf16.msra.mxu0 %v20738_v46  ;;  %v20776_v46 = vld [vmem:[%s23760_s30 + $0x12b4] ss:$72 sps:$4 sm:$0xff]  }
 0x46b   : > { %7207 = vmatpush1.bf16.msra.mxu1 %v20741_v50  ;;  %v6855_v63 = vpop.f32.mrf.mxu0  ;;  %7165 = vmatprep.subr.bf16.mxu0 %v20746_v33  ;;  %v20779_v50 = vld [vmem:[%s23760_s30 + $0xbc] ss:$72 sps:$4 sm:$0xff]   ;;  %v20777_v33 = vld [vmem:[%s23760_s30 + $0xb8] ss:$72 sps:$4 sm:$0xff]  }
 0x46c   : > { %v6898_v0 = vpop.f32.mrf.mxu1  ;;  %7208 = vmatprep.subr.bf16.mxu1 %v20749_v39  ;;  %v6856_v32 = vadd.f32 %v6855_v63, %v2174_v56  ;;  %v24464_v42 = vadd.f32 %v6896_v37, %v6854_v62  ;;  %7195 = vmatprep.mubr.bf16.mxu0 %v23999_v53  ;;  %v20782_v39 = vld [vmem:[%s23760_s30 + $0x1224] ss:$72 sps:$4 sm:$0xff]   ;;  %v20788_v60 = vld [vmem:[%s23760_s30 + $0x1a94] ss:$72 sps:$4 sm:$0xff]   ;;  %v20786_v62 = vld [vmem:[%s23760_s30 + $0x1a90] ss:$72 sps:$4 sm:$0xff]  }
 0x46d   : > { %7238 = vmatprep.mubr.bf16.mxu1 %v23940_v55  ;;  %v6857_v3 = vpop.f32.mrf.mxu0  ;;  %v20791_v37 = vld [vmem:[%s23760_s30 + $0x89c] ss:$72 sps:$4 sm:$0xff]   ;;  %v20789_v63 = vld [vmem:[%s23760_s30 + $0x898] ss:$72 sps:$4 sm:$0xff]  }
 0x46e   : > { %v6900_v4 = vpop.f32.mrf.mxu1  ;;  %v6858_v5 = vadd.f32 %v6857_v3, %v2170_v51  ;;  %v24470_v6 = vadd.f32 %v6898_v0, %v6856_v32  ;;  %7166 = vmatpush1.bf16.msra.mxu0 %v20744_v57  ;;  %v20774_v51 = vld [vmem:[%s23760_s30 + $0x12b0] ss:$72 sps:$4 sm:$0xff]   ;;  %v20780_v57 = vld [vmem:[%s23760_s30 + $0x1220] ss:$72 sps:$4 sm:$0xff]   ;;  %v20794_v0 = vld [vmem:[%s23760_s30 + $0x1a04] ss:$72 sps:$4 sm:$0xff]  }
 0x46f   : > { %7209 = vmatpush1.bf16.msra.mxu1 %v20747_v59  ;;  %v6859_v7 = vpop.f32.mrf.mxu0  ;;  %7167 = vmatprep.subr.bf16.mxu0 %v20752_v1  ;;  %v20783_v59 = vld [vmem:[%s23760_s30 + $0x28] ss:$72 sps:$4 sm:$0xff]   ;;  %v20797_v1 = vld [vmem:[%s23760_s30 + $0x80c] ss:$72 sps:$4 sm:$0xff]  }
 0x470   : > { %v6902_v10 = vpop.f32.mrf.mxu1  ;;  %7210 = vmatprep.subr.bf16.mxu1 %v20755_v38  ;;  %v6860_v15 = vadd.f32 %v6859_v7, %v2174_v56  ;;  %v24474_v54 = vadd.f32 %v6900_v4, %v6858_v5  ;;  %v20785_v56 = vld [vmem:[%s23760_s30 + $0x2c] ss:$72 sps:$4 sm:$0xff]   ;;  %v20792_v38 = vld [vmem:[%s23760_s30 + $0x1a00] ss:$72 sps:$4 sm:$0xff]   ;;  %v20798_v3 = vld [vmem:[%s23760_s30 + $0x1970] ss:$72 sps:$4 sm:$0xff]  }
 0x471   : > { %v20795_v32 = vld [vmem:[%s23760_s30 + $0x808] ss:$72 sps:$4 sm:$0xff]   ;;  %v20801_v4 = vld [vmem:[%s23760_s30 + $0x778] ss:$72 sps:$4 sm:$0xff]   ;;  %v20806_v5 = vld [vmem:[%s23760_s30 + $0x18e4] ss:$72 sps:$4 sm:$0xff]  }
 0x472   : > { %v24480_v28 = vadd.f32 %v6902_v10, %v6860_v15  ;;  %7168 = vmatpush1.bf16.msra.mxu0 %v20750_v47  ;;  %v20800_v47 = vld [vmem:[%s23760_s30 + $0x1974] ss:$72 sps:$4 sm:$0xff]   ;;  %v20804_v10 = vld [vmem:[%s23760_s30 + $0x18e0] ss:$72 sps:$4 sm:$0xff]  }
 0x473   : > { %7211 = vmatpush1.bf16.msra.mxu1 %v20753_v52  ;;  %7169 = vmatprep.subr.bf16.mxu0 %v20758_v29  ;;  %v20803_v52 = vld [vmem:[%s23760_s30 + $0x77c] ss:$72 sps:$4 sm:$0xff]   ;;  %v20809_v7 = vld [vmem:[%s23760_s30 + $0x6ec] ss:$72 sps:$4 sm:$0xff]   ;;  %v20807_v29 = vld [vmem:[%s23760_s30 + $0x6e8] ss:$72 sps:$4 sm:$0xff]  }
 0x474   : > { %7212 = vmatprep.subr.bf16.mxu1 %v20761_v13  ;;  %v20812_v13 = vld [vmem:[%s23760_s30 + $0x1854] ss:$72 sps:$4 sm:$0xff]  }
 0x475   : > { %v20815_v15 = vld [vmem:[%s23760_s30 + $0x65c] ss:$72 sps:$4 sm:$0xff]  }
 0x476   : > { %7170 = vmatpush1.bf16.msra.mxu0 %v20756_v19  ;;  %v20810_v19 = vld [vmem:[%s23760_s30 + $0x1850] ss:$72 sps:$4 sm:$0xff]  }
 0x477   : > { %7213 = vmatpush1.bf16.msra.mxu1 %v20759_v20  ;;  %7171 = vmatprep.subr.bf16.mxu0 %v20764_v61  ;;  %v20813_v20 = vld [vmem:[%s23760_s30 + $0x658] ss:$72 sps:$4 sm:$0xff]   ;;  %v20818_v61 = vld [vmem:[%s23760_s30 + $0x17c4] ss:$72 sps:$4 sm:$0xff]  }
 0x478   : > { %7214 = vmatprep.subr.bf16.mxu1 %v20767_v24  ;;  %v20821_v24 = vld [vmem:[%s23760_s30 + $0x5cc] ss:$72 sps:$4 sm:$0xff]  }
 0x47a   : > { %7172 = vmatpush1.bf16.msra.mxu0 %v20762_v31  ;;  %v20816_v31 = vld [vmem:[%s23760_s30 + $0x17c0] ss:$72 sps:$4 sm:$0xff]  }
 0x47b   : > { %7215 = vmatpush1.bf16.msra.mxu1 %v20765_v34  ;;  %7173 = vmatprep.subr.bf16.mxu0 %v20770_v35  ;;  %v20819_v34 = vld [vmem:[%s23760_s30 + $0x5c8] ss:$72 sps:$4 sm:$0xff]   ;;  %v20824_v35 = vld [vmem:[%s23760_s30 + $0x1734] ss:$72 sps:$4 sm:$0xff]  }
 0x47c   : > { %7216 = vmatprep.subr.bf16.mxu1 %v20773_v40  ;;  %v20827_v40 = vld [vmem:[%s23760_s30 + $0x53c] ss:$72 sps:$4 sm:$0xff]  }
 0x47e   : > { %7174 = vmatpush1.bf16.msra.mxu0 %v20768_v44  ;;  %v20822_v44 = vld [vmem:[%s23760_s30 + $0x1730] ss:$72 sps:$4 sm:$0xff]  }
 0x47f   : > { %7217 = vmatpush1.bf16.msra.mxu1 %v20771_v45  ;;  %7175 = vmatprep.subr.bf16.mxu0 %v20776_v46  ;;  %v20825_v45 = vld [vmem:[%s23760_s30 + $0x538] ss:$72 sps:$4 sm:$0xff]   ;;  %v20830_v46 = vld [vmem:[%s23760_s30 + $0x16a4] ss:$72 sps:$4 sm:$0xff]  }
 0x480   : > { %7218 = vmatprep.subr.bf16.mxu1 %v20779_v50  ;;  %v20833_v50 = vld [vmem:[%s23760_s30 + $0x4ac] ss:$72 sps:$4 sm:$0xff]  }
 0x482   : > { %7176 = vmatpush1.bf16.msra.mxu0 %v20774_v51  ;;  %v20828_v51 = vld [vmem:[%s23760_s30 + $0x16a0] ss:$72 sps:$4 sm:$0xff]  }
 0x483   : > { %7219 = vmatpush1.bf16.msra.mxu1 %v20777_v33  ;;  %7177 = vmatprep.subr.bf16.mxu0 %v20782_v39  ;;  %v20831_v33 = vld [vmem:[%s23760_s30 + $0x4a8] ss:$72 sps:$4 sm:$0xff]   ;;  %v20836_v39 = vld [vmem:[%s23760_s30 + $0xd1c] ss:$72 sps:$4 sm:$0xff]  }
 0x484   : > { %7220 = vmatprep.subr.bf16.mxu1 %v20785_v56  ;;  %v20839_v56 = vld [vmem:[%s23760_s30 + $0x161c] ss:$72 sps:$4 sm:$0xff]  }
 0x486   : > { %7178 = vmatpush1.bf16.msra.mxu0 %v20780_v57  ;;  %v20834_v57 = vld [vmem:[%s23760_s30 + $0xd18] ss:$72 sps:$4 sm:$0xff]  }
 0x487   : > { %7221 = vmatpush1.bf16.msra.mxu1 %v20783_v59  ;;  %7179 = vmatprep.subr.bf16.mxu0 %v20788_v60  ;;  %v20837_v59 = vld [vmem:[%s23760_s30 + $0x1618] ss:$72 sps:$4 sm:$0xff]   ;;  %v20842_v60 = vld [vmem:[%s23760_s30 + $0xc8c] ss:$72 sps:$4 sm:$0xff]  }
 0x488   : > { %7222 = vmatprep.subr.bf16.mxu1 %v20791_v37  ;;  %v20845_v37 = vld [vmem:[%s23760_s30 + $0x158c] ss:$72 sps:$4 sm:$0xff]  }
 0x48a   : > { %7180 = vmatpush2.bf16.msra.mxu0 %v20786_v62  ;;  %v20840_v62 = vld [vmem:[%s23760_s30 + $0xc88] ss:$72 sps:$4 sm:$0xff]  }
 0x48b   : > { %7223 = vmatpush2.bf16.msra.mxu1 %v20789_v63  ;;  %7181 = vmatprep.subr.bf16.mxu0 %v20794_v0  ;;  %v20843_v63 = vld [vmem:[%s23760_s30 + $0x1588] ss:$72 sps:$4 sm:$0xff]  }
 0x48c   : > { %7224 = vmatprep.subr.bf16.mxu1 %v20797_v1  ;;  %v20848_v1 = vld [vmem:[%s23760_s30 + $0xbfc] ss:$72 sps:$4 sm:$0xff]  }
 0x48e   : > { %7182 = vmatpush2.bf16.msra.mxu0 %v20792_v38  ;;  %v20851_v38 = vld [vmem:[%s23760_s30 + $0x14fc] ss:$72 sps:$4 sm:$0xff]  }
 0x48f   : > { %7225 = vmatpush2.bf16.msra.mxu1 %v20795_v32  ;;  %7183 = vmatprep.subr.bf16.mxu0 %v20800_v47 }
 0x490   : > { %7226 = vmatprep.subr.bf16.mxu1 %v20803_v52 }
 0x492   : > { %7184 = vmatpush2.bf16.msra.mxu0 %v20798_v3  ;;  %v20846_v3 = vld [vmem:[%s23760_s30 + $0xbf8] ss:$72 sps:$4 sm:$0xff]  }
 0x493   : > { %7227 = vmatpush2.bf16.msra.mxu1 %v20801_v4  ;;  %7185 = vmatprep.subr.bf16.mxu0 %v20806_v5  ;;  %v20849_v4 = vld [vmem:[%s23760_s30 + $0x14f8] ss:$72 sps:$4 sm:$0xff]  }
 0x494   : > { %7228 = vmatprep.subr.bf16.mxu1 %v20809_v7  ;;  %v20857_v7 = vld [vmem:[%s23760_s30 + $0x146c] ss:$72 sps:$4 sm:$0xff]  }
 0x496   : > { %7186 = vmatpush2.bf16.msra.mxu0 %v20804_v10 }
 0x497   : > { %7229 = vmatpush2.bf16.msra.mxu1 %v20807_v29  ;;  %7187 = vmatprep.subr.bf16.mxu0 %v20812_v13  ;;  %v20852_v13 = vld [vmem:[%s23760_s30 + $0xb68] ss:$72 sps:$4 sm:$0xff]  }
 0x498   : > { %7230 = vmatprep.subr.bf16.mxu1 %v20815_v15  ;;  %v20855_v15 = vld [vmem:[%s23760_s30 + $0x1468] ss:$72 sps:$4 sm:$0xff]  }
 0x49a   : > { %7188 = vmatpush2.bf16.msra.mxu0 %v20810_v19  ;;  %v20863_v19 = vld [vmem:[%s23760_s30 + $0x13dc] ss:$72 sps:$4 sm:$0xff]  }
 0x49b   : > { %7231 = vmatpush2.bf16.msra.mxu1 %v20813_v20  ;;  %7189 = vmatprep.subr.bf16.mxu0 %v20818_v61  ;;  %v20858_v20 = vld [vmem:[%s23760_s30 + $0xad8] ss:$72 sps:$4 sm:$0xff]  }
 0x49c   : > { %7232 = vmatprep.subr.bf16.mxu1 %v20821_v24  ;;  %v20861_v61 = vld [vmem:[%s23760_s30 + $0x13d8] ss:$72 sps:$4 sm:$0xff]   ;;  %v20869_v24 = vld [vmem:[%s23760_s30 + $0x134c] ss:$72 sps:$4 sm:$0xff]  }
 0x49e   : > { %7190 = vmatpush2.bf16.msra.mxu0 %v20816_v31  ;;  %v20864_v31 = vld [vmem:[%s23760_s30 + $0xa48] ss:$72 sps:$4 sm:$0xff]  }
 0x49f   : > { %7233 = vmatpush2.bf16.msra.mxu1 %v20819_v34  ;;  %7191 = vmatprep.subr.bf16.mxu0 %v20824_v35  ;;  %v20867_v34 = vld [vmem:[%s23760_s30 + $0x1348] ss:$72 sps:$4 sm:$0xff]   ;;  %v20872_v35 = vld [vmem:[%s23760_s30 + $0x9bc] ss:$72 sps:$4 sm:$0xff]  }
 0x4a0   : > { %7234 = vmatprep.subr.bf16.mxu1 %v20827_v40  ;;  %v20875_v40 = vld [vmem:[%s23760_s30 + $0x12bc] ss:$72 sps:$4 sm:$0xff]  }
 0x4a2   : > { %7192 = vmatpush2.bf16.msra.mxu0 %v20822_v44  ;;  %v20870_v44 = vld [vmem:[%s23760_s30 + $0x9b8] ss:$72 sps:$4 sm:$0xff]  }
 0x4a3   : > { %7235 = vmatpush2.bf16.msra.mxu1 %v20825_v45  ;;  %7193 = vmatprep.subr.bf16.mxu0 %v20830_v46  ;;  %v20873_v45 = vld [vmem:[%s23760_s30 + $0x12b8] ss:$72 sps:$4 sm:$0xff]   ;;  %v20878_v46 = vld [vmem:[%s23760_s30 + $0x92c] ss:$72 sps:$4 sm:$0xff]  }
 0x4a4   : > { %7236 = vmatprep.subr.bf16.mxu1 %v20833_v50  ;;  %v20881_v50 = vld [vmem:[%s23760_s30 + $0x122c] ss:$72 sps:$4 sm:$0xff]  }
 0x4a6   : > { %7194 = vmatpush2.bf16.msra.mxu0 %v20828_v51  ;;  %v20876_v51 = vld [vmem:[%s23760_s30 + $0x928] ss:$72 sps:$4 sm:$0xff]  }
 0x4a7   : > { %7237 = vmatpush2.bf16.msra.mxu1 %v20831_v33  ;;  %7249 = vmatprep.subr.bf16.mxu0 %v20836_v39  ;;  %v20879_v33 = vld [vmem:[%s23760_s30 + $0x1228] ss:$72 sps:$4 sm:$0xff]   ;;  %v20884_v39 = vld [vmem:[%s23760_s30 + $0x119c] ss:$72 sps:$4 sm:$0xff]  }
 0x4a8   : > { %7292 = vmatprep.subr.bf16.mxu1 %v20839_v56  ;;  %v20887_v56 = vld [vmem:[%s23760_s30 + $0x1a9c] ss:$72 sps:$4 sm:$0xff]  }
 0x4a9   : > { %v6939_v0 = vpop.f32.mrf.mxu0  ;;  %7196 = vmatmul.mubr.bf16.vlgmr.msra.gmra.mxu0 %v24038_v22 }
 0x4aa   : > { %7239 = vmatmul.mubr.bf16.vlgmr.msra.gmra.mxu1 %v23964_v11  ;;  %v24541_v32 = vadd.f32 %v6939_v0, %v24464_v42  ;;  %7250 = vmatpush1.bf16.msra.mxu0 %v20834_v57  ;;  %v20854_v42 = vld [vmem:[%s23760_s30 + $0xb6c] ss:$72 sps:$4 sm:$0xff]   ;;  %v20882_v57 = vld [vmem:[%s23760_s30 + $0x1198] ss:$72 sps:$4 sm:$0xff]   ;;  %v20896_v0 = vld [vmem:[%s23760_s30 + $0x107c] ss:$72 sps:$4 sm:$0xff]  }
 0x4ab   : > { %7293 = vmatpush1.bf16.msra.mxu1 %v20837_v59  ;;  %v6941_v47 = vpop.f32.mrf.mxu0  ;;  %7251 = vmatprep.subr.bf16.mxu0 %v20842_v60  ;;  %v20885_v59 = vld [vmem:[%s23760_s30 + $0x1a98] ss:$72 sps:$4 sm:$0xff]   ;;  %v20890_v60 = vld [vmem:[%s23760_s30 + $0x110c] ss:$72 sps:$4 sm:$0xff]  }
 0x4ac   : > { %7294 = vmatprep.subr.bf16.mxu1 %v20845_v37  ;;  %v24544_v52 = vadd.f32 %v6941_v47, %v24470_v6  ;;  %7281 = vmatprep.mubr.bf16.mxu0 %v23944_v36  ;;  %v20893_v37 = vld [vmem:[%s23760_s30 + $0x1a0c] ss:$72 sps:$4 sm:$0xff]   ;;  %v20897_v47 = vld [vmem:[%s23760_s30 + $0x1978] ss:$72 sps:$4 sm:$0xff]  }
 0x4ad   : > { %7324 = vmatprep.mubr.bf16.mxu1 %v23999_v53  ;;  %v6943_v5 = vpop.f32.mrf.mxu0 }
 0x4ae   : > { %v24553_v10 = vadd.f32 %v6943_v5, %v24474_v54  ;;  %7252 = vmatpush1.bf16.msra.mxu0 %v20840_v62  ;;  %v20860_v54 = vld [vmem:[%s23760_s30 + $0xadc] ss:$72 sps:$4 sm:$0xff]   ;;  %v20888_v62 = vld [vmem:[%s23760_s30 + $0x1108] ss:$72 sps:$4 sm:$0xff]  }
 0x4af   : > { %7295 = vmatpush1.bf16.msra.mxu1 %v20843_v63  ;;  %v6945_v6 = vpop.f32.mrf.mxu0  ;;  %7253 = vmatprep.subr.bf16.mxu0 %v20848_v1  ;;  %v20891_v63 = vld [vmem:[%s23760_s30 + $0x1a08] ss:$72 sps:$4 sm:$0xff]   ;;  %v20899_v1 = vld [vmem:[%s23760_s30 + $0x197c] ss:$72 sps:$4 sm:$0xff]  }
 0x4b0   : > { %7296 = vmatprep.subr.bf16.mxu1 %v20851_v38  ;;  %v24556_v29 = vadd.f32 %v6945_v6, %v24480_v28  ;;  %v20866_v28 = vld [vmem:[%s23760_s30 + $0xa4c] ss:$72 sps:$4 sm:$0xff]   ;;  %v20894_v38 = vld [vmem:[%s23760_s30 + $0x1078] ss:$72 sps:$4 sm:$0xff]   ;;  %v20900_v5 = vld [vmem:[%s23760_s30 + $0xfe8] ss:$72 sps:$4 sm:$0xff]  }
 0x4b1   : > { %v20911_v6 = vld [vmem:[%s23760_s30 + $0x185c] ss:$72 sps:$4 sm:$0xff]  }
 0x4b2   : > { %7254 = vmatpush1.bf16.msra.mxu0 %v20846_v3  ;;  %v20902_v3 = vld [vmem:[%s23760_s30 + $0xfec] ss:$72 sps:$4 sm:$0xff]  }
 0x4b3   : > { %7297 = vmatpush1.bf16.msra.mxu1 %v20849_v4  ;;  %7255 = vmatprep.subr.bf16.mxu0 %v20854_v42  ;;  %v20905_v4 = vld [vmem:[%s23760_s30 + $0x18ec] ss:$72 sps:$4 sm:$0xff]   ;;  %v20903_v42 = vld [vmem:[%s23760_s30 + $0x18e8] ss:$72 sps:$4 sm:$0xff]  }
 0x4b4   : > { %7298 = vmatprep.subr.bf16.mxu1 %v20857_v7  ;;  %v20908_v7 = vld [vmem:[%s23760_s30 + $0xf5c] ss:$72 sps:$4 sm:$0xff]  }
 0x4b6   : > { %7256 = vmatpush1.bf16.msra.mxu0 %v20852_v13  ;;  %v20906_v13 = vld [vmem:[%s23760_s30 + $0xf58] ss:$72 sps:$4 sm:$0xff]  }
 0x4b7   : > { %7299 = vmatpush1.bf16.msra.mxu1 %v20855_v15  ;;  %7257 = vmatprep.subr.bf16.mxu0 %v20860_v54  ;;  %v20909_v15 = vld [vmem:[%s23760_s30 + $0x1858] ss:$72 sps:$4 sm:$0xff]   ;;  %v20914_v54 = vld [vmem:[%s23760_s30 + $0xecc] ss:$72 sps:$4 sm:$0xff]  }
 0x4b8   : > { %7300 = vmatprep.subr.bf16.mxu1 %v20863_v19  ;;  %v20917_v19 = vld [vmem:[%s23760_s30 + $0x17cc] ss:$72 sps:$4 sm:$0xff]  }
 0x4ba   : > { %7258 = vmatpush1.bf16.msra.mxu0 %v20858_v20  ;;  %v6982_v20 = vpop.f32.mrf.mxu1 }
 0x4bb   : > { %7301 = vmatpush1.bf16.msra.mxu1 %v20861_v61  ;;  %7259 = vmatprep.subr.bf16.mxu0 %v20866_v28  ;;  %v20912_v61 = vld [vmem:[%s23760_s30 + $0xec8] ss:$72 sps:$4 sm:$0xff]  }
 0x4bc   : > { %7302 = vmatprep.subr.bf16.mxu1 %v20869_v24  ;;  %v20915_v28 = vld [vmem:[%s23760_s30 + $0x17c8] ss:$72 sps:$4 sm:$0xff]   ;;  %v20920_v24 = vld [vmem:[%s23760_s30 + $0xe3c] ss:$72 sps:$4 sm:$0xff]  }
 0x4be   : > { %7260 = vmatpush1.bf16.msra.mxu0 %v20864_v31  ;;  %v20923_v31 = vld [vmem:[%s23760_s30 + $0x173c] ss:$72 sps:$4 sm:$0xff]  }
 0x4bf   : > { %7303 = vmatpush1.bf16.msra.mxu1 %v20867_v34  ;;  %7261 = vmatprep.subr.bf16.mxu0 %v20872_v35  ;;  %v6984_v34 = vpop.f32.mrf.mxu1  ;;  %v20918_v35 = vld [vmem:[%s23760_s30 + $0xe38] ss:$72 sps:$4 sm:$0xff]  }
 0x4c0   : > { %7304 = vmatprep.subr.bf16.mxu1 %v20875_v40  ;;  %v20921_v40 = vld [vmem:[%s23760_s30 + $0x1738] ss:$72 sps:$4 sm:$0xff]  }
 0x4c2   : > { %7262 = vmatpush1.bf16.msra.mxu0 %v20870_v44  ;;  %v20926_v44 = vld [vmem:[%s23760_s30 + $0xdac] ss:$72 sps:$4 sm:$0xff]  }
 0x4c3   : > { %7305 = vmatpush1.bf16.msra.mxu1 %v20873_v45  ;;  %7263 = vmatprep.subr.bf16.mxu0 %v20878_v46  ;;  %v20929_v45 = vld [vmem:[%s23760_s30 + $0x16ac] ss:$72 sps:$4 sm:$0xff]   ;;  %v2181_v46 = vsub.s32 7, %v24172_v41 }
 0x4c4   : > { %7306 = vmatprep.subr.bf16.mxu1 %v20881_v50  ;;  %v20924_v50 = vld [vmem:[%s23760_s30 + $0xda8] ss:$72 sps:$4 sm:$0xff]  }
 0x4c6   : > { %7264 = vmatpush1.bf16.msra.mxu0 %v20876_v51  ;;  %v20927_v51 = vld [vmem:[%s23760_s30 + $0x16a8] ss:$72 sps:$4 sm:$0xff]  }
 0x4c7   : > { %7307 = vmatpush1.bf16.msra.mxu1 %v20879_v33  ;;  %7265 = vmatprep.subr.bf16.mxu0 %v20884_v39  ;;  %v6986_v33 = vpop.f32.mrf.mxu1  ;;  %v20932_v39 = vld [vmem:[%s23760_s30 + $0x424] ss:$72 sps:$4 sm:$0xff]  }
 0x4c8   : > { %7308 = vmatprep.subr.bf16.mxu1 %v20887_v56  ;;  %v20935_v56 = vld [vmem:[%s23760_s30 + $0xd24] ss:$72 sps:$4 sm:$0xff]  }
 0x4ca   : > { %7266 = vmatpush2.bf16.msra.mxu0 %v20882_v57  ;;  %v2177_v57 = vsub.s32 6, %v24172_v41 }
 0x4cb   : > { %7309 = vmatpush2.bf16.msra.mxu1 %v20885_v59  ;;  %7267 = vmatprep.subr.bf16.mxu0 %v20890_v60  ;;  %v21895_v59 = vld [vmem:[%s23769_s21] sm:$0xff] }
 0x4cc   : > { %7310 = vmatprep.subr.bf16.mxu1 %v20893_v37  ;;  %v2182_v60 = vrot.slane %v21895_v59, %v2181_v46  ;;  %v20930_v37 = vld [vmem:[%s23760_s30 + $0x420] ss:$72 sps:$4 sm:$0xff]  }
 0x4ce   : > { %7268 = vmatpush2.bf16.msra.mxu0 %v20888_v62  ;;  %v20933_v62 = vld [vmem:[%s23760_s30 + $0xd20] ss:$72 sps:$4 sm:$0xff]  }
 0x4cf   : > { %7311 = vmatpush2.bf16.msra.mxu1 %v20891_v63  ;;  %7269 = vmatprep.subr.bf16.mxu0 %v20896_v0  ;;  %v6988_v63 = vpop.f32.mrf.mxu1  ;;  %v20938_v0 = vld [vmem:[%s23760_s30 + $0x394] ss:$72 sps:$4 sm:$0xff]  }
 0x4d0   : > { %7312 = vmatprep.subr.bf16.mxu1 %v20899_v1  ;;  %v20941_v1 = vld [vmem:[%s23760_s30 + $0xc94] ss:$72 sps:$4 sm:$0xff]  }
 0x4d2   : > { %7270 = vmatpush2.bf16.msra.mxu0 %v20894_v38  ;;  %v2178_v38 = vrot.slane %v21895_v59, %v2177_v57  ;;  %v20951_v59 = vld [vmem:[%s23760_s30 + $0xb70] ss:$72 sps:$4 sm:$0xff]  }
 0x4d3   : > { %7313 = vmatpush2.bf16.msra.mxu1 %v20897_v47  ;;  %7271 = vmatprep.subr.bf16.mxu0 %v20902_v3  ;;  %v6985_v47 = vadd.f32 %v6984_v34, %v2182_v60  ;;  %v20936_v3 = vld [vmem:[%s23760_s30 + $0x390] ss:$72 sps:$4 sm:$0xff]  }
 0x4d4   : > { %7314 = vmatprep.subr.bf16.mxu1 %v20905_v4  ;;  %v20939_v4 = vld [vmem:[%s23760_s30 + $0xc90] ss:$72 sps:$4 sm:$0xff]  }
 0x4d6   : > { %7272 = vmatpush2.bf16.msra.mxu0 %v20900_v5 }
 0x4d7   : > { %7315 = vmatpush2.bf16.msra.mxu1 %v20903_v42  ;;  %7273 = vmatprep.subr.bf16.mxu0 %v20908_v7  ;;  %v20944_v7 = vld [vmem:[%s23760_s30 + $0x304] ss:$72 sps:$4 sm:$0xff]  }
 0x4d8   : > { %7316 = vmatprep.subr.bf16.mxu1 %v20911_v6  ;;  %v20947_v6 = vld [vmem:[%s23760_s30 + $0xc04] ss:$72 sps:$4 sm:$0xff]  }
 0x4da   : > { %7274 = vmatpush2.bf16.msra.mxu0 %v20906_v13  ;;  %v6987_v13 = vadd.f32 %v6986_v33, %v2178_v38 }
 0x4db   : > { %7317 = vmatpush2.bf16.msra.mxu1 %v20909_v15  ;;  %7275 = vmatprep.subr.bf16.mxu0 %v20914_v54 }
 0x4dc   : > { %7318 = vmatprep.subr.bf16.mxu1 %v20917_v19  ;;  %v6602_v19 = vadd.f32 %v24271_v48, %v24190_v27 }
 0x4de   : > { %7276 = vmatpush2.bf16.msra.mxu0 %v20912_v61  ;;  %v6645_v27 = vadd.f32 %v24337_v9, %v6602_v19  ;;  %v20956_v9 = vld [vmem:[%s23760_s30 + $0x1e4] ss:$72 sps:$4 sm:$0xff]   ;;  %v20975_v19 = vld [vmem:[%s23760_s30 + $0x930] ss:$72 sps:$4 sm:$0xff]  }
 0x4df   : > { %7319 = vmatpush2.bf16.msra.mxu1 %v20915_v28  ;;  %7277 = vmatprep.subr.bf16.mxu0 %v20920_v24  ;;  %v20942_v28 = vld [vmem:[%s23760_s30 + $0x300] ss:$72 sps:$4 sm:$0xff]   ;;  %v6983_v24 = vadd.f32 %v6982_v20, %v2178_v38  ;;  %v20953_v20 = vld [vmem:[%s23760_s30 + $0xb74] ss:$72 sps:$4 sm:$0xff]  }
 0x4e0   : > { %7320 = vmatprep.subr.bf16.mxu1 %v20923_v31  ;;  %v24643_v33 = vadd.f32 %v24368_v26, %v6645_v27  ;;  %v20965_v38 = vld [vmem:[%s23760_s30 + $0xa54] ss:$72 sps:$4 sm:$0xff]   ;;  %v20992_v27 = vld [vmem:[%s23760_s30 + $0x784] ss:$72 sps:$4 sm:$0xff]  }
 0x4e2   : > { %7278 = vmatpush2.bf16.msra.mxu0 %v20918_v35  ;;  %v20945_v35 = vld [vmem:[%s23760_s30 + $0xc00] ss:$72 sps:$4 sm:$0xff]  }
 0x4e3   : > { %7321 = vmatpush2.bf16.msra.mxu1 %v20921_v40  ;;  %7279 = vmatprep.subr.bf16.mxu0 %v20926_v44  ;;  %v20950_v40 = vld [vmem:[%s23760_s30 + $0x274] ss:$72 sps:$4 sm:$0xff]  }
 0x4e4   : > { %7322 = vmatprep.subr.bf16.mxu1 %v20929_v45 }
 0x4e6   : > { %7280 = vmatpush2.bf16.msra.mxu0 %v20924_v50  ;;  %v6989_v50 = vadd.f32 %v6988_v63, %v2182_v60  ;;  %v20954_v63 = vld [vmem:[%s23760_s30 + $0x1e0] ss:$72 sps:$4 sm:$0xff]  }
 0x4e7   : > { %7323 = vmatpush2.bf16.msra.mxu1 %v20927_v51  ;;  %7335 = vmatprep.subr.bf16.mxu0 %v20932_v39 }
 0x4e8   : > { %7378 = vmatprep.subr.bf16.mxu1 %v20935_v56  ;;  %v20948_v56 = vld [vmem:[%s23760_s30 + $0x270] ss:$72 sps:$4 sm:$0xff]  }
 0x4e9   : > { %v7025_v5 = vpop.f32.mrf.mxu0  ;;  %7282 = vmatmul.mubr.bf16.vlgmr.msra.gmra.mxu0 %v23968_v14 }
 0x4ea   : > { %7325 = vmatmul.mubr.bf16.vlgmr.msra.gmra.mxu1 %v24038_v22  ;;  %v7068_v42 = vpop.f32.mrf.mxu1  ;;  %7336 = vmatpush1.bf16.msra.mxu0 %v20930_v37  ;;  %v7026_v51 = vadd.f32 %v7025_v5, %v6983_v24  ;;  %v20959_v37 = vld [vmem:[%s23760_s30 + $0xae4] ss:$72 sps:$4 sm:$0xff]   ;;  %v20978_v24 = vld [vmem:[%s23760_s30 + $0x8a0] ss:$72 sps:$4 sm:$0xff]  }
 0x4eb   : > { %7379 = vmatpush1.bf16.msra.mxu1 %v20933_v62  ;;  %v7027_v15 = vpop.f32.mrf.mxu0  ;;  %7337 = vmatprep.subr.bf16.mxu0 %v20938_v0  ;;  %v20957_v0 = vld [vmem:[%s23760_s30 + $0xae0] ss:$72 sps:$4 sm:$0xff]   ;;  %v20968_v5 = vld [vmem:[%s23760_s30 + $0xc4] ss:$72 sps:$4 sm:$0xff]  }
 0x4ec   : > { %v7070_v54 = vpop.f32.mrf.mxu1  ;;  %7380 = vmatprep.subr.bf16.mxu1 %v20941_v1  ;;  %v7028_v61 = vadd.f32 %v7027_v15, %v6985_v47  ;;  %7367 = vmatprep.mubr.bf16.mxu0 %v23940_v55  ;;  %v24653_v26 = vadd.f32 %v7068_v42, %v7026_v51  ;;  %v20962_v1 = vld [vmem:[%s23760_s30 + $0x154] ss:$72 sps:$4 sm:$0xff]   ;;  %v20971_v42 = vld [vmem:[%s23760_s30 + $0x9c4] ss:$72 sps:$4 sm:$0xff]   ;;  %v20993_v51 = vld [vmem:[%s23760_s30 + $0x1080] ss:$72 sps:$4 sm:$0xff]  }
 0x4ed   : > { %7410 = vmatprep.mubr.bf16.mxu1 %v23944_v36  ;;  %v7029_v31 = vpop.f32.mrf.mxu0  ;;  %v20977_v15 = vld [vmem:[%s23760_s30 + $0x934] ss:$72 sps:$4 sm:$0xff]  }
 0x4ee   : > { %v7072_v34 = vpop.f32.mrf.mxu1  ;;  %v7030_v44 = vadd.f32 %v7029_v31, %v6987_v13  ;;  %v24634_v45 = vadd.f32 %v7070_v54, %v7028_v61  ;;  %7338 = vmatpush1.bf16.msra.mxu0 %v20936_v3  ;;  %v20960_v3 = vld [vmem:[%s23760_s30 + $0x150] ss:$72 sps:$4 sm:$0xff]   ;;  %v20974_v13 = vld [vmem:[%s23760_s30 + $0x34] ss:$72 sps:$4 sm:$0xff]   ;;  %v20980_v61 = vld [vmem:[%s23760_s30 + $0x8a4] ss:$72 sps:$4 sm:$0xff]  }
 0x4ef   : > { %7381 = vmatpush1.bf16.msra.mxu1 %v20939_v4  ;;  %7339 = vmatprep.subr.bf16.mxu0 %v20944_v7  ;;  %v7031_v39 = vpop.f32.mrf.mxu0  ;;  %v20963_v4 = vld [vmem:[%s23760_s30 + $0xa50] ss:$72 sps:$4 sm:$0xff]   ;;  %v20966_v7 = vld [vmem:[%s23760_s30 + $0xc0] ss:$72 sps:$4 sm:$0xff]  }
 0x4f0   : > { %7382 = vmatprep.subr.bf16.mxu1 %v20947_v6  ;;  %v24637_v48 = vadd.f32 %v7072_v34, %v7030_v44  ;;  %8407 = vrot.lane.b32.xlu1 %v24634_v45, %s23324_s7  ;;  %v7032_v60 = vadd.f32 %v7031_v39, %v6989_v50  ;;  %v7074_v62 = vpop.f32.mrf.mxu1  ;;  %v20969_v6 = vld [vmem:[%s23760_s30 + $0x9c0] ss:$72 sps:$4 sm:$0xff]   ;;  %v20972_v54 = vld [vmem:[%s23760_s30 + $0x30] ss:$72 sps:$4 sm:$0xff]   ;;  %v20986_v34 = vld [vmem:[%s23760_s30 + $0x814] ss:$72 sps:$4 sm:$0xff]  }
 0x4f1   : > { %v20981_v31 = vld [vmem:[%s23760_s30 + $0x11a0] ss:$72 sps:$4 sm:$0xff]   ;;  %v20987_v44 = vld [vmem:[%s23760_s30 + $0x1110] ss:$72 sps:$4 sm:$0xff]   ;;  %v20998_v39 = vld [vmem:[%s23760_s30 + $0x6f4] ss:$72 sps:$4 sm:$0xff]  }
 0x4f2   : > { %7340 = vmatpush1.bf16.msra.mxu0 %v20942_v28  ;;  %7980 = vrot.lane.b32.xlu0 %v24637_v48, %s23324_s7  ;;  %v24661_v47 = vadd.f32 %v7074_v62, %v7032_v60  ;;  %v20983_v28 = vld [vmem:[%s23760_s30 + $0x11a4] ss:$72 sps:$4 sm:$0xff]   ;;  %v20990_v50 = vld [vmem:[%s23760_s30 + $0x780] ss:$72 sps:$4 sm:$0xff]  }
 0x4f3   : > { %7383 = vmatpush1.bf16.msra.mxu1 %v20945_v35  ;;  %7341 = vmatprep.subr.bf16.mxu0 %v20950_v40  ;;  %v20989_v35 = vld [vmem:[%s23760_s30 + $0x1114] ss:$72 sps:$4 sm:$0xff]   ;;  %v20984_v40 = vld [vmem:[%s23760_s30 + $0x810] ss:$72 sps:$4 sm:$0xff]   ;;  %v21007_v60 = vld [vmem:[%s23760_s30 + $0xf64] ss:$72 sps:$4 sm:$0xff]  }
 0x4f4   : > { %8403 = vrot.lane.b32.xlu1 %v24643_v33, %s23324_s7  ;;  %7384 = vmatprep.subr.bf16.mxu1 %v20953_v20  ;;  %v20995_v20 = vld [vmem:[%s23760_s30 + $0x1084] ss:$72 sps:$4 sm:$0xff]   ;;  %v21002_v62 = vld [vmem:[%s23760_s30 + $0x660] ss:$72 sps:$4 sm:$0xff]  }
 0x4f6   : > { %7342 = vmatpush1.bf16.msra.mxu0 %v20948_v56  ;;  %7978 = vrot.lane.b32.xlu0 %v24653_v26, %s23324_s7  ;;  %v21001_v56 = vld [vmem:[%s23760_s30 + $0xff4] ss:$72 sps:$4 sm:$0xff]  }
 0x4f7   : > { %7385 = vmatpush1.bf16.msra.mxu1 %v20951_v59  ;;  %7343 = vmatprep.subr.bf16.mxu0 %v20956_v9  ;;  %v20996_v59 = vld [vmem:[%s23760_s30 + $0x6f0] ss:$72 sps:$4 sm:$0xff]  }
 0x4f8   : > { %7386 = vmatprep.subr.bf16.mxu1 %v20959_v37  ;;  %v20999_v9 = vld [vmem:[%s23760_s30 + $0xff0] ss:$72 sps:$4 sm:$0xff]   ;;  %v21004_v37 = vld [vmem:[%s23760_s30 + $0x664] ss:$72 sps:$4 sm:$0xff]  }
 0x4fa   : > { %7344 = vmatpush1.bf16.msra.mxu0 %v20954_v63  ;;  %8409 = vrot.lane.b32.xlu0 %v24661_v47, %s23324_s7  ;;  %v21005_v63 = vld [vmem:[%s23760_s30 + $0xf60] ss:$72 sps:$4 sm:$0xff]  }
 0x4fb   : > { %7387 = vmatpush1.bf16.msra.mxu1 %v20957_v0  ;;  %7345 = vmatprep.subr.bf16.mxu0 %v20962_v1  ;;  %v21010_v0 = vld [vmem:[%s23760_s30 + $0x5d4] ss:$72 sps:$4 sm:$0xff]  }
 0x4fc   : > { %7388 = vmatprep.subr.bf16.mxu1 %v20965_v38  ;;  %v21013_v1 = vld [vmem:[%s23760_s30 + $0xed4] ss:$72 sps:$4 sm:$0xff]   ;;  %v21008_v38 = vld [vmem:[%s23760_s30 + $0x5d0] ss:$72 sps:$4 sm:$0xff]  }
 0x4fe   : > { %7346 = vmatpush1.bf16.msra.mxu0 %v20960_v3  ;;  %8401 = vrot.lane.b32.xlu0 %v24285_v17, %s23324_s7  ;;  %v21011_v3 = vld [vmem:[%s23760_s30 + $0xed0] ss:$72 sps:$4 sm:$0xff]  }
 0x4ff   : > { %7389 = vmatpush1.bf16.msra.mxu1 %v20963_v4  ;;  %7347 = vmatprep.subr.bf16.mxu0 %v20968_v5  ;;  %v21016_v4 = vld [vmem:[%s23760_s30 + $0x544] ss:$72 sps:$4 sm:$0xff]  }
 0x500   : > { %7390 = vmatprep.subr.bf16.mxu1 %v20971_v42  ;;  %v21019_v5 = vld [vmem:[%s23760_s30 + $0xe44] ss:$72 sps:$4 sm:$0xff]   ;;  %v21014_v42 = vld [vmem:[%s23760_s30 + $0x540] ss:$72 sps:$4 sm:$0xff]  }
 0x502   : > { %7348 = vmatpush1.bf16.msra.mxu0 %v20966_v7  ;;  %v21017_v7 = vld [vmem:[%s23760_s30 + $0xe40] ss:$72 sps:$4 sm:$0xff]  }
 0x503   : > { %7391 = vmatpush1.bf16.msra.mxu1 %v20969_v6  ;;  %7349 = vmatprep.subr.bf16.mxu0 %v20974_v13  ;;  %v21022_v6 = vld [vmem:[%s23760_s30 + $0x4b4] ss:$72 sps:$4 sm:$0xff]  }
 0x504   : > { %7392 = vmatprep.subr.bf16.mxu1 %v20977_v15  ;;  %v21025_v13 = vld [vmem:[%s23760_s30 + $0xdb4] ss:$72 sps:$4 sm:$0xff]   ;;  %v21020_v15 = vld [vmem:[%s23760_s30 + $0x4b0] ss:$72 sps:$4 sm:$0xff]  }
 0x506   : > { %7350 = vmatpush1.bf16.msra.mxu0 %v20972_v54  ;;  %v21023_v54 = vld [vmem:[%s23760_s30 + $0xdb0] ss:$72 sps:$4 sm:$0xff]  }
 0x507   : > { %7393 = vmatpush1.bf16.msra.mxu1 %v20975_v19  ;;  %7351 = vmatprep.subr.bf16.mxu0 %v20980_v61  ;;  %v24710_v19 = vld [vmem:[%s23769_s21 + $0x8] sm:$0xff] }
 0x508   : > { %7394 = vmatprep.subr.bf16.mxu1 %v20983_v28  ;;  %v21028_v61 = vld [vmem:[%s23760_s30 + $0x1624] ss:$72 sps:$4 sm:$0xff]  }
 0x509   : > { %v21031_v28 = vld [vmem:[%s23760_s30 + $0x42c] ss:$72 sps:$4 sm:$0xff]  }
 0x50a   : > { %7352 = vmatpush2.bf16.msra.mxu0 %v20978_v24  ;;  %v21026_v24 = vld [vmem:[%s23760_s30 + $0x1620] ss:$72 sps:$4 sm:$0xff]  }
 0x50b   : > { %7395 = vmatpush2.bf16.msra.mxu1 %v20981_v31  ;;  %7353 = vmatprep.subr.bf16.mxu0 %v20986_v34  ;;  %v21029_v31 = vld [vmem:[%s23760_s30 + $0x428] ss:$72 sps:$4 sm:$0xff]   ;;  %v21034_v34 = vld [vmem:[%s23760_s30 + $0x1594] ss:$72 sps:$4 sm:$0xff]  }
 0x50c   : > { %7396 = vmatprep.subr.bf16.mxu1 %v20989_v35  ;;  %v21037_v35 = vld [vmem:[%s23760_s30 + $0x39c] ss:$72 sps:$4 sm:$0xff]  }
 0x50e   : > { %7354 = vmatpush2.bf16.msra.mxu0 %v20984_v40  ;;  %v2190_v40 = vrot.slane %v24710_v19, %v24182_v49 }
 0x50f   : > { %7397 = vmatpush2.bf16.msra.mxu1 %v20987_v44  ;;  %7355 = vmatprep.subr.bf16.mxu0 %v20992_v27  ;;  %v21032_v44 = vld [vmem:[%s23760_s30 + $0x1590] ss:$72 sps:$4 sm:$0xff]  }
 0x510   : > { %7398 = vmatprep.subr.bf16.mxu1 %v20995_v20  ;;  %v21035_v27 = vld [vmem:[%s23760_s30 + $0x398] ss:$72 sps:$4 sm:$0xff]  }
 0x512   : > { %7356 = vmatpush2.bf16.msra.mxu0 %v20990_v50 }
 0x513   : > { %7399 = vmatpush2.bf16.msra.mxu1 %v20993_v51  ;;  %7357 = vmatprep.subr.bf16.mxu0 %v20998_v39  ;;  %v21040_v51 = vld [vmem:[%s23760_s30 + $0x1504] ss:$72 sps:$4 sm:$0xff]  }
 0x514   : > { %7400 = vmatprep.subr.bf16.mxu1 %v21001_v56  ;;  %v21043_v39 = vld [vmem:[%s23760_s30 + $0x30c] ss:$72 sps:$4 sm:$0xff]  }
 0x516   : > { %7358 = vmatpush2.bf16.msra.mxu0 %v20996_v59 }
 0x517   : > { %7401 = vmatpush2.bf16.msra.mxu1 %v20999_v9  ;;  %7359 = vmatprep.subr.bf16.mxu0 %v21004_v37 }
 0x518   : > { %7402 = vmatprep.subr.bf16.mxu1 %v21007_v60 }
 0x51a   : > { %7360 = vmatpush2.bf16.msra.mxu0 %v21002_v62 }
 0x51b   : > { %7403 = vmatpush2.bf16.msra.mxu1 %v21005_v63  ;;  %7361 = vmatprep.subr.bf16.mxu0 %v21010_v0  ;;  %v21038_v63 = vld [vmem:[%s23760_s30 + $0x1500] ss:$72 sps:$4 sm:$0xff]  }
 0x51c   : > { %7404 = vmatprep.subr.bf16.mxu1 %v21013_v1  ;;  %v21041_v0 = vld [vmem:[%s23760_s30 + $0x308] ss:$72 sps:$4 sm:$0xff]  }
 0x51e   : > { %7362 = vmatpush2.bf16.msra.mxu0 %v21008_v38 }
 0x51f   : > { %7405 = vmatpush2.bf16.msra.mxu1 %v21011_v3  ;;  %7363 = vmatprep.subr.bf16.mxu0 %v21016_v4  ;;  %v21046_v3 = vld [vmem:[%s23760_s30 + $0x1474] ss:$72 sps:$4 sm:$0xff]  }
 0x520   : > { %7406 = vmatprep.subr.bf16.mxu1 %v21019_v5  ;;  %v21049_v4 = vld [vmem:[%s23760_s30 + $0x27c] ss:$72 sps:$4 sm:$0xff]  }
 0x522   : > { %7364 = vmatpush2.bf16.msra.mxu0 %v21014_v42 }
 0x523   : > { %7407 = vmatpush2.bf16.msra.mxu1 %v21017_v7  ;;  %7365 = vmatprep.subr.bf16.mxu0 %v21022_v6  ;;  %v21044_v7 = vld [vmem:[%s23760_s30 + $0x1470] ss:$72 sps:$4 sm:$0xff]  }
 0x524   : > { %7408 = vmatprep.subr.bf16.mxu1 %v21025_v13  ;;  %v21047_v6 = vld [vmem:[%s23760_s30 + $0x278] ss:$72 sps:$4 sm:$0xff]   ;;  %v21052_v13 = vld [vmem:[%s23760_s30 + $0x13e4] ss:$72 sps:$4 sm:$0xff]  }
 0x526   : > { %7366 = vmatpush2.bf16.msra.mxu0 %v21020_v15  ;;  %v21055_v15 = vld [vmem:[%s23760_s30 + $0x1ec] ss:$72 sps:$4 sm:$0xff]  }
 0x527   : > { %7409 = vmatpush2.bf16.msra.mxu1 %v21023_v54  ;;  %7421 = vmatprep.subr.bf16.mxu0 %v21028_v61  ;;  %v21050_v54 = vld [vmem:[%s23760_s30 + $0x13e0] ss:$72 sps:$4 sm:$0xff]  }
 0x528   : > { %7464 = vmatprep.subr.bf16.mxu1 %v21031_v28  ;;  %v21053_v61 = vld [vmem:[%s23760_s30 + $0x1e8] ss:$72 sps:$4 sm:$0xff]   ;;  %v21058_v28 = vld [vmem:[%s23760_s30 + $0x1354] ss:$72 sps:$4 sm:$0xff]  }
 0x529   : > { %v24722_v20 = vpop.f32.mrf.mxu0  ;;  %7368 = vmatmul.mubr.bf16.vlgmr.msra.gmra.mxu0 %v23964_v11 }
 0x52a   : > { %7411 = vmatmul.mubr.bf16.vlgmr.msra.gmra.mxu1 %v23968_v14  ;;  %v24726_v50 = vpop.f32.mrf.mxu1  ;;  %7422 = vmatpush1.bf16.msra.mxu0 %v21026_v24  ;;  %v21061_v24 = vld [vmem:[%s23760_s30 + $0x15c] ss:$72 sps:$4 sm:$0xff]  }
 0x52b   : > { %7465 = vmatpush1.bf16.msra.mxu1 %v21029_v31  ;;  %v7113_v56 = vpop.f32.mrf.mxu0  ;;  %7423 = vmatprep.subr.bf16.mxu0 %v21034_v34  ;;  %v21056_v31 = vld [vmem:[%s23760_s30 + $0x1350] ss:$72 sps:$4 sm:$0xff]  }
 0x52c   : > { %v7156_v59 = vpop.f32.mrf.mxu1  ;;  %7466 = vmatprep.subr.bf16.mxu1 %v21037_v35  ;;  %v7114_v9 = vadd.f32 %v7113_v56, %v2190_v40  ;;  %7453 = vmatprep.mubr.bf16.mxu0 %v23999_v53  ;;  %v21059_v34 = vld [vmem:[%s23760_s30 + $0x158] ss:$72 sps:$4 sm:$0xff]   ;;  %v21064_v35 = vld [vmem:[%s23760_s30 + $0x12c4] ss:$72 sps:$4 sm:$0xff]  }
 0x52d   : > { %7496 = vmatprep.mubr.bf16.mxu1 %v23940_v55  ;;  %v24732_v37 = vpop.f32.mrf.mxu0  ;;  %v21068_v56 = vld [vmem:[%s23760_s30 + $0x1230] ss:$72 sps:$4 sm:$0xff]  }
 0x52e   : > { %v24734_v60 = vpop.f32.mrf.mxu1  ;;  %v24736_v62 = vadd.f32 %v7156_v59, %v7114_v9  ;;  %7424 = vmatpush1.bf16.msra.mxu0 %v21032_v44  ;;  %v21062_v44 = vld [vmem:[%s23760_s30 + $0x12c0] ss:$72 sps:$4 sm:$0xff]   ;;  %v21076_v9 = vld [vmem:[%s23760_s30 + $0x1aa4] ss:$72 sps:$4 sm:$0xff]  }
 0x52f   : > { %7467 = vmatpush1.bf16.msra.mxu1 %v21035_v27  ;;  %v7117_v1 = vpop.f32.mrf.mxu0  ;;  %7425 = vmatprep.subr.bf16.mxu0 %v21040_v51  ;;  %v21065_v27 = vld [vmem:[%s23760_s30 + $0xc8] ss:$72 sps:$4 sm:$0xff]   ;;  %v21070_v51 = vld [vmem:[%s23760_s30 + $0x1234] ss:$72 sps:$4 sm:$0xff]   ;;  %v21071_v59 = vld [vmem:[%s23760_s30 + $0x38] ss:$72 sps:$4 sm:$0xff]  }
 0x530   : > { %v7160_v38 = vpop.f32.mrf.mxu1  ;;  %7468 = vmatprep.subr.bf16.mxu1 %v21043_v39  ;;  %v7118_v5 = vadd.f32 %v7117_v1, %v2190_v40  ;;  %v21067_v40 = vld [vmem:[%s23760_s30 + $0xcc] ss:$72 sps:$4 sm:$0xff]   ;;  %v21073_v39 = vld [vmem:[%s23760_s30 + $0x3c] ss:$72 sps:$4 sm:$0xff]   ;;  %v21077_v1 = vld [vmem:[%s23760_s30 + $0x8a8] ss:$72 sps:$4 sm:$0xff]  }
 0x532   : > { %v24742_v42 = vadd.f32 %v7160_v38, %v7118_v5  ;;  %7426 = vmatpush1.bf16.msra.mxu0 %v21038_v63  ;;  %v21079_v63 = vld [vmem:[%s23760_s30 + $0x8ac] ss:$72 sps:$4 sm:$0xff]   ;;  %v21083_v5 = vld [vmem:[%s23760_s30 + $0x818] ss:$72 sps:$4 sm:$0xff]  }
 0x533   : > { %7469 = vmatpush1.bf16.msra.mxu1 %v21041_v0  ;;  %7427 = vmatprep.subr.bf16.mxu0 %v21046_v3  ;;  %v21074_v0 = vld [vmem:[%s23760_s30 + $0x1aa0] ss:$72 sps:$4 sm:$0xff]   ;;  %v21082_v38 = vld [vmem:[%s23760_s30 + $0x1a14] ss:$72 sps:$4 sm:$0xff]  }
 0x534   : > { %7470 = vmatprep.subr.bf16.mxu1 %v21049_v4  ;;  %v21085_v3 = vld [vmem:[%s23760_s30 + $0x81c] ss:$72 sps:$4 sm:$0xff]   ;;  %v21080_v4 = vld [vmem:[%s23760_s30 + $0x1a10] ss:$72 sps:$4 sm:$0xff]  }
 0x536   : > { %7428 = vmatpush1.bf16.msra.mxu0 %v21044_v7  ;;  %v21088_v7 = vld [vmem:[%s23760_s30 + $0x1984] ss:$72 sps:$4 sm:$0xff]  }
 0x537   : > { %7471 = vmatpush1.bf16.msra.mxu1 %v21047_v6  ;;  %7429 = vmatprep.subr.bf16.mxu0 %v21052_v13  ;;  %v21091_v6 = vld [vmem:[%s23760_s30 + $0x78c] ss:$72 sps:$4 sm:$0xff]   ;;  %v21086_v13 = vld [vmem:[%s23760_s30 + $0x1980] ss:$72 sps:$4 sm:$0xff]  }
 0x538   : > { %7472 = vmatprep.subr.bf16.mxu1 %v21055_v15  ;;  %v21089_v15 = vld [vmem:[%s23760_s30 + $0x788] ss:$72 sps:$4 sm:$0xff]  }
 0x53a   : > { %7430 = vmatpush1.bf16.msra.mxu0 %v21050_v54  ;;  %v21094_v54 = vld [vmem:[%s23760_s30 + $0x18f4] ss:$72 sps:$4 sm:$0xff]  }
 0x53b   : > { %7473 = vmatpush1.bf16.msra.mxu1 %v21053_v61  ;;  %7431 = vmatprep.subr.bf16.mxu0 %v21058_v28  ;;  %v21097_v61 = vld [vmem:[%s23760_s30 + $0x6fc] ss:$72 sps:$4 sm:$0xff]   ;;  %v21092_v28 = vld [vmem:[%s23760_s30 + $0x18f0] ss:$72 sps:$4 sm:$0xff]  }
 0x53c   : > { %7474 = vmatprep.subr.bf16.mxu1 %v21061_v24  ;;  %v21095_v24 = vld [vmem:[%s23760_s30 + $0x6f8] ss:$72 sps:$4 sm:$0xff]  }
 0x53e   : > { %7432 = vmatpush1.bf16.msra.mxu0 %v21056_v31  ;;  %v21100_v31 = vld [vmem:[%s23760_s30 + $0x1864] ss:$72 sps:$4 sm:$0xff]  }
 0x53f   : > { %7475 = vmatpush1.bf16.msra.mxu1 %v21059_v34  ;;  %7433 = vmatprep.subr.bf16.mxu0 %v21064_v35  ;;  %v21103_v34 = vld [vmem:[%s23760_s30 + $0x66c] ss:$72 sps:$4 sm:$0xff]   ;;  %v21098_v35 = vld [vmem:[%s23760_s30 + $0x1860] ss:$72 sps:$4 sm:$0xff]  }
 0x540   : > { %7476 = vmatprep.subr.bf16.mxu1 %v21067_v40  ;;  %v21101_v40 = vld [vmem:[%s23760_s30 + $0x668] ss:$72 sps:$4 sm:$0xff]  }
 0x542   : > { %7434 = vmatpush1.bf16.msra.mxu0 %v21062_v44  ;;  %v21106_v44 = vld [vmem:[%s23760_s30 + $0x17d4] ss:$72 sps:$4 sm:$0xff]  }
 0x543   : > { %7477 = vmatpush1.bf16.msra.mxu1 %v21065_v27  ;;  %7435 = vmatprep.subr.bf16.mxu0 %v21070_v51  ;;  %v21109_v27 = vld [vmem:[%s23760_s30 + $0x5dc] ss:$72 sps:$4 sm:$0xff]   ;;  %v21104_v51 = vld [vmem:[%s23760_s30 + $0x17d0] ss:$72 sps:$4 sm:$0xff]  }
 0x544   : > { %7478 = vmatprep.subr.bf16.mxu1 %v21073_v39  ;;  %v21107_v39 = vld [vmem:[%s23760_s30 + $0x5d8] ss:$72 sps:$4 sm:$0xff]  }
 0x546   : > { %7436 = vmatpush1.bf16.msra.mxu0 %v21068_v56  ;;  %v21112_v56 = vld [vmem:[%s23760_s30 + $0x1744] ss:$72 sps:$4 sm:$0xff]  }
 0x547   : > { %7479 = vmatpush1.bf16.msra.mxu1 %v21071_v59  ;;  %7437 = vmatprep.subr.bf16.mxu0 %v21076_v9  ;;  %v21115_v59 = vld [vmem:[%s23760_s30 + $0x54c] ss:$72 sps:$4 sm:$0xff]   ;;  %v21110_v9 = vld [vmem:[%s23760_s30 + $0x1740] ss:$72 sps:$4 sm:$0xff]  }
 0x548   : > { %7480 = vmatprep.subr.bf16.mxu1 %v21079_v63  ;;  %v21113_v63 = vld [vmem:[%s23760_s30 + $0x548] ss:$72 sps:$4 sm:$0xff]  }
 0x54a   : > { %7438 = vmatpush2.bf16.msra.mxu0 %v21074_v0  ;;  %v21118_v0 = vld [vmem:[%s23760_s30 + $0x16b4] ss:$72 sps:$4 sm:$0xff]  }
 0x54b   : > { %7481 = vmatpush2.bf16.msra.mxu1 %v21077_v1  ;;  %7439 = vmatprep.subr.bf16.mxu0 %v21082_v38  ;;  %v21121_v1 = vld [vmem:[%s23760_s30 + $0x4bc] ss:$72 sps:$4 sm:$0xff]   ;;  %v21116_v38 = vld [vmem:[%s23760_s30 + $0x16b0] ss:$72 sps:$4 sm:$0xff]  }
 0x54c   : > { %7482 = vmatprep.subr.bf16.mxu1 %v21085_v3  ;;  %v21119_v3 = vld [vmem:[%s23760_s30 + $0x4b8] ss:$72 sps:$4 sm:$0xff]  }
 0x54e   : > { %7440 = vmatpush2.bf16.msra.mxu0 %v21080_v4  ;;  %v21124_v4 = vld [vmem:[%s23760_s30 + $0xd2c] ss:$72 sps:$4 sm:$0xff]  }
 0x54f   : > { %7483 = vmatpush2.bf16.msra.mxu1 %v21083_v5  ;;  %7441 = vmatprep.subr.bf16.mxu0 %v21088_v7  ;;  %v21127_v5 = vld [vmem:[%s23760_s30 + $0x162c] ss:$72 sps:$4 sm:$0xff]   ;;  %v21122_v7 = vld [vmem:[%s23760_s30 + $0xd28] ss:$72 sps:$4 sm:$0xff]  }
 0x550   : > { %7484 = vmatprep.subr.bf16.mxu1 %v21091_v6  ;;  %v21125_v6 = vld [vmem:[%s23760_s30 + $0x1628] ss:$72 sps:$4 sm:$0xff]  }
 0x552   : > { %7442 = vmatpush2.bf16.msra.mxu0 %v21086_v13  ;;  %v21130_v13 = vld [vmem:[%s23760_s30 + $0xc9c] ss:$72 sps:$4 sm:$0xff]  }
 0x553   : > { %7485 = vmatpush2.bf16.msra.mxu1 %v21089_v15  ;;  %7443 = vmatprep.subr.bf16.mxu0 %v21094_v54  ;;  %v21133_v15 = vld [vmem:[%s23760_s30 + $0x159c] ss:$72 sps:$4 sm:$0xff]  }
 0x554   : > { %7486 = vmatprep.subr.bf16.mxu1 %v21097_v61  ;;  %v21128_v61 = vld [vmem:[%s23760_s30 + $0xc98] ss:$72 sps:$4 sm:$0xff]  }
 0x556   : > { %7444 = vmatpush2.bf16.msra.mxu0 %v21092_v28  ;;  %v21131_v28 = vld [vmem:[%s23760_s30 + $0x1598] ss:$72 sps:$4 sm:$0xff]  }
 0x557   : > { %7487 = vmatpush2.bf16.msra.mxu1 %v21095_v24  ;;  %7445 = vmatprep.subr.bf16.mxu0 %v21100_v31  ;;  %v21136_v31 = vld [vmem:[%s23760_s30 + $0xc0c] ss:$72 sps:$4 sm:$0xff]  }
 0x558   : > { %7488 = vmatprep.subr.bf16.mxu1 %v21103_v34  ;;  %v21139_v34 = vld [vmem:[%s23760_s30 + $0x150c] ss:$72 sps:$4 sm:$0xff]  }
 0x55a   : > { %7446 = vmatpush2.bf16.msra.mxu0 %v21098_v35 }
 0x55b   : > { %7489 = vmatpush2.bf16.msra.mxu1 %v21101_v40  ;;  %7447 = vmatprep.subr.bf16.mxu0 %v21106_v44  ;;  %v21134_v44 = vld [vmem:[%s23760_s30 + $0xc08] ss:$72 sps:$4 sm:$0xff]  }
 0x55c   : > { %7490 = vmatprep.subr.bf16.mxu1 %v21109_v27  ;;  %v21137_v27 = vld [vmem:[%s23760_s30 + $0x1508] ss:$72 sps:$4 sm:$0xff]  }
 0x55e   : > { %7448 = vmatpush2.bf16.msra.mxu0 %v21104_v51 }
 0x55f   : > { %7491 = vmatpush2.bf16.msra.mxu1 %v21107_v39  ;;  %7449 = vmatprep.subr.bf16.mxu0 %v21112_v56  ;;  %v21145_v39 = vld [vmem:[%s23760_s30 + $0x147c] ss:$72 sps:$4 sm:$0xff]  }
 0x560   : > { %7492 = vmatprep.subr.bf16.mxu1 %v21115_v59  ;;  %v21140_v59 = vld [vmem:[%s23760_s30 + $0xb78] ss:$72 sps:$4 sm:$0xff]  }
 0x562   : > { %7450 = vmatpush2.bf16.msra.mxu0 %v21110_v9  ;;  %v21143_v9 = vld [vmem:[%s23760_s30 + $0x1478] ss:$72 sps:$4 sm:$0xff]  }
 0x563   : > { %7493 = vmatpush2.bf16.msra.mxu1 %v21113_v63  ;;  %7451 = vmatprep.subr.bf16.mxu0 %v21118_v0  ;;  %v21148_v63 = vld [vmem:[%s23760_s30 + $0xaec] ss:$72 sps:$4 sm:$0xff]  }
 0x564   : > { %7494 = vmatprep.subr.bf16.mxu1 %v21121_v1  ;;  %v21151_v0 = vld [vmem:[%s23760_s30 + $0x13ec] ss:$72 sps:$4 sm:$0xff]   ;;  %v21146_v1 = vld [vmem:[%s23760_s30 + $0xae8] ss:$72 sps:$4 sm:$0xff]  }
 0x566   : > { %7452 = vmatpush2.bf16.msra.mxu0 %v21116_v38  ;;  %v21149_v38 = vld [vmem:[%s23760_s30 + $0x13e8] ss:$72 sps:$4 sm:$0xff]  }
 0x567   : > { %7495 = vmatpush2.bf16.msra.mxu1 %v21119_v3  ;;  %7507 = vmatprep.subr.bf16.mxu0 %v21124_v4  ;;  %v21157_v3 = vld [vmem:[%s23760_s30 + $0x135c] ss:$72 sps:$4 sm:$0xff]   ;;  %v21152_v4 = vld [vmem:[%s23760_s30 + $0xa58] ss:$72 sps:$4 sm:$0xff]  }
 0x568   : > { %7550 = vmatprep.subr.bf16.mxu1 %v21127_v5  ;;  %v21155_v5 = vld [vmem:[%s23760_s30 + $0x1358] ss:$72 sps:$4 sm:$0xff]  }
 0x569   : > { %v24800_v54 = vpop.f32.mrf.mxu0  ;;  %7454 = vmatmul.mubr.bf16.vlgmr.msra.gmra.mxu0 %v24038_v22 }
 0x56a   : > { %7497 = vmatmul.mubr.bf16.vlgmr.msra.gmra.mxu1 %v23964_v11  ;;  %7508 = vmatpush1.bf16.msra.mxu0 %v21122_v7  ;;  %v21160_v7 = vld [vmem:[%s23760_s30 + $0x9cc] ss:$72 sps:$4 sm:$0xff]  }
 0x56b   : > { %7551 = vmatpush1.bf16.msra.mxu1 %v21125_v6  ;;  %v7199_v24 = vpop.f32.mrf.mxu0  ;;  %7509 = vmatprep.subr.bf16.mxu0 %v21130_v13  ;;  %v21163_v6 = vld [vmem:[%s23760_s30 + $0x12cc] ss:$72 sps:$4 sm:$0xff]   ;;  %v21158_v13 = vld [vmem:[%s23760_s30 + $0x9c8] ss:$72 sps:$4 sm:$0xff]  }
 0x56c   : > { %7552 = vmatprep.subr.bf16.mxu1 %v21133_v15  ;;  %v24809_v35 = vadd.f32 %v7199_v24, %v24736_v62  ;;  %7539 = vmatprep.mubr.bf16.mxu0 %v23944_v36  ;;  %v21142_v62 = vld [vmem:[%s23760_s30 + $0xb7c] ss:$72 sps:$4 sm:$0xff]   ;;  %v21161_v15 = vld [vmem:[%s23760_s30 + $0x12c8] ss:$72 sps:$4 sm:$0xff]   ;;  %v21164_v24 = vld [vmem:[%s23760_s30 + $0x938] ss:$72 sps:$4 sm:$0xff]  }
 0x56d   : > { %7582 = vmatprep.mubr.bf16.mxu1 %v23999_v53  ;;  %v24813_v40 = vpop.f32.mrf.mxu0 }
 0x56e   : > { %7510 = vmatpush1.bf16.msra.mxu0 %v21128_v61  ;;  %v21166_v61 = vld [vmem:[%s23760_s30 + $0x93c] ss:$72 sps:$4 sm:$0xff]  }
 0x56f   : > { %7553 = vmatpush1.bf16.msra.mxu1 %v21131_v28  ;;  %v7203_v51 = vpop.f32.mrf.mxu0  ;;  %7511 = vmatprep.subr.bf16.mxu0 %v21136_v31  ;;  %v21169_v28 = vld [vmem:[%s23760_s30 + $0x123c] ss:$72 sps:$4 sm:$0xff]   ;;  %v21167_v31 = vld [vmem:[%s23760_s30 + $0x1238] ss:$72 sps:$4 sm:$0xff]  }
 0x570   : > { %7554 = vmatprep.subr.bf16.mxu1 %v21139_v34  ;;  %v24820_v56 = vadd.f32 %v7203_v51, %v24742_v42  ;;  %v21154_v42 = vld [vmem:[%s23760_s30 + $0xa5c] ss:$72 sps:$4 sm:$0xff]   ;;  %v21172_v34 = vld [vmem:[%s23760_s30 + $0x11ac] ss:$72 sps:$4 sm:$0xff]   ;;  %v21173_v51 = vld [vmem:[%s23760_s30 + $0x1aa8] ss:$72 sps:$4 sm:$0xff]  }
 0x572   : > { %7512 = vmatpush1.bf16.msra.mxu0 %v21134_v44  ;;  %v21175_v44 = vld [vmem:[%s23760_s30 + $0x1aac] ss:$72 sps:$4 sm:$0xff]  }
 0x573   : > { %7555 = vmatpush1.bf16.msra.mxu1 %v21137_v27  ;;  %7513 = vmatprep.subr.bf16.mxu0 %v21142_v62  ;;  %v21170_v27 = vld [vmem:[%s23760_s30 + $0x11a8] ss:$72 sps:$4 sm:$0xff]   ;;  %v21178_v62 = vld [vmem:[%s23760_s30 + $0x111c] ss:$72 sps:$4 sm:$0xff]  }
 0x574   : > { %7556 = vmatprep.subr.bf16.mxu1 %v21145_v39  ;;  %v21181_v39 = vld [vmem:[%s23760_s30 + $0x1a1c] ss:$72 sps:$4 sm:$0xff]  }
 0x576   : > { %7514 = vmatpush1.bf16.msra.mxu0 %v21140_v59  ;;  %v21176_v59 = vld [vmem:[%s23760_s30 + $0x1118] ss:$72 sps:$4 sm:$0xff]  }
 0x577   : > { %7557 = vmatpush1.bf16.msra.mxu1 %v21143_v9  ;;  %7515 = vmatprep.subr.bf16.mxu0 %v21148_v63  ;;  %v21179_v9 = vld [vmem:[%s23760_s30 + $0x1a18] ss:$72 sps:$4 sm:$0xff]   ;;  %v21184_v63 = vld [vmem:[%s23760_s30 + $0x108c] ss:$72 sps:$4 sm:$0xff]  }
 0x578   : > { %7558 = vmatprep.subr.bf16.mxu1 %v21151_v0  ;;  %v21187_v0 = vld [vmem:[%s23760_s30 + $0x198c] ss:$72 sps:$4 sm:$0xff]  }
 0x57a   : > { %7516 = vmatpush1.bf16.msra.mxu0 %v21146_v1  ;;  %v21182_v1 = vld [vmem:[%s23760_s30 + $0x1088] ss:$72 sps:$4 sm:$0xff]  }
 0x57b   : > { %7559 = vmatpush1.bf16.msra.mxu1 %v21149_v38  ;;  %7517 = vmatprep.subr.bf16.mxu0 %v21154_v42  ;;  %v21185_v38 = vld [vmem:[%s23760_s30 + $0x1988] ss:$72 sps:$4 sm:$0xff]   ;;  %v21190_v42 = vld [vmem:[%s23760_s30 + $0xffc] ss:$72 sps:$4 sm:$0xff]  }
 0x57c   : > { %7560 = vmatprep.subr.bf16.mxu1 %v21157_v3  ;;  %v21193_v3 = vld [vmem:[%s23760_s30 + $0x18fc] ss:$72 sps:$4 sm:$0xff]  }
 0x57e   : > { %7518 = vmatpush1.bf16.msra.mxu0 %v21152_v4  ;;  %v21188_v4 = vld [vmem:[%s23760_s30 + $0xff8] ss:$72 sps:$4 sm:$0xff]  }
 0x57f   : > { %7561 = vmatpush1.bf16.msra.mxu1 %v21155_v5  ;;  %7519 = vmatprep.subr.bf16.mxu0 %v21160_v7  ;;  %v21191_v5 = vld [vmem:[%s23760_s30 + $0x18f8] ss:$72 sps:$4 sm:$0xff]   ;;  %v21196_v7 = vld [vmem:[%s23760_s30 + $0xf6c] ss:$72 sps:$4 sm:$0xff]  }
 0x580   : > { %7562 = vmatprep.subr.bf16.mxu1 %v21163_v6  ;;  %v21199_v6 = vld [vmem:[%s23760_s30 + $0x186c] ss:$72 sps:$4 sm:$0xff]  }
 0x582   : > { %7520 = vmatpush1.bf16.msra.mxu0 %v21158_v13  ;;  %v21194_v13 = vld [vmem:[%s23760_s30 + $0xf68] ss:$72 sps:$4 sm:$0xff]  }
 0x583   : > { %7563 = vmatpush1.bf16.msra.mxu1 %v21161_v15  ;;  %7521 = vmatprep.subr.bf16.mxu0 %v21166_v61  ;;  %v21197_v15 = vld [vmem:[%s23760_s30 + $0x1868] ss:$72 sps:$4 sm:$0xff]   ;;  %v21202_v61 = vld [vmem:[%s23760_s30 + $0xedc] ss:$72 sps:$4 sm:$0xff]  }
 0x584   : > { %7564 = vmatprep.subr.bf16.mxu1 %v21169_v28  ;;  %v21205_v28 = vld [vmem:[%s23760_s30 + $0x17dc] ss:$72 sps:$4 sm:$0xff]  }
 0x586   : > { %7522 = vmatpush1.bf16.msra.mxu0 %v21164_v24  ;;  %v7240_v24 = vpop.f32.mrf.mxu1 }
 0x587   : > { %7565 = vmatpush1.bf16.msra.mxu1 %v21167_v31  ;;  %7523 = vmatprep.subr.bf16.mxu0 %v21172_v34  ;;  %v21200_v31 = vld [vmem:[%s23760_s30 + $0xed8] ss:$72 sps:$4 sm:$0xff]  }
 0x588   : > { %7566 = vmatprep.subr.bf16.mxu1 %v21175_v44  ;;  %v21203_v34 = vld [vmem:[%s23760_s30 + $0x17d8] ss:$72 sps:$4 sm:$0xff]   ;;  %v21208_v44 = vld [vmem:[%s23760_s30 + $0xe4c] ss:$72 sps:$4 sm:$0xff]  }
 0x58a   : > { %7524 = vmatpush2.bf16.msra.mxu0 %v21170_v27  ;;  %v21211_v27 = vld [vmem:[%s23760_s30 + $0x174c] ss:$72 sps:$4 sm:$0xff]  }
 0x58b   : > { %7567 = vmatpush2.bf16.msra.mxu1 %v21173_v51  ;;  %7525 = vmatprep.subr.bf16.mxu0 %v21178_v62  ;;  %v7242_v51 = vpop.f32.mrf.mxu1  ;;  %v21206_v62 = vld [vmem:[%s23760_s30 + $0xe48] ss:$72 sps:$4 sm:$0xff]  }
 0x58c   : > { %7568 = vmatprep.subr.bf16.mxu1 %v21181_v39  ;;  %v21209_v39 = vld [vmem:[%s23760_s30 + $0x1748] ss:$72 sps:$4 sm:$0xff]  }
 0x58e   : > { %7526 = vmatpush2.bf16.msra.mxu0 %v21176_v59  ;;  %v21214_v59 = vld [vmem:[%s23760_s30 + $0xdbc] ss:$72 sps:$4 sm:$0xff]  }
 0x58f   : > { %7569 = vmatpush2.bf16.msra.mxu1 %v21179_v9  ;;  %7527 = vmatprep.subr.bf16.mxu0 %v21184_v63  ;;  %v21217_v9 = vld [vmem:[%s23760_s30 + $0x16bc] ss:$72 sps:$4 sm:$0xff]   ;;  %v7244_v63 = vpop.f32.mrf.mxu1 }
 0x590   : > { %7570 = vmatprep.subr.bf16.mxu1 %v21187_v0  ;;  %v2194_v0 = vrot.slane %v24710_v19, %v24348_v23 }
 0x592   : > { %7528 = vmatpush2.bf16.msra.mxu0 %v21182_v1  ;;  %v21212_v1 = vld [vmem:[%s23760_s30 + $0xdb8] ss:$72 sps:$4 sm:$0xff]  }
 0x593   : > { %7571 = vmatpush2.bf16.msra.mxu1 %v21185_v38  ;;  %7529 = vmatprep.subr.bf16.mxu0 %v21190_v42  ;;  %v21215_v38 = vld [vmem:[%s23760_s30 + $0x16b8] ss:$72 sps:$4 sm:$0xff]   ;;  %v21220_v42 = vld [vmem:[%s23760_s30 + $0x434] ss:$72 sps:$4 sm:$0xff]  }
 0x594   : > { %7572 = vmatprep.subr.bf16.mxu1 %v21193_v3  ;;  %v21223_v3 = vld [vmem:[%s23760_s30 + $0xd34] ss:$72 sps:$4 sm:$0xff]  }
 0x596   : > { %7530 = vmatpush2.bf16.msra.mxu0 %v21188_v4  ;;  %v2198_v4 = vrot.slane %v24710_v19, %v24353_v30 }
 0x597   : > { %7573 = vmatpush2.bf16.msra.mxu1 %v21191_v5  ;;  %7531 = vmatprep.subr.bf16.mxu0 %v21196_v7  ;;  %v7246_v5 = vpop.f32.mrf.mxu1  ;;  %v7241_v7 = vadd.f32 %v7240_v24, %v2194_v0  ;;  %v7245_v24 = vadd.f32 %v7244_v63, %v2194_v0 }
 0x598   : > { %7574 = vmatprep.subr.bf16.mxu1 %v21199_v6  ;;  %v21218_v6 = vld [vmem:[%s23760_s30 + $0x430] ss:$72 sps:$4 sm:$0xff]  }
 0x59a   : > { %7532 = vmatpush2.bf16.msra.mxu0 %v21194_v13  ;;  %v21221_v13 = vld [vmem:[%s23760_s30 + $0xd30] ss:$72 sps:$4 sm:$0xff]  }
 0x59b   : > { %7575 = vmatpush2.bf16.msra.mxu1 %v21197_v15  ;;  %7533 = vmatprep.subr.bf16.mxu0 %v21202_v61  ;;  %v21226_v15 = vld [vmem:[%s23760_s30 + $0x3a4] ss:$72 sps:$4 sm:$0xff]  }
 0x59c   : > { %7576 = vmatprep.subr.bf16.mxu1 %v21205_v28  ;;  %v21229_v61 = vld [vmem:[%s23760_s30 + $0xca4] ss:$72 sps:$4 sm:$0xff]   ;;  %v7243_v28 = vadd.f32 %v7242_v51, %v2198_v4  ;;  %v21232_v51 = vld [vmem:[%s23760_s30 + $0x314] ss:$72 sps:$4 sm:$0xff]  }
 0x59e   : > { %7534 = vmatpush2.bf16.msra.mxu0 %v21200_v31 }
 0x59f   : > { %7577 = vmatpush2.bf16.msra.mxu1 %v21203_v34  ;;  %7535 = vmatprep.subr.bf16.mxu0 %v21208_v44 }
 0x5a0   : > { %7578 = vmatprep.subr.bf16.mxu1 %v21211_v27  ;;  %v21224_v27 = vld [vmem:[%s23760_s30 + $0x3a0] ss:$72 sps:$4 sm:$0xff]  }
 0x5a2   : > { %7536 = vmatpush2.bf16.msra.mxu0 %v21206_v62  ;;  %v21227_v62 = vld [vmem:[%s23760_s30 + $0xca0] ss:$72 sps:$4 sm:$0xff]  }
 0x5a3   : > { %7579 = vmatpush2.bf16.msra.mxu1 %v21209_v39  ;;  %7537 = vmatprep.subr.bf16.mxu0 %v21214_v59 }
 0x5a4   : > { %7580 = vmatprep.subr.bf16.mxu1 %v21217_v9  ;;  %v21235_v9 = vld [vmem:[%s23760_s30 + $0xc14] ss:$72 sps:$4 sm:$0xff]  }
 0x5a6   : > { %7538 = vmatpush2.bf16.msra.mxu0 %v21212_v1  ;;  %v7247_v1 = vadd.f32 %v7246_v5, %v2198_v4  ;;  %v21233_v4 = vld [vmem:[%s23760_s30 + $0xc10] ss:$72 sps:$4 sm:$0xff]  }
 0x5a7   : > { %7581 = vmatpush2.bf16.msra.mxu1 %v21215_v38  ;;  %7593 = vmatprep.subr.bf16.mxu0 %v21220_v42 }
 0x5a8   : > { %7636 = vmatprep.subr.bf16.mxu1 %v21223_v3 }
 0x5a9   : > { %v7283_v31 = vpop.f32.mrf.mxu0  ;;  %7540 = vmatmul.mubr.bf16.vlgmr.msra.gmra.mxu0 %v23968_v14 }
 0x5aa   : > { %7583 = vmatmul.mubr.bf16.vlgmr.msra.gmra.mxu1 %v24038_v22  ;;  %v7326_v34 = vpop.f32.mrf.mxu1  ;;  %v7284_v44 = vadd.f32 %v7283_v31, %v7241_v7  ;;  %7594 = vmatpush1.bf16.msra.mxu0 %v21218_v6  ;;  %v21230_v6 = vld [vmem:[%s23760_s30 + $0x310] ss:$72 sps:$4 sm:$0xff]   ;;  %v21236_v31 = vld [vmem:[%s23760_s30 + $0x280] ss:$72 sps:$4 sm:$0xff]  }
 0x5ab   : > { %7637 = vmatpush1.bf16.msra.mxu1 %v21221_v13  ;;  %v7285_v39 = vpop.f32.mrf.mxu0  ;;  %7595 = vmatprep.subr.bf16.mxu0 %v21226_v15 }
 0x5ac   : > { %v7328_v59 = vpop.f32.mrf.mxu1  ;;  %7638 = vmatprep.subr.bf16.mxu1 %v21229_v61  ;;  %v7286_v38 = vadd.f32 %v7285_v39, %v7243_v28  ;;  %v24888_v42 = vadd.f32 %v7326_v34, %v7284_v44  ;;  %7625 = vmatprep.mubr.bf16.mxu0 %v23940_v55  ;;  %v21238_v55 = vld [vmem:[%s23760_s30 + $0x284] ss:$72 sps:$4 sm:$0xff]   ;;  %v21239_v34 = vld [vmem:[%s23760_s30 + $0xb80] ss:$72 sps:$4 sm:$0xff]   ;;  %v21247_v44 = vld [vmem:[%s23760_s30 + $0xaf4] ss:$72 sps:$4 sm:$0xff]  }
 0x5ad   : > { %7668 = vmatprep.mubr.bf16.mxu1 %v23944_v36  ;;  %v7287_v63 = vpop.f32.mrf.mxu0  ;;  %v21241_v36 = vld [vmem:[%s23760_s30 + $0xb84] ss:$72 sps:$4 sm:$0xff]  }
 0x5ae   : > { %v7330_v0 = vpop.f32.mrf.mxu1  ;;  %v7288_v3 = vadd.f32 %v7287_v63, %v7245_v24  ;;  %v24892_v7 = vadd.f32 %v7328_v59, %v7286_v38  ;;  %7596 = vmatpush1.bf16.msra.mxu0 %v21224_v27  ;;  %v21244_v24 = vld [vmem:[%s23760_s30 + $0x1f4] ss:$72 sps:$4 sm:$0xff]   ;;  %v21242_v27 = vld [vmem:[%s23760_s30 + $0x1f0] ss:$72 sps:$4 sm:$0xff]   ;;  %v21250_v39 = vld [vmem:[%s23760_s30 + $0x164] ss:$72 sps:$4 sm:$0xff]  }
 0x5af   : > { %7639 = vmatpush1.bf16.msra.mxu1 %v21227_v62  ;;  %v7289_v5 = vpop.f32.mrf.mxu0  ;;  %7597 = vmatprep.subr.bf16.mxu0 %v21232_v51  ;;  %v21245_v62 = vld [vmem:[%s23760_s30 + $0xaf0] ss:$72 sps:$4 sm:$0xff]   ;;  %v21253_v59 = vld [vmem:[%s23760_s30 + $0xa64] ss:$72 sps:$4 sm:$0xff]   ;;  %v21248_v51 = vld [vmem:[%s23760_s30 + $0x160] ss:$72 sps:$4 sm:$0xff]  }
 0x5b0   : > { %v7332_v13 = vpop.f32.mrf.mxu1  ;;  %7640 = vmatprep.subr.bf16.mxu1 %v21235_v9  ;;  %v7290_v15 = vadd.f32 %v7289_v5, %v7247_v1  ;;  %v24898_v61 = vadd.f32 %v7330_v0, %v7288_v3  ;;  %v21251_v9 = vld [vmem:[%s23760_s30 + $0xa60] ss:$72 sps:$4 sm:$0xff]   ;;  %v21256_v1 = vld [vmem:[%s23760_s30 + $0xd4] ss:$72 sps:$4 sm:$0xff]   ;;  %v21254_v63 = vld [vmem:[%s23760_s30 + $0xd0] ss:$72 sps:$4 sm:$0xff]  }
 0x5b1   : > { %v21259_v38 = vld [vmem:[%s23760_s30 + $0x9d4] ss:$72 sps:$4 sm:$0xff]   ;;  %v21257_v0 = vld [vmem:[%s23760_s30 + $0x9d0] ss:$72 sps:$4 sm:$0xff]   ;;  %v21262_v3 = vld [vmem:[%s23760_s30 + $0x44] ss:$72 sps:$4 sm:$0xff]  }
 0x5b2   : > { %v24900_v28 = vadd.f32 %v7332_v13, %v7290_v15  ;;  %7598 = vmatpush1.bf16.msra.mxu0 %v21230_v6  ;;  %v21265_v6 = vld [vmem:[%s23760_s30 + $0x944] ss:$72 sps:$4 sm:$0xff]   ;;  %v21263_v5 = vld [vmem:[%s23760_s30 + $0x940] ss:$72 sps:$4 sm:$0xff]   ;;  %v21268_v13 = vld [vmem:[%s23760_s30 + $0x8b4] ss:$72 sps:$4 sm:$0xff]  }
 0x5b3   : > { %7641 = vmatpush1.bf16.msra.mxu1 %v21233_v4  ;;  %7599 = vmatprep.subr.bf16.mxu0 %v21238_v55  ;;  %v21260_v4 = vld [vmem:[%s23760_s30 + $0x40] ss:$72 sps:$4 sm:$0xff]   ;;  %v21271_v55 = vld [vmem:[%s23760_s30 + $0x11b4] ss:$72 sps:$4 sm:$0xff]   ;;  %v21269_v15 = vld [vmem:[%s23760_s30 + $0x11b0] ss:$72 sps:$4 sm:$0xff]  }
 0x5b4   : > { %7642 = vmatprep.subr.bf16.mxu1 %v21241_v36  ;;  %v21266_v36 = vld [vmem:[%s23760_s30 + $0x8b0] ss:$72 sps:$4 sm:$0xff]  }
 0x5b6   : > { %7600 = vmatpush1.bf16.msra.mxu0 %v21236_v31  ;;  %v21274_v31 = vld [vmem:[%s23760_s30 + $0x824] ss:$72 sps:$4 sm:$0xff]  }
 0x5b7   : > { %7643 = vmatpush1.bf16.msra.mxu1 %v21239_v34  ;;  %7601 = vmatprep.subr.bf16.mxu0 %v21244_v24  ;;  %v21277_v34 = vld [vmem:[%s23760_s30 + $0x1124] ss:$72 sps:$4 sm:$0xff]   ;;  %v21272_v24 = vld [vmem:[%s23760_s30 + $0x820] ss:$72 sps:$4 sm:$0xff]  }
 0x5b8   : > { %7644 = vmatprep.subr.bf16.mxu1 %v21247_v44  ;;  %v21275_v44 = vld [vmem:[%s23760_s30 + $0x1120] ss:$72 sps:$4 sm:$0xff]  }
 0x5ba   : > { %7602 = vmatpush1.bf16.msra.mxu0 %v21242_v27  ;;  %v21280_v27 = vld [vmem:[%s23760_s30 + $0x794] ss:$72 sps:$4 sm:$0xff]  }
 0x5bb   : > { %7645 = vmatpush1.bf16.msra.mxu1 %v21245_v62  ;;  %7603 = vmatprep.subr.bf16.mxu0 %v21250_v39  ;;  %v21283_v62 = vld [vmem:[%s23760_s30 + $0x1094] ss:$72 sps:$4 sm:$0xff]   ;;  %v21278_v39 = vld [vmem:[%s23760_s30 + $0x790] ss:$72 sps:$4 sm:$0xff]  }
 0x5bc   : > { %7646 = vmatprep.subr.bf16.mxu1 %v21253_v59  ;;  %v21281_v59 = vld [vmem:[%s23760_s30 + $0x1090] ss:$72 sps:$4 sm:$0xff]  }
 0x5be   : > { %7604 = vmatpush1.bf16.msra.mxu0 %v21248_v51  ;;  %v21286_v51 = vld [vmem:[%s23760_s30 + $0x704] ss:$72 sps:$4 sm:$0xff]  }
 0x5bf   : > { %7647 = vmatpush1.bf16.msra.mxu1 %v21251_v9  ;;  %7605 = vmatprep.subr.bf16.mxu0 %v21256_v1  ;;  %v21289_v9 = vld [vmem:[%s23760_s30 + $0x1004] ss:$72 sps:$4 sm:$0xff]   ;;  %v21284_v1 = vld [vmem:[%s23760_s30 + $0x700] ss:$72 sps:$4 sm:$0xff]  }
 0x5c0   : > { %7648 = vmatprep.subr.bf16.mxu1 %v21259_v38  ;;  %v21287_v38 = vld [vmem:[%s23760_s30 + $0x1000] ss:$72 sps:$4 sm:$0xff]  }
 0x5c2   : > { %7606 = vmatpush1.bf16.msra.mxu0 %v21254_v63  ;;  %v21292_v63 = vld [vmem:[%s23760_s30 + $0x674] ss:$72 sps:$4 sm:$0xff]  }
 0x5c3   : > { %7649 = vmatpush1.bf16.msra.mxu1 %v21257_v0  ;;  %7607 = vmatprep.subr.bf16.mxu0 %v21262_v3  ;;  %v21295_v0 = vld [vmem:[%s23760_s30 + $0xf74] ss:$72 sps:$4 sm:$0xff]   ;;  %v21290_v3 = vld [vmem:[%s23760_s30 + $0x670] ss:$72 sps:$4 sm:$0xff]  }
 0x5c4   : > { %7650 = vmatprep.subr.bf16.mxu1 %v21265_v6  ;;  %v21293_v6 = vld [vmem:[%s23760_s30 + $0xf70] ss:$72 sps:$4 sm:$0xff]  }
 0x5c6   : > { %7608 = vmatpush1.bf16.msra.mxu0 %v21260_v4  ;;  %v21298_v4 = vld [vmem:[%s23760_s30 + $0x5e4] ss:$72 sps:$4 sm:$0xff]  }
 0x5c7   : > { %7651 = vmatpush1.bf16.msra.mxu1 %v21263_v5  ;;  %7609 = vmatprep.subr.bf16.mxu0 %v21268_v13  ;;  %v21301_v5 = vld [vmem:[%s23760_s30 + $0xee4] ss:$72 sps:$4 sm:$0xff]   ;;  %v21296_v13 = vld [vmem:[%s23760_s30 + $0x5e0] ss:$72 sps:$4 sm:$0xff]  }
 0x5c8   : > { %7652 = vmatprep.subr.bf16.mxu1 %v21271_v55  ;;  %v21299_v55 = vld [vmem:[%s23760_s30 + $0xee0] ss:$72 sps:$4 sm:$0xff]  }
 0x5ca   : > { %7610 = vmatpush2.bf16.msra.mxu0 %v21266_v36  ;;  %v21304_v36 = vld [vmem:[%s23760_s30 + $0x554] ss:$72 sps:$4 sm:$0xff]  }
 0x5cb   : > { %7653 = vmatpush2.bf16.msra.mxu1 %v21269_v15  ;;  %7611 = vmatprep.subr.bf16.mxu0 %v21274_v31  ;;  %v21307_v15 = vld [vmem:[%s23760_s30 + $0xe54] ss:$72 sps:$4 sm:$0xff]   ;;  %v21302_v31 = vld [vmem:[%s23760_s30 + $0x550] ss:$72 sps:$4 sm:$0xff]  }
 0x5cc   : > { %7654 = vmatprep.subr.bf16.mxu1 %v21277_v34  ;;  %v21305_v34 = vld [vmem:[%s23760_s30 + $0xe50] ss:$72 sps:$4 sm:$0xff]  }
 0x5ce   : > { %7612 = vmatpush2.bf16.msra.mxu0 %v21272_v24  ;;  %v21310_v24 = vld [vmem:[%s23760_s30 + $0x4c4] ss:$72 sps:$4 sm:$0xff]  }
 0x5cf   : > { %7655 = vmatpush2.bf16.msra.mxu1 %v21275_v44  ;;  %7613 = vmatprep.subr.bf16.mxu0 %v21280_v27  ;;  %v21313_v44 = vld [vmem:[%s23760_s30 + $0xdc4] ss:$72 sps:$4 sm:$0xff]   ;;  %v21308_v27 = vld [vmem:[%s23760_s30 + $0x4c0] ss:$72 sps:$4 sm:$0xff]  }
 0x5d0   : > { %7656 = vmatprep.subr.bf16.mxu1 %v21283_v62  ;;  %v21311_v62 = vld [vmem:[%s23760_s30 + $0xdc0] ss:$72 sps:$4 sm:$0xff]  }
 0x5d2   : > { %7614 = vmatpush2.bf16.msra.mxu0 %v21278_v39  ;;  %v21316_v39 = vld [vmem:[%s23760_s30 + $0x1634] ss:$72 sps:$4 sm:$0xff]  }
 0x5d3   : > { %7657 = vmatpush2.bf16.msra.mxu1 %v21281_v59  ;;  %7615 = vmatprep.subr.bf16.mxu0 %v21286_v51  ;;  %v21314_v59 = vld [vmem:[%s23760_s30 + $0x1630] ss:$72 sps:$4 sm:$0xff]   ;;  %v2206_v51 = vrot.slane %v24710_v19, %v24450_v25 }
 0x5d4   : > { %7658 = vmatprep.subr.bf16.mxu1 %v21289_v9  ;;  %v21319_v9 = vld [vmem:[%s23760_s30 + $0x15a4] ss:$72 sps:$4 sm:$0xff]  }
 0x5d6   : > { %7616 = vmatpush2.bf16.msra.mxu0 %v21284_v1 }
 0x5d7   : > { %7659 = vmatpush2.bf16.msra.mxu1 %v21287_v38  ;;  %7617 = vmatprep.subr.bf16.mxu0 %v21292_v63  ;;  %v21317_v63 = vld [vmem:[%s23760_s30 + $0x15a0] ss:$72 sps:$4 sm:$0xff]  }
 0x5d8   : > { %7660 = vmatprep.subr.bf16.mxu1 %v21295_v0 }
 0x5da   : > { %7618 = vmatpush2.bf16.msra.mxu0 %v21290_v3 }
 0x5db   : > { %7661 = vmatpush2.bf16.msra.mxu1 %v21293_v6  ;;  %7619 = vmatprep.subr.bf16.mxu0 %v21298_v4 }
 0x5dc   : > { %7662 = vmatprep.subr.bf16.mxu1 %v21301_v5 }
 0x5de   : > { %7620 = vmatpush2.bf16.msra.mxu0 %v21296_v13 }
 0x5df   : > { %7663 = vmatpush2.bf16.msra.mxu1 %v21299_v55  ;;  %7621 = vmatprep.subr.bf16.mxu0 %v21304_v36  ;;  %v21323_v36 = vld [vmem:[%s23760_s30 + $0x1480] ss:$72 sps:$4 sm:$0xff]  }
 0x5e0   : > { %7664 = vmatprep.subr.bf16.mxu1 %v21307_v15  ;;  %v21326_v15 = vld [vmem:[%s23760_s30 + $0x13f0] ss:$72 sps:$4 sm:$0xff]  }
 0x5e2   : > { %7622 = vmatpush2.bf16.msra.mxu0 %v21302_v31  ;;  %v21331_v31 = vld [vmem:[%s23760_s30 + $0x1364] ss:$72 sps:$4 sm:$0xff]  }
 0x5e3   : > { %7665 = vmatpush2.bf16.msra.mxu1 %v21305_v34  ;;  %7623 = vmatprep.subr.bf16.mxu0 %v21310_v24  ;;  %v21329_v34 = vld [vmem:[%s23760_s30 + $0x1360] ss:$72 sps:$4 sm:$0xff]   ;;  %v21332_v24 = vld [vmem:[%s23760_s30 + $0x12d0] ss:$72 sps:$4 sm:$0xff]  }
 0x5e4   : > { %7666 = vmatprep.subr.bf16.mxu1 %v21313_v44  ;;  %v21337_v44 = vld [vmem:[%s23760_s30 + $0x1244] ss:$72 sps:$4 sm:$0xff]  }
 0x5e6   : > { %7624 = vmatpush2.bf16.msra.mxu0 %v21308_v27  ;;  %v21335_v27 = vld [vmem:[%s23760_s30 + $0x1240] ss:$72 sps:$4 sm:$0xff]  }
 0x5e7   : > { %7667 = vmatpush2.bf16.msra.mxu1 %v21311_v62  ;;  %7679 = vmatprep.subr.bf16.mxu0 %v21316_v39  ;;  %v21340_v62 = vld [vmem:[%s23760_s30 + $0x1ab4] ss:$72 sps:$4 sm:$0xff]   ;;  %v21338_v39 = vld [vmem:[%s23760_s30 + $0x1ab0] ss:$72 sps:$4 sm:$0xff]  }
 0x5e8   : > { %19712 = vmatprep.subr.msk.mxu1 %vm7766_vm0, %v24637_v48 }
 0x5e9   : > { %v24959_v1 = vpop.f32.mrf.mxu0  ;;  %7626 = vmatmul.mubr.bf16.vlgmr.msra.gmra.mxu0 %v23964_v11  ;;  %v21322_v11 = vld [vmem:[%s23760_s30 + $0x1514] ss:$72 sps:$4 sm:$0xff]  }
 0x5ea   : > { %7669 = vmatmul.mubr.bf16.vlgmr.msra.gmra.mxu1 %v23968_v14  ;;  %v24963_v38 = vpop.f32.mrf.mxu1  ;;  %7680 = vmatpush1.bf16.msra.mxu0 %v21314_v59  ;;  %v21343_v59 = vld [vmem:[%s23760_s30 + $0x1a24] ss:$72 sps:$4 sm:$0xff]  }
 0x5eb   : > { %19713 = vmatpush3.xpose.msk.msra.mxu1 %vm7766_vm0, %v24637_v48  ;;  %19716 = vmatprep.mubr.msk.f32.mxu1 %vm7766_vm0, %v24280_v12  ;;  %v7371_v0 = vpop.f32.mrf.mxu0  ;;  %v21320_v12 = vld [vmem:[%s23760_s30 + $0x1510] ss:$72 sps:$4 sm:$0xff]  }
 0x5ec   : > { %19714 = vmatprep.subr.msk.mxu1 %vm7766_vm0, %v24653_v26  ;;  %v7414_v19 = vpop.f32.mrf.mxu1  ;;  %v7372_v3 = vadd.f32 %v7371_v0, %v2206_v51  ;;  %7681 = vmatprep.subr.bf16.mxu0 %v21319_v9  ;;  %v21346_v9 = vld [vmem:[%s23760_s30 + $0x1994] ss:$72 sps:$4 sm:$0xff]   ;;  %v21349_v0 = vld [vmem:[%s23760_s30 + $0x1904] ss:$72 sps:$4 sm:$0xff]  }
 0x5ed   : > { %7711 = vmatprep.mubr.bf16.mxu0 %v23999_v53  ;;  %v24974_v14 = vpop.f32.mrf.mxu0  ;;  %v21325_v53 = vld [vmem:[%s23760_s30 + $0x1484] ss:$72 sps:$4 sm:$0xff]  }
 0x5ee   : > { %v24976_v48 = vpop.f32.mrf.mxu1  ;;  %v24978_v6 = vadd.f32 %v7414_v19, %v7372_v3  ;;  %7682 = vmatpush1.bf16.msra.mxu0 %v21317_v63  ;;  %v21344_v63 = vld [vmem:[%s23760_s30 + $0x1990] ss:$72 sps:$4 sm:$0xff]   ;;  %v21347_v19 = vld [vmem:[%s23760_s30 + $0x1900] ss:$72 sps:$4 sm:$0xff]  }
 0x5ef   : > { %19715 = vmatpush3.xpose.msk.msra.mxu1 %vm7766_vm0, %v24653_v26  ;;  %v7375_v4 = vpop.f32.mrf.mxu0  ;;  %7683 = vmatprep.subr.bf16.mxu0 %v21322_v11  ;;  %v21328_v26 = vld [vmem:[%s23760_s30 + $0x13f4] ss:$72 sps:$4 sm:$0xff]   ;;  %v21350_v3 = vld [vmem:[%s23760_s30 + $0x1870] ss:$72 sps:$4 sm:$0xff]  }
 0x5f0   : > { %v7418_v5 = vpop.f32.mrf.mxu1  ;;  %v7376_v13 = vadd.f32 %v7375_v4, %v2206_v51  ;;  %v21341_v51 = vld [vmem:[%s23760_s30 + $0x1a20] ss:$72 sps:$4 sm:$0xff]   ;;  %v21352_v11 = vld [vmem:[%s23760_s30 + $0x1874] ss:$72 sps:$4 sm:$0xff]  }
 0x5f1   : > { %v21353_v4 = vld [vmem:[%s23760_s30 + $0x17e0] ss:$72 sps:$4 sm:$0xff]  }
 0x5f2   : > { %19717 = vmatmul.mubr.msk.f32.vlgmr.msra.gmra.mxu1 %vm7766_vm0, %v24293_v21  ;;  %v24986_v55 = vadd.f32 %v7418_v5, %v7376_v13  ;;  %7684 = vmatpush1.bf16.msra.mxu0 %v21320_v12  ;;  %v21334_v21 = vld [vmem:[%s23760_s30 + $0x12d4] ss:$72 sps:$4 sm:$0xff]   ;;  %v21355_v12 = vld [vmem:[%s23760_s30 + $0x17e4] ss:$72 sps:$4 sm:$0xff]  }
 0x5f3   : > { %7685 = vmatprep.subr.bf16.mxu0 %v21325_v53  ;;  %v21358_v5 = vld [vmem:[%s23760_s30 + $0x1754] ss:$72 sps:$4 sm:$0xff]   ;;  %v21356_v53 = vld [vmem:[%s23760_s30 + $0x1750] ss:$72 sps:$4 sm:$0xff]   ;;  %v21361_v13 = vld [vmem:[%s23760_s30 + $0x16c4] ss:$72 sps:$4 sm:$0xff]  }
 0x5f6   : > { %7686 = vmatpush1.bf16.msra.mxu0 %v21323_v36  ;;  %v21359_v36 = vld [vmem:[%s23760_s30 + $0x16c0] ss:$72 sps:$4 sm:$0xff]  }
 0x5f7   : > { %7687 = vmatprep.subr.bf16.mxu0 %v21328_v26  ;;  %v7981_v26 = vpop.permute.xlu0 %7980 }
 0x5fa   : > { %7688 = vmatpush1.bf16.msra.mxu0 %v21326_v15  ;;  %v21896_v15 = vld [vmem:[%s23769_s21 + $0x8] sm:$0xff] }
 0x5fb   : > { %7689 = vmatprep.subr.bf16.mxu0 %v21331_v31  ;;  %v2202_v31 = vrot.slane %v21896_v15, %v24443_v43 }
 0x5fe   : > { %7690 = vmatpush1.bf16.msra.mxu0 %v21329_v34  ;;  %v7374_v34 = vadd.f32 %v24974_v14, %v2202_v31 }
 0x5ff   : > { %7691 = vmatprep.subr.bf16.mxu0 %v21334_v21  ;;  %v7973_v21 = vpop.permute.xlu1 %7972 }
 0x602   : > { %7692 = vmatpush1.bf16.msra.mxu0 %v21332_v24 }
 0x603   : > { %7693 = vmatprep.subr.bf16.mxu0 %v21337_v44  ;;  %v7979_v44 = vpop.permute.xlu0 %7978 }
 0x606   : > { %7694 = vmatpush1.bf16.msra.mxu0 %v21335_v27  ;;  %v7370_v27 = vadd.f32 %v24959_v1, %v2202_v31  ;;  %v7975_v1 = vpop.permute.xlu1 %7974 }
 0x607   : > { %7695 = vmatprep.subr.bf16.mxu0 %v21340_v62 }
 0x60a   : > { %7696 = vmatpush2.bf16.msra.mxu0 %v21338_v39  ;;  %v7417_v39 = vadd.f32 %v24976_v48, %v7374_v34  ;;  %v2186_v48 = vrot.slane %v21896_v15, %v24256_v58 }
 0x60b   : > { %7697 = vmatprep.subr.bf16.mxu0 %v21343_v59 }
 0x60e   : > { %7698 = vmatpush2.bf16.msra.mxu0 %v21341_v51  ;;  %v7413_v51 = vadd.f32 %v24963_v38, %v7370_v27  ;;  %v8410_v38 = vpop.permute.xlu0 %8409 }
 0x60f   : > { %7699 = vmatprep.subr.bf16.mxu0 %v21346_v9 }
 0x612   : > { %7700 = vmatpush2.bf16.msra.mxu0 %v21344_v63 }
 0x613   : > { %7701 = vmatprep.subr.bf16.mxu0 %v21349_v0 }
 0x616   : > { %7702 = vmatpush2.bf16.msra.mxu0 %v21347_v19 }
 0x617   : > { %7703 = vmatprep.subr.bf16.mxu0 %v21352_v11 }
 0x61a   : > { %7704 = vmatpush2.bf16.msra.mxu0 %v21350_v3 }
 0x61b   : > { %7705 = vmatprep.subr.bf16.mxu0 %v21355_v12 }
 0x61e   : > { %7706 = vmatpush2.bf16.msra.mxu0 %v21353_v4 }
 0x61f   : > { %7707 = vmatprep.subr.bf16.mxu0 %v21358_v5 }
 0x622   : > { %7708 = vmatpush2.bf16.msra.mxu0 %v21356_v53 }
 0x623   : > { %7709 = vmatprep.subr.bf16.mxu0 %v21361_v13 }
 0x626   : > { %7710 = vmatpush2.bf16.msra.mxu0 %v21359_v36 }
 0x627   : > { %19726 = vmatprep.subr.msk.mxu0 %vm7766_vm0, %v7981_v26 }
 0x629   : > { %v7455_v24 = vpop.f32.mrf.mxu0  ;;  %7712 = vmatmul.mubr.bf16.vlgmr.msra.gmra.mxu0 %v24038_v22 }
 0x62a   : > { %19727 = vmatpush3.xpose.msk.msra.mxu0 %vm7766_vm0, %v7981_v26  ;;  %19730 = vmatprep.mubr.msk.f32.mxu0 %vm7766_vm0, %v7973_v21  ;;  %v25032_v63 = vadd.f32 %v7455_v24, %v7413_v51  ;;  %v2147_v51 = vld [vmem:[%s23769_s21 + $0x10] sm:$0x3] }
 0x62b   : > { %v7457_v62 = vpop.f32.mrf.mxu0  ;;  %19728 = vmatprep.subr.msk.mxu0 %vm7766_vm0, %v7979_v44 }
 0x62c   : > { %v25024_v59 = vadd.f32 %v7457_v62, %v24978_v6  ;;  %v7116_v6 = vadd.f32 %v24732_v37, %v2186_v48 }
 0x62d   : > { %v7459_v14 = vpop.f32.mrf.mxu0 }
 0x62e   : > { %v25027_v9 = vadd.f32 %v7459_v14, %v7417_v39  ;;  %19729 = vmatpush3.xpose.msk.msra.mxu0 %vm7766_vm0, %v7979_v44  ;;  %v7159_v19 = vadd.f32 %v24734_v60, %v7116_v6 }
 0x62f   : > { %v7461_v22 = vpop.f32.mrf.mxu0  ;;  %19740 = vmatprep.subr.msk.mxu0 %vm7766_vm0, %v24661_v47 }
 0x630   : > { %v25035_v0 = vadd.f32 %v7461_v22, %v24986_v55  ;;  %19719 = vmatprep.subr.mxu1 %v25027_v9  ;;  %v8402_v55 = vpop.permute.xlu0 %8401  ;;  %v2218_v22 = vrot.slane %v2147_v51, %v24256_v58 }
 0x631   : > { %19720 = vmatpush3.msra.mxu1 %v25027_v9  ;;  %19731 = vmatmul.mubr.msk.f32.vlgmr.msra.gmra.mxu0 %vm7766_vm0, %v7975_v1  ;;  %v2222_v1 = vrot.slane %v2147_v51, %v24182_v49 }
 0x632   : > { %19721 = vmatprep.subr.mxu1 %v25032_v63  ;;  %19741 = vmatpush3.xpose.msk.msra.mxu0 %vm7766_vm0, %v24661_v47  ;;  %v8408_v47 = vpop.permute.xlu1 %8407 }
 0x633   : > { %19744 = vmatprep.mubr.msk.f32.mxu0 %vm7766_vm0, %v24285_v17  ;;  %19722 = vmatpush3.msra.mxu1 %v25032_v63  ;;  %v7112_v17 = vadd.f32 %v24722_v20, %v2186_v48  ;;  %v7498_v20 = vpop.f32.mrf.mxu1 }
 0x634   : > { %19742 = vmatprep.subr.msk.mxu0 %vm7766_vm0, %v24634_v45 }
 0x635   : > { %v7155_v37 = vadd.f32 %v24726_v50, %v7112_v17  ;;  %v7500_v50 = vpop.f32.mrf.mxu1 }
 0x636   : > { %19743 = vmatpush3.xpose.msk.msra.mxu0 %vm7766_vm0, %v24634_v45  ;;  %v25061_v45 = vadd.f32 %v24813_v40, %v7159_v19  ;;  %v2214_v40 = vrot.slane %v21896_v15, %v2181_v46 }
 0x637   : > { %19754 = vmatprep.subr.msk.mxu0 %vm7766_vm0, %v8410_v38  ;;  %v25068_v11 = vadd.f32 %v24800_v54, %v7155_v37  ;;  %v7502_v60 = vpop.f32.mrf.mxu1  ;;  %v2210_v54 = vrot.slane %v21896_v15, %v2177_v57 }
 0x638   : > { %v7501_v4 = vadd.f32 %v7500_v50, %v2214_v40 }
 0x639   : > { %19745 = vmatmul.mubr.msk.f32.vlgmr.msra.gmra.mxu0 %vm7766_vm0, %v24643_v33  ;;  %v8404_v33 = vpop.permute.xlu1 %8403  ;;  %v7504_v3 = vpop.f32.mrf.mxu1  ;;  %v7499_v12 = vadd.f32 %v7498_v20, %v2210_v54  ;;  %v7503_v13 = vadd.f32 %v7502_v60, %v2210_v54 }
 0x63a   : > { %19755 = vmatpush3.xpose.msk.msra.mxu0 %vm7766_vm0, %v8410_v38  ;;  %19758 = vmatprep.mubr.msk.f32.mxu0 %vm7766_vm0, %v8402_v55  ;;  %v7505_v34 = vadd.f32 %v7504_v3, %v2214_v40 }
 0x63b   : > { %19756 = vmatprep.subr.msk.mxu0 %vm7766_vm0, %v8408_v47 }
 0x63e   : > { %19757 = vmatpush3.xpose.msk.msra.mxu0 %vm7766_vm0, %v8408_v47 }
 0x63f   : > { %19768 = vmatprep.subr.msk.mxu0 %vm7766_vm0, %v25061_v45 }
 0x641   : > { %19759 = vmatmul.mubr.msk.f32.vlgmr.msra.gmra.mxu0 %vm7766_vm0, %v8404_v33 }
 0x642   : > { %19769 = vmatpush3.xpose.msk.msra.mxu0 %vm7766_vm0, %v25061_v45  ;;  %19772 = vmatprep.mubr.msk.f32.mxu0 %vm7766_vm0, %v24378_v2 }
 0x643   : > { %19770 = vmatprep.subr.msk.mxu0 %vm7766_vm0, %v25068_v11 }
 0x646   : > { %19771 = vmatpush3.xpose.msk.msra.mxu0 %vm7766_vm0, %v25068_v11 }
 0x649   : > { %19773 = vmatmul.mubr.msk.f32.vlgmr.msra.gmra.mxu0 %vm7766_vm0, %v24388_v16 }
 0x669   : > { %v7541_v5 = vpop.f32.mrf.mxu0 }
 0x66a   : > { %v7584_v53 = vpop.f32.mrf.mxu1  ;;  %v7542_v36 = vadd.f32 %v7541_v5, %v7499_v12 }
 0x66b   : > { %v7543_v26 = vpop.f32.mrf.mxu0 }
 0x66c   : > { %v7586_v31 = vpop.f32.mrf.mxu1  ;;  %v7544_v21 = vadd.f32 %v7543_v26, %v7501_v4  ;;  %v25085_v24 = vadd.f32 %v7584_v53, %v7542_v36  ;;  %v25099_v4 = vld [vmem:[%s26827_s8 + $0x8] sm:$0xff]  ;;  %v25104_v36 = vld [vmem:[%s26827_s8] sm:$0xff] }
 0x66d   : > { %v7545_v44 = vpop.f32.mrf.mxu0 }
 0x66e   : > { %v7588_v27 = vpop.f32.mrf.mxu1  ;;  %v7546_v57 = vadd.f32 %v7545_v44, %v7503_v13  ;;  %v25087_v62 = vadd.f32 %v7586_v31, %v7544_v21 }
 0x66f   : > { %v7547_v41 = vpop.f32.mrf.mxu0 }
 0x670   : > { %v7590_v46 = vpop.f32.mrf.mxu1  ;;  %v7548_v15 = vadd.f32 %v7547_v41, %v7505_v34  ;;  %v25089_v39 = vadd.f32 %v7588_v27, %v7546_v57 }
 0x672   : > { %v25091_v14 = vadd.f32 %v7590_v46, %v7548_v15 }
 0x6a9   : > { %v7627_v38 = vpop.f32.mrf.mxu0 }
 0x6aa   : > { %v7670_v48 = vpop.f32.mrf.mxu1  ;;  %v7628_v6 = vadd.f32 %v7627_v38, %v2218_v22 }
 0x6ab   : > { %v7629_v55 = vpop.f32.mrf.mxu0 }
 0x6ac   : > { %v7672_v47 = vpop.f32.mrf.mxu1  ;;  %v7671_v17 = vadd.f32 %v7670_v48, %v7628_v6  ;;  %v7630_v19 = vadd.f32 %v7629_v55, %v2222_v1 }
 0x6ad   : > { %v7631_v37 = vpop.f32.mrf.mxu0 }
 0x6ae   : > { %v7674_v33 = vpop.f32.mrf.mxu1  ;;  %v7673_v20 = vadd.f32 %v7672_v47, %v7630_v19  ;;  %v7632_v50 = vadd.f32 %v7631_v37, %v2218_v22 }
 0x6af   : > { %v7633_v60 = vpop.f32.mrf.mxu0 }
 0x6b0   : > { %v7676_v54 = vpop.f32.mrf.mxu1  ;;  %v7675_v40 = vadd.f32 %v7674_v33, %v7632_v50  ;;  %v7634_v3 = vadd.f32 %v7633_v60, %v2222_v1 }
 0x6b2   : > { %v19718_v12 = vpop.f32.mrf.mxu1  ;;  %v7677_v5 = vadd.f32 %v7676_v54, %v7634_v3 }
 0x6b3   : > { %v7855_v53 = vmul.f32 0.125, %v19718_v12 }
 0x6b4   : > { %v7845_v13 = vpop.f32.mrf.mxu1 }
 0x6b5   : > { %v7854_v26 = vmul.f32 0.125, %v7845_v13  ;;  %v7857_v31 = vadd.f32 %v7855_v53, %v25099_v4 }
 0x6b7   : > { %v7862_v34 = vsel %vm7858_vm1, %v7857_v31, -inf  ;;  %v7856_v21 = vadd.f32 %v7854_v26, %v25104_v36 }
 0x6b8   : > { %7863 = vmax.xlane.f32.xlu1 %v7862_v34 }
 0x6b9   : > { %v7859_v44 = vsel %vm7858_vm1, %v7856_v21, -inf }
 0x6ba   : > { %7860 = vmax.xlane.f32.xlu0 %v7859_v44 }
 0x6e9   : > { %v7713_v27 = vpop.f32.mrf.mxu0 }
 0x6ea   : > { %v25110_v57 = vadd.f32 %v7713_v27, %v7671_v17 }
 0x6eb   : > { %v7715_v41 = vpop.f32.mrf.mxu0 }
 0x6ec   : > { %v25112_v46 = vadd.f32 %v7715_v41, %v7673_v20 }
 0x6ed   : > { %v7717_v15 = vpop.f32.mrf.mxu0 }
 0x6ee   : > { %v25114_v51 = vadd.f32 %v7717_v15, %v7675_v40 }
 0x6ef   : > { %v7719_v22 = vpop.f32.mrf.mxu0 }
 0x6f0   : > { %v25116_v1 = vadd.f32 %v7719_v22, %v7677_v5 }
 0x6f1   : > { %v19732_v38 = vpop.f32.mrf.mxu0 }
 0x6f2   : > { %v8066_v6 = vmul.f32 0.125, %v19732_v38 }
 0x6f3   : > { %v8056_v48 = vpop.f32.mrf.mxu0 }
 0x6f4   : > { %v8065_v55 = vmul.f32 0.125, %v8056_v48  ;;  %v8068_v17 = vadd.f32 %v8066_v6, %v25099_v4 }
 0x6f6   : > { %v8067_v47 = vadd.f32 %v8065_v55, %v25104_v36  ;;  %v8072_v60 = vsel %vm7858_vm1, %v8068_v17, -inf }
 0x6f8   : > { %v8069_v19 = vsel %vm7858_vm1, %v8067_v47, -inf }
 0x6f9   : > { %v19746_v37 = vpop.f32.mrf.mxu0  ;;  %8070 = vmax.xlane.f32.xlu0 %v8069_v19 }
 0x6fa   : > { %v8285_v33 = vmul.f32 0.125, %v19746_v37 }
 0x6fb   : > { %v8275_v20 = vpop.f32.mrf.mxu0 }
 0x6fc   : > { %v8284_v50 = vmul.f32 0.125, %v8275_v20  ;;  %v8287_v54 = vadd.f32 %v8285_v33, %v25099_v4 }
 0x6fd   : > { %8073 = vmax.xlane.f32.xlu0 %v8072_v60 }
 0x6fe   : > { %v8286_v40 = vadd.f32 %v8284_v50, %v25104_v36  ;;  %v8291_v12 = vsel %vm7858_vm1, %v8287_v54, -inf }
 0x700   : > { %v8288_v3 = vsel %vm7858_vm1, %v8286_v40, -inf }
 0x701   : > { %v19760_v5 = vpop.f32.mrf.mxu0  ;;  %8289 = vmax.xlane.f32.xlu1 %v8288_v3  ;;  %8292 = vmax.xlane.f32.xlu0 %v8291_v12 }
 0x702   : > { %v8495_v53 = vmul.f32 0.125, %v19760_v5 }
 0x703   : > { %v8485_v13 = vpop.f32.mrf.mxu0 }
 0x704   : > { %v8494_v26 = vmul.f32 0.125, %v8485_v13  ;;  %v8497_v34 = vadd.f32 %v8495_v53, %v25099_v4 }
 0x706   : > { %v8501_v44 = vsel %vm7858_vm1, %v8497_v34, -inf  ;;  %v8496_v27 = vadd.f32 %v8494_v26, %v25104_v36 }
 0x707   : > { %8502 = vmax.xlane.f32.xlu0 %v8501_v44 }
 0x708   : > { %v8498_v41 = vsel %vm7858_vm1, %v8496_v27, -inf }
 0x709   : > { %v19774_v15 = vpop.f32.mrf.mxu0  ;;  %8499 = vmax.xlane.f32.xlu1 %v8498_v41 }
 0x70a   : > { %v8713_v22 = vmul.f32 0.125, %v19774_v15 }
 0x70b   : > { %v8703_v38 = vpop.f32.mrf.mxu0 }
 0x70c   : > { %v8712_v48 = vmul.f32 0.125, %v8703_v38  ;;  %v8715_v6 = vadd.f32 %v8713_v22, %v25099_v4 }
 0x70e   : > { %v8719_v55 = vsel %vm7858_vm1, %v8715_v6, -inf  ;;  %v8714_v19 = vadd.f32 %v8712_v48, %v25104_v36 }
 0x70f   : > { %8720 = vmax.xlane.f32.xlu0 %v8719_v55 }
 0x710   : > { %v8716_v37 = vsel %vm7858_vm1, %v8714_v19, -inf }
 0x711   : > { %8717 = vmax.xlane.f32.xlu1 %v8716_v37 }
 0x722   : > { %8095 = vrot.lane.b32.xlu1 %v25027_v9, %s23324_s7 }
 0x725   : > { %8093 = vrot.lane.b32.xlu0 %v25032_v63, %s23324_s7 }
 0x726   : > { %8524 = vrot.lane.b32.xlu1 %v25035_v0, %s23324_s7 }
 0x72a   : > { %8522 = vrot.lane.b32.xlu1 %v25024_v59, %s23324_s7 }
 0x741   : > { %v7864_v33 = vpop.xlane.xlu1 %7863 }
 0x742   : > { %v7866_v20 = vsub.f32 %v7857_v31, %v7864_v33 }
 0x743   : > { %v7861_v50 = vpop.xlane.xlu0 %7860 }
 0x744   : > { %v7869_v60 = vmul.f32 1.442695, %v7866_v20  ;;  %v7865_v3 = vsub.f32 %v7856_v21, %v7861_v50 }
 0x746   : > { %21794 = vpow2.f32 %v7869_v60  ;;  %v7867_v12 = vmul.f32 1.442695, %v7865_v3 }
 0x748   : > { %21796 = vpow2.f32 %v7867_v12 }
 0x753   : > { %v25142_v5 = vpop.eup %21794 }
 0x754   : > { %v7874_v9 = vsel %vm7858_vm1, %v25142_v5, 0.0 }
 0x755   : > { %v25146_v63 = vpop.eup %21796  ;;  %7875 = vadd.xlane.f32.xlu0 %v7874_v9 }
 0x756   : > { %v7871_v53 = vsel %vm7858_vm1, %v25146_v63, 0.0 }
 0x757   : > { %7872 = vadd.xlane.f32.xlu1 %v7871_v53 }
 0x782   : > { %v8071_v13 = vpop.xlane.xlu0 %8070 }
 0x783   : > { %v8075_v31 = vsub.f32 %v8067_v47, %v8071_v13 }
 0x785   : > { %v8077_v26 = vmul.f32 1.442695, %v8075_v31 }
 0x786   : > { %v8074_v44 = vpop.xlane.xlu0 %8073 }
 0x787   : > { %21798 = vpow2.f32 %v8077_v26  ;;  %v8076_v21 = vsub.f32 %v8068_v17, %v8074_v44 }
 0x789   : > { %v8079_v41 = vmul.f32 1.442695, %v8076_v21 }
 0x78a   : > { %v8290_v15 = vpop.xlane.xlu1 %8289  ;;  %v8293_v22 = vpop.xlane.xlu0 %8292 }
 0x78b   : > { %21800 = vpow2.f32 %v8079_v41  ;;  %v8294_v38 = vsub.f32 %v8286_v40, %v8290_v15  ;;  %v8295_v48 = vsub.f32 %v8287_v54, %v8293_v22 }
 0x78d   : > { %v8296_v55 = vmul.f32 1.442695, %v8294_v38  ;;  %v8298_v37 = vmul.f32 1.442695, %v8295_v48 }
 0x78f   : > { %21802 = vpow2.f32 %v8296_v55 }
 0x790   : > { %21804 = vpow2.f32 %v8298_v37  ;;  %v8503_v33 = vpop.xlane.xlu0 %8502 }
 0x791   : > { %v8505_v20 = vsub.f32 %v8497_v34, %v8503_v33 }
 0x792   : > { %v8500_v50 = vpop.xlane.xlu1 %8499 }
 0x793   : > { %v8508_v60 = vmul.f32 1.442695, %v8505_v20  ;;  %v8504_v3 = vsub.f32 %v8496_v27, %v8500_v50 }
 0x794   : > { %v25150_v47 = vpop.eup %21798 }
 0x795   : > { %21806 = vpow2.f32 %v8508_v60  ;;  %v8506_v12 = vmul.f32 1.442695, %v8504_v3  ;;  %v8081_v17 = vsel %vm7858_vm1, %v25150_v47, 0.0 }
 0x796   : > { %8082 = vadd.xlane.f32.xlu1 %v8081_v17 }
 0x797   : > { %21808 = vpow2.f32 %v8506_v12 }
 0x798   : > { %v25154_v40 = vpop.eup %21800  ;;  %v8721_v54 = vpop.xlane.xlu0 %8720 }
 0x799   : > { %v8723_v9 = vsub.f32 %v8715_v6, %v8721_v54  ;;  %v8084_v53 = vsel %vm7858_vm1, %v25154_v40, 0.0 }
 0x79a   : > { %v8718_v34 = vpop.xlane.xlu1 %8717  ;;  %8085 = vadd.xlane.f32.xlu0 %v8084_v53 }
 0x79b   : > { %v8726_v13 = vmul.f32 1.442695, %v8723_v9  ;;  %v8722_v27 = vsub.f32 %v8714_v19, %v8718_v34 }
 0x79c   : > { %v25158_v31 = vpop.eup %21802  ;;  %v8094_v50 = vpop.permute.xlu0 %8093 }
 0x79d   : > { %v25160_v26 = vpop.eup %21804  ;;  %21810 = vpow2.f32 %v8726_v13  ;;  %v8724_v44 = vmul.f32 1.442695, %v8722_v27  ;;  %v8300_v21 = vsel %vm7858_vm1, %v25158_v31, 0.0 }
 0x79e   : > { %v8096_v41 = vpop.permute.xlu1 %8095  ;;  %8301 = vadd.xlane.f32.xlu1 %v8300_v21  ;;  %v8303_v6 = vsel %vm7858_vm1, %v25160_v26, 0.0 }
 0x79f   : > { %21812 = vpow2.f32 %v8724_v44  ;;  %8304 = vadd.xlane.f32.xlu0 %v8303_v6  ;;  %19733 = vmatprep.subr.mxu1 %v8096_v41 }
 0x7a2   : > { %v25166_v15 = vpop.eup %21806  ;;  %v8525_v20 = vpop.permute.xlu1 %8524 }
 0x7a3   : > { %v8513_v19 = vsel %vm7858_vm1, %v25166_v15, 0.0 }
 0x7a4   : > { %v25170_v22 = vpop.eup %21808  ;;  %8514 = vadd.xlane.f32.xlu0 %v8513_v19 }
 0x7a5   : > { %v8510_v38 = vsel %vm7858_vm1, %v25170_v22, 0.0 }
 0x7a6   : > { %8511 = vadd.xlane.f32.xlu1 %v8510_v38  ;;  %v8523_v60 = vpop.permute.xlu1 %8522 }
 0x7aa   : > { %v25174_v48 = vpop.eup %21810 }
 0x7ab   : > { %v8731_v55 = vsel %vm7858_vm1, %v25174_v48, 0.0 }
 0x7ac   : > { %v25178_v37 = vpop.eup %21812  ;;  %8732 = vadd.xlane.f32.xlu0 %v8731_v55 }
 0x7ad   : > { %v8728_v33 = vsel %vm7858_vm1, %v25178_v37, 0.0 }
 0x7ae   : > { %8729 = vadd.xlane.f32.xlu1 %v8728_v33 }
 0x7bf   : > { %8835 = vrot.lane.b32.xlu1 %v25068_v11, %s23324_s7 }
 0x7c2   : > { %8837 = vrot.lane.b32.xlu0 %v25061_v45, %s23324_s7 }
 0x7c3   : > { %8831 = vrot.lane.b32.xlu1 %v24388_v16, %s23324_s7 }
 0x7c6   : > { %8829 = vrot.lane.b32.xlu0 %v24378_v2, %s23324_s7 }
 0x7de   : > { %v7876_v3 = vpop.xlane.xlu0 %7875 }
 0x7df   : > { %21814 = vrcp.f32 %v7876_v3 }
 0x7e0   : > { %v7873_v12 = vpop.xlane.xlu1 %7872 }
 0x7e1   : > { %21816 = vrcp.f32 %v7873_v12 }
 0x7ec   : > { %v21815_v17 = vpop.eup %21814 }
 0x7ed   : > { %v7880_v9 = vmul.f32 %v21815_v17, %v25142_v5 }
 0x7ee   : > { %v21817_v54 = vpop.eup %21816 }
 0x7ef   : > { %v7878_v11 = vmul.f32 %v21817_v54, %v25146_v63 }
 0x7f1   : > { %19723 = vmatprep.mubr.msk.f32.mxu1 %vm7858_vm1, %v7878_v11 }
 0x7f2   : > { %19724 = vmatmul.mubr.msk.f32.vlgmr.msra.gmra.mxu1 %vm7858_vm1, %v7880_v9 }
 0x7f3   : > { %19734 = vmatpush3.msra.mxu1 %v8096_v41 }
 0x7f4   : > { %19735 = vmatprep.subr.mxu1 %v8094_v50 }
 0x7f5   : > { %19736 = vmatpush3.msra.mxu1 %v8094_v50 }
 0x7f6   : > { %19747 = vmatprep.subr.mxu1 %v25035_v0 }
 0x81f   : > { %v8083_v2 = vpop.xlane.xlu1 %8082 }
 0x820   : > { %21818 = vrcp.f32 %v8083_v2 }
 0x823   : > { %v8086_v16 = vpop.xlane.xlu0 %8085 }
 0x824   : > { %21820 = vrcp.f32 %v8086_v16 }
 0x827   : > { %v8302_v45 = vpop.xlane.xlu1 %8301 }
 0x828   : > { %21822 = vrcp.f32 %v8302_v45  ;;  %v8305_v53 = vpop.xlane.xlu0 %8304 }
 0x829   : > { %21824 = vrcp.f32 %v8305_v53 }
 0x82d   : > { %v21819_v63 = vpop.eup %21818  ;;  %v8515_v34 = vpop.xlane.xlu0 %8514 }
 0x82e   : > { %v8088_v5 = vmul.f32 %v21819_v63, %v25150_v47  ;;  %21826 = vrcp.f32 %v8515_v34 }
 0x82f   : > { %v8512_v13 = vpop.xlane.xlu1 %8511 }
 0x830   : > { %21828 = vrcp.f32 %v8512_v13  ;;  %19737 = vmatprep.mubr.msk.f32.mxu1 %vm7858_vm1, %v8088_v5 }
 0x831   : > { %v21821_v27 = vpop.eup %21820 }
 0x832   : > { %v8090_v44 = vmul.f32 %v21821_v27, %v25154_v40 }
 0x834   : > { %19738 = vmatmul.mubr.msk.f32.vlgmr.msra.gmra.mxu1 %vm7858_vm1, %v8090_v44 }
 0x835   : > { %v21823_v21 = vpop.eup %21822  ;;  %19748 = vmatpush3.msra.mxu1 %v25035_v0  ;;  %v8733_v41 = vpop.xlane.xlu0 %8732 }
 0x836   : > { %v21825_v6 = vpop.eup %21824  ;;  %19749 = vmatprep.subr.mxu1 %v25024_v59  ;;  %v8307_v19 = vmul.f32 %v21823_v21, %v25158_v31  ;;  %21830 = vrcp.f32 %v8733_v41 }
 0x837   : > { %19750 = vmatpush3.msra.mxu1 %v25024_v59  ;;  %v8730_v47 = vpop.xlane.xlu1 %8729  ;;  %v8309_v38 = vmul.f32 %v21825_v6, %v25160_v26 }
 0x838   : > { %21832 = vrcp.f32 %v8730_v47  ;;  %19761 = vmatprep.subr.mxu1 %v8525_v20  ;;  %19751 = vmatprep.mubr.msk.f32.mxu1 %vm7858_vm1, %v8307_v19 }
 0x839   : > { %19752 = vmatmul.mubr.msk.f32.vlgmr.msra.gmra.mxu1 %vm7858_vm1, %v8309_v38  ;;  %v8838_v26 = vpop.permute.xlu0 %8837 }
 0x83a   : > { %19762 = vmatpush3.msra.mxu1 %v8525_v20 }
 0x83b   : > { %19763 = vmatprep.subr.mxu1 %v8523_v60  ;;  %v21827_v0 = vpop.eup %21826  ;;  %v8836_v50 = vpop.permute.xlu1 %8835 }
 0x83c   : > { %19764 = vmatpush3.msra.mxu1 %v8523_v60  ;;  %v8519_v59 = vmul.f32 %v21827_v0, %v25166_v15 }
 0x83d   : > { %v21829_v40 = vpop.eup %21828  ;;  %19775 = vmatprep.subr.mxu1 %v25089_v39  ;;  %v8830_v15 = vpop.permute.xlu0 %8829 }
 0x83e   : > { %v8517_v31 = vmul.f32 %v21829_v40, %v25170_v22 }
 0x840   : > { %19765 = vmatprep.mubr.msk.f32.mxu1 %vm7858_vm1, %v8517_v31 }
 0x841   : > { %19766 = vmatmul.mubr.msk.f32.vlgmr.msra.gmra.mxu1 %vm7858_vm1, %v8519_v59 }
 0x842   : > { %19776 = vmatpush3.msra.mxu1 %v25089_v39 }
 0x843   : > { %19777 = vmatprep.subr.mxu1 %v25085_v24  ;;  %v21831_v55 = vpop.eup %21830 }
 0x844   : > { %19778 = vmatpush3.msra.mxu1 %v25085_v24  ;;  %v8737_v22 = vmul.f32 %v21831_v55, %v25174_v48 }
 0x845   : > { %v21833_v33 = vpop.eup %21832  ;;  %19782 = vmatprep.subr.msk.mxu1 %vm7766_vm0, %v8838_v26 }
 0x846   : > { %v8735_v20 = vmul.f32 %v21833_v33, %v25178_v37  ;;  %v8832_v37 = vpop.permute.xlu1 %8831 }
 0x848   : > { %19779 = vmatprep.mubr.msk.f32.mxu1 %vm7858_vm1, %v8735_v20 }
 0x849   : > { %19780 = vmatmul.mubr.msk.f32.vlgmr.msra.gmra.mxu1 %vm7858_vm1, %v8737_v22 }
 0x84a   : > { %19783 = vmatpush3.xpose.msk.msra.mxu1 %vm7766_vm0, %v8838_v26  ;;  %19786 = vmatprep.mubr.msk.f32.mxu1 %vm7766_vm0, %v8830_v15 }
 0x84b   : > { %19784 = vmatprep.subr.msk.mxu1 %vm7766_vm0, %v8836_v50 }
 0x84e   : > { %19785 = vmatpush3.xpose.msk.msra.mxu1 %vm7766_vm0, %v8836_v50 }
 0x84f   : > { %19796 = vmatprep.subr.msk.mxu1 %vm7766_vm0, %v24820_v56 }
 0x851   : > { %19787 = vmatmul.mubr.msk.f32.vlgmr.msra.gmra.mxu1 %vm7766_vm0, %v8832_v37 }
 0x852   : > { %19797 = vmatpush3.xpose.msk.msra.mxu1 %vm7766_vm0, %v24820_v56  ;;  %19800 = vmatprep.mubr.msk.f32.mxu1 %vm7766_vm0, %v24384_v8 }
 0x853   : > { %19798 = vmatprep.subr.msk.mxu1 %vm7766_vm0, %v24809_v35 }
 0x856   : > { %19799 = vmatpush3.xpose.msk.msra.mxu1 %vm7766_vm0, %v24809_v35 }
 0x859   : > { %19801 = vmatmul.mubr.msk.f32.vlgmr.msra.gmra.mxu1 %vm7766_vm0, %v24390_v18 }
 0x8b2   : > { %v19725_v48 = vpop.f32.mrf.mxu1 }
 0x8b3   : > { %7963 = vst.msk [vmem:[#allocation4 + $0x30] sm:$0xff] %vm7766_vm0, %v19725_v48 }
 0x8b4   : > { %v7953_v60 = vpop.f32.mrf.mxu1 }
 0x8b5   : > { %7962 = vst.msk [vmem:[#allocation4] sm:$0xff] %vm7766_vm0, %v7953_v60 }
 0x8f4   : > { %v25238_v3 = vpop.f32.mrf.mxu1 }
 0x8f6   : > { %v25240_v12 = vpop.f32.mrf.mxu1 }
 0x8f9   : > { %v19753_v17 = vpop.f32.mrf.mxu1 }
 0x8fa   : > { %8392 = vst.msk [vmem:[#allocation4 + $0x38] sm:$0xff] %vm7766_vm0, %v19753_v17 }
 0x8fb   : > { %v8382_v54 = vpop.f32.mrf.mxu1 }
 0x8fc   : > { %8391 = vst.msk [vmem:[#allocation4 + $0x8] sm:$0xff] %vm7766_vm0, %v8382_v54 }
 0x901   : > { %v25244_v11 = vpop.f32.mrf.mxu1 }
 0x903   : > { %v25246_v9 = vpop.f32.mrf.mxu1 }
 0x909   : > { %v19781_v2 = vpop.f32.mrf.mxu1 }
 0x90a   : > { %8820 = vst.msk [vmem:[#allocation4 + $0x40] sm:$0xff] %vm7766_vm0, %v19781_v2 }
 0x90b   : > { %v8810_v16 = vpop.f32.mrf.mxu1 }
 0x90c   : > { %8819 = vst.msk [vmem:[#allocation4 + $0x10] sm:$0xff] %vm7766_vm0, %v8810_v16 }
 0x911   : > { %v19788_v45 = vpop.f32.mrf.mxu1 }
 0x912   : > { %v8923_v53 = vmul.f32 0.125, %v19788_v45 }
 0x913   : > { %v8913_v63 = vpop.f32.mrf.mxu1 }
 0x914   : > { %v8922_v34 = vmul.f32 0.125, %v8913_v63  ;;  %v8925_v5 = vadd.f32 %v8923_v53, %v25099_v4 }
 0x916   : > { %v8929_v13 = vsel %vm7858_vm1, %v8925_v5, -inf  ;;  %v8924_v27 = vadd.f32 %v8922_v34, %v25104_v36 }
 0x917   : > { %8930 = vmax.xlane.f32.xlu1 %v8929_v13 }
 0x918   : > { %v8926_v44 = vsel %vm7858_vm1, %v8924_v27, -inf }
 0x919   : > { %v19802_v21 = vpop.f32.mrf.mxu1  ;;  %8927 = vmax.xlane.f32.xlu0 %v8926_v44 }
 0x91a   : > { %v9141_v6 = vmul.f32 0.125, %v19802_v21 }
 0x91b   : > { %v9131_v41 = vpop.f32.mrf.mxu1 }
 0x91c   : > { %v9140_v19 = vmul.f32 0.125, %v9131_v41  ;;  %v9143_v0 = vadd.f32 %v9141_v6, %v25099_v4 }
 0x91e   : > { %v9142_v47 = vadd.f32 %v9140_v19, %v25104_v36  ;;  %v9147_v40 = vsel %vm7858_vm1, %v9143_v0, -inf }
 0x920   : > { %v9144_v38 = vsel %vm7858_vm1, %v9142_v47, -inf }
 0x921   : > { %9145 = vmax.xlane.f32.xlu0 %v9144_v38 }
 0x925   : > { %9148 = vmax.xlane.f32.xlu0 %v9147_v40 }
 0x928   : > { %8952 = vrot.lane.b32.xlu1 %v25089_v39, %s23324_s7 }
 0x9a0   : > { %v8931_v31 = vpop.xlane.xlu1 %8930 }
 0x9a1   : > { %v8933_v59 = vsub.f32 %v8925_v5, %v8931_v31 }
 0x9a2   : > { %v8928_v26 = vpop.xlane.xlu0 %8927 }
 0x9a3   : > { %v8936_v55 = vmul.f32 1.442695, %v8933_v59  ;;  %v8932_v33 = vsub.f32 %v8924_v27, %v8928_v26 }
 0x9a4   : > { %v8953_v20 = vpop.permute.xlu1 %8952 }
 0x9a5   : > { %21834 = vpow2.f32 %v8936_v55  ;;  %v8934_v22 = vmul.f32 1.442695, %v8932_v33  ;;  %19789 = vmatprep.subr.mxu0 %v8953_v20 }
 0x9a6   : > { %19790 = vmatpush3.msra.mxu0 %v8953_v20 }
 0x9a7   : > { %21836 = vpow2.f32 %v8934_v22 }
 0x9aa   : > { %v9146_v15 = vpop.xlane.xlu0 %9145 }
 0x9ab   : > { %v9150_v45 = vsub.f32 %v9142_v47, %v9146_v15 }
 0x9ad   : > { %v9152_v53 = vmul.f32 1.442695, %v9150_v45 }
 0x9ae   : > { %v9149_v50 = vpop.xlane.xlu0 %9148 }
 0x9af   : > { %v9151_v37 = vsub.f32 %v9143_v0, %v9149_v50 }
 0x9b1   : > { %v9154_v48 = vmul.f32 1.442695, %v9151_v37 }
 0x9b2   : > { %v21835_v60 = vpop.eup %21834 }
 0x9b3   : > { %21838 = vpow2.f32 %v9154_v48  ;;  %v8941_v17 = vsel %vm7858_vm1, %v21835_v60, 0.0 }
 0x9b4   : > { %v21837_v39 = vpop.eup %21836  ;;  %8942 = vadd.xlane.f32.xlu0 %v8941_v17  ;;  %21840 = vpow2.f32 %v9152_v53 }
 0x9b5   : > { %v8938_v54 = vsel %vm7858_vm1, %v21837_v39, 0.0 }
 0x9b6   : > { %8939 = vadd.xlane.f32.xlu1 %v8938_v54 }
 0x9c0   : > { %v21839_v2 = vpop.eup %21838 }
 0x9c1   : > { %v9159_v16 = vsel %vm7858_vm1, %v21839_v2, 0.0  ;;  %v21841_v63 = vpop.eup %21840 }
 0x9c2   : > { %9160 = vadd.xlane.f32.xlu0 %v9159_v16  ;;  %v9156_v34 = vsel %vm7858_vm1, %v21841_v63, 0.0 }
 0x9c7   : > { %9265 = vrot.lane.b32.xlu1 %v24820_v56, %s23324_s7 }
 0x9cb   : > { %9263 = vrot.lane.b32.xlu1 %v24809_v35, %s23324_s7 }
 0x9d8   : > { %8950 = vrot.lane.b32.xlu0 %v25085_v24, %s23324_s7 }
 0x9dc   : > { %9257 = vrot.lane.b32.xlu0 %v24384_v8, %s23324_s7 }
 0x9ef   : > { %9157 = vadd.xlane.f32.xlu1 %v9156_v34 }
 0xa00   : > { %9259 = vrot.lane.b32.xlu1 %v24390_v18, %s23324_s7 }
 0xa3d   : > { %v8943_v56 = vpop.xlane.xlu0 %8942 }
 0xa3e   : > { %21842 = vrcp.f32 %v8943_v56 }
 0xa3f   : > { %v8940_v5 = vpop.xlane.xlu1 %8939 }
 0xa40   : > { %21844 = vrcp.f32 %v8940_v5 }
 0xa43   : > { %v9266_v18 = vpop.permute.xlu1 %9265 }
 0xa47   : > { %v9264_v21 = vpop.permute.xlu1 %9263 }
 0xa4b   : > { %v9161_v35 = vpop.xlane.xlu0 %9160  ;;  %v21843_v13 = vpop.eup %21842 }
 0xa4c   : > { %v8947_v8 = vmul.f32 %v21843_v13, %v21835_v60  ;;  %21846 = vrcp.f32 %v9161_v35 }
 0xa4d   : > { %v21845_v27 = vpop.eup %21844 }
 0xa4e   : > { %v8945_v24 = vmul.f32 %v21845_v27, %v21837_v39 }
 0xa4f   : > { %v8951_v44 = vpop.permute.xlu0 %8950 }
 0xa50   : > { %19791 = vmatprep.subr.mxu0 %v8951_v44  ;;  %19793 = vmatprep.mubr.msk.f32.mxu0 %vm7858_vm1, %v8945_v24 }
 0xa51   : > { %19792 = vmatpush3.msra.mxu0 %v8951_v44 }
 0xa52   : > { %19794 = vmatmul.mubr.msk.f32.vlgmr.msra.gmra.mxu0 %vm7858_vm1, %v8947_v8  ;;  %19803 = vmatprep.subr.mxu0 %v25091_v14 }
 0xa53   : > { %19804 = vmatpush3.msra.mxu0 %v25091_v14  ;;  %v9258_v0 = vpop.permute.xlu0 %9257 }
 0xa54   : > { %19805 = vmatprep.subr.mxu0 %v25087_v62 }
 0xa55   : > { %19806 = vmatpush3.msra.mxu0 %v25087_v62 }
 0xa56   : > { %19810 = vmatprep.subr.msk.mxu0 %vm7766_vm0, %v9266_v18 }
 0xa59   : > { %v21847_v6 = vpop.eup %21846 }
 0xa5a   : > { %v9165_v38 = vmul.f32 %v21847_v6, %v21839_v2 }
 0xa78   : > { %v9158_v41 = vpop.xlane.xlu1 %9157 }
 0xa79   : > { %21848 = vrcp.f32 %v9158_v41 }
 0xa7c   : > { %v9260_v40 = vpop.permute.xlu1 %9259 }
 0xa86   : > { %v21849_v19 = vpop.eup %21848 }
 0xa87   : > { %v9163_v47 = vmul.f32 %v21849_v19, %v21841_v63 }
 0xa89   : > { %19807 = vmatprep.mubr.msk.f32.mxu0 %vm7858_vm1, %v9163_v47 }
 0xa8a   : > { %19808 = vmatmul.mubr.msk.f32.vlgmr.msra.gmra.mxu0 %vm7858_vm1, %v9165_v38 }
 0xa8b   : > { %19811 = vmatpush3.xpose.msk.msra.mxu0 %vm7766_vm0, %v9266_v18  ;;  %19814 = vmatprep.mubr.msk.f32.mxu0 %vm7766_vm0, %v9258_v0 }
 0xa8c   : > { %19812 = vmatprep.subr.msk.mxu0 %vm7766_vm0, %v9264_v21 }
 0xa8f   : > { %19813 = vmatpush3.xpose.msk.msra.mxu0 %vm7766_vm0, %v9264_v21 }
 0xa90   : > { %19831 = vmatprep.subr.mxu0 %v25114_v51 }
 0xa92   : > { %19815 = vmatmul.mubr.msk.f32.vlgmr.msra.gmra.mxu0 %vm7766_vm0, %v9260_v40 }
 0xa93   : > { %19832 = vmatpush3.msra.mxu0 %v25114_v51 }
 0xa94   : > { %19833 = vmatprep.subr.mxu0 %v25110_v57 }
 0xa95   : > { %19834 = vmatpush3.msra.mxu0 %v25110_v57 }
 0xb12   : > { %v25292_v31 = vpop.f32.mrf.mxu0 }
 0xb14   : > { %v25294_v59 = vpop.f32.mrf.mxu0 }
 0xb4a   : > { %v19809_v26 = vpop.f32.mrf.mxu0 }
 0xb4b   : > { %9248 = vst.msk [vmem:[#allocation4 + $0x48] sm:$0xff] %vm7766_vm0, %v19809_v26 }
 0xb4c   : > { %v9238_v55 = vpop.f32.mrf.mxu0 }
 0xb4d   : > { %9247 = vst.msk [vmem:[#allocation4 + $0x18] sm:$0xff] %vm7766_vm0, %v9238_v55 }
 0xb52   : > { %v19816_v33 = vpop.f32.mrf.mxu0 }
 0xb53   : > { %v9351_v20 = vmul.f32 0.125, %v19816_v33 }
 0xb54   : > { %v9341_v22 = vpop.f32.mrf.mxu0 }
 0xb55   : > { %v9350_v15 = vmul.f32 0.125, %v9341_v22  ;;  %v9353_v50 = vadd.f32 %v9351_v20, %v25099_v4 }
 0xb57   : > { %v9357_v37 = vsel %vm7858_vm1, %v9353_v50, -inf  ;;  %v9352_v48 = vadd.f32 %v9350_v15, %v25104_v36 }
 0xb58   : > { %9358 = vmax.xlane.f32.xlu1 %v9357_v37 }
 0xb59   : > { %v9354_v60 = vsel %vm7858_vm1, %v9352_v48, -inf }
 0xb5a   : > { %9355 = vmax.xlane.f32.xlu0 %v9354_v60 }
 0xb69   : > { %9380 = vrot.lane.b32.xlu1 %v25091_v14, %s23324_s7 }
 0xbe1   : > { %v9359_v17 = vpop.xlane.xlu1 %9358 }
 0xbe2   : > { %v9361_v39 = vsub.f32 %v9353_v50, %v9359_v17 }
 0xbe3   : > { %v9356_v54 = vpop.xlane.xlu0 %9355 }
 0xbe4   : > { %v9364_v2 = vmul.f32 1.442695, %v9361_v39  ;;  %v9360_v16 = vsub.f32 %v9352_v48, %v9356_v54 }
 0xbe5   : > { %v9381_v45 = vpop.permute.xlu1 %9380 }
 0xbe6   : > { %21850 = vpow2.f32 %v9364_v2  ;;  %v9362_v53 = vmul.f32 1.442695, %v9360_v16  ;;  %19817 = vmatprep.subr.mxu1 %v9381_v45 }
 0xbe7   : > { %19818 = vmatpush3.msra.mxu1 %v9381_v45 }
 0xbe8   : > { %21852 = vpow2.f32 %v9362_v53 }
 0xbf3   : > { %v21851_v63 = vpop.eup %21850 }
 0xbf4   : > { %v9369_v34 = vsel %vm7858_vm1, %v21851_v63, 0.0 }
 0xbf5   : > { %v21853_v56 = vpop.eup %21852  ;;  %9370 = vadd.xlane.f32.xlu0 %v9369_v34 }
 0xbf6   : > { %v9366_v5 = vsel %vm7858_vm1, %v21853_v56, 0.0 }
 0xbf9   : > { %9367 = vadd.xlane.f32.xlu0 %v9366_v5 }
 0xc0f   : > { %9378 = vrot.lane.b32.xlu0 %v25087_v62, %s23324_s7 }
 0xc7e   : > { %v9371_v14 = vpop.xlane.xlu0 %9370 }
 0xc7f   : > { %21854 = vrcp.f32 %v9371_v14 }
 0xc82   : > { %v9368_v35 = vpop.xlane.xlu0 %9367 }
 0xc83   : > { %21856 = vrcp.f32 %v9368_v35 }
 0xc86   : > { %v9379_v13 = vpop.permute.xlu0 %9378 }
 0xc87   : > { %19819 = vmatprep.subr.mxu1 %v9379_v13 }
 0xc88   : > { %19820 = vmatpush3.msra.mxu1 %v9379_v13 }
 0xc89   : > { %19824 = vmatprep.subr.msk.mxu1 %vm7766_vm0, %v24898_v61 }
 0xc8c   : > { %v21855_v27 = vpop.eup %21854 }
 0xc8d   : > { %v9375_v8 = vmul.f32 %v21855_v27, %v21851_v63 }
 0xc90   : > { %v21857_v24 = vpop.eup %21856 }
 0xc91   : > { %v9373_v44 = vmul.f32 %v21857_v24, %v21853_v56 }
 0xc93   : > { %19821 = vmatprep.mubr.msk.f32.mxu1 %vm7858_vm1, %v9373_v44 }
 0xc94   : > { %19822 = vmatmul.mubr.msk.f32.vlgmr.msra.gmra.mxu1 %vm7858_vm1, %v9375_v8 }
 0xc95   : > { %19825 = vmatpush3.xpose.msk.msra.mxu1 %vm7766_vm0, %v24898_v61  ;;  %19828 = vmatprep.mubr.msk.f32.mxu1 %vm7766_vm0, %v24541_v32 }
 0xc96   : > { %19826 = vmatprep.subr.msk.mxu1 %vm7766_vm0, %v24888_v42 }
 0xc99   : > { %19827 = vmatpush3.xpose.msk.msra.mxu1 %vm7766_vm0, %v24888_v42 }
 0xc9c   : > { %19829 = vmatmul.mubr.msk.f32.vlgmr.msra.gmra.mxu1 %vm7766_vm0, %v24553_v10 }
 0xd54   : > { %v25322_v62 = vpop.f32.mrf.mxu1 }
 0xd56   : > { %v25324_v18 = vpop.f32.mrf.mxu1 }
 0xd5c   : > { %v19830_v21 = vpop.f32.mrf.mxu1 }
 0xd5d   : > { %v9569_v41 = vmul.f32 0.125, %v19830_v21 }
 0xd5e   : > { %v9559_v6 = vpop.f32.mrf.mxu1 }
 0xd5f   : > { %v9568_v19 = vmul.f32 0.125, %v9559_v6  ;;  %v9571_v47 = vadd.f32 %v9569_v41, %v25099_v4 }
 0xd61   : > { %v9575_v38 = vsel %vm7858_vm1, %v9571_v47, -inf  ;;  %v9570_v0 = vadd.f32 %v9568_v19, %v25104_v36 }
 0xd62   : > { %9576 = vmax.xlane.f32.xlu0 %v9575_v38 }
 0xd63   : > { %v9572_v40 = vsel %vm7858_vm1, %v9570_v0, -inf }
 0xd64   : > { %9573 = vmax.xlane.f32.xlu1 %v9572_v40 }
 0xd75   : > { %9693 = vrot.lane.b32.xlu1 %v24898_v61, %s23324_s7 }
 0xd79   : > { %9685 = vrot.lane.b32.xlu1 %v24541_v32, %s23324_s7 }
 0xdeb   : > { %v9577_v26 = vpop.xlane.xlu0 %9576 }
 0xdec   : > { %v9579_v55 = vsub.f32 %v9571_v47, %v9577_v26 }
 0xded   : > { %v9574_v33 = vpop.xlane.xlu1 %9573 }
 0xdee   : > { %v9582_v20 = vmul.f32 1.442695, %v9579_v55  ;;  %v9578_v22 = vsub.f32 %v9570_v0, %v9574_v33 }
 0xdf0   : > { %21858 = vpow2.f32 %v9582_v20  ;;  %v9580_v15 = vmul.f32 1.442695, %v9578_v22 }
 0xdf1   : > { %v9694_v50 = vpop.permute.xlu1 %9693 }
 0xdf2   : > { %21860 = vpow2.f32 %v9580_v15  ;;  %19838 = vmatprep.subr.msk.mxu0 %vm7766_vm0, %v9694_v50 }
 0xdf5   : > { %v9686_v32 = vpop.permute.xlu1 %9685 }
 0xdfd   : > { %v21859_v37 = vpop.eup %21858 }
 0xdfe   : > { %v9587_v48 = vsel %vm7858_vm1, %v21859_v37, 0.0 }
 0xdff   : > { %v21861_v60 = vpop.eup %21860  ;;  %9588 = vadd.xlane.f32.xlu0 %v9587_v48 }
 0xe00   : > { %v9584_v61 = vsel %vm7858_vm1, %v21861_v60, 0.0 }
 0xe01   : > { %9585 = vadd.xlane.f32.xlu1 %v9584_v61 }
 0xe12   : > { %9687 = vrot.lane.b32.xlu1 %v24553_v10, %s23324_s7 }
 0xe15   : > { %9691 = vrot.lane.b32.xlu0 %v24888_v42, %s23324_s7 }
 0xe88   : > { %v9589_v17 = vpop.xlane.xlu0 %9588 }
 0xe89   : > { %21862 = vrcp.f32 %v9589_v17 }
 0xe8a   : > { %v9586_v39 = vpop.xlane.xlu1 %9585 }
 0xe8b   : > { %21864 = vrcp.f32 %v9586_v39 }
 0xe8c   : > { %v9692_v53 = vpop.permute.xlu0 %9691 }
 0xe8e   : > { %v9688_v10 = vpop.permute.xlu1 %9687 }
 0xe96   : > { %v21863_v54 = vpop.eup %21862 }
 0xe97   : > { %v9593_v45 = vmul.f32 %v21863_v54, %v21859_v37 }
 0xe98   : > { %v21865_v2 = vpop.eup %21864 }
 0xe99   : > { %v9591_v16 = vmul.f32 %v21865_v2, %v21861_v60 }
 0xe9b   : > { %19835 = vmatprep.mubr.msk.f32.mxu0 %vm7858_vm1, %v9591_v16 }
 0xe9c   : > { %19836 = vmatmul.mubr.msk.f32.vlgmr.msra.gmra.mxu0 %vm7858_vm1, %v9593_v45 }
 0xe9d   : > { %19839 = vmatpush3.xpose.msk.msra.mxu0 %vm7766_vm0, %v9694_v50  ;;  %19842 = vmatprep.mubr.msk.f32.mxu0 %vm7766_vm0, %v9686_v32 }
 0xe9e   : > { %19840 = vmatprep.subr.msk.mxu0 %vm7766_vm0, %v9692_v53 }
 0xea1   : > { %19841 = vmatpush3.xpose.msk.msra.mxu0 %vm7766_vm0, %v9692_v53 }
 0xea2   : > { %19859 = vmatprep.subr.mxu0 %v25116_v1 }
 0xea4   : > { %19843 = vmatmul.mubr.msk.f32.vlgmr.msra.gmra.mxu0 %vm7766_vm0, %v9688_v10 }
 0xea5   : > { %19860 = vmatpush3.msra.mxu0 %v25116_v1 }
 0xea6   : > { %19861 = vmatprep.subr.mxu0 %v25112_v46 }
 0xea7   : > { %19862 = vmatpush3.msra.mxu0 %v25112_v46 }
 0xf5c   : > { %v19837_v42 = vpop.f32.mrf.mxu0 }
 0xf5d   : > { %9676 = vst.msk [vmem:[#allocation4 + $0x50] sm:$0xff] %vm7766_vm0, %v19837_v42 }
 0xf5e   : > { %v9666_v63 = vpop.f32.mrf.mxu0 }
 0xf5f   : > { %9675 = vst.msk [vmem:[#allocation4 + $0x20] sm:$0xff] %vm7766_vm0, %v9666_v63 }
 0xf64   : > { %v19844_v34 = vpop.f32.mrf.mxu0 }
 0xf65   : > { %v9779_v56 = vmul.f32 0.125, %v19844_v34 }
 0xf66   : > { %v9769_v5 = vpop.f32.mrf.mxu0 }
 0xf67   : > { %v9778_v14 = vmul.f32 0.125, %v9769_v5  ;;  %v9781_v35 = vadd.f32 %v9779_v56, %v25099_v4 }
 0xf69   : > { %v9785_v13 = vsel %vm7858_vm1, %v9781_v35, -inf  ;;  %v9780_v27 = vadd.f32 %v9778_v14, %v25104_v36 }
 0xf6a   : > { %9786 = vmax.xlane.f32.xlu1 %v9785_v13 }
 0xf6b   : > { %v9782_v24 = vsel %vm7858_vm1, %v9780_v27, -inf }
 0xf6c   : > { %9783 = vmax.xlane.f32.xlu0 %v9782_v24 }
 0xf7b   : > { %9808 = vrot.lane.b32.xlu1 %v25114_v51, %s23324_s7 }
 0xff3   : > { %v9787_v44 = vpop.xlane.xlu1 %9786 }
 0xff4   : > { %v9789_v8 = vsub.f32 %v9781_v35, %v9787_v44 }
 0xff5   : > { %v9784_v21 = vpop.xlane.xlu0 %9783 }
 0xff6   : > { %v9792_v41 = vmul.f32 1.442695, %v9789_v8  ;;  %v9788_v6 = vsub.f32 %v9780_v27, %v9784_v21 }
 0xff7   : > { %v9809_v19 = vpop.permute.xlu1 %9808 }
 0xff8   : > { %21866 = vpow2.f32 %v9792_v41  ;;  %v9790_v47 = vmul.f32 1.442695, %v9788_v6  ;;  %19845 = vmatprep.subr.mxu1 %v9809_v19 }
 0xff9   : > { %19846 = vmatpush3.msra.mxu1 %v9809_v19 }
 0xffa   : > { %21868 = vpow2.f32 %v9790_v47  ;;  %v21897_v47 = vld [vmem:[%s26827_s8 + $0x8] sm:$0xff] }
0x1005   : > { %v21867_v38 = vpop.eup %21866 }
0x1006   : > { %v9797_v0 = vsel %vm7858_vm1, %v21867_v38, 0.0 }
0x1007   : > { %v21869_v40 = vpop.eup %21868  ;;  %9798 = vadd.xlane.f32.xlu0 %v9797_v0 }
0x1008   : > { %v9794_v26 = vsel %vm7858_vm1, %v21869_v40, 0.0 }
0x100b   : > { %9795 = vadd.xlane.f32.xlu0 %v9794_v26 }
0x1021   : > { %9806 = vrot.lane.b32.xlu0 %v25110_v57, %s23324_s7 }
0x1090   : > { %v9799_v51 = vpop.xlane.xlu0 %9798 }
0x1091   : > { %21870 = vrcp.f32 %v9799_v51 }
0x1094   : > { %v9796_v55 = vpop.xlane.xlu0 %9795 }
0x1095   : > { %21872 = vrcp.f32 %v9796_v55  ;;  %v21362_v55 = vld [vmem:[%s23771_s22 + $0x450] ss:$24 sps:$4 sm:$0xff]  }
0x1098   : > { %v9807_v33 = vpop.permute.xlu0 %9806 }
0x1099   : > { %19847 = vmatprep.subr.mxu1 %v9807_v33 }
0x109a   : > { %19848 = vmatpush3.msra.mxu1 %v9807_v33  ;;  %v21367_v33 = vld [vmem:[%s23771_s22 + $0x424] ss:$24 sps:$4 sm:$0xff]  }
0x109b   : > { %19852 = vmatprep.subr.msk.mxu1 %vm7766_vm0, %v24900_v28 }
0x109e   : > { %v21871_v20 = vpop.eup %21870 }
0x109f   : > { %v9803_v50 = vmul.f32 %v21871_v20, %v21867_v38  ;;  %v21376_v20 = vld [vmem:[%s23771_s22 + $0x394] ss:$24 sps:$4 sm:$0xff]  }
0x10a2   : > { %v21873_v22 = vpop.eup %21872 }
0x10a3   : > { %v9801_v15 = vmul.f32 %v21873_v22, %v21869_v40  ;;  %v21898_v40 = vld [vmem:[%s26827_s8] sm:$0xff] }
0x10a4   : > { %v21374_v22 = vld [vmem:[%s23771_s22 + $0x390] ss:$24 sps:$4 sm:$0xff]  }
0x10a5   : > { %19849 = vmatprep.mubr.msk.f32.mxu1 %vm7858_vm1, %v9801_v15  ;;  %v21379_v15 = vld [vmem:[%s23771_s22 + $0x364] ss:$24 sps:$4 sm:$0xff]  }
0x10a6   : > { %19850 = vmatmul.mubr.msk.f32.vlgmr.msra.gmra.mxu1 %vm7858_vm1, %v9803_v50  ;;  %v21377_v50 = vld [vmem:[%s23771_s22 + $0x360] ss:$24 sps:$4 sm:$0xff]  }
0x10a7   : > { %19853 = vmatpush3.xpose.msk.msra.mxu1 %vm7766_vm0, %v24900_v28  ;;  %19856 = vmatprep.mubr.msk.f32.mxu1 %vm7766_vm0, %v24544_v52 }
0x10a8   : > { %19854 = vmatprep.subr.msk.mxu1 %vm7766_vm0, %v24892_v7 }
0x10ab   : > { %19855 = vmatpush3.xpose.msk.msra.mxu1 %vm7766_vm0, %v24892_v7 }
0x10ae   : > { %19857 = vmatmul.mubr.msk.f32.vlgmr.msra.gmra.mxu1 %vm7766_vm0, %v24556_v29 }
0x1166   : > { %v25378_v57 = vpop.f32.mrf.mxu1 }
0x1168   : > { %v25380_v37 = vpop.f32.mrf.mxu1 }
0x116e   : > { %v19858_v48 = vpop.f32.mrf.mxu1 }
0x116f   : > { %v9997_v60 = vmul.f32 0.125, %v19858_v48  ;;  %v21382_v48 = vld [vmem:[%s23771_s22 + $0x334] ss:$24 sps:$4 sm:$0xff]  }
0x1170   : > { %v9987_v61 = vpop.f32.mrf.mxu1 }
0x1171   : > { %v9996_v32 = vmul.f32 0.125, %v9987_v61  ;;  %v9999_v17 = vadd.f32 %v9997_v60, %v25099_v4  ;;  %v21380_v60 = vld [vmem:[%s23771_s22 + $0x330] ss:$24 sps:$4 sm:$0xff]   ;;  %v21385_v61 = vld [vmem:[%s23771_s22 + $0x304] ss:$24 sps:$4 sm:$0xff]  }
0x1173   : > { %v10003_v39 = vsel %vm7858_vm1, %v9999_v17, -inf  ;;  %v9998_v54 = vadd.f32 %v9996_v32, %v25104_v36  ;;  %v21383_v32 = vld [vmem:[%s23771_s22 + $0x300] ss:$24 sps:$4 sm:$0xff]  }
0x1174   : > { %10004 = vmax.xlane.f32.xlu0 %v10003_v39  ;;  %v21386_v39 = vld [vmem:[%s23771_s22 + $0x5d0] ss:$24 sps:$4 sm:$0xff]  }
0x1175   : > { %v10000_v2 = vsel %vm7858_vm1, %v9998_v54, -inf }
0x1176   : > { %10001 = vmax.xlane.f32.xlu1 %v10000_v2 }
0x1187   : > { %10121 = vrot.lane.b32.xlu1 %v24900_v28, %s23324_s7 }
0x118b   : > { %10113 = vrot.lane.b32.xlu1 %v24544_v52, %s23324_s7 }
0x11fd   : > { %v10005_v16 = vpop.xlane.xlu0 %10004 }
0x11fe   : > { %v10007_v45 = vsub.f32 %v9999_v17, %v10005_v16  ;;  %v21388_v17 = vld [vmem:[%s23771_s22 + $0x5d4] ss:$24 sps:$4 sm:$0xff]  }
0x11ff   : > { %v10002_v53 = vpop.xlane.xlu1 %10001 }
0x1200   : > { %v10010_v10 = vmul.f32 1.442695, %v10007_v45  ;;  %v10006_v42 = vsub.f32 %v9998_v54, %v10002_v53 }
0x1202   : > { %21874 = vpow2.f32 %v10010_v10  ;;  %v10008_v4 = vmul.f32 1.442695, %v10006_v42 }
0x1203   : > { %v10122_v63 = vpop.permute.xlu1 %10121 }
0x1204   : > { %21876 = vpow2.f32 %v10008_v4  ;;  %19866 = vmatprep.subr.msk.mxu0 %vm7766_vm0, %v10122_v63 }
0x1207   : > { %v10114_v52 = vpop.permute.xlu1 %10113 }
0x120f   : > { %v21875_v36 = vpop.eup %21874 }
0x1210   : > { %v10015_v34 = vsel %vm7858_vm1, %v21875_v36, 0.0 }
0x1211   : > { %v21877_v56 = vpop.eup %21876  ;;  %10016 = vadd.xlane.f32.xlu0 %v10015_v34 }
0x1212   : > { %v10012_v28 = vsel %vm7858_vm1, %v21877_v56, 0.0 }
0x1213   : > { %10013 = vadd.xlane.f32.xlu1 %v10012_v28 }
0x1224   : > { %10115 = vrot.lane.b32.xlu1 %v24556_v29, %s23324_s7 }
0x1227   : > { %10119 = vrot.lane.b32.xlu0 %v24892_v7, %s23324_s7 }
0x129a   : > { %v10017_v5 = vpop.xlane.xlu0 %10016 }
0x129b   : > { %21878 = vrcp.f32 %v10017_v5 }
0x129c   : > { %v10014_v14 = vpop.xlane.xlu1 %10013 }
0x129d   : > { %21880 = vrcp.f32 %v10014_v14 }
0x129e   : > { %v10120_v44 = vpop.permute.xlu0 %10119 }
0x12a0   : > { %v10116_v29 = vpop.permute.xlu1 %10115 }
0x12a8   : > { %v21879_v35 = vpop.eup %21878 }
0x12a9   : > { %v10021_v24 = vmul.f32 %v21879_v35, %v21875_v36  ;;  %v21391_v35 = vld [vmem:[%s23771_s22 + $0x5a4] ss:$24 sps:$4 sm:$0xff]  }
0x12aa   : > { %v21881_v13 = vpop.eup %21880 }
0x12ab   : > { %v10019_v27 = vmul.f32 %v21881_v13, %v21877_v56  ;;  %v21389_v13 = vld [vmem:[%s23771_s22 + $0x5a0] ss:$24 sps:$4 sm:$0xff]  }
0x12ad   : > { %19863 = vmatprep.mubr.msk.f32.mxu0 %vm7858_vm1, %v10019_v27  ;;  %v21394_v27 = vld [vmem:[%s23771_s22 + $0x574] ss:$24 sps:$4 sm:$0xff]  }
0x12ae   : > { %19864 = vmatmul.mubr.msk.f32.vlgmr.msra.gmra.mxu0 %vm7858_vm1, %v10021_v24  ;;  %v21392_v24 = vld [vmem:[%s23771_s22 + $0x570] ss:$24 sps:$4 sm:$0xff]  }
0x12af   : > { %19867 = vmatpush3.xpose.msk.msra.mxu0 %vm7766_vm0, %v10122_v63  ;;  %19870 = vmatprep.mubr.msk.f32.mxu0 %vm7766_vm0, %v10114_v52 }
0x12b0   : > { %19868 = vmatprep.subr.msk.mxu0 %vm7766_vm0, %v10120_v44 }
0x12b3   : > { %19869 = vmatpush3.xpose.msk.msra.mxu0 %vm7766_vm0, %v10120_v44  ;;  %v21397_v44 = vld [vmem:[%s23771_s22 + $0x544] ss:$24 sps:$4 sm:$0xff]  }
0x12b6   : > { %19871 = vmatmul.mubr.msk.f32.vlgmr.msra.gmra.mxu0 %vm7766_vm0, %v10116_v29  ;;  %v21395_v29 = vld [vmem:[%s23771_s22 + $0x540] ss:$24 sps:$4 sm:$0xff]  }
0x136e   : > { %v19865_v7 = vpop.f32.mrf.mxu0 }
0x136f   : > { %10104 = vst.msk [vmem:[#allocation4 + $0x58] sm:$0xff] %vm7766_vm0, %v19865_v7  ;;  %v21400_v7 = vld [vmem:[%s23771_s22 + $0x514] ss:$24 sps:$4 sm:$0xff]  }
0x1370   : > { %v10094_v8 = vpop.f32.mrf.mxu0 }
0x1371   : > { %10103 = vst.msk [vmem:[#allocation4 + $0x28] sm:$0xff] %vm7766_vm0, %v10094_v8  ;;  %v21398_v8 = vld [vmem:[%s23771_s22 + $0x510] ss:$24 sps:$4 sm:$0xff]  }
0x1376   : > { %v19872_v21 = vpop.f32.mrf.mxu0 }
0x1377   : > { %v10207_v41 = vmul.f32 0.125, %v19872_v21  ;;  %v21403_v21 = vld [vmem:[%s23771_s22 + $0x4e4] ss:$24 sps:$4 sm:$0xff]  }
0x1378   : > { %v10197_v6 = vpop.f32.mrf.mxu0 }
0x1379   : > { %v10206_v19 = vmul.f32 0.125, %v10197_v6  ;;  %v10209_v38 = vadd.f32 %v21897_v47, %v10207_v41  ;;  %v21401_v41 = vld [vmem:[%s23771_s22 + $0x4e0] ss:$24 sps:$4 sm:$0xff]   ;;  %v21409_v6 = vld [vmem:[%s23771_s22 + $0x4b4] ss:$24 sps:$4 sm:$0xff]  }
0x137a   : > { %v21415_v47 = vld [vmem:[%s23771_s22 + $0x484] ss:$24 sps:$4 sm:$0xff]  }
0x137b   : > { %v10213_v0 = vsel %vm7858_vm1, %v10209_v38, -inf  ;;  %v10208_v26 = vadd.f32 %v21898_v40, %v10206_v19  ;;  %v21407_v19 = vld [vmem:[%s23771_s22 + $0x4b0] ss:$24 sps:$4 sm:$0xff]   ;;  %v21406_v40 = vld [vmem:[%s23771_s22 + $0x154] ss:$24 sps:$4 sm:$0xff]  }
0x137c   : > { %10214 = vmax.xlane.f32.xlu1 %v10213_v0 }
0x137d   : > { %v10210_v51 = vsel %vm7858_vm1, %v10208_v26, -inf }
0x137e   : > { %10211 = vmax.xlane.f32.xlu0 %v10210_v51 }
0x138d   : > { %10236 = vrot.lane.b32.xlu1 %v25116_v1, %s23324_s7  ;;  %v21364_v1 = vld [vmem:[%s23771_s22 + $0x454] ss:$24 sps:$4 sm:$0xff]  }
0x138e   : > { %12152 = vmatprep.subr.bf16.mxu0 %v21364_v1 }
0x138f   : > { %12153 = vmatpush1.bf16.msra.mxu0 %v21362_v55 }
0x1390   : > { %12154 = vmatprep.subr.bf16.mxu0 %v21367_v33 }
0x1391   : > { %8611 = vrot.lane.b32.xlu1 %v25246_v9, %s23324_s7  ;;  %v21365_v9 = vld [vmem:[%s23771_s22 + $0x420] ss:$24 sps:$4 sm:$0xff]  }
0x1393   : > { %12155 = vmatpush1.bf16.msra.mxu0 %v21365_v9  ;;  %v21404_v9 = vld [vmem:[%s23771_s22 + $0x150] ss:$24 sps:$4 sm:$0xff]  }
0x1395   : > { %8613 = vrot.lane.b32.xlu1 %v25244_v11, %s23324_s7  ;;  %v21370_v11 = vld [vmem:[%s23771_s22 + $0x3f4] ss:$24 sps:$4 sm:$0xff]  }
0x1396   : > { %12156 = vmatprep.subr.bf16.mxu0 %v21370_v11 }
0x1399   : > { %8184 = vrot.lane.b32.xlu1 %v25238_v3, %s23324_s7  ;;  %v21368_v3 = vld [vmem:[%s23771_s22 + $0x3f0] ss:$24 sps:$4 sm:$0xff]  }
0x139a   : > { %12157 = vmatpush1.bf16.msra.mxu0 %v21368_v3 }
0x139d   : > { %9469 = vrot.lane.b32.xlu1 %v25322_v62, %s23324_s7  ;;  %v21373_v62 = vld [vmem:[%s23771_s22 + $0x3c4] ss:$24 sps:$4 sm:$0xff]  }
0x139e   : > { %12158 = vmatprep.subr.bf16.mxu0 %v21373_v62 }
0x13a1   : > { %9041 = vrot.lane.b32.xlu1 %v25292_v31, %s23324_s7  ;;  %v21371_v31 = vld [vmem:[%s23771_s22 + $0x3c0] ss:$24 sps:$4 sm:$0xff]  }
0x13a2   : > { %12159 = vmatpush1.bf16.msra.mxu0 %v21371_v31  ;;  %v21412_v31 = vld [vmem:[%s23771_s22 + $0x124] ss:$24 sps:$4 sm:$0xff]  }
0x13a3   : > { %12160 = vmatprep.subr.bf16.mxu0 %v21376_v20 }
0x13a6   : > { %12161 = vmatpush1.bf16.msra.mxu0 %v21374_v22  ;;  %v21410_v22 = vld [vmem:[%s23771_s22 + $0x120] ss:$24 sps:$4 sm:$0xff]  }
0x13a7   : > { %12162 = vmatprep.subr.bf16.mxu0 %v21379_v15 }
0x13aa   : > { %12163 = vmatpush1.bf16.msra.mxu0 %v21377_v50 }
0x13ab   : > { %12164 = vmatprep.subr.bf16.mxu0 %v21382_v48  ;;  %v21418_v48 = vld [vmem:[%s23771_s22 + $0xf4] ss:$24 sps:$4 sm:$0xff]  }
0x13ae   : > { %12165 = vmatpush1.bf16.msra.mxu0 %v21380_v60 }
0x13af   : > { %12166 = vmatprep.subr.bf16.mxu0 %v21385_v61  ;;  %v21416_v61 = vld [vmem:[%s23771_s22 + $0xf0] ss:$24 sps:$4 sm:$0xff]  }
0x13b2   : > { %12167 = vmatpush1.bf16.msra.mxu0 %v21383_v32  ;;  %v21419_v32 = vld [vmem:[%s23771_s22 + $0x158] ss:$24 sps:$4 sm:$0xff]  }
0x13b3   : > { %12168 = vmatprep.subr.bf16.mxu0 %v21388_v17 }
0x13b6   : > { %12169 = vmatpush2.bf16.msra.mxu0 %v21386_v39 }
0x13b7   : > { %12170 = vmatprep.subr.bf16.mxu0 %v21391_v35  ;;  %v21443_v35 = vld [vmem:[%s23771_s22 + $0x98] ss:$24 sps:$4 sm:$0xff]  }
0x13ba   : > { %12171 = vmatpush2.bf16.msra.mxu0 %v21389_v13  ;;  %v21448_v13 = vld [vmem:[%s23771_s22 + $0x4] ss:$24 sps:$4 sm:$0xff]  }
0x13bb   : > { %12172 = vmatprep.subr.bf16.mxu0 %v21394_v27  ;;  %v21451_v27 = vld [vmem:[%s23771_s22 + $0x6c] ss:$24 sps:$4 sm:$0xff]  }
0x13be   : > { %12173 = vmatpush2.bf16.msra.mxu0 %v21392_v24  ;;  %v21446_v24 = vld [vmem:[%s23771_s22] ss:$24 sps:$4 sm:$0xff]  }
0x13bf   : > { %12174 = vmatprep.subr.bf16.mxu0 %v21397_v44  ;;  %v21449_v44 = vld [vmem:[%s23771_s22 + $0x68] ss:$24 sps:$4 sm:$0xff]  }
0x13c2   : > { %12175 = vmatpush2.bf16.msra.mxu0 %v21395_v29  ;;  %v21454_v29 = vld [vmem:[%s23771_s22 + $0x2d4] ss:$24 sps:$4 sm:$0xff]  }
0x13c3   : > { %12176 = vmatprep.subr.bf16.mxu0 %v21400_v7  ;;  %v21457_v7 = vld [vmem:[%s23771_s22 + $0x3c] ss:$24 sps:$4 sm:$0xff]  }
0x13c6   : > { %12177 = vmatpush2.bf16.msra.mxu0 %v21398_v8  ;;  %v21452_v8 = vld [vmem:[%s23771_s22 + $0x2d0] ss:$24 sps:$4 sm:$0xff]  }
0x13c7   : > { %12178 = vmatprep.subr.bf16.mxu0 %v21403_v21  ;;  %v21455_v21 = vld [vmem:[%s23771_s22 + $0x38] ss:$24 sps:$4 sm:$0xff]  }
0x13ca   : > { %12179 = vmatpush2.bf16.msra.mxu0 %v21401_v41  ;;  %v21460_v41 = vld [vmem:[%s23771_s22 + $0x2a4] ss:$24 sps:$4 sm:$0xff]  }
0x13cb   : > { %12180 = vmatprep.subr.bf16.mxu0 %v21409_v6  ;;  %v21463_v6 = vld [vmem:[%s23771_s22 + $0xc] ss:$24 sps:$4 sm:$0xff]  }
0x13ce   : > { %12181 = vmatpush2.bf16.msra.mxu0 %v21407_v19  ;;  %v21458_v19 = vld [vmem:[%s23771_s22 + $0x2a0] ss:$24 sps:$4 sm:$0xff]  }
0x13cf   : > { %12182 = vmatprep.subr.bf16.mxu0 %v21415_v47  ;;  %v21461_v47 = vld [vmem:[%s23771_s22 + $0x8] ss:$24 sps:$4 sm:$0xff]  }
0x1405   : > { %v10215_v54 = vpop.xlane.xlu1 %10214 }
0x1406   : > { %v10217_v2 = vsub.f32 %v10209_v38, %v10215_v54  ;;  %v21413_v38 = vld [vmem:[%s23771_s22 + $0x480] ss:$24 sps:$4 sm:$0xff]  }
0x1407   : > { %v10212_v16 = vpop.xlane.xlu0 %10211  ;;  %12183 = vmatpush2.bf16.msra.mxu0 %v21413_v38  ;;  %v21466_v38 = vld [vmem:[%s23771_s22 + $0x274] ss:$24 sps:$4 sm:$0xff]  }
0x1408   : > { %v10220_v45 = vmul.f32 1.442695, %v10217_v2  ;;  %v10216_v53 = vsub.f32 %v10208_v26, %v10212_v16  ;;  %v21424_v2 = vld [vmem:[%s23771_s22 + $0xc4] ss:$24 sps:$4 sm:$0xff]  }
0x1409   : > { %v10237_v10 = vpop.permute.xlu1 %10236  ;;  %v21427_v16 = vld [vmem:[%s23771_s22 + $0x12c] ss:$24 sps:$4 sm:$0xff]  }
0x140a   : > { %21882 = vpow2.f32 %v10220_v45  ;;  %v10218_v42 = vmul.f32 1.442695, %v10216_v53  ;;  %19873 = vmatprep.subr.mxu1 %v10237_v10  ;;  %v21422_v45 = vld [vmem:[%s23771_s22 + $0xc0] ss:$24 sps:$4 sm:$0xff]  }
0x140b   : > { %19874 = vmatpush3.msra.mxu1 %v10237_v10  ;;  %v21425_v53 = vld [vmem:[%s23771_s22 + $0x128] ss:$24 sps:$4 sm:$0xff]   ;;  %v21430_v10 = vld [vmem:[%s23771_s22 + $0x94] ss:$24 sps:$4 sm:$0xff]  }
0x140c   : > { %21884 = vpow2.f32 %v10218_v42  ;;  %v21433_v42 = vld [vmem:[%s23771_s22 + $0xfc] ss:$24 sps:$4 sm:$0xff]  }
0x140d   : > { %v8612_v4 = vpop.permute.xlu1 %8611 }
0x140e   : > { %8617 = vst.msk [vmem:[#allocation4 + $0x8] sm:$0xff] %vm8188_vm2, %v8612_v4  ;;  %v21428_v4 = vld [vmem:[%s23771_s22 + $0x90] ss:$24 sps:$4 sm:$0xff]  }
0x1411   : > { %v8614_v63 = vpop.permute.xlu1 %8613 }
0x1412   : > { %8618 = vst.msk [vmem:[#allocation4 + $0x38] sm:$0xff] %vm8188_vm2, %v8614_v63  ;;  %v21431_v63 = vld [vmem:[%s23771_s22 + $0xf8] ss:$24 sps:$4 sm:$0xff]  }
0x1415   : > { %v8185_v36 = vpop.permute.xlu1 %8184  ;;  %v10332_v62 = vld [vmem:[#allocation4 + $0x8] sm:$0xff] }
0x1416   : > { %8190 = vst.msk [vmem:[#allocation4 + $0x30] sm:$0xff] %vm8188_vm2, %v8185_v36  ;;  %v21436_v36 = vld [vmem:[%s23771_s22 + $0x64] ss:$24 sps:$4 sm:$0xff]  }
0x1417   : > { %v25447_v34 = vpop.eup %21882 }
0x1418   : > { %v10225_v56 = vsel %vm7858_vm1, %v25447_v34, 0.0 }
0x1419   : > { %v21885_v28 = vpop.eup %21884  ;;  %v9470_v52 = vpop.permute.xlu1 %9469  ;;  %10226 = vadd.xlane.f32.xlu0 %v10225_v56  ;;  %v10338_v1 = vld [vmem:[#allocation4 + $0x38] sm:$0xff]  ;;  %v21434_v56 = vld [vmem:[%s23771_s22 + $0x60] ss:$24 sps:$4 sm:$0xff]  }
0x141a   : > { %9474 = vst.msk [vmem:[#allocation4 + $0x48] sm:$0xff] %vm8188_vm2, %v9470_v52  ;;  %v10222_v5 = vsel %vm7858_vm1, %v21885_v28, 0.0  ;;  %v25485_v20 = vpack.c.bf16 %v10338_v1, %v10332_v62  ;;  %v21442_v52 = vld [vmem:[%s23771_s22 + $0x34] ss:$24 sps:$4 sm:$0xff]   ;;  %v21476_v1 = vld [vmem:[%s23771_s22 + $0x210] ss:$24 sps:$4 sm:$0xff]  }
0x141b   : > { %v21485_v62 = vld [vmem:[%s23771_s22 + $0x248] ss:$24 sps:$4 sm:$0xff]  }
0x141d   : > { %v9042_v14 = vpop.permute.xlu1 %9041  ;;  %10223 = vadd.xlane.f32.xlu0 %v10222_v5  ;;  %v21445_v5 = vld [vmem:[%s23771_s22 + $0x9c] ss:$24 sps:$4 sm:$0xff]  }
0x141e   : > { %9046 = vst.msk [vmem:[#allocation4 + $0x40] sm:$0xff] %vm8188_vm2, %v9042_v14  ;;  %v21440_v14 = vld [vmem:[%s23771_s22 + $0x30] ss:$24 sps:$4 sm:$0xff]  }
0x1421   : > { %v10340_v50 = vld [vmem:[#allocation4 + $0x48] sm:$0xff] }
0x1425   : > { %v10339_v39 = vld [vmem:[#allocation4 + $0x40] sm:$0xff] }
0x1433   : > { %10234 = vrot.lane.b32.xlu0 %v25112_v46, %s23324_s7  ;;  %v21421_v46 = vld [vmem:[%s23771_s22 + $0x15c] ss:$24 sps:$4 sm:$0xff]  }
0x1434   : > { %12238 = vmatprep.subr.bf16.mxu0 %v21421_v46  ;;  %v21469_v46 = vld [vmem:[%s23771_s22 + $0x2dc] ss:$24 sps:$4 sm:$0xff]  }
0x1437   : > { %8182 = vrot.lane.b32.xlu0 %v25240_v12, %s23324_s7 }
0x143b   : > { %9467 = vrot.lane.b32.xlu0 %v25324_v18, %s23324_s7 }
0x143f   : > { %9039 = vrot.lane.b32.xlu0 %v25294_v59, %s23324_s7 }
0x14a2   : > { %v10227_v0 = vpop.xlane.xlu0 %10226 }
0x14a3   : > { %21886 = vrcp.f32 %v10227_v0  ;;  %v21464_v0 = vld [vmem:[%s23771_s22 + $0x270] ss:$24 sps:$4 sm:$0xff]  }
0x14a6   : > { %v10224_v12 = vpop.xlane.xlu0 %10223 }
0x14a7   : > { %21888 = vrcp.f32 %v10224_v12  ;;  %v21467_v12 = vld [vmem:[%s23771_s22 + $0x2d8] ss:$24 sps:$4 sm:$0xff]  }
0x14aa   : > { %v10235_v26 = vpop.permute.xlu0 %10234 }
0x14ab   : > { %19875 = vmatprep.subr.mxu1 %v10235_v26 }
0x14ac   : > { %19876 = vmatpush3.msra.mxu1 %v10235_v26  ;;  %v21475_v26 = vld [vmem:[%s23771_s22 + $0x2ac] ss:$24 sps:$4 sm:$0xff]  }
0x14ad   : > { %12109 = vmatprep.subr.bf16.mxu1 %v21406_v40  ;;  %v21472_v40 = vld [vmem:[%s23771_s22 + $0x244] ss:$24 sps:$4 sm:$0xff]  }
0x14ae   : > { %v8183_v18 = vpop.permute.xlu0 %8182 }
0x14af   : > { %8189 = vst.msk [vmem:[#allocation4] sm:$0xff] %vm8188_vm2, %v8183_v18  ;;  %v21470_v18 = vld [vmem:[%s23771_s22 + $0x240] ss:$24 sps:$4 sm:$0xff]  }
0x14b0   : > { %v21887_v55 = vpop.eup %21886 }
0x14b1   : > { %v10231_v3 = vmul.f32 %v21887_v55, %v25447_v34  ;;  %v21439_v34 = vld [vmem:[%s23771_s22 + $0xcc] ss:$24 sps:$4 sm:$0xff]  }
0x14b2   : > { %v9468_v51 = vpop.permute.xlu0 %9467  ;;  %v21478_v55 = vld [vmem:[%s23771_s22 + $0x214] ss:$24 sps:$4 sm:$0xff]  }
0x14b3   : > { %9473 = vst.msk [vmem:[#allocation4 + $0x18] sm:$0xff] %vm8188_vm2, %v9468_v51  ;;  %v21473_v51 = vld [vmem:[%s23771_s22 + $0x2a8] ss:$24 sps:$4 sm:$0xff]  }
0x14b4   : > { %v21889_v59 = vpop.eup %21888 }
0x14b5   : > { %v10229_v33 = vmul.f32 %v21889_v59, %v21885_v28  ;;  %v21437_v28 = vld [vmem:[%s23771_s22 + $0xc8] ss:$24 sps:$4 sm:$0xff]   ;;  %v21481_v59 = vld [vmem:[%s23771_s22 + $0x27c] ss:$24 sps:$4 sm:$0xff]  }
0x14b6   : > { %v9040_v11 = vpop.permute.xlu0 %9039 }
0x14b7   : > { %9045 = vst.msk [vmem:[#allocation4 + $0x10] sm:$0xff] %vm8188_vm2, %v9040_v11  ;;  %19877 = vmatprep.mubr.msk.f32.mxu1 %vm7858_vm1, %v10229_v33  ;;  %v21479_v33 = vld [vmem:[%s23771_s22 + $0x278] ss:$24 sps:$4 sm:$0xff]   ;;  %v21487_v11 = vld [vmem:[%s23771_s22 + $0x24c] ss:$24 sps:$4 sm:$0xff]  }
0x14b8   : > { %19878 = vmatmul.mubr.msk.f32.vlgmr.msra.gmra.mxu1 %vm7858_vm1, %v10231_v3  ;;  %v21482_v3 = vld [vmem:[%s23771_s22 + $0x1e0] ss:$24 sps:$4 sm:$0xff]  }
0x14b9   : > { %12110 = vmatpush1.bf16.msra.mxu1 %v21404_v9  ;;  %12141 = vmatprep.mubr.bf16.mxu1 %v25485_v20  ;;  %v21484_v9 = vld [vmem:[%s23771_s22 + $0x1e4] ss:$24 sps:$4 sm:$0xff]  }
0x14ba   : > { %12111 = vmatprep.subr.bf16.mxu1 %v21412_v31  ;;  %v10334_v15 = vld [vmem:[#allocation4 + $0x18] sm:$0xff] }
0x14bb   : > { %v25491_v60 = vpack.c.bf16 %v10340_v50, %v10334_v15  ;;  %v21490_v31 = vld [vmem:[%s23771_s22 + $0x1b4] ss:$24 sps:$4 sm:$0xff]   ;;  %v21488_v15 = vld [vmem:[%s23771_s22 + $0x1b0] ss:$24 sps:$4 sm:$0xff]  }
0x14bc   : > { %v21491_v50 = vld [vmem:[%s23771_s22 + $0x218] ss:$24 sps:$4 sm:$0xff]  }
0x14bd   : > { %12112 = vmatpush1.bf16.msra.mxu1 %v21410_v22  ;;  %12184 = vmatprep.mubr.bf16.mxu0 %v25491_v60  ;;  %v21493_v22 = vld [vmem:[%s23771_s22 + $0x21c] ss:$24 sps:$4 sm:$0xff]  }
0x14be   : > { %12113 = vmatprep.subr.bf16.mxu1 %v21418_v48  ;;  %v10333_v17 = vld [vmem:[#allocation4 + $0x10] sm:$0xff] }
0x14bf   : > { %v25496_v54 = vpack.c.bf16 %v10339_v39, %v10333_v17  ;;  %v21496_v48 = vld [vmem:[%s23771_s22 + $0x184] ss:$24 sps:$4 sm:$0xff]   ;;  %v21497_v17 = vld [vmem:[%s23771_s22 + $0x1e8] ss:$24 sps:$4 sm:$0xff]   ;;  %v10331_v39 = vld [vmem:[#allocation4] sm:$0xff] }
0x14c1   : > { %12114 = vmatpush1.bf16.msra.mxu1 %v21416_v61  ;;  %12185 = vmatmul.mubr.bf16.vlgmr.msra.gmra.mxu0 %v25496_v54  ;;  %v21499_v61 = vld [vmem:[%s23771_s22 + $0x1ec] ss:$24 sps:$4 sm:$0xff]  }
0x14c2   : > { %12239 = vmatpush1.bf16.msra.mxu0 %v21419_v32  ;;  %12270 = vmatprep.mubr.bf16.mxu0 %v25485_v20  ;;  %v21494_v32 = vld [vmem:[%s23771_s22 + $0x180] ss:$24 sps:$4 sm:$0xff]  }
0x14c3   : > { %12115 = vmatprep.subr.bf16.mxu1 %v21424_v2  ;;  %12240 = vmatprep.subr.bf16.mxu0 %v21427_v16  ;;  %v21502_v2 = vld [vmem:[%s23771_s22 + $0x1bc] ss:$24 sps:$4 sm:$0xff]  }
0x14c4   : > { %v10337_v16 = vld [vmem:[#allocation4 + $0x30] sm:$0xff] }
0x14c5   : > { %12116 = vmatpush1.bf16.msra.mxu1 %v21422_v45  ;;  %v25553_v45 = vpack.c.bf16 %v10337_v16, %v10331_v39  ;;  %v21572_v39 = vld [vmem:[%s23771_s22 + $0x840] ss:$24 sps:$4 sm:$0xff]   ;;  %v21580_v16 = vld [vmem:[%s23771_s22 + $0x814] ss:$24 sps:$4 sm:$0xff]  }
0x14c6   : > { %12241 = vmatpush1.bf16.msra.mxu0 %v21425_v53  ;;  %12117 = vmatprep.subr.bf16.mxu1 %v21430_v10  ;;  %v21500_v53 = vld [vmem:[%s23771_s22 + $0x1b8] ss:$24 sps:$4 sm:$0xff]   ;;  %v21505_v10 = vld [vmem:[%s23771_s22 + $0x18c] ss:$24 sps:$4 sm:$0xff]  }
0x14c7   : > { %12242 = vmatprep.subr.bf16.mxu0 %v21433_v42  ;;  %v21503_v42 = vld [vmem:[%s23771_s22 + $0x188] ss:$24 sps:$4 sm:$0xff]  }
0x14c9   : > { %12118 = vmatpush1.bf16.msra.mxu1 %v21428_v4  ;;  %v21508_v4 = vld [vmem:[%s23771_s22 + $0x754] ss:$24 sps:$4 sm:$0xff]  }
0x14ca   : > { %12243 = vmatpush1.bf16.msra.mxu0 %v21431_v63  ;;  %12119 = vmatprep.subr.bf16.mxu1 %v21436_v36  ;;  %v21511_v63 = vld [vmem:[%s23771_s22 + $0x75c] ss:$24 sps:$4 sm:$0xff]   ;;  %v21506_v36 = vld [vmem:[%s23771_s22 + $0x750] ss:$24 sps:$4 sm:$0xff]  }
0x14cb   : > { %12244 = vmatprep.subr.bf16.mxu0 %v21439_v34  ;;  %v21509_v34 = vld [vmem:[%s23771_s22 + $0x758] ss:$24 sps:$4 sm:$0xff]  }
0x14cd   : > { %12120 = vmatpush1.bf16.msra.mxu1 %v21434_v56  ;;  %v21514_v56 = vld [vmem:[%s23771_s22 + $0x724] ss:$24 sps:$4 sm:$0xff]  }
0x14ce   : > { %12245 = vmatpush1.bf16.msra.mxu0 %v21437_v28  ;;  %12121 = vmatprep.subr.bf16.mxu1 %v21442_v52  ;;  %v21517_v28 = vld [vmem:[%s23771_s22 + $0x72c] ss:$24 sps:$4 sm:$0xff]   ;;  %v21512_v52 = vld [vmem:[%s23771_s22 + $0x720] ss:$24 sps:$4 sm:$0xff]  }
0x14cf   : > { %12246 = vmatprep.subr.bf16.mxu0 %v21445_v5  ;;  %v21515_v5 = vld [vmem:[%s23771_s22 + $0x728] ss:$24 sps:$4 sm:$0xff]  }
0x14d1   : > { %12122 = vmatpush1.bf16.msra.mxu1 %v21440_v14  ;;  %v21520_v14 = vld [vmem:[%s23771_s22 + $0x6f4] ss:$24 sps:$4 sm:$0xff]  }
0x14d2   : > { %12247 = vmatpush1.bf16.msra.mxu0 %v21443_v35  ;;  %12123 = vmatprep.subr.bf16.mxu1 %v21448_v13  ;;  %v21523_v35 = vld [vmem:[%s23771_s22 + $0x6fc] ss:$24 sps:$4 sm:$0xff]   ;;  %v21518_v13 = vld [vmem:[%s23771_s22 + $0x6f0] ss:$24 sps:$4 sm:$0xff]  }
0x14d3   : > { %12248 = vmatprep.subr.bf16.mxu0 %v21451_v27  ;;  %v21521_v27 = vld [vmem:[%s23771_s22 + $0x6f8] ss:$24 sps:$4 sm:$0xff]  }
0x14d5   : > { %12124 = vmatpush1.bf16.msra.mxu1 %v21446_v24  ;;  %v21526_v24 = vld [vmem:[%s23771_s22 + $0x6c4] ss:$24 sps:$4 sm:$0xff]  }
0x14d6   : > { %12249 = vmatpush1.bf16.msra.mxu0 %v21449_v44  ;;  %12125 = vmatprep.subr.bf16.mxu1 %v21454_v29  ;;  %v21529_v44 = vld [vmem:[%s23771_s22 + $0x6cc] ss:$24 sps:$4 sm:$0xff]   ;;  %v21524_v29 = vld [vmem:[%s23771_s22 + $0x6c0] ss:$24 sps:$4 sm:$0xff]  }
0x14d7   : > { %12250 = vmatprep.subr.bf16.mxu0 %v21457_v7  ;;  %v21527_v7 = vld [vmem:[%s23771_s22 + $0x6c8] ss:$24 sps:$4 sm:$0xff]  }
0x14d9   : > { %12126 = vmatpush2.bf16.msra.mxu1 %v21452_v8  ;;  %v21532_v8 = vld [vmem:[%s23771_s22 + $0x694] ss:$24 sps:$4 sm:$0xff]  }
0x14da   : > { %12251 = vmatpush1.bf16.msra.mxu0 %v21455_v21  ;;  %12127 = vmatprep.subr.bf16.mxu1 %v21460_v41  ;;  %v21530_v21 = vld [vmem:[%s23771_s22 + $0x690] ss:$24 sps:$4 sm:$0xff]  }
0x14db   : > { %12252 = vmatprep.subr.bf16.mxu0 %v21463_v6  ;;  %v21533_v41 = vld [vmem:[%s23771_s22 + $0x698] ss:$24 sps:$4 sm:$0xff]   ;;  %v21535_v6 = vld [vmem:[%s23771_s22 + $0x69c] ss:$24 sps:$4 sm:$0xff]  }
0x14dd   : > { %12128 = vmatpush2.bf16.msra.mxu1 %v21458_v19  ;;  %v21538_v19 = vld [vmem:[%s23771_s22 + $0x664] ss:$24 sps:$4 sm:$0xff]  }
0x14de   : > { %12253 = vmatpush1.bf16.msra.mxu0 %v21461_v47  ;;  %12129 = vmatprep.subr.bf16.mxu1 %v21466_v38  ;;  %v21541_v47 = vld [vmem:[%s23771_s22 + $0x66c] ss:$24 sps:$4 sm:$0xff]   ;;  %v21536_v38 = vld [vmem:[%s23771_s22 + $0x660] ss:$24 sps:$4 sm:$0xff]  }
0x14df   : > { %12254 = vmatprep.subr.bf16.mxu0 %v21469_v46  ;;  %v21539_v46 = vld [vmem:[%s23771_s22 + $0x668] ss:$24 sps:$4 sm:$0xff]  }
0x14e1   : > { %12130 = vmatpush2.bf16.msra.mxu1 %v21464_v0  ;;  %v21544_v0 = vld [vmem:[%s23771_s22 + $0x634] ss:$24 sps:$4 sm:$0xff]  }
0x14e2   : > { %12255 = vmatpush2.bf16.msra.mxu0 %v21467_v12  ;;  %12131 = vmatprep.subr.bf16.mxu1 %v21472_v40  ;;  %v21547_v12 = vld [vmem:[%s23771_s22 + $0x63c] ss:$24 sps:$4 sm:$0xff]   ;;  %v21542_v40 = vld [vmem:[%s23771_s22 + $0x630] ss:$24 sps:$4 sm:$0xff]  }
0x14e3   : > { %12256 = vmatprep.subr.bf16.mxu0 %v21475_v26  ;;  %v21545_v26 = vld [vmem:[%s23771_s22 + $0x638] ss:$24 sps:$4 sm:$0xff]  }
0x14e5   : > { %12132 = vmatpush2.bf16.msra.mxu1 %v21470_v18  ;;  %v21550_v18 = vld [vmem:[%s23771_s22 + $0x604] ss:$24 sps:$4 sm:$0xff]  }
0x14e6   : > { %12257 = vmatpush2.bf16.msra.mxu0 %v21473_v51  ;;  %12133 = vmatprep.subr.bf16.mxu1 %v21478_v55  ;;  %v21553_v51 = vld [vmem:[%s23771_s22 + $0x60c] ss:$24 sps:$4 sm:$0xff]   ;;  %v21548_v55 = vld [vmem:[%s23771_s22 + $0x600] ss:$24 sps:$4 sm:$0xff]  }
0x14e7   : > { %12258 = vmatprep.subr.bf16.mxu0 %v21481_v59  ;;  %v21551_v59 = vld [vmem:[%s23771_s22 + $0x608] ss:$24 sps:$4 sm:$0xff]  }
0x14e9   : > { %12134 = vmatpush2.bf16.msra.mxu1 %v21476_v1  ;;  %v21556_v1 = vld [vmem:[%s23771_s22 + $0x8d4] ss:$24 sps:$4 sm:$0xff]  }
0x14ea   : > { %12259 = vmatpush2.bf16.msra.mxu0 %v21479_v33  ;;  %12135 = vmatprep.subr.bf16.mxu1 %v21484_v9  ;;  %v21559_v33 = vld [vmem:[%s23771_s22 + $0x8dc] ss:$24 sps:$4 sm:$0xff]   ;;  %v21554_v9 = vld [vmem:[%s23771_s22 + $0x8d0] ss:$24 sps:$4 sm:$0xff]  }
0x14eb   : > { %12260 = vmatprep.subr.bf16.mxu0 %v21487_v11  ;;  %v21557_v11 = vld [vmem:[%s23771_s22 + $0x8d8] ss:$24 sps:$4 sm:$0xff]  }
0x14ed   : > { %12136 = vmatpush2.bf16.msra.mxu1 %v21482_v3  ;;  %v21562_v3 = vld [vmem:[%s23771_s22 + $0x8a4] ss:$24 sps:$4 sm:$0xff]  }
0x14ee   : > { %12261 = vmatpush2.bf16.msra.mxu0 %v21485_v62  ;;  %12137 = vmatprep.subr.bf16.mxu1 %v21490_v31  ;;  %v21565_v62 = vld [vmem:[%s23771_s22 + $0x8ac] ss:$24 sps:$4 sm:$0xff]   ;;  %v21560_v31 = vld [vmem:[%s23771_s22 + $0x8a0] ss:$24 sps:$4 sm:$0xff]  }
0x14ef   : > { %12262 = vmatprep.subr.bf16.mxu0 %v21493_v22  ;;  %v21563_v22 = vld [vmem:[%s23771_s22 + $0x8a8] ss:$24 sps:$4 sm:$0xff]  }
0x14f1   : > { %12138 = vmatpush2.bf16.msra.mxu1 %v21488_v15  ;;  %v21568_v15 = vld [vmem:[%s23771_s22 + $0x874] ss:$24 sps:$4 sm:$0xff]  }
0x14f2   : > { %12263 = vmatpush2.bf16.msra.mxu0 %v21491_v50  ;;  %12139 = vmatprep.subr.bf16.mxu1 %v21496_v48  ;;  %v21571_v50 = vld [vmem:[%s23771_s22 + $0x87c] ss:$24 sps:$4 sm:$0xff]   ;;  %v21566_v48 = vld [vmem:[%s23771_s22 + $0x870] ss:$24 sps:$4 sm:$0xff]  }
0x14f3   : > { %12264 = vmatprep.subr.bf16.mxu0 %v21499_v61  ;;  %v21569_v61 = vld [vmem:[%s23771_s22 + $0x878] ss:$24 sps:$4 sm:$0xff]  }
0x14f5   : > { %12140 = vmatpush2.bf16.msra.mxu1 %v21494_v32  ;;  %v21574_v32 = vld [vmem:[%s23771_s22 + $0x844] ss:$24 sps:$4 sm:$0xff]  }
0x14f6   : > { %12265 = vmatpush2.bf16.msra.mxu0 %v21497_v17  ;;  %12195 = vmatprep.subr.bf16.mxu1 %v21508_v4  ;;  %v21577_v17 = vld [vmem:[%s23771_s22 + $0x84c] ss:$24 sps:$4 sm:$0xff]  }
0x14f7   : > { %12266 = vmatprep.subr.bf16.mxu0 %v21502_v2  ;;  %v21575_v2 = vld [vmem:[%s23771_s22 + $0x848] ss:$24 sps:$4 sm:$0xff]   ;;  %v21586_v4 = vld [vmem:[%s23771_s22 + $0x7e4] ss:$24 sps:$4 sm:$0xff]  }
0x14f8   : > { %12142 = vmatmul.mubr.bf16.vlgmr.msra.gmra.mxu1 %v25553_v45 }
0x14f9   : > { %12196 = vmatpush1.bf16.msra.mxu1 %v21506_v36  ;;  %v21584_v36 = vld [vmem:[%s23771_s22 + $0x7e0] ss:$24 sps:$4 sm:$0xff]  }
0x14fa   : > { %12267 = vmatpush2.bf16.msra.mxu0 %v21500_v53  ;;  %12197 = vmatprep.subr.bf16.mxu1 %v21514_v56  ;;  %v21583_v53 = vld [vmem:[%s23771_s22 + $0x81c] ss:$24 sps:$4 sm:$0xff]   ;;  %v21590_v56 = vld [vmem:[%s23771_s22 + $0x7b0] ss:$24 sps:$4 sm:$0xff]  }
0x14fb   : > { %12268 = vmatprep.subr.bf16.mxu0 %v21505_v10  ;;  %v21578_v10 = vld [vmem:[%s23771_s22 + $0x810] ss:$24 sps:$4 sm:$0xff]  }
0x14fd   : > { %12198 = vmatpush1.bf16.msra.mxu1 %v21512_v52  ;;  %v21593_v52 = vld [vmem:[%s23771_s22 + $0x7b8] ss:$24 sps:$4 sm:$0xff]  }
0x14fe   : > { %12269 = vmatpush2.bf16.msra.mxu0 %v21503_v42  ;;  %12199 = vmatprep.subr.bf16.mxu1 %v21520_v14  ;;  %v21581_v42 = vld [vmem:[%s23771_s22 + $0x818] ss:$24 sps:$4 sm:$0xff]   ;;  %v21598_v14 = vld [vmem:[%s23771_s22 + $0x784] ss:$24 sps:$4 sm:$0xff]  }
0x14ff   : > { %12324 = vmatprep.subr.bf16.mxu0 %v21511_v63  ;;  %v21589_v63 = vld [vmem:[%s23771_s22 + $0x7ec] ss:$24 sps:$4 sm:$0xff]  }
0x1501   : > { %12271 = vmatmul.mubr.bf16.vlgmr.msra.gmra.mxu0 %v25553_v45  ;;  %12200 = vmatpush1.bf16.msra.mxu1 %v21518_v13  ;;  %v21596_v13 = vld [vmem:[%s23771_s22 + $0x780] ss:$24 sps:$4 sm:$0xff]  }
0x1502   : > { %12325 = vmatpush1.bf16.msra.mxu0 %v21509_v34  ;;  %12201 = vmatprep.subr.bf16.mxu1 %v21526_v24  ;;  %v21587_v34 = vld [vmem:[%s23771_s22 + $0x7e8] ss:$24 sps:$4 sm:$0xff]  }
0x1503   : > { %12326 = vmatprep.subr.bf16.mxu0 %v21517_v28  ;;  %v21592_v28 = vld [vmem:[%s23771_s22 + $0x7b4] ss:$24 sps:$4 sm:$0xff]  }
0x1505   : > { %12202 = vmatpush1.bf16.msra.mxu1 %v21524_v29  ;;  %v21607_v29 = vld [vmem:[%s23771_s22 + $0x464] ss:$24 sps:$4 sm:$0xff]  }
0x1506   : > { %12327 = vmatpush1.bf16.msra.mxu0 %v21515_v5  ;;  %12203 = vmatprep.subr.bf16.mxu1 %v21532_v8  ;;  %v21595_v5 = vld [vmem:[%s23771_s22 + $0x7bc] ss:$24 sps:$4 sm:$0xff]  }
0x1507   : > { %12328 = vmatprep.subr.bf16.mxu0 %v21523_v35  ;;  %v21601_v35 = vld [vmem:[%s23771_s22 + $0x78c] ss:$24 sps:$4 sm:$0xff]  }
0x1509   : > { %12204 = vmatpush1.bf16.msra.mxu1 %v21530_v21 }
0x150a   : > { %12329 = vmatpush1.bf16.msra.mxu0 %v21521_v27  ;;  %12205 = vmatprep.subr.bf16.mxu1 %v21538_v19  ;;  %v21599_v27 = vld [vmem:[%s23771_s22 + $0x788] ss:$24 sps:$4 sm:$0xff]  }
0x150b   : > { %12330 = vmatprep.subr.bf16.mxu0 %v21529_v44  ;;  %v21604_v44 = vld [vmem:[%s23771_s22 + $0x45c] ss:$24 sps:$4 sm:$0xff]  }
0x150d   : > { %12206 = vmatpush1.bf16.msra.mxu1 %v21536_v38  ;;  %v21605_v38 = vld [vmem:[%s23771_s22 + $0x460] ss:$24 sps:$4 sm:$0xff]  }
0x150e   : > { %12331 = vmatpush1.bf16.msra.mxu0 %v21527_v7  ;;  %12207 = vmatprep.subr.bf16.mxu1 %v21544_v0 }
0x150f   : > { %12332 = vmatprep.subr.bf16.mxu0 %v21535_v6 }
0x1511   : > { %12208 = vmatpush1.bf16.msra.mxu1 %v21542_v40  ;;  %v21610_v40 = vld [vmem:[%s23771_s22 + $0x42c] ss:$24 sps:$4 sm:$0xff]  }
0x1512   : > { %12333 = vmatpush1.bf16.msra.mxu0 %v21533_v41  ;;  %12209 = vmatprep.subr.bf16.mxu1 %v21550_v18  ;;  %v21608_v18 = vld [vmem:[%s23771_s22 + $0x428] ss:$24 sps:$4 sm:$0xff]  }
0x1513   : > { %12334 = vmatprep.subr.bf16.mxu0 %v21541_v47 }
0x1515   : > { %12210 = vmatpush1.bf16.msra.mxu1 %v21548_v55  ;;  %v21616_v55 = vld [vmem:[%s23771_s22 + $0x3fc] ss:$24 sps:$4 sm:$0xff]  }
0x1516   : > { %12335 = vmatpush1.bf16.msra.mxu0 %v21539_v46  ;;  %12211 = vmatprep.subr.bf16.mxu1 %v21556_v1  ;;  %v21614_v1 = vld [vmem:[%s23771_s22 + $0x3f8] ss:$24 sps:$4 sm:$0xff]  }
0x1517   : > { %12336 = vmatprep.subr.bf16.mxu0 %v21547_v12 }
0x1519   : > { %12212 = vmatpush2.bf16.msra.mxu1 %v21554_v9  ;;  %v21622_v9 = vld [vmem:[%s23771_s22 + $0x3cc] ss:$24 sps:$4 sm:$0xff]  }
0x151a   : > { %12337 = vmatpush1.bf16.msra.mxu0 %v21545_v26  ;;  %12213 = vmatprep.subr.bf16.mxu1 %v21562_v3  ;;  %v21613_v26 = vld [vmem:[%s23771_s22 + $0x434] ss:$24 sps:$4 sm:$0xff]   ;;  %v21623_v3 = vld [vmem:[%s23771_s22 + $0x3d0] ss:$24 sps:$4 sm:$0xff]  }
0x151b   : > { %12338 = vmatprep.subr.bf16.mxu0 %v21553_v51  ;;  %v21611_v51 = vld [vmem:[%s23771_s22 + $0x430] ss:$24 sps:$4 sm:$0xff]  }
0x151d   : > { %12214 = vmatpush2.bf16.msra.mxu1 %v21560_v31  ;;  %v21631_v31 = vld [vmem:[%s23771_s22 + $0x3a4] ss:$24 sps:$4 sm:$0xff]  }
0x151e   : > { %12339 = vmatpush1.bf16.msra.mxu0 %v21551_v59  ;;  %12215 = vmatprep.subr.bf16.mxu1 %v21568_v15  ;;  %v21619_v59 = vld [vmem:[%s23771_s22 + $0x404] ss:$24 sps:$4 sm:$0xff]   ;;  %v21629_v15 = vld [vmem:[%s23771_s22 + $0x3a0] ss:$24 sps:$4 sm:$0xff]  }
0x151f   : > { %12340 = vmatprep.subr.bf16.mxu0 %v21559_v33  ;;  %v21617_v33 = vld [vmem:[%s23771_s22 + $0x400] ss:$24 sps:$4 sm:$0xff]  }
0x1521   : > { %12216 = vmatpush2.bf16.msra.mxu1 %v21566_v48  ;;  %v21637_v48 = vld [vmem:[%s23771_s22 + $0x374] ss:$24 sps:$4 sm:$0xff]  }
0x1522   : > { %12341 = vmatpush2.bf16.msra.mxu0 %v21557_v11  ;;  %12217 = vmatprep.subr.bf16.mxu1 %v21574_v32  ;;  %v21625_v11 = vld [vmem:[%s23771_s22 + $0x3d4] ss:$24 sps:$4 sm:$0xff]   ;;  %v21635_v32 = vld [vmem:[%s23771_s22 + $0x370] ss:$24 sps:$4 sm:$0xff]  }
0x1523   : > { %12342 = vmatprep.subr.bf16.mxu0 %v21565_v62  ;;  %v21628_v62 = vld [vmem:[%s23771_s22 + $0x39c] ss:$24 sps:$4 sm:$0xff]  }
0x1525   : > { %12218 = vmatpush2.bf16.msra.mxu1 %v21572_v39  ;;  %v21643_v39 = vld [vmem:[%s23771_s22 + $0x344] ss:$24 sps:$4 sm:$0xff]  }
0x1526   : > { %12343 = vmatpush2.bf16.msra.mxu0 %v21563_v22  ;;  %12219 = vmatprep.subr.bf16.mxu1 %v21580_v16  ;;  %v21626_v22 = vld [vmem:[%s23771_s22 + $0x398] ss:$24 sps:$4 sm:$0xff]  }
0x1527   : > { %12344 = vmatprep.subr.bf16.mxu0 %v21571_v50  ;;  %v21634_v50 = vld [vmem:[%s23771_s22 + $0x36c] ss:$24 sps:$4 sm:$0xff]   ;;  %v21641_v16 = vld [vmem:[%s23771_s22 + $0x340] ss:$24 sps:$4 sm:$0xff]  }
0x1529   : > { %12220 = vmatpush2.bf16.msra.mxu1 %v21578_v10  ;;  %v21649_v10 = vld [vmem:[%s23771_s22 + $0x314] ss:$24 sps:$4 sm:$0xff]  }
0x152a   : > { %12345 = vmatpush2.bf16.msra.mxu0 %v21569_v61  ;;  %12221 = vmatprep.subr.bf16.mxu1 %v21586_v4  ;;  %v21632_v61 = vld [vmem:[%s23771_s22 + $0x368] ss:$24 sps:$4 sm:$0xff]  }
0x152b   : > { %12346 = vmatprep.subr.bf16.mxu0 %v21577_v17  ;;  %v21640_v17 = vld [vmem:[%s23771_s22 + $0x33c] ss:$24 sps:$4 sm:$0xff]   ;;  %v21647_v4 = vld [vmem:[%s23771_s22 + $0x310] ss:$24 sps:$4 sm:$0xff]  }
0x152d   : > { %12222 = vmatpush2.bf16.msra.mxu1 %v21584_v36  ;;  %v21655_v36 = vld [vmem:[%s23771_s22 + $0x5e4] ss:$24 sps:$4 sm:$0xff]  }
0x152e   : > { %12347 = vmatpush2.bf16.msra.mxu0 %v21575_v2  ;;  %12223 = vmatprep.subr.bf16.mxu1 %v21592_v28  ;;  %v21638_v2 = vld [vmem:[%s23771_s22 + $0x338] ss:$24 sps:$4 sm:$0xff]   ;;  %v21658_v28 = vld [vmem:[%s23771_s22 + $0x5ac] ss:$24 sps:$4 sm:$0xff]  }
0x152f   : > { %12348 = vmatprep.subr.bf16.mxu0 %v21583_v53  ;;  %v21646_v53 = vld [vmem:[%s23771_s22 + $0x30c] ss:$24 sps:$4 sm:$0xff]  }
0x1531   : > { %12224 = vmatpush2.bf16.msra.mxu1 %v21590_v56  ;;  %v21653_v56 = vld [vmem:[%s23771_s22 + $0x5e0] ss:$24 sps:$4 sm:$0xff]  }
0x1532   : > { %12349 = vmatpush2.bf16.msra.mxu0 %v21581_v42  ;;  %12225 = vmatprep.subr.bf16.mxu1 %v21598_v14  ;;  %v21644_v42 = vld [vmem:[%s23771_s22 + $0x308] ss:$24 sps:$4 sm:$0xff]  }
0x1533   : > { %12350 = vmatprep.subr.bf16.mxu0 %v21589_v63  ;;  %v21652_v63 = vld [vmem:[%s23771_s22 + $0x5dc] ss:$24 sps:$4 sm:$0xff]   ;;  %v21659_v14 = vld [vmem:[%s23771_s22 + $0x5b0] ss:$24 sps:$4 sm:$0xff]  }
0x1535   : > { %12226 = vmatpush2.bf16.msra.mxu1 %v21596_v13  ;;  %v21667_v13 = vld [vmem:[%s23771_s22 + $0x584] ss:$24 sps:$4 sm:$0xff]  }
0x1536   : > { %12351 = vmatpush2.bf16.msra.mxu0 %v21587_v34  ;;  %12281 = vmatprep.subr.bf16.mxu1 %v21604_v44  ;;  %v21650_v34 = vld [vmem:[%s23771_s22 + $0x5d8] ss:$24 sps:$4 sm:$0xff]   ;;  %v21670_v44 = vld [vmem:[%s23771_s22 + $0x54c] ss:$24 sps:$4 sm:$0xff]  }
0x1537   : > { %12352 = vmatprep.subr.bf16.mxu0 %v21595_v5  ;;  %v21656_v5 = vld [vmem:[%s23771_s22 + $0x5a8] ss:$24 sps:$4 sm:$0xff]  }
0x153a   : > { %12353 = vmatpush2.bf16.msra.mxu0 %v21593_v52  ;;  %v21661_v52 = vld [vmem:[%s23771_s22 + $0x5b4] ss:$24 sps:$4 sm:$0xff]  }
0x153b   : > { %12354 = vmatprep.subr.bf16.mxu0 %v21601_v35  ;;  %v21664_v35 = vld [vmem:[%s23771_s22 + $0x57c] ss:$24 sps:$4 sm:$0xff]  }
0x153e   : > { %12355 = vmatpush2.bf16.msra.mxu0 %v21599_v27  ;;  %v21662_v27 = vld [vmem:[%s23771_s22 + $0x578] ss:$24 sps:$4 sm:$0xff]  }
0x153f   : > { %12410 = vmatprep.subr.bf16.mxu0 %v21607_v29  ;;  %v21673_v29 = vld [vmem:[%s23771_s22 + $0x554] ss:$24 sps:$4 sm:$0xff]  }
0x1578   : > { %v19879_v24 = vpop.f32.mrf.mxu1 }
0x1579   : > { %10325 = vrot.lane.b32.xlu1 %v19879_v24, %s23324_s7  ;;  %v21665_v24 = vld [vmem:[%s23771_s22 + $0x580] ss:$24 sps:$4 sm:$0xff]  }
0x157a   : > { %v10312_v7 = vpop.f32.mrf.mxu1 }
0x157b   : > { %10323 = vrot.lane.b32.xlu0 %v10312_v7, %s23324_s7  ;;  %v21668_v7 = vld [vmem:[%s23771_s22 + $0x548] ss:$24 sps:$4 sm:$0xff]  }
0x157d   : > { %9897 = vrot.lane.b32.xlu1 %v25378_v57, %s23324_s7 }
0x157f   : > { %9895 = vrot.lane.b32.xlu0 %v25380_v37, %s23324_s7  ;;  %v21602_v37 = vld [vmem:[%s23771_s22 + $0x458] ss:$24 sps:$4 sm:$0xff]  }
0x15eb   : > { %v10326_v8 = vpop.permute.xlu1 %10325 }
0x15ec   : > { %10330 = vst.msk [vmem:[#allocation4 + $0x58] sm:$0xff] %vm8188_vm2, %v10326_v8  ;;  %v21671_v8 = vld [vmem:[%s23771_s22 + $0x550] ss:$24 sps:$4 sm:$0xff]  }
0x15ed   : > { %v10324_v21 = vpop.permute.xlu0 %10323 }
0x15ee   : > { %10329 = vst.msk [vmem:[#allocation4 + $0x28] sm:$0xff] %vm8188_vm2, %v10324_v21  ;;  %v21676_v21 = vld [vmem:[%s23771_s22 + $0x51c] ss:$24 sps:$4 sm:$0xff]  }
0x15ef   : > { %v9898_v41 = vpop.permute.xlu1 %9897 }
0x15f0   : > { %9902 = vst.msk [vmem:[#allocation4 + $0x50] sm:$0xff] %vm8188_vm2, %v9898_v41  ;;  %v21679_v41 = vld [vmem:[%s23771_s22 + $0x524] ss:$24 sps:$4 sm:$0xff]  }
0x15f1   : > { %v9896_v6 = vpop.permute.xlu0 %9895 }
0x15f2   : > { %9901 = vst.msk [vmem:[#allocation4 + $0x20] sm:$0xff] %vm8188_vm2, %v9896_v6  ;;  %v21674_v6 = vld [vmem:[%s23771_s22 + $0x518] ss:$24 sps:$4 sm:$0xff]  }
0x15f3   : > { %v10342_v57 = vld [vmem:[#allocation4 + $0x58] sm:$0xff] }
0x15f5   : > { %v10336_v19 = vld [vmem:[#allocation4 + $0x28] sm:$0xff] }
0x15f6   : > { %v25636_v47 = vpack.c.bf16 %v10342_v57, %v10336_v19  ;;  %v21677_v19 = vld [vmem:[%s23771_s22 + $0x520] ss:$24 sps:$4 sm:$0xff]   ;;  %v21682_v57 = vld [vmem:[%s23771_s22 + $0x4ec] ss:$24 sps:$4 sm:$0xff]  }
0x15f7   : > { %v10341_v0 = vld [vmem:[#allocation4 + $0x50] sm:$0xff] }
0x15f8   : > { %12227 = vmatprep.mubr.bf16.mxu1 %v25636_v47  ;;  %12356 = vmatprep.mubr.bf16.mxu0 %v25636_v47 }
0x15f9   : > { %v10335_v46 = vld [vmem:[#allocation4 + $0x20] sm:$0xff] }
0x15fa   : > { %v25642_v12 = vpack.c.bf16 %v10341_v0, %v10335_v46  ;;  %v21683_v46 = vld [vmem:[%s23771_s22 + $0x4f0] ss:$24 sps:$4 sm:$0xff]   ;;  %v21688_v0 = vld [vmem:[%s23771_s22 + $0x4bc] ss:$24 sps:$4 sm:$0xff]  }
0x15fc   : > { %12228 = vmatmul.mubr.bf16.vlgmr.msra.gmra.mxu1 %v25642_v12  ;;  %12357 = vmatmul.mubr.bf16.vlgmr.msra.gmra.mxu0 %v25642_v12 }
0x15fd   : > { %12282 = vmatpush1.bf16.msra.mxu1 %v21602_v37  ;;  %12411 = vmatpush1.bf16.msra.mxu0 %v21605_v38  ;;  %v21685_v37 = vld [vmem:[%s23771_s22 + $0x4f4] ss:$24 sps:$4 sm:$0xff]   ;;  %v21680_v38 = vld [vmem:[%s23771_s22 + $0x4e8] ss:$24 sps:$4 sm:$0xff]  }
0x15fe   : > { %12313 = vmatprep.mubr.bf16.mxu1 %v25491_v60  ;;  %12442 = vmatprep.mubr.bf16.mxu0 %v25491_v60  ;;  %v21620_v60 = vld [vmem:[%s23771_s22 + $0x3c8] ss:$24 sps:$4 sm:$0xff]  }
0x15ff   : > { %12283 = vmatprep.subr.bf16.mxu1 %v21610_v40  ;;  %12412 = vmatprep.subr.bf16.mxu0 %v21613_v26  ;;  %v21691_v40 = vld [vmem:[%s23771_s22 + $0x4c4] ss:$24 sps:$4 sm:$0xff]   ;;  %v21686_v26 = vld [vmem:[%s23771_s22 + $0x4b8] ss:$24 sps:$4 sm:$0xff]  }
0x1601   : > { %12284 = vmatpush1.bf16.msra.mxu1 %v21608_v18  ;;  %12413 = vmatpush1.bf16.msra.mxu0 %v21611_v51  ;;  %v21689_v18 = vld [vmem:[%s23771_s22 + $0x4c0] ss:$24 sps:$4 sm:$0xff]   ;;  %v21694_v51 = vld [vmem:[%s23771_s22 + $0x48c] ss:$24 sps:$4 sm:$0xff]  }
0x1602   : > { %12285 = vmatprep.subr.bf16.mxu1 %v21616_v55  ;;  %12414 = vmatprep.subr.bf16.mxu0 %v21619_v59  ;;  %v21697_v55 = vld [vmem:[%s23771_s22 + $0x494] ss:$24 sps:$4 sm:$0xff]   ;;  %v21692_v59 = vld [vmem:[%s23771_s22 + $0x488] ss:$24 sps:$4 sm:$0xff]  }
0x1605   : > { %12286 = vmatpush1.bf16.msra.mxu1 %v21614_v1  ;;  %12415 = vmatpush1.bf16.msra.mxu0 %v21617_v33  ;;  %v21695_v1 = vld [vmem:[%s23771_s22 + $0x490] ss:$24 sps:$4 sm:$0xff]   ;;  %v21700_v33 = vld [vmem:[%s23771_s22 + $0x164] ss:$24 sps:$4 sm:$0xff]  }
0x1606   : > { %12287 = vmatprep.subr.bf16.mxu1 %v21622_v9  ;;  %12416 = vmatprep.subr.bf16.mxu0 %v21625_v11  ;;  %v21698_v9 = vld [vmem:[%s23771_s22 + $0x160] ss:$24 sps:$4 sm:$0xff]   ;;  %v21703_v11 = vld [vmem:[%s23771_s22 + $0x134] ss:$24 sps:$4 sm:$0xff]  }
0x1609   : > { %12288 = vmatpush1.bf16.msra.mxu1 %v21620_v60  ;;  %12417 = vmatpush1.bf16.msra.mxu0 %v21623_v3  ;;  %v21701_v60 = vld [vmem:[%s23771_s22 + $0x130] ss:$24 sps:$4 sm:$0xff]   ;;  %v21706_v3 = vld [vmem:[%s23771_s22 + $0x104] ss:$24 sps:$4 sm:$0xff]  }
0x160a   : > { %12289 = vmatprep.subr.bf16.mxu1 %v21628_v62  ;;  %12418 = vmatprep.subr.bf16.mxu0 %v21631_v31  ;;  %v21704_v62 = vld [vmem:[%s23771_s22 + $0x100] ss:$24 sps:$4 sm:$0xff]   ;;  %v21709_v31 = vld [vmem:[%s23771_s22 + $0xd4] ss:$24 sps:$4 sm:$0xff]  }
0x160d   : > { %12290 = vmatpush1.bf16.msra.mxu1 %v21626_v22  ;;  %12419 = vmatpush1.bf16.msra.mxu0 %v21629_v15  ;;  %v21707_v22 = vld [vmem:[%s23771_s22 + $0xd0] ss:$24 sps:$4 sm:$0xff]   ;;  %v21710_v15 = vld [vmem:[%s23771_s22 + $0xa0] ss:$24 sps:$4 sm:$0xff]  }
0x160e   : > { %12291 = vmatprep.subr.bf16.mxu1 %v21634_v50  ;;  %12420 = vmatprep.subr.bf16.mxu0 %v21637_v48  ;;  %v21713_v50 = vld [vmem:[%s23771_s22 + $0x70] ss:$24 sps:$4 sm:$0xff]   ;;  %v21718_v48 = vld [vmem:[%s23771_s22 + $0x44] ss:$24 sps:$4 sm:$0xff]  }
0x1611   : > { %12292 = vmatpush1.bf16.msra.mxu1 %v21632_v61  ;;  %12421 = vmatpush1.bf16.msra.mxu0 %v21635_v32  ;;  %v21716_v61 = vld [vmem:[%s23771_s22 + $0x40] ss:$24 sps:$4 sm:$0xff]   ;;  %v21721_v32 = vld [vmem:[%s23771_s22 + $0x14] ss:$24 sps:$4 sm:$0xff]  }
0x1612   : > { %12293 = vmatprep.subr.bf16.mxu1 %v21640_v17  ;;  %12422 = vmatprep.subr.bf16.mxu0 %v21643_v39  ;;  %v21719_v17 = vld [vmem:[%s23771_s22 + $0x10] ss:$24 sps:$4 sm:$0xff]   ;;  %v21724_v39 = vld [vmem:[%s23771_s22 + $0x2e4] ss:$24 sps:$4 sm:$0xff]  }
0x1615   : > { %12294 = vmatpush1.bf16.msra.mxu1 %v21638_v2  ;;  %12423 = vmatpush1.bf16.msra.mxu0 %v21641_v16  ;;  %v21722_v2 = vld [vmem:[%s23771_s22 + $0x2e0] ss:$24 sps:$4 sm:$0xff]   ;;  %v21727_v16 = vld [vmem:[%s23771_s22 + $0x2b4] ss:$24 sps:$4 sm:$0xff]  }
0x1616   : > { %12295 = vmatprep.subr.bf16.mxu1 %v21646_v53  ;;  %12424 = vmatprep.subr.bf16.mxu0 %v21649_v10  ;;  %v21725_v53 = vld [vmem:[%s23771_s22 + $0x2b0] ss:$24 sps:$4 sm:$0xff]   ;;  %v21730_v10 = vld [vmem:[%s23771_s22 + $0x284] ss:$24 sps:$4 sm:$0xff]  }
0x1619   : > { %12296 = vmatpush1.bf16.msra.mxu1 %v21644_v42  ;;  %12425 = vmatpush1.bf16.msra.mxu0 %v21647_v4  ;;  %v21728_v42 = vld [vmem:[%s23771_s22 + $0x280] ss:$24 sps:$4 sm:$0xff]   ;;  %v21733_v4 = vld [vmem:[%s23771_s22 + $0x254] ss:$24 sps:$4 sm:$0xff]  }
0x161a   : > { %12297 = vmatprep.subr.bf16.mxu1 %v21652_v63  ;;  %12426 = vmatprep.subr.bf16.mxu0 %v21655_v36  ;;  %v21731_v63 = vld [vmem:[%s23771_s22 + $0x250] ss:$24 sps:$4 sm:$0xff]   ;;  %v21736_v36 = vld [vmem:[%s23771_s22 + $0x224] ss:$24 sps:$4 sm:$0xff]  }
0x161d   : > { %12298 = vmatpush2.bf16.msra.mxu1 %v21650_v34  ;;  %12427 = vmatpush2.bf16.msra.mxu0 %v21653_v56  ;;  %v21734_v34 = vld [vmem:[%s23771_s22 + $0x220] ss:$24 sps:$4 sm:$0xff]   ;;  %v21739_v56 = vld [vmem:[%s23771_s22 + $0x1f4] ss:$24 sps:$4 sm:$0xff]  }
0x161e   : > { %12299 = vmatprep.subr.bf16.mxu1 %v21658_v28  ;;  %12428 = vmatprep.subr.bf16.mxu0 %v21661_v52  ;;  %v21737_v28 = vld [vmem:[%s23771_s22 + $0x1f0] ss:$24 sps:$4 sm:$0xff]   ;;  %v21742_v52 = vld [vmem:[%s23771_s22 + $0x1c4] ss:$24 sps:$4 sm:$0xff]  }
0x1621   : > { %12300 = vmatpush2.bf16.msra.mxu1 %v21656_v5  ;;  %12429 = vmatpush2.bf16.msra.mxu0 %v21659_v14  ;;  %v21740_v5 = vld [vmem:[%s23771_s22 + $0x1c0] ss:$24 sps:$4 sm:$0xff]   ;;  %v21745_v14 = vld [vmem:[%s23771_s22 + $0x194] ss:$24 sps:$4 sm:$0xff]  }
0x1622   : > { %12301 = vmatprep.subr.bf16.mxu1 %v21664_v35  ;;  %12430 = vmatprep.subr.bf16.mxu0 %v21667_v13  ;;  %v21743_v35 = vld [vmem:[%s23771_s22 + $0x190] ss:$24 sps:$4 sm:$0xff]   ;;  %v21748_v13 = vld [vmem:[%s23771_s22 + $0x764] ss:$24 sps:$4 sm:$0xff]  }
0x1625   : > { %12302 = vmatpush2.bf16.msra.mxu1 %v21662_v27  ;;  %12431 = vmatpush2.bf16.msra.mxu0 %v21665_v24  ;;  %v21746_v27 = vld [vmem:[%s23771_s22 + $0x760] ss:$24 sps:$4 sm:$0xff]   ;;  %v21751_v24 = vld [vmem:[%s23771_s22 + $0x734] ss:$24 sps:$4 sm:$0xff]  }
0x1626   : > { %12303 = vmatprep.subr.bf16.mxu1 %v21670_v44  ;;  %12432 = vmatprep.subr.bf16.mxu0 %v21673_v29  ;;  %v21749_v44 = vld [vmem:[%s23771_s22 + $0x730] ss:$24 sps:$4 sm:$0xff]   ;;  %v21754_v29 = vld [vmem:[%s23771_s22 + $0x704] ss:$24 sps:$4 sm:$0xff]  }
0x1629   : > { %12304 = vmatpush2.bf16.msra.mxu1 %v21668_v7  ;;  %12433 = vmatpush2.bf16.msra.mxu0 %v21671_v8  ;;  %v21752_v7 = vld [vmem:[%s23771_s22 + $0x700] ss:$24 sps:$4 sm:$0xff]   ;;  %v21757_v8 = vld [vmem:[%s23771_s22 + $0x6d4] ss:$24 sps:$4 sm:$0xff]  }
0x162a   : > { %12305 = vmatprep.subr.bf16.mxu1 %v21676_v21  ;;  %12434 = vmatprep.subr.bf16.mxu0 %v21679_v41  ;;  %v21755_v21 = vld [vmem:[%s23771_s22 + $0x6d0] ss:$24 sps:$4 sm:$0xff]   ;;  %v21758_v41 = vld [vmem:[%s23771_s22 + $0x6a0] ss:$24 sps:$4 sm:$0xff]  }
0x162d   : > { %12306 = vmatpush2.bf16.msra.mxu1 %v21674_v6  ;;  %12435 = vmatpush2.bf16.msra.mxu0 %v21677_v19  ;;  %v21761_v6 = vld [vmem:[%s23771_s22 + $0x670] ss:$24 sps:$4 sm:$0xff]   ;;  %v21766_v19 = vld [vmem:[%s23771_s22 + $0x644] ss:$24 sps:$4 sm:$0xff]  }
0x162e   : > { %12307 = vmatprep.subr.bf16.mxu1 %v21682_v57  ;;  %12436 = vmatprep.subr.bf16.mxu0 %v21685_v37  ;;  %v21764_v57 = vld [vmem:[%s23771_s22 + $0x640] ss:$24 sps:$4 sm:$0xff]   ;;  %v21769_v37 = vld [vmem:[%s23771_s22 + $0x614] ss:$24 sps:$4 sm:$0xff]  }
0x1631   : > { %12308 = vmatpush2.bf16.msra.mxu1 %v21680_v38  ;;  %12437 = vmatpush2.bf16.msra.mxu0 %v21683_v46  ;;  %v21767_v38 = vld [vmem:[%s23771_s22 + $0x610] ss:$24 sps:$4 sm:$0xff]   ;;  %v21772_v46 = vld [vmem:[%s23771_s22 + $0x8e4] ss:$24 sps:$4 sm:$0xff]  }
0x1632   : > { %12309 = vmatprep.subr.bf16.mxu1 %v21688_v0  ;;  %12438 = vmatprep.subr.bf16.mxu0 %v21691_v40  ;;  %v21770_v0 = vld [vmem:[%s23771_s22 + $0x8e0] ss:$24 sps:$4 sm:$0xff]   ;;  %v21775_v40 = vld [vmem:[%s23771_s22 + $0x8b4] ss:$24 sps:$4 sm:$0xff]  }
0x1635   : > { %12310 = vmatpush2.bf16.msra.mxu1 %v21686_v26  ;;  %12439 = vmatpush2.bf16.msra.mxu0 %v21689_v18  ;;  %v21773_v26 = vld [vmem:[%s23771_s22 + $0x8b0] ss:$24 sps:$4 sm:$0xff]   ;;  %v21778_v18 = vld [vmem:[%s23771_s22 + $0x884] ss:$24 sps:$4 sm:$0xff]  }
0x1636   : > { %12311 = vmatprep.subr.bf16.mxu1 %v21694_v51  ;;  %12440 = vmatprep.subr.bf16.mxu0 %v21697_v55  ;;  %v21776_v51 = vld [vmem:[%s23771_s22 + $0x880] ss:$24 sps:$4 sm:$0xff]   ;;  %v21781_v55 = vld [vmem:[%s23771_s22 + $0x854] ss:$24 sps:$4 sm:$0xff]  }
0x1639   : > { %12312 = vmatpush2.bf16.msra.mxu1 %v21692_v59  ;;  %12441 = vmatpush2.bf16.msra.mxu0 %v21695_v1  ;;  %v21779_v59 = vld [vmem:[%s23771_s22 + $0x850] ss:$24 sps:$4 sm:$0xff]   ;;  %v21784_v1 = vld [vmem:[%s23771_s22 + $0x824] ss:$24 sps:$4 sm:$0xff]  }
0x163a   : > { %12367 = vmatprep.subr.bf16.mxu1 %v21700_v33  ;;  %v21782_v33 = vld [vmem:[%s23771_s22 + $0x820] ss:$24 sps:$4 sm:$0xff]  }
0x163c   : > { %12314 = vmatmul.mubr.bf16.vlgmr.msra.gmra.mxu1 %v25496_v54  ;;  %12443 = vmatmul.mubr.bf16.vlgmr.msra.gmra.mxu0 %v25496_v54  ;;  %v21712_v54 = vld [vmem:[%s23771_s22 + $0xa4] ss:$24 sps:$4 sm:$0xff]  }
0x163d   : > { %12368 = vmatpush1.bf16.msra.mxu1 %v21698_v9  ;;  %12399 = vmatprep.mubr.bf16.mxu1 %v25485_v20  ;;  %v21715_v20 = vld [vmem:[%s23771_s22 + $0x74] ss:$24 sps:$4 sm:$0xff]  }
0x163e   : > { %12369 = vmatprep.subr.bf16.mxu1 %v21703_v11  ;;  %v21787_v9 = vld [vmem:[%s23771_s22 + $0x7f4] ss:$24 sps:$4 sm:$0xff]   ;;  %v21785_v11 = vld [vmem:[%s23771_s22 + $0x7f0] ss:$24 sps:$4 sm:$0xff]  }
0x1641   : > { %12370 = vmatpush1.bf16.msra.mxu1 %v21701_v60  ;;  %v21790_v60 = vld [vmem:[%s23771_s22 + $0x7c4] ss:$24 sps:$4 sm:$0xff]  }
0x1642   : > { %12371 = vmatprep.subr.bf16.mxu1 %v21706_v3  ;;  %v21788_v3 = vld [vmem:[%s23771_s22 + $0x7c0] ss:$24 sps:$4 sm:$0xff]  }
0x1645   : > { %12372 = vmatpush1.bf16.msra.mxu1 %v21704_v62  ;;  %v21793_v62 = vld [vmem:[%s23771_s22 + $0x794] ss:$24 sps:$4 sm:$0xff]  }
0x1646   : > { %12373 = vmatprep.subr.bf16.mxu1 %v21709_v31  ;;  %v21791_v31 = vld [vmem:[%s23771_s22 + $0x790] ss:$24 sps:$4 sm:$0xff]  }
0x1649   : > { %12374 = vmatpush1.bf16.msra.mxu1 %v21707_v22  ;;  %v12143_v22 = vpop.f32.mrf.mxu1 }
0x164a   : > { %12375 = vmatprep.subr.bf16.mxu1 %v21712_v54 }
0x164b   : > { %v12145_v54 = vpop.f32.mrf.mxu1 }
0x164d   : > { %12376 = vmatpush1.bf16.msra.mxu1 %v21710_v15  ;;  %v12186_v15 = vpop.f32.mrf.mxu0 }
0x164e   : > { %12377 = vmatprep.subr.bf16.mxu1 %v21715_v20  ;;  %v12147_v20 = vpop.f32.mrf.mxu1 }
0x1651   : > { %12378 = vmatpush1.bf16.msra.mxu1 %v21713_v50  ;;  %v12188_v50 = vpop.f32.mrf.mxu0 }
0x1652   : > { %12379 = vmatprep.subr.bf16.mxu1 %v21718_v48  ;;  %v12149_v48 = vpop.f32.mrf.mxu1 }
0x1655   : > { %12380 = vmatpush1.bf16.msra.mxu1 %v21716_v61  ;;  %v12190_v61 = vpop.f32.mrf.mxu0 }
0x1656   : > { %12381 = vmatprep.subr.bf16.mxu1 %v21721_v32 }
0x1659   : > { %12382 = vmatpush1.bf16.msra.mxu1 %v21719_v17  ;;  %v12192_v17 = vpop.f32.mrf.mxu0 }
0x165a   : > { %12383 = vmatprep.subr.bf16.mxu1 %v21724_v39 }
0x165d   : > { %12384 = vmatpush2.bf16.msra.mxu1 %v21722_v2  ;;  %v12272_v2 = vpop.f32.mrf.mxu0 }
0x165e   : > { %12385 = vmatprep.subr.bf16.mxu1 %v21727_v16 }
0x1661   : > { %12386 = vmatpush2.bf16.msra.mxu1 %v21725_v53  ;;  %v12274_v53 = vpop.f32.mrf.mxu0 }
0x1662   : > { %12387 = vmatprep.subr.bf16.mxu1 %v21730_v10 }
0x1665   : > { %12388 = vmatpush2.bf16.msra.mxu1 %v21728_v42  ;;  %v12276_v42 = vpop.f32.mrf.mxu0 }
0x1666   : > { %12389 = vmatprep.subr.bf16.mxu1 %v21733_v4 }
0x1669   : > { %12390 = vmatpush2.bf16.msra.mxu1 %v21731_v63  ;;  %v10637_v63 = vld [vmem:[%s881_s3] sm:$0x3f] }
0x166a   : > { %12391 = vmatprep.subr.bf16.mxu1 %v21736_v36 }
0x166d   : > { %12392 = vmatpush2.bf16.msra.mxu1 %v21734_v34  ;;  %v10646_v34 = vrot.slane %v10637_v63, %v24182_v49 }
0x166e   : > { %12393 = vmatprep.subr.bf16.mxu1 %v21739_v56 }
0x1671   : > { %12394 = vmatpush2.bf16.msra.mxu1 %v21737_v28  ;;  %v10642_v28 = vrot.slane %v10637_v63, %v24256_v58 }
0x1672   : > { %12395 = vmatprep.subr.bf16.mxu1 %v21742_v52  ;;  %v10650_v52 = vrot.slane %v10637_v63, %v24348_v23 }
0x1675   : > { %12396 = vmatpush2.bf16.msra.mxu1 %v21740_v5 }
0x1676   : > { %12397 = vmatprep.subr.bf16.mxu1 %v21745_v14  ;;  %v12146_v14 = vadd.f32 %v12145_v54, %v10646_v34 }
0x1679   : > { %12398 = vmatpush2.bf16.msra.mxu1 %v21743_v35 }
0x167a   : > { %12453 = vmatprep.subr.bf16.mxu1 %v21748_v13  ;;  %v12144_v13 = vadd.f32 %v12143_v22, %v10642_v28  ;;  %v21901_v22 = vld [vmem:[#allocation2 + $0x58] sm:$0xff] }
0x167c   : > { %12400 = vmatmul.mubr.bf16.vlgmr.msra.gmra.mxu1 %v25553_v45  ;;  %v21760_v45 = vld [vmem:[%s23771_s22 + $0x6a4] ss:$24 sps:$4 sm:$0xff]  }
0x167d   : > { %12454 = vmatpush1.bf16.msra.mxu1 %v21746_v27  ;;  %12485 = vmatprep.mubr.bf16.mxu1 %v25636_v47  ;;  %v21763_v47 = vld [vmem:[%s23771_s22 + $0x674] ss:$24 sps:$4 sm:$0xff]   ;;  %v12273_v27 = vadd.f32 %v12272_v2, %v10650_v52 }
0x167e   : > { %12455 = vmatprep.subr.bf16.mxu1 %v21751_v24  ;;  %v10654_v24 = vrot.slane %v10637_v63, %v24353_v30 }
0x1681   : > { %12456 = vmatpush1.bf16.msra.mxu1 %v21749_v44 }
0x1682   : > { %12457 = vmatprep.subr.bf16.mxu1 %v21754_v29  ;;  %v12150_v29 = vadd.f32 %v12149_v48, %v10646_v34 }
0x1685   : > { %12458 = vmatpush1.bf16.msra.mxu1 %v21752_v7  ;;  %v12189_v7 = vadd.f32 %v12188_v50, %v12146_v14 }
0x1686   : > { %12459 = vmatprep.subr.bf16.mxu1 %v21757_v8 }
0x1689   : > { %12460 = vmatpush1.bf16.msra.mxu1 %v21755_v21 }
0x168a   : > { %12461 = vmatprep.subr.bf16.mxu1 %v21760_v45 }
0x168d   : > { %12462 = vmatpush1.bf16.msra.mxu1 %v21758_v41  ;;  %v12187_v41 = vadd.f32 %v12186_v15, %v12144_v13 }
0x168e   : > { %12463 = vmatprep.subr.bf16.mxu1 %v21763_v47  ;;  %v12148_v47 = vadd.f32 %v12147_v20, %v10642_v28 }
0x1691   : > { %12464 = vmatpush1.bf16.msra.mxu1 %v21761_v6  ;;  %v12275_v6 = vadd.f32 %v12274_v53, %v10654_v24 }
0x1692   : > { %12465 = vmatprep.subr.bf16.mxu1 %v21766_v19  ;;  %v12277_v19 = vadd.f32 %v12276_v42, %v10650_v52 }
0x1695   : > { %12466 = vmatpush1.bf16.msra.mxu1 %v21764_v57 }
0x1696   : > { %12467 = vmatprep.subr.bf16.mxu1 %v21769_v37 }
0x1699   : > { %12468 = vmatpush1.bf16.msra.mxu1 %v21767_v38  ;;  %v12193_v38 = vadd.f32 %v12192_v17, %v12150_v29 }
0x169a   : > { %12469 = vmatprep.subr.bf16.mxu1 %v21772_v46 }
0x169d   : > { %12470 = vmatpush2.bf16.msra.mxu1 %v21770_v0 }
0x169e   : > { %12471 = vmatprep.subr.bf16.mxu1 %v21775_v40 }
0x16a1   : > { %12472 = vmatpush2.bf16.msra.mxu1 %v21773_v26 }
0x16a2   : > { %12473 = vmatprep.subr.bf16.mxu1 %v21778_v18 }
0x16a5   : > { %12474 = vmatpush2.bf16.msra.mxu1 %v21776_v51  ;;  %v10658_v51 = vrot.slane %v10637_v63, %v24443_v43 }
0x16a6   : > { %12475 = vmatprep.subr.bf16.mxu1 %v21781_v55  ;;  %v21899_v55 = vld [vmem:[#allocation2] sm:$0xff] }
0x16a9   : > { %12476 = vmatpush2.bf16.msra.mxu1 %v21779_v59 }
0x16aa   : > { %12477 = vmatprep.subr.bf16.mxu1 %v21784_v1  ;;  %v12191_v1 = vadd.f32 %v12190_v61, %v12148_v47 }
0x16ad   : > { %12478 = vmatpush2.bf16.msra.mxu1 %v21782_v33 }
0x16ae   : > { %12479 = vmatprep.subr.bf16.mxu1 %v21787_v9 }
0x16b1   : > { %12480 = vmatpush2.bf16.msra.mxu1 %v21785_v11 }
0x16b2   : > { %12481 = vmatprep.subr.bf16.mxu1 %v21790_v60  ;;  %v21900_v60 = vld [vmem:[#allocation2 + $0x30] sm:$0xff] }
0x16b5   : > { %12482 = vmatpush2.bf16.msra.mxu1 %v21788_v3 }
0x16b6   : > { %12483 = vmatprep.subr.bf16.mxu1 %v21793_v62  ;;  %v10662_v62 = vrot.slane %v10637_v63, %v24450_v25  ;;  %v21905_v63 = vld [vmem:[#allocation2 + $0x28] sm:$0xff] }
0x16b9   : > { %12484 = vmatpush2.bf16.msra.mxu1 %v21791_v31 }
0x16bc   : > { %12486 = vmatmul.mubr.bf16.vlgmr.msra.gmra.mxu1 %v25642_v12  ;;  %v12229_v32 = vpop.f32.mrf.mxu1  ;;  %v12278_v12 = vpop.f32.mrf.mxu0 }
0x16bd   : > { %v12230_v37 = vadd.f32 %v12229_v32, %v12187_v41  ;;  %v12279_v11 = vadd.f32 %v12278_v12, %v10654_v24  ;;  %v21904_v12 = vld [vmem:[#allocation2 + $0x18] sm:$0xff] }
0x16be   : > { %v12231_v39 = vpop.f32.mrf.mxu1  ;;  %v12358_v56 = vpop.f32.mrf.mxu0 }
0x16bf   : > { %v12232_v57 = vadd.f32 %v12231_v39, %v12189_v7  ;;  %v12496_v3 = vadd.f32 %v21900_v60, %v12230_v37  ;;  %v21902_v39 = vld [vmem:[#allocation2 + $0x38] sm:$0xff]  ;;  %v21908_v37 = vld [vmem:[#allocation2 + $0x20] sm:$0xff] }
0x16c0   : > { %v12233_v16 = vpop.f32.mrf.mxu1  ;;  %v12360_v35 = vpop.f32.mrf.mxu0 }
0x16c1   : > { %v25785_v59 = vadd.f32 %v21899_v55, %v12232_v57  ;;  %v12234_v31 = vadd.f32 %v12233_v16, %v12191_v1 }
0x16c2   : > { %v12235_v10 = vpop.f32.mrf.mxu1  ;;  %v12362_v8 = vpop.f32.mrf.mxu0 }
0x16c3   : > { %v12236_v33 = vadd.f32 %v12235_v10, %v12193_v38  ;;  %v12510_v17 = vadd.f32 %v25785_v59, %v12496_v3  ;;  %v21903_v10 = vld [vmem:[#allocation2 + $0x8] sm:$0xff] }
0x16c4   : > { %v12364_v46 = vpop.f32.mrf.mxu0  ;;  %v12502_v42 = vadd.f32 %v21903_v10, %v12234_v31 }
0x16c5   : > { %v12503_v2 = vadd.f32 %v21902_v39, %v12236_v33 }
0x16fc   : > { %v12315_v4 = vpop.f32.mrf.mxu1  ;;  %v12444_v9 = vpop.f32.mrf.mxu0 }
0x16fd   : > { %v12316_v21 = vadd.f32 %v12315_v4, %v12273_v27 }
0x16fe   : > { %v12317_v36 = vpop.f32.mrf.mxu1  ;;  %v12446_v61 = vpop.f32.mrf.mxu0 }
0x16ff   : > { %v12359_v0 = vadd.f32 %v12358_v56, %v12316_v21  ;;  %v12318_v40 = vadd.f32 %v12317_v36, %v12275_v6 }
0x1700   : > { %v12319_v5 = vpop.f32.mrf.mxu1  ;;  %v12448_v14 = vpop.f32.mrf.mxu0 }
0x1701   : > { %v12320_v26 = vadd.f32 %v12319_v5, %v12277_v19  ;;  %v12498_v54 = vadd.f32 %v21901_v22, %v12359_v0  ;;  %v12361_v15 = vadd.f32 %v12360_v35, %v12318_v40  ;;  %v12517_v5 = vadd.f32 %v12503_v2, %v12502_v42 }
0x1702   : > { %v12321_v44 = vpop.f32.mrf.mxu1  ;;  %v12450_v19 = vpop.f32.mrf.mxu0 }
0x1703   : > { %v12363_v20 = vadd.f32 %v12362_v8, %v12320_v26  ;;  %v12322_v48 = vadd.f32 %v12321_v44, %v12279_v11  ;;  %v12511_v4 = vadd.f32 %v12510_v17, %v12498_v54  ;;  %v12499_v36 = vadd.f32 %v21904_v12, %v12361_v15  ;;  %v21906_v8 = vld [vmem:[#allocation2 + $0x48] sm:$0xff] }
0x1705   : > { %v12504_v16 = vadd.f32 %v21905_v63, %v12363_v20  ;;  %v12365_v56 = vadd.f32 %v12364_v46, %v12322_v48  ;;  %v12512_v7 = vadd.f32 %v12511_v4, %v12499_v36 }
0x1707   : > { %v12518_v44 = vadd.f32 %v12517_v5, %v12504_v16  ;;  %v12505_v21 = vadd.f32 %v21906_v8, %v12365_v56 }
0x1709   : > { %v12519_v33 = vadd.f32 %v12518_v44, %v12505_v21 }
0x173c   : > { %v12401_v45 = vpop.f32.mrf.mxu1 }
0x173d   : > { %v12402_v32 = vadd.f32 %v12401_v45, %v10658_v51  ;;  %v21907_v45 = vld [vmem:[#allocation2 + $0x50] sm:$0xff] }
0x173e   : > { %v12403_v18 = vpop.f32.mrf.mxu1 }
0x173f   : > { %v12404_v53 = vadd.f32 %v12403_v18, %v10662_v62  ;;  %v12445_v52 = vadd.f32 %v12444_v9, %v12402_v32  ;;  %v21909_v18 = vld [vmem:[#allocation2 + $0x10] sm:$0xff]  ;;  %v21910_v9 = vld [vmem:[#allocation2 + $0x40] sm:$0xff] }
0x1740   : > { %v12405_v50 = vpop.f32.mrf.mxu1 }
0x1741   : > { %v12406_v28 = vadd.f32 %v12405_v50, %v10658_v51  ;;  %v12447_v24 = vadd.f32 %v12446_v61, %v12404_v53 }
0x1742   : > { %v12407_v34 = vpop.f32.mrf.mxu1 }
0x1743   : > { %v12408_v13 = vadd.f32 %v12407_v34, %v10662_v62  ;;  %v12449_v6 = vadd.f32 %v12448_v14, %v12406_v28 }
0x1745   : > { %v12451_v0 = vadd.f32 %v12450_v19, %v12408_v13 }
0x177c   : > { %v12487_v35 = vpop.f32.mrf.mxu1 }
0x177d   : > { %v12488_v27 = vadd.f32 %v12487_v35, %v12445_v52 }
0x177e   : > { %v12489_v29 = vpop.f32.mrf.mxu1 }
0x177f   : > { %v12500_v41 = vadd.f32 %v21907_v45, %v12488_v27  ;;  %v12490_v47 = vadd.f32 %v12489_v29, %v12447_v24 }
0x1780   : > { %v12491_v57 = vpop.f32.mrf.mxu1 }
0x1781   : > { %v12501_v38 = vadd.f32 %v21908_v37, %v12490_v47  ;;  %v12492_v46 = vadd.f32 %v12491_v57, %v12449_v6  ;;  %v12513_v40 = vadd.f32 %v12512_v7, %v12500_v41 }
0x1782   : > { %v12493_v26 = vpop.f32.mrf.mxu1 }
0x1783   : > { %v12506_v51 = vadd.f32 %v21909_v18, %v12492_v46  ;;  %v12494_v55 = vadd.f32 %v12493_v26, %v12451_v0  ;;  %v12514_v1 = vadd.f32 %v12513_v40, %v12501_v38  ;;  %v12508_v46 = vld [vmem:[%s890_s26] sm:$0x3f]  ;;  %v12509_v0 = vld [vmem:[%s899_s14] sm:$0x3f] }
0x1784   : > { %v12587_v40 = vrot.slane %v12508_v46, %v24256_v58  ;;  %v12591_v26 = vrot.slane %v12508_v46, %v24182_v49  ;;  %v12595_v18 = vrot.slane %v12508_v46, %v24348_v23 }
0x1785   : > { %v12507_v11 = vadd.f32 %v21910_v9, %v12494_v55  ;;  %12515 = vadd.xlane.f32.xlu0 %v12514_v1  ;;  %v12520_v60 = vadd.f32 %v12519_v33, %v12506_v51  ;;  %v12634_v55 = vrot.slane %v12509_v0, %v24182_v49  ;;  %v12599_v1 = vrot.slane %v12508_v46, %v24353_v30 }
0x1786   : > { %v12638_v9 = vrot.slane %v12509_v0, %v24348_v23  ;;  %v12646_v49 = vrot.slane %v12509_v0, %v24443_v43 }
0x1787   : > { %v12521_v62 = vadd.f32 %v12520_v60, %v12507_v11  ;;  %v12603_v60 = vrot.slane %v12508_v46, %v24443_v43 }
0x1789   : > { %12522 = vadd.xlane.f32.xlu1 %v12521_v62  ;;  %v12607_v62 = vrot.slane %v12508_v46, %v24450_v25 }
0x180e   : > { %v12516_v31 = vpop.xlane.xlu0 %12515 }
0x180f   : > { %v12525_v22 = vmul.f32 0.0013020834, %v12516_v31 }
0x1811   : > { %v25789_v15 = vsub.f32 %v12496_v3, %v12525_v22  ;;  %v25792_v20 = vsub.f32 %v25785_v59, %v12525_v22  ;;  %v25794_v50 = vsub.f32 %v12498_v54, %v12525_v22  ;;  %v25796_v32 = vsub.f32 %v12499_v36, %v12525_v22 }
0x1812   : > { %v12523_v48 = vpop.xlane.xlu1 %12522  ;;  %v25802_v53 = vsub.f32 %v12500_v41, %v12525_v22  ;;  %v25812_v12 = vsub.f32 %v12501_v38, %v12525_v22  ;;  %v23325_v41 = vmov 0.0  }
0x1813   : > { %v12526_v17 = vmul.f32 0.0013020834, %v12523_v48  ;;  %v12539_v39 = vmul.f32 %v25789_v15, %v25789_v15  ;;  %v12540_v61 = vmul.f32 %v25792_v20, %v25792_v20  ;;  %v12541_v3 = vmul.f32 %v25794_v50, %v25794_v50  ;;  %12681 = vst [vmem:[#allocation5 + $0x48] sm:$0xff] %v23325_v41  ;;  %12682 = vst [vmem:[#allocation5] sm:$0xff] %v23325_v41 }
0x1814   : > { %v12542_v36 = vmul.f32 %v25796_v32, %v25796_v32  ;;  %v12544_v14 = vmul.f32 %v25812_v12, %v25812_v12  ;;  %12683 = vst [vmem:[#allocation5 + $0x50] sm:$0xff] %v23325_v41  ;;  %12684 = vst [vmem:[#allocation5 + $0x30] sm:$0xff] %v23325_v41 }
0x1815   : > { %v12551_v10 = vadd.f32 %v12540_v61, %v12539_v39  ;;  %v25806_v59 = vsub.f32 %v12502_v42, %v12526_v17  ;;  %v25808_v54 = vsub.f32 %v12503_v2, %v12526_v17  ;;  %v25810_v4 = vsub.f32 %v12504_v16, %v12526_v17  ;;  %12685 = vst [vmem:[#allocation5 + $0x8] sm:$0xff] %v23325_v41 }
0x1816   : > { %v25816_v34 = vsub.f32 %v12505_v21, %v12526_v17  ;;  %v12543_v2 = vmul.f32 %v25802_v53, %v25802_v53  ;;  %v25824_v16 = vsub.f32 %v12506_v51, %v12526_v17  ;;  %v25830_v13 = vsub.f32 %v12507_v11, %v12526_v17  ;;  %12686 = vst [vmem:[#allocation5 + $0x20] sm:$0xff] %v23325_v41 }
0x1817   : > { %v12552_v63 = vadd.f32 %v12551_v10, %v12541_v3  ;;  %v12545_v56 = vmul.f32 %v25806_v59, %v25806_v59  ;;  %v12546_v28 = vmul.f32 %v25808_v54, %v25808_v54  ;;  %v12547_v52 = vmul.f32 %v25810_v4, %v25810_v4  ;;  %12687 = vst [vmem:[#allocation5 + $0x18] sm:$0xff] %v23325_v41 }
0x1818   : > { %v12548_v27 = vmul.f32 %v25816_v34, %v25816_v34  ;;  %v12549_v29 = vmul.f32 %v25824_v16, %v25824_v16  ;;  %v12550_v8 = vmul.f32 %v25830_v13, %v25830_v13  ;;  %12688 = vst [vmem:[#allocation5 + $0x40] sm:$0xff] %v23325_v41  ;;  %12689 = vst [vmem:[#allocation5 + $0x38] sm:$0xff] %v23325_v41 }
0x1819   : > { %v12553_v42 = vadd.f32 %v12552_v63, %v12542_v36  ;;  %v12558_v5 = vadd.f32 %v12546_v28, %v12545_v56  ;;  %12690 = vst [vmem:[#allocation5 + $0x28] sm:$0xff] %v23325_v41  ;;  %12691 = vst [vmem:[#allocation5 + $0x58] sm:$0xff] %v23325_v41  ;;  %v12630_v51 = vrot.slane %v12509_v0, %v24256_v58 }
0x181a   : > { %12692 = vst [vmem:[#allocation5 + $0x10] sm:$0xff] %v23325_v41  ;;  %v12642_v11 = vrot.slane %v12509_v0, %v24353_v30  ;;  %v12650_v17 = vrot.slane %v12509_v0, %v24450_v25 }
0x181b   : > { %v12554_v35 = vadd.f32 %v12553_v42, %v12543_v2  ;;  %v12559_v24 = vadd.f32 %v12558_v5, %v12547_v52 }
0x181d   : > { %v12555_v44 = vadd.f32 %v12554_v35, %v12544_v14  ;;  %v12560_v7 = vadd.f32 %v12559_v24, %v12548_v27 }
0x181f   : > { %12556 = vadd.xlane.f32.xlu0 %v12555_v44  ;;  %v12561_v21 = vadd.f32 %v12560_v7, %v12549_v29 }
0x1821   : > { %v12562_v45 = vadd.f32 %v12561_v21, %v12550_v8 }
0x1823   : > { %12563 = vadd.xlane.f32.xlu0 %v12562_v45 }
0x18a8   : > { %v12557_v47 = vpop.xlane.xlu0 %12556 }
0x18a9   : > { %v12565_v6 = vmul.f32 0.0013020834, %v12557_v47 }
0x18ab   : > { %v12567_v19 = vadd.f32 1e-12, %v12565_v6 }
0x18ac   : > { %v12564_v57 = vpop.xlane.xlu0 %12563 }
0x18ad   : > { %21890 = vrsqrt.f32 %v12567_v19  ;;  %v12566_v37 = vmul.f32 0.0013020834, %v12564_v57 }
0x18af   : > { %v12568_v38 = vadd.f32 1e-12, %v12566_v37 }
0x18b1   : > { %21892 = vrsqrt.f32 %v12568_v38 }
0x18ba   : > { %v21891_v33 = vpop.eup %21890 }
0x18bb   : > { %v12571_v31 = vmul.f32 %v21891_v33, %v25789_v15  ;;  %v12572_v22 = vmul.f32 %v21891_v33, %v25792_v20  ;;  %v12573_v48 = vmul.f32 %v21891_v33, %v25794_v50  ;;  %v12574_v58 = vmul.f32 %v21891_v33, %v25796_v32 }
0x18bc   : > { %v12575_v23 = vmul.f32 %v21891_v33, %v25802_v53  ;;  %v12576_v30 = vmul.f32 %v21891_v33, %v25812_v12 }
0x18bd   : > { %v12614_v39 = vmul.f32 %v12587_v40, %v12571_v31  ;;  %v12615_v61 = vmul.f32 %v12591_v26, %v12572_v22  ;;  %v12616_v3 = vmul.f32 %v12595_v18, %v12573_v48  ;;  %v12617_v10 = vmul.f32 %v12599_v1, %v12574_v58 }
0x18be   : > { %v21893_v36 = vpop.eup %21892  ;;  %v12618_v15 = vmul.f32 %v12603_v60, %v12575_v23  ;;  %v12619_v63 = vmul.f32 %v12607_v62, %v12576_v30 }
0x18bf   : > { %v12657_v20 = vadd.f32 %v12630_v51, %v12614_v39  ;;  %v12658_v56 = vadd.f32 %v12634_v55, %v12615_v61  ;;  %v12659_v50 = vadd.f32 %v12638_v9, %v12616_v3  ;;  %v12660_v28 = vadd.f32 %v12642_v11, %v12617_v10 }
0x18c0   : > { %v12661_v32 = vadd.f32 %v12646_v49, %v12618_v15  ;;  %v12662_v2 = vadd.f32 %v12650_v17, %v12619_v63  ;;  %v12577_v43 = vmul.f32 %v21893_v36, %v25806_v59  ;;  %v12578_v25 = vmul.f32 %v21893_v36, %v25808_v54 }
0x18c1   : > { %12669 = vst [vmem:[#allocation2 + $0x30] sm:$0xff] %v12657_v20  ;;  %12670 = vst [vmem:[#allocation2] sm:$0xff] %v12658_v56  ;;  %v12579_v53 = vmul.f32 %v21893_v36, %v25810_v4  ;;  %v12580_v12 = vmul.f32 %v21893_v36, %v25816_v34  ;;  %v12581_v42 = vmul.f32 %v21893_v36, %v25824_v16 }
0x18c2   : > { %12671 = vst [vmem:[#allocation2 + $0x58] sm:$0xff] %v12659_v50  ;;  %12672 = vst [vmem:[#allocation2 + $0x18] sm:$0xff] %v12660_v28  ;;  %v12582_v52 = vmul.f32 %v21893_v36, %v25830_v13  ;;  %v12620_v5 = vmul.f32 %v12587_v40, %v12577_v43  ;;  %v12621_v14 = vmul.f32 %v12591_v26, %v12578_v25 }
0x18c3   : > { %12673 = vst [vmem:[#allocation2 + $0x50] sm:$0xff] %v12661_v32  ;;  %12674 = vst [vmem:[#allocation2 + $0x20] sm:$0xff] %v12662_v2  ;;  %v12622_v35 = vmul.f32 %v12595_v18, %v12579_v53  ;;  %v12623_v59 = vmul.f32 %v12599_v1, %v12580_v12  ;;  %v12624_v27 = vmul.f32 %v12603_v60, %v12581_v42 }
0x18c4   : > { %v12625_v54 = vmul.f32 %v12607_v62, %v12582_v52  ;;  %v12663_v24 = vadd.f32 %v12630_v51, %v12620_v5  ;;  %v12664_v44 = vadd.f32 %v12634_v55, %v12621_v14 }
0x18c5   : > { %v12665_v29 = vadd.f32 %v12638_v9, %v12622_v35  ;;  %v12666_v7 = vadd.f32 %v12642_v11, %v12623_v59  ;;  %v12667_v8 = vadd.f32 %v12646_v49, %v12624_v27 }
0x18c6   : > { %v12668_v4 = vadd.f32 %v12650_v17, %v12625_v54  ;;  %12675 = vst [vmem:[#allocation2 + $0x8] sm:$0xff] %v12663_v24  ;;  %12676 = vst [vmem:[#allocation2 + $0x38] sm:$0xff] %v12664_v44 }
0x18c7   : > { %12677 = vst [vmem:[#allocation2 + $0x28] sm:$0xff] %v12665_v29  ;;  %12678 = vst [vmem:[#allocation2 + $0x48] sm:$0xff] %v12666_v7 }
0x18c8   : > { %12679 = vst [vmem:[#allocation2 + $0x10] sm:$0xff] %v12667_v8  ;;  %12680 = vst [vmem:[#allocation2 + $0x40] sm:$0xff] %v12668_v4 }
0x18c9 PF: > { %s26828_s22 = sld [smem:[#allocation33_spill]] }
0x18cf   : > { %p19035_p11 = scmp.le.s32.totalorder %s26828_s22, 0 }
0x18d1   : > { %12696 = sbr.rel (%p19035_p11) target bundleno = 7309 (0x1c8d), region = 164 }
0x18d6   : > { %v21911_v34 = vld [vmem:[%s23776_s24 + $0x154] ss:$24 sps:$4 sm:$0xff]   ;;  %v21913_v16 = vld [vmem:[%s23776_s24 + $0x150] ss:$24 sps:$4 sm:$0xff]   ;;  %v21917_v45 = vld [vmem:[%s23776_s24 + $0x124] ss:$24 sps:$4 sm:$0xff]  }
0x18d7   : > { %14475 = vmatprep.subr.bf16.mxu0 %v21911_v34  ;;  %v21914_v13 = vld [vmem:[%s23776_s24 + $0x454] ss:$24 sps:$4 sm:$0xff]   ;;  %v21916_v21 = vld [vmem:[%s23776_s24 + $0x450] ss:$24 sps:$4 sm:$0xff]   ;;  %v21919_v41 = vld [vmem:[%s23776_s24 + $0x120] ss:$24 sps:$4 sm:$0xff]  }
0x18d8   : > { %14476 = vmatpush1.bf16.msra.mxu0 %v21913_v16  ;;  %14518 = vmatprep.subr.bf16.mxu1 %v21914_v13  ;;  %v21920_v47 = vld [vmem:[%s23776_s24 + $0x424] ss:$24 sps:$4 sm:$0xff]   ;;  %v21922_v6 = vld [vmem:[%s23776_s24 + $0x420] ss:$24 sps:$4 sm:$0xff]   ;;  %v21923_v19 = vld [vmem:[%s23776_s24 + $0xf4] ss:$24 sps:$4 sm:$0xff]  }
0x18d9   : > { %14519 = vmatpush1.bf16.msra.mxu1 %v21916_v21  ;;  %14477 = vmatprep.subr.bf16.mxu0 %v21917_v45  ;;  %v21925_v57 = vld [vmem:[%s23776_s24 + $0xf0] ss:$24 sps:$4 sm:$0xff]   ;;  %v21926_v37 = vld [vmem:[%s23776_s24 + $0x3f4] ss:$24 sps:$4 sm:$0xff]   ;;  %v21929_v38 = vld [vmem:[%s23776_s24 + $0xc4] ss:$24 sps:$4 sm:$0xff]  }
0x18da   : > { %14520 = vmatprep.subr.bf16.mxu1 %v21920_v47  ;;  %v21928_v46 = vld [vmem:[%s23776_s24 + $0x3f0] ss:$24 sps:$4 sm:$0xff]   ;;  %v21932_v0 = vld [vmem:[%s23776_s24 + $0x3c4] ss:$24 sps:$4 sm:$0xff]   ;;  %v21931_v40 = vld [vmem:[%s23776_s24 + $0xc0] ss:$24 sps:$4 sm:$0xff]  }
0x18db   : > { %v21935_v26 = vld [vmem:[%s23776_s24 + $0x94] ss:$24 sps:$4 sm:$0xff]   ;;  %v21934_v18 = vld [vmem:[%s23776_s24 + $0x3c0] ss:$24 sps:$4 sm:$0xff]   ;;  %v21937_v55 = vld [vmem:[%s23776_s24 + $0x90] ss:$24 sps:$4 sm:$0xff]  }
0x18dc   : > { %14478 = vmatpush1.bf16.msra.mxu0 %v21919_v41  ;;  %v21938_v51 = vld [vmem:[%s23776_s24 + $0x394] ss:$24 sps:$4 sm:$0xff]   ;;  %v21941_v1 = vld [vmem:[%s23776_s24 + $0x64] ss:$24 sps:$4 sm:$0xff]   ;;  %v21940_v33 = vld [vmem:[%s23776_s24 + $0x390] ss:$24 sps:$4 sm:$0xff]  }
0x18dd   : > { %14479 = vmatprep.subr.bf16.mxu0 %v21923_v19  ;;  %14521 = vmatpush1.bf16.msra.mxu1 %v21922_v6  ;;  %v21944_v9 = vld [vmem:[%s23776_s24 + $0x364] ss:$24 sps:$4 sm:$0xff]   ;;  %v21943_v11 = vld [vmem:[%s23776_s24 + $0x60] ss:$24 sps:$4 sm:$0xff]   ;;  %v21947_v60 = vld [vmem:[%s23776_s24 + $0x34] ss:$24 sps:$4 sm:$0xff]  }
0x18de   : > { %14522 = vmatprep.subr.bf16.mxu1 %v21926_v37  ;;  %v21946_v62 = vld [vmem:[%s23776_s24 + $0x360] ss:$24 sps:$4 sm:$0xff]   ;;  %v21950_v31 = vld [vmem:[%s23776_s24 + $0x334] ss:$24 sps:$4 sm:$0xff]   ;;  %v21949_v22 = vld [vmem:[%s23776_s24 + $0x30] ss:$24 sps:$4 sm:$0xff]  }
0x18df   : > { %v21953_v48 = vld [vmem:[%s23776_s24 + $0x4] ss:$24 sps:$4 sm:$0xff]   ;;  %v21952_v58 = vld [vmem:[%s23776_s24 + $0x330] ss:$24 sps:$4 sm:$0xff]   ;;  %v21955_v17 = vld [vmem:[%s23776_s24] ss:$24 sps:$4 sm:$0xff]  }
0x18e0   : > { %14480 = vmatpush1.bf16.msra.mxu0 %v21925_v57  ;;  %v21956_v49 = vld [vmem:[%s23776_s24 + $0x304] ss:$24 sps:$4 sm:$0xff]   ;;  %v21959_v23 = vld [vmem:[%s23776_s24 + $0x2d4] ss:$24 sps:$4 sm:$0xff]   ;;  %v21958_v30 = vld [vmem:[%s23776_s24 + $0x300] ss:$24 sps:$4 sm:$0xff]  }
0x18e1   : > { %14481 = vmatprep.subr.bf16.mxu0 %v21929_v38  ;;  %14523 = vmatpush1.bf16.msra.mxu1 %v21928_v46  ;;  %v21962_v39 = vld [vmem:[%s23776_s24 + $0x5d4] ss:$24 sps:$4 sm:$0xff]   ;;  %v21961_v61 = vld [vmem:[%s23776_s24 + $0x2d0] ss:$24 sps:$4 sm:$0xff]   ;;  %v21965_v3 = vld [vmem:[%s23776_s24 + $0x2a4] ss:$24 sps:$4 sm:$0xff]  }
0x18e2   : > { %14524 = vmatprep.subr.bf16.mxu1 %v21932_v0  ;;  %v21964_v10 = vld [vmem:[%s23776_s24 + $0x5d0] ss:$24 sps:$4 sm:$0xff]   ;;  %v21968_v36 = vld [vmem:[%s23776_s24 + $0x5a4] ss:$24 sps:$4 sm:$0xff]   ;;  %v21967_v15 = vld [vmem:[%s23776_s24 + $0x2a0] ss:$24 sps:$4 sm:$0xff]  }
0x18e3   : > { %v21971_v63 = vld [vmem:[%s23776_s24 + $0x274] ss:$24 sps:$4 sm:$0xff]   ;;  %v21970_v20 = vld [vmem:[%s23776_s24 + $0x5a0] ss:$24 sps:$4 sm:$0xff]   ;;  %v21973_v50 = vld [vmem:[%s23776_s24 + $0x270] ss:$24 sps:$4 sm:$0xff]  }
0x18e4   : > { %14482 = vmatpush1.bf16.msra.mxu0 %v21931_v40  ;;  %v21974_v56 = vld [vmem:[%s23776_s24 + $0x574] ss:$24 sps:$4 sm:$0xff]   ;;  %v21977_v28 = vld [vmem:[%s23776_s24 + $0x244] ss:$24 sps:$4 sm:$0xff]   ;;  %v21976_v32 = vld [vmem:[%s23776_s24 + $0x570] ss:$24 sps:$4 sm:$0xff]  }
0x18e5   : > { %14483 = vmatprep.subr.bf16.mxu0 %v21935_v26  ;;  %14525 = vmatpush1.bf16.msra.mxu1 %v21934_v18  ;;  %v21980_v2 = vld [vmem:[%s23776_s24 + $0x544] ss:$24 sps:$4 sm:$0xff]   ;;  %v12698_v43 = vld [vmem:[#allocation2] sm:$0xff]  ;;  %v21979_v53 = vld [vmem:[%s23776_s24 + $0x240] ss:$24 sps:$4 sm:$0xff]  }
0x18e6   : > { %14526 = vmatprep.subr.bf16.mxu1 %v21938_v51  ;;  %v12704_v25 = vld [vmem:[#allocation2 + $0x38] sm:$0xff]  ;;  %v21983_v42 = vld [vmem:[%s23776_s24 + $0x214] ss:$24 sps:$4 sm:$0xff]   ;;  %v12697_v41 = vld [vmem:[#allocation2 + $0x30] sm:$0xff] }
0x18e7   : > { %v25914_v12 = vpack.c.bf16 %v12704_v25, %v12698_v43  ;;  %v21982_v52 = vld [vmem:[%s23776_s24 + $0x540] ss:$24 sps:$4 sm:$0xff]   ;;  %v21986_v35 = vld [vmem:[%s23776_s24 + $0x514] ss:$24 sps:$4 sm:$0xff]   ;;  %v21985_v27 = vld [vmem:[%s23776_s24 + $0x210] ss:$24 sps:$4 sm:$0xff]  }
0x18e8   : > { %14484 = vmatpush1.bf16.msra.mxu0 %v21937_v55  ;;  %v12700_v5 = vld [vmem:[#allocation2 + $0x18] sm:$0xff]  ;;  %v12706_v14 = vld [vmem:[#allocation2 + $0x48] sm:$0xff] }
0x18e9   : > { %14485 = vmatprep.subr.bf16.mxu0 %v21941_v1  ;;  %14527 = vmatpush1.bf16.msra.mxu1 %v21940_v33  ;;  %v25920_v59 = vpack.c.bf16 %v12706_v14, %v12700_v5  ;;  %v21989_v54 = vld [vmem:[%s23776_s24 + $0x1e4] ss:$24 sps:$4 sm:$0xff]   ;;  %v21988_v24 = vld [vmem:[%s23776_s24 + $0x510] ss:$24 sps:$4 sm:$0xff]   ;;  %v21991_v29 = vld [vmem:[%s23776_s24 + $0x1e0] ss:$24 sps:$4 sm:$0xff]  }
0x18ea   : > { %14528 = vmatprep.subr.bf16.mxu1 %v21944_v9  ;;  %14507 = vmatprep.mubr.bf16.mxu0 %v25914_v12  ;;  %v21992_v44 = vld [vmem:[%s23776_s24 + $0x4e4] ss:$24 sps:$4 sm:$0xff]   ;;  %v21995_v7 = vld [vmem:[%s23776_s24 + $0x1b4] ss:$24 sps:$4 sm:$0xff]   ;;  %v21994_v8 = vld [vmem:[%s23776_s24 + $0x4e0] ss:$24 sps:$4 sm:$0xff]  }
0x18eb   : > { %14550 = vmatprep.mubr.bf16.mxu1 %v25920_v59  ;;  %v21998_v4 = vld [vmem:[%s23776_s24 + $0x4b4] ss:$24 sps:$4 sm:$0xff]   ;;  %v21997_v34 = vld [vmem:[%s23776_s24 + $0x1b0] ss:$24 sps:$4 sm:$0xff]   ;;  %v22001_v13 = vld [vmem:[%s23776_s24 + $0x184] ss:$24 sps:$4 sm:$0xff]  }
0x18ec   : > { %14486 = vmatpush1.bf16.msra.mxu0 %v21943_v11  ;;  %v22000_v16 = vld [vmem:[%s23776_s24 + $0x4b0] ss:$24 sps:$4 sm:$0xff]   ;;  %v22003_v21 = vld [vmem:[%s23776_s24 + $0x180] ss:$24 sps:$4 sm:$0xff]   ;;  %v22004_v45 = vld [vmem:[%s23776_s24 + $0x484] ss:$24 sps:$4 sm:$0xff]  }
0x18ed   : > { %14487 = vmatprep.subr.bf16.mxu0 %v21947_v60  ;;  %14529 = vmatpush1.bf16.msra.mxu1 %v21946_v62  ;;  %v22006_v47 = vld [vmem:[%s23776_s24 + $0x480] ss:$24 sps:$4 sm:$0xff]   ;;  %v22009_v19 = vld [vmem:[%s23776_s24 + $0x754] ss:$24 sps:$4 sm:$0xff]   ;;  %v22007_v0 = vld [vmem:[%s23776_s24 + $0x750] ss:$24 sps:$4 sm:$0xff]  }
0x18ee   : > { %14530 = vmatprep.subr.bf16.mxu1 %v21950_v31  ;;  %v12703_v6 = vld [vmem:[#allocation2 + $0x8] sm:$0xff]  ;;  %v12699_v57 = vld [vmem:[#allocation2 + $0x58] sm:$0xff] }
0x18ef   : > { %v12705_v37 = vld [vmem:[#allocation2 + $0x28] sm:$0xff]  ;;  %v25938_v38 = vpack.c.bf16 %v12703_v6, %v12697_v41  ;;  %v22015_v26 = vld [vmem:[%s23776_s24 + $0x724] ss:$24 sps:$4 sm:$0xff]   ;;  %v22016_v33 = vld [vmem:[%s23776_s24 + $0x128] ss:$24 sps:$4 sm:$0xff]  }
0x18f0   : > { %14488 = vmatpush1.bf16.msra.mxu0 %v21949_v22  ;;  %v22012_v46 = vld [vmem:[%s23776_s24 + $0x15c] ss:$24 sps:$4 sm:$0xff]   ;;  %v25942_v40 = vpack.c.bf16 %v12705_v37, %v12699_v57  ;;  %v22010_v18 = vld [vmem:[%s23776_s24 + $0x158] ss:$24 sps:$4 sm:$0xff]   ;;  %v22018_v51 = vld [vmem:[%s23776_s24 + $0x12c] ss:$24 sps:$4 sm:$0xff]  }
0x18f1   : > { %14489 = vmatprep.subr.bf16.mxu0 %v21953_v48  ;;  %14531 = vmatpush1.bf16.msra.mxu1 %v21952_v58  ;;  %v22013_v55 = vld [vmem:[%s23776_s24 + $0x720] ss:$24 sps:$4 sm:$0xff]   ;;  %v22021_v1 = vld [vmem:[%s23776_s24 + $0x6f4] ss:$24 sps:$4 sm:$0xff]   ;;  %v22019_v11 = vld [vmem:[%s23776_s24 + $0x6f0] ss:$24 sps:$4 sm:$0xff]  }
0x18f2   : > { %14532 = vmatprep.subr.bf16.mxu1 %v21956_v49  ;;  %v22024_v9 = vld [vmem:[%s23776_s24 + $0xfc] ss:$24 sps:$4 sm:$0xff]   ;;  %v22022_v62 = vld [vmem:[%s23776_s24 + $0xf8] ss:$24 sps:$4 sm:$0xff]   ;;  %v22030_v31 = vld [vmem:[%s23776_s24 + $0xcc] ss:$24 sps:$4 sm:$0xff]  }
0x18f3   : > { %v22027_v60 = vld [vmem:[%s23776_s24 + $0x6c4] ss:$24 sps:$4 sm:$0xff]   ;;  %v22025_v22 = vld [vmem:[%s23776_s24 + $0x6c0] ss:$24 sps:$4 sm:$0xff]   ;;  %v22033_v48 = vld [vmem:[%s23776_s24 + $0x694] ss:$24 sps:$4 sm:$0xff]  }
0x18f4   : > { %14490 = vmatpush1.bf16.msra.mxu0 %v21955_v17  ;;  %v22028_v58 = vld [vmem:[%s23776_s24 + $0xc8] ss:$24 sps:$4 sm:$0xff]   ;;  %v22036_v49 = vld [vmem:[%s23776_s24 + $0x9c] ss:$24 sps:$4 sm:$0xff]   ;;  %v22058_v5 = vld [vmem:[%s23776_s24 + $0x2d8] ss:$24 sps:$4 sm:$0xff]  }
0x18f5   : > { %14491 = vmatprep.subr.bf16.mxu0 %v21959_v23  ;;  %14533 = vmatpush1.bf16.msra.mxu1 %v21958_v30  ;;  %v22031_v17 = vld [vmem:[%s23776_s24 + $0x690] ss:$24 sps:$4 sm:$0xff]   ;;  %v22039_v23 = vld [vmem:[%s23776_s24 + $0x664] ss:$24 sps:$4 sm:$0xff]   ;;  %v22057_v43 = vld [vmem:[%s23776_s24 + $0x8d4] ss:$24 sps:$4 sm:$0xff]  }
0x18f6   : > { %14534 = vmatprep.subr.bf16.mxu1 %v21962_v39  ;;  %v22034_v30 = vld [vmem:[%s23776_s24 + $0x98] ss:$24 sps:$4 sm:$0xff]   ;;  %v22042_v39 = vld [vmem:[%s23776_s24 + $0x6c] ss:$24 sps:$4 sm:$0xff]   ;;  %v22052_v25 = vld [vmem:[%s23776_s24 + $0x8] ss:$24 sps:$4 sm:$0xff]  }
0x18f7   : > { %v22066_v14 = vld [vmem:[%s23776_s24 + $0x2ac] ss:$24 sps:$4 sm:$0xff]   ;;  %v22082_v41 = vld [vmem:[%s23776_s24 + $0x218] ss:$24 sps:$4 sm:$0xff]   ;;  %v22088_v57 = vld [vmem:[%s23776_s24 + $0x1e8] ss:$24 sps:$4 sm:$0xff]  }
0x18f8   : > { %14492 = vmatpush2.bf16.msra.mxu0 %v21961_v61  ;;  %v22037_v61 = vld [vmem:[%s23776_s24 + $0x660] ss:$24 sps:$4 sm:$0xff]   ;;  %v22096_v37 = vld [vmem:[%s23776_s24 + $0x1bc] ss:$24 sps:$4 sm:$0xff]  }
0x18f9   : > { %14493 = vmatprep.subr.bf16.mxu0 %v21965_v3  ;;  %14535 = vmatpush2.bf16.msra.mxu1 %v21964_v10  ;;  %v22045_v3 = vld [vmem:[%s23776_s24 + $0x634] ss:$24 sps:$4 sm:$0xff]   ;;  %v22040_v10 = vld [vmem:[%s23776_s24 + $0x68] ss:$24 sps:$4 sm:$0xff]  }
0x18fa   : > { %14536 = vmatprep.subr.bf16.mxu1 %v21968_v36  ;;  %v22048_v36 = vld [vmem:[%s23776_s24 + $0x3c] ss:$24 sps:$4 sm:$0xff]   ;;  %v22085_v6 = vld [vmem:[%s23776_s24 + $0x7e0] ss:$24 sps:$4 sm:$0xff]  }
0x18fc   : > { %14494 = vmatpush2.bf16.msra.mxu0 %v21967_v15  ;;  %v22043_v15 = vld [vmem:[%s23776_s24 + $0x630] ss:$24 sps:$4 sm:$0xff]  }
0x18fd   : > { %14495 = vmatprep.subr.bf16.mxu0 %v21971_v63  ;;  %14537 = vmatpush2.bf16.msra.mxu1 %v21970_v20  ;;  %v22051_v63 = vld [vmem:[%s23776_s24 + $0x604] ss:$24 sps:$4 sm:$0xff]   ;;  %v12702_v20 = vld [vmem:[#allocation2 + $0x20] sm:$0xff] }
0x18fe   : > { %14538 = vmatprep.subr.bf16.mxu1 %v21974_v56  ;;  %v12708_v56 = vld [vmem:[#allocation2 + $0x40] sm:$0xff] }
0x1900   : > { %14496 = vmatpush2.bf16.msra.mxu0 %v21973_v50  ;;  %v22046_v50 = vld [vmem:[%s23776_s24 + $0x38] ss:$24 sps:$4 sm:$0xff]  }
0x1901   : > { %14497 = vmatprep.subr.bf16.mxu0 %v21977_v28  ;;  %14539 = vmatpush2.bf16.msra.mxu1 %v21976_v32  ;;  %v25973_v28 = vpack.c.bf16 %v12708_v56, %v12702_v20  ;;  %v22054_v32 = vld [vmem:[%s23776_s24 + $0xc] ss:$24 sps:$4 sm:$0xff]   ;;  %v22127_v20 = vld [vmem:[%s23776_s24 + $0x398] ss:$24 sps:$4 sm:$0xff]  }
0x1902   : > { %14540 = vmatprep.subr.bf16.mxu1 %v21980_v2  ;;  %v22049_v2 = vld [vmem:[%s23776_s24 + $0x600] ss:$24 sps:$4 sm:$0xff]   ;;  %v22135_v56 = vld [vmem:[%s23776_s24 + $0x36c] ss:$24 sps:$4 sm:$0xff]  }
0x1904   : > { %14498 = vmatpush2.bf16.msra.mxu0 %v21979_v53  ;;  %v22060_v53 = vld [vmem:[%s23776_s24 + $0x2dc] ss:$24 sps:$4 sm:$0xff]  }
0x1905   : > { %14499 = vmatprep.subr.bf16.mxu0 %v21983_v42  ;;  %14541 = vmatpush2.bf16.msra.mxu1 %v21982_v52  ;;  %v22055_v42 = vld [vmem:[%s23776_s24 + $0x8d0] ss:$24 sps:$4 sm:$0xff]   ;;  %v22063_v52 = vld [vmem:[%s23776_s24 + $0x8a4] ss:$24 sps:$4 sm:$0xff]  }
0x1906   : > { %14542 = vmatprep.subr.bf16.mxu1 %v21986_v35  ;;  %v22061_v35 = vld [vmem:[%s23776_s24 + $0x8a0] ss:$24 sps:$4 sm:$0xff]  }
0x1908   : > { %14500 = vmatpush2.bf16.msra.mxu0 %v21985_v27  ;;  %v22069_v27 = vld [vmem:[%s23776_s24 + $0x874] ss:$24 sps:$4 sm:$0xff]  }
0x1909   : > { %14501 = vmatprep.subr.bf16.mxu0 %v21989_v54  ;;  %14543 = vmatpush2.bf16.msra.mxu1 %v21988_v24  ;;  %v22064_v54 = vld [vmem:[%s23776_s24 + $0x2a8] ss:$24 sps:$4 sm:$0xff]   ;;  %v22072_v24 = vld [vmem:[%s23776_s24 + $0x27c] ss:$24 sps:$4 sm:$0xff]  }
0x190a   : > { %14544 = vmatprep.subr.bf16.mxu1 %v21992_v44  ;;  %v22067_v44 = vld [vmem:[%s23776_s24 + $0x870] ss:$24 sps:$4 sm:$0xff]  }
0x190c   : > { %14502 = vmatpush2.bf16.msra.mxu0 %v21991_v29  ;;  %v22075_v29 = vld [vmem:[%s23776_s24 + $0x844] ss:$24 sps:$4 sm:$0xff]  }
0x190d   : > { %14503 = vmatprep.subr.bf16.mxu0 %v21995_v7  ;;  %14545 = vmatpush2.bf16.msra.mxu1 %v21994_v8  ;;  %v22070_v7 = vld [vmem:[%s23776_s24 + $0x278] ss:$24 sps:$4 sm:$0xff]   ;;  %v22078_v8 = vld [vmem:[%s23776_s24 + $0x24c] ss:$24 sps:$4 sm:$0xff]  }
0x190e   : > { %14546 = vmatprep.subr.bf16.mxu1 %v21998_v4  ;;  %v22073_v4 = vld [vmem:[%s23776_s24 + $0x840] ss:$24 sps:$4 sm:$0xff]  }
0x1910   : > { %14504 = vmatpush2.bf16.msra.mxu0 %v21997_v34  ;;  %v22081_v34 = vld [vmem:[%s23776_s24 + $0x814] ss:$24 sps:$4 sm:$0xff]  }
0x1911   : > { %14505 = vmatprep.subr.bf16.mxu0 %v22001_v13  ;;  %14547 = vmatpush2.bf16.msra.mxu1 %v22000_v16  ;;  %v22076_v16 = vld [vmem:[%s23776_s24 + $0x248] ss:$24 sps:$4 sm:$0xff]   ;;  %v22084_v13 = vld [vmem:[%s23776_s24 + $0x21c] ss:$24 sps:$4 sm:$0xff]  }
0x1912   : > { %14548 = vmatprep.subr.bf16.mxu1 %v22004_v45  ;;  %v22087_v45 = vld [vmem:[%s23776_s24 + $0x7e4] ss:$24 sps:$4 sm:$0xff]  }
0x1914   : > { %14506 = vmatpush2.bf16.msra.mxu0 %v22003_v21  ;;  %v22079_v21 = vld [vmem:[%s23776_s24 + $0x810] ss:$24 sps:$4 sm:$0xff]  }
0x1915   : > { %14561 = vmatprep.subr.bf16.mxu0 %v22009_v19  ;;  %14549 = vmatpush2.bf16.msra.mxu1 %v22006_v47  ;;  %v22090_v47 = vld [vmem:[%s23776_s24 + $0x1ec] ss:$24 sps:$4 sm:$0xff]  }
0x1916   : > { %14604 = vmatprep.subr.bf16.mxu1 %v22012_v46  ;;  %v22093_v19 = vld [vmem:[%s23776_s24 + $0x7b4] ss:$24 sps:$4 sm:$0xff]   ;;  %v22091_v46 = vld [vmem:[%s23776_s24 + $0x7b0] ss:$24 sps:$4 sm:$0xff]  }
0x1917   : > { %14508 = vmatmul.mubr.bf16.vlgmr.msra.gmra.mxu0 %v25938_v38 }
0x1918   : > { %14562 = vmatpush1.bf16.msra.mxu0 %v22007_v0  ;;  %14551 = vmatmul.mubr.bf16.vlgmr.msra.gmra.mxu1 %v25942_v40  ;;  %v22099_v0 = vld [vmem:[%s23776_s24 + $0x784] ss:$24 sps:$4 sm:$0xff]  }
0x1919   : > { %14563 = vmatprep.subr.bf16.mxu0 %v22015_v26  ;;  %14605 = vmatpush1.bf16.msra.mxu1 %v22010_v18  ;;  %v22094_v26 = vld [vmem:[%s23776_s24 + $0x1b8] ss:$24 sps:$4 sm:$0xff]  }
0x191a   : > { %14636 = vmatprep.mubr.bf16.mxu1 %v25914_v12  ;;  %14606 = vmatprep.subr.bf16.mxu1 %v22018_v51  ;;  %v22097_v18 = vld [vmem:[%s23776_s24 + $0x780] ss:$24 sps:$4 sm:$0xff]   ;;  %v22102_v51 = vld [vmem:[%s23776_s24 + $0x18c] ss:$24 sps:$4 sm:$0xff]  }
0x191b   : > { %14593 = vmatprep.mubr.bf16.mxu0 %v25973_v28 }
0x191c   : > { %14564 = vmatpush1.bf16.msra.mxu0 %v22013_v55  ;;  %v12701_v55 = vld [vmem:[#allocation2 + $0x50] sm:$0xff] }
0x191d   : > { %14565 = vmatprep.subr.bf16.mxu0 %v22021_v1  ;;  %14607 = vmatpush1.bf16.msra.mxu1 %v22016_v33  ;;  %v12707_v1 = vld [vmem:[#allocation2 + $0x10] sm:$0xff] }
0x191e   : > { %14608 = vmatprep.subr.bf16.mxu1 %v22024_v9  ;;  %v22105_v33 = vld [vmem:[%s23776_s24 + $0x45c] ss:$24 sps:$4 sm:$0xff]   ;;  %v22100_v9 = vld [vmem:[%s23776_s24 + $0x188] ss:$24 sps:$4 sm:$0xff]  }
0x1920   : > { %14566 = vmatpush1.bf16.msra.mxu0 %v22019_v11  ;;  %v26012_v11 = vpack.c.bf16 %v12707_v1, %v12701_v55  ;;  %v22189_v55 = vld [vmem:[%s23776_s24 + $0x4bc] ss:$24 sps:$4 sm:$0xff]   ;;  %v22184_v1 = vld [vmem:[%s23776_s24 + $0x7e8] ss:$24 sps:$4 sm:$0xff]  }
0x1921   : > { %14567 = vmatprep.subr.bf16.mxu0 %v22027_v60  ;;  %14609 = vmatpush1.bf16.msra.mxu1 %v22022_v62  ;;  %v22108_v60 = vld [vmem:[%s23776_s24 + $0x75c] ss:$24 sps:$4 sm:$0xff]   ;;  %v22103_v62 = vld [vmem:[%s23776_s24 + $0x458] ss:$24 sps:$4 sm:$0xff]  }
0x1922   : > { %14610 = vmatprep.subr.bf16.mxu1 %v22030_v31  ;;  %v22111_v31 = vld [vmem:[%s23776_s24 + $0x42c] ss:$24 sps:$4 sm:$0xff]  }
0x1924   : > { %14568 = vmatpush1.bf16.msra.mxu0 %v22025_v22  ;;  %v22106_v22 = vld [vmem:[%s23776_s24 + $0x758] ss:$24 sps:$4 sm:$0xff]  }
0x1925   : > { %14569 = vmatprep.subr.bf16.mxu0 %v22033_v48  ;;  %14611 = vmatpush1.bf16.msra.mxu1 %v22028_v58  ;;  %v22114_v48 = vld [vmem:[%s23776_s24 + $0x72c] ss:$24 sps:$4 sm:$0xff]   ;;  %v22109_v58 = vld [vmem:[%s23776_s24 + $0x428] ss:$24 sps:$4 sm:$0xff]  }
0x1926   : > { %14612 = vmatprep.subr.bf16.mxu1 %v22036_v49  ;;  %v22117_v49 = vld [vmem:[%s23776_s24 + $0x3fc] ss:$24 sps:$4 sm:$0xff]  }
0x1928   : > { %14570 = vmatpush1.bf16.msra.mxu0 %v22031_v17  ;;  %v22112_v17 = vld [vmem:[%s23776_s24 + $0x728] ss:$24 sps:$4 sm:$0xff]  }
0x1929   : > { %14571 = vmatprep.subr.bf16.mxu0 %v22039_v23  ;;  %14613 = vmatpush1.bf16.msra.mxu1 %v22034_v30  ;;  %v22120_v23 = vld [vmem:[%s23776_s24 + $0x6fc] ss:$24 sps:$4 sm:$0xff]   ;;  %v22115_v30 = vld [vmem:[%s23776_s24 + $0x3f8] ss:$24 sps:$4 sm:$0xff]  }
0x192a   : > { %14614 = vmatprep.subr.bf16.mxu1 %v22042_v39  ;;  %v22123_v39 = vld [vmem:[%s23776_s24 + $0x3cc] ss:$24 sps:$4 sm:$0xff]  }
0x192c   : > { %14572 = vmatpush1.bf16.msra.mxu0 %v22037_v61  ;;  %v22118_v61 = vld [vmem:[%s23776_s24 + $0x6f8] ss:$24 sps:$4 sm:$0xff]  }
0x192d   : > { %14573 = vmatprep.subr.bf16.mxu0 %v22045_v3  ;;  %14615 = vmatpush1.bf16.msra.mxu1 %v22040_v10  ;;  %v22126_v3 = vld [vmem:[%s23776_s24 + $0x6cc] ss:$24 sps:$4 sm:$0xff]   ;;  %v22121_v10 = vld [vmem:[%s23776_s24 + $0x3c8] ss:$24 sps:$4 sm:$0xff]  }
0x192e   : > { %14616 = vmatprep.subr.bf16.mxu1 %v22048_v36  ;;  %v22129_v36 = vld [vmem:[%s23776_s24 + $0x39c] ss:$24 sps:$4 sm:$0xff]  }
0x1930   : > { %14574 = vmatpush1.bf16.msra.mxu0 %v22043_v15  ;;  %v22124_v15 = vld [vmem:[%s23776_s24 + $0x6c8] ss:$24 sps:$4 sm:$0xff]  }
0x1931   : > { %14575 = vmatprep.subr.bf16.mxu0 %v22051_v63  ;;  %14617 = vmatpush1.bf16.msra.mxu1 %v22046_v50  ;;  %v22132_v63 = vld [vmem:[%s23776_s24 + $0x69c] ss:$24 sps:$4 sm:$0xff]   ;;  %v22130_v50 = vld [vmem:[%s23776_s24 + $0x698] ss:$24 sps:$4 sm:$0xff]  }
0x1932   : > { %14618 = vmatprep.subr.bf16.mxu1 %v22054_v32  ;;  %v22138_v32 = vld [vmem:[%s23776_s24 + $0x66c] ss:$24 sps:$4 sm:$0xff]  }
0x1934   : > { %14576 = vmatpush1.bf16.msra.mxu0 %v22049_v2  ;;  %v22133_v2 = vld [vmem:[%s23776_s24 + $0x368] ss:$24 sps:$4 sm:$0xff]  }
0x1935   : > { %14577 = vmatprep.subr.bf16.mxu0 %v22057_v43  ;;  %14619 = vmatpush1.bf16.msra.mxu1 %v22052_v25  ;;  %v22141_v43 = vld [vmem:[%s23776_s24 + $0x33c] ss:$24 sps:$4 sm:$0xff]   ;;  %v22136_v25 = vld [vmem:[%s23776_s24 + $0x668] ss:$24 sps:$4 sm:$0xff]  }
0x1936   : > { %14620 = vmatprep.subr.bf16.mxu1 %v22060_v53  ;;  %v22144_v53 = vld [vmem:[%s23776_s24 + $0x63c] ss:$24 sps:$4 sm:$0xff]  }
0x1938   : > { %14578 = vmatpush2.bf16.msra.mxu0 %v22055_v42  ;;  %v22139_v42 = vld [vmem:[%s23776_s24 + $0x338] ss:$24 sps:$4 sm:$0xff]  }
0x1939   : > { %14579 = vmatprep.subr.bf16.mxu0 %v22063_v52  ;;  %14621 = vmatpush2.bf16.msra.mxu1 %v22058_v5  ;;  %v22147_v52 = vld [vmem:[%s23776_s24 + $0x30c] ss:$24 sps:$4 sm:$0xff]   ;;  %v22142_v5 = vld [vmem:[%s23776_s24 + $0x638] ss:$24 sps:$4 sm:$0xff]  }
0x193a   : > { %14622 = vmatprep.subr.bf16.mxu1 %v22066_v14  ;;  %v22150_v14 = vld [vmem:[%s23776_s24 + $0x60c] ss:$24 sps:$4 sm:$0xff]  }
0x193c   : > { %14580 = vmatpush2.bf16.msra.mxu0 %v22061_v35  ;;  %v22145_v35 = vld [vmem:[%s23776_s24 + $0x308] ss:$24 sps:$4 sm:$0xff]  }
0x193d   : > { %14581 = vmatprep.subr.bf16.mxu0 %v22069_v27  ;;  %14623 = vmatpush2.bf16.msra.mxu1 %v22064_v54  ;;  %v22153_v27 = vld [vmem:[%s23776_s24 + $0x5dc] ss:$24 sps:$4 sm:$0xff]   ;;  %v22148_v54 = vld [vmem:[%s23776_s24 + $0x608] ss:$24 sps:$4 sm:$0xff]  }
0x193e   : > { %14624 = vmatprep.subr.bf16.mxu1 %v22072_v24  ;;  %v22156_v24 = vld [vmem:[%s23776_s24 + $0x8dc] ss:$24 sps:$4 sm:$0xff]  }
0x1940   : > { %14582 = vmatpush2.bf16.msra.mxu0 %v22067_v44  ;;  %v22151_v44 = vld [vmem:[%s23776_s24 + $0x5d8] ss:$24 sps:$4 sm:$0xff]  }
0x1941   : > { %14583 = vmatprep.subr.bf16.mxu0 %v22075_v29  ;;  %14625 = vmatpush2.bf16.msra.mxu1 %v22070_v7  ;;  %v22159_v29 = vld [vmem:[%s23776_s24 + $0x5ac] ss:$24 sps:$4 sm:$0xff]   ;;  %v22154_v7 = vld [vmem:[%s23776_s24 + $0x8d8] ss:$24 sps:$4 sm:$0xff]  }
0x1942   : > { %14626 = vmatprep.subr.bf16.mxu1 %v22078_v8  ;;  %v22162_v8 = vld [vmem:[%s23776_s24 + $0x8ac] ss:$24 sps:$4 sm:$0xff]  }
0x1944   : > { %14584 = vmatpush2.bf16.msra.mxu0 %v22073_v4  ;;  %v22157_v4 = vld [vmem:[%s23776_s24 + $0x5a8] ss:$24 sps:$4 sm:$0xff]  }
0x1945   : > { %14585 = vmatprep.subr.bf16.mxu0 %v22081_v34  ;;  %14627 = vmatpush2.bf16.msra.mxu1 %v22076_v16  ;;  %v22165_v34 = vld [vmem:[%s23776_s24 + $0x57c] ss:$24 sps:$4 sm:$0xff]   ;;  %v22160_v16 = vld [vmem:[%s23776_s24 + $0x8a8] ss:$24 sps:$4 sm:$0xff]  }
0x1946   : > { %14628 = vmatprep.subr.bf16.mxu1 %v22084_v13  ;;  %v22168_v13 = vld [vmem:[%s23776_s24 + $0x87c] ss:$24 sps:$4 sm:$0xff]  }
0x1948   : > { %14586 = vmatpush2.bf16.msra.mxu0 %v22079_v21  ;;  %v22163_v21 = vld [vmem:[%s23776_s24 + $0x578] ss:$24 sps:$4 sm:$0xff]  }
0x1949   : > { %14587 = vmatprep.subr.bf16.mxu0 %v22087_v45  ;;  %14629 = vmatpush2.bf16.msra.mxu1 %v22082_v41  ;;  %v22171_v45 = vld [vmem:[%s23776_s24 + $0x54c] ss:$24 sps:$4 sm:$0xff]   ;;  %v22166_v41 = vld [vmem:[%s23776_s24 + $0x878] ss:$24 sps:$4 sm:$0xff]  }
0x194a   : > { %14630 = vmatprep.subr.bf16.mxu1 %v22090_v47  ;;  %v22174_v47 = vld [vmem:[%s23776_s24 + $0x84c] ss:$24 sps:$4 sm:$0xff]  }
0x194c   : > { %14588 = vmatpush2.bf16.msra.mxu0 %v22085_v6  ;;  %v22169_v6 = vld [vmem:[%s23776_s24 + $0x548] ss:$24 sps:$4 sm:$0xff]  }
0x194d   : > { %14589 = vmatprep.subr.bf16.mxu0 %v22093_v19  ;;  %14631 = vmatpush2.bf16.msra.mxu1 %v22088_v57  ;;  %v22177_v19 = vld [vmem:[%s23776_s24 + $0x51c] ss:$24 sps:$4 sm:$0xff]   ;;  %v22172_v57 = vld [vmem:[%s23776_s24 + $0x848] ss:$24 sps:$4 sm:$0xff]  }
0x194e   : > { %14632 = vmatprep.subr.bf16.mxu1 %v22096_v37  ;;  %v22180_v37 = vld [vmem:[%s23776_s24 + $0x81c] ss:$24 sps:$4 sm:$0xff]  }
0x1950   : > { %14590 = vmatpush2.bf16.msra.mxu0 %v22091_v46  ;;  %v22175_v46 = vld [vmem:[%s23776_s24 + $0x518] ss:$24 sps:$4 sm:$0xff]  }
0x1951   : > { %14591 = vmatprep.subr.bf16.mxu0 %v22099_v0  ;;  %14633 = vmatpush2.bf16.msra.mxu1 %v22094_v26  ;;  %v22183_v0 = vld [vmem:[%s23776_s24 + $0x4ec] ss:$24 sps:$4 sm:$0xff]   ;;  %v22178_v26 = vld [vmem:[%s23776_s24 + $0x818] ss:$24 sps:$4 sm:$0xff]  }
0x1952   : > { %14634 = vmatprep.subr.bf16.mxu1 %v22102_v51  ;;  %v22181_v51 = vld [vmem:[%s23776_s24 + $0x4e8] ss:$24 sps:$4 sm:$0xff]  }
0x1954   : > { %14592 = vmatpush2.bf16.msra.mxu0 %v22097_v18  ;;  %v22186_v18 = vld [vmem:[%s23776_s24 + $0x7ec] ss:$24 sps:$4 sm:$0xff]  }
0x1955   : > { %14647 = vmatprep.subr.bf16.mxu0 %v22105_v33  ;;  %14635 = vmatpush2.bf16.msra.mxu1 %v22100_v9  ;;  %v22192_v33 = vld [vmem:[%s23776_s24 + $0x7bc] ss:$24 sps:$4 sm:$0xff]   ;;  %v22187_v9 = vld [vmem:[%s23776_s24 + $0x4b8] ss:$24 sps:$4 sm:$0xff]  }
0x1956   : > { %14690 = vmatprep.subr.bf16.mxu1 %v22108_v60  ;;  %v22195_v60 = vld [vmem:[%s23776_s24 + $0x48c] ss:$24 sps:$4 sm:$0xff]  }
0x1957   : > { %14594 = vmatmul.mubr.bf16.vlgmr.msra.gmra.mxu0 %v26012_v11 }
0x1958   : > { %14648 = vmatpush1.bf16.msra.mxu0 %v22103_v62  ;;  %14679 = vmatprep.mubr.bf16.mxu0 %v25920_v59  ;;  %v22190_v62 = vld [vmem:[%s23776_s24 + $0x7b8] ss:$24 sps:$4 sm:$0xff]  }
0x1959   : > { %14637 = vmatmul.mubr.bf16.vlgmr.msra.gmra.mxu1 %v25938_v38  ;;  %14649 = vmatprep.subr.bf16.mxu0 %v22111_v31  ;;  %v22198_v31 = vld [vmem:[%s23776_s24 + $0x78c] ss:$24 sps:$4 sm:$0xff]  }
0x195a   : > { %14691 = vmatpush1.bf16.msra.mxu1 %v22106_v22  ;;  %14722 = vmatprep.mubr.bf16.mxu1 %v25973_v28  ;;  %v22193_v22 = vld [vmem:[%s23776_s24 + $0x488] ss:$24 sps:$4 sm:$0xff]  }
0x195b   : > { %14692 = vmatprep.subr.bf16.mxu1 %v22114_v48  ;;  %v22201_v48 = vld [vmem:[%s23776_s24 + $0x164] ss:$24 sps:$4 sm:$0xff]  }
0x195c   : > { %14650 = vmatpush1.bf16.msra.mxu0 %v22109_v58  ;;  %v22196_v58 = vld [vmem:[%s23776_s24 + $0x788] ss:$24 sps:$4 sm:$0xff]  }
0x195d   : > { %14651 = vmatprep.subr.bf16.mxu0 %v22117_v49  ;;  %v22204_v49 = vld [vmem:[%s23776_s24 + $0x464] ss:$24 sps:$4 sm:$0xff]  }
0x195e   : > { %14693 = vmatpush1.bf16.msra.mxu1 %v22112_v17  ;;  %v22199_v17 = vld [vmem:[%s23776_s24 + $0x160] ss:$24 sps:$4 sm:$0xff]  }
0x195f   : > { %14694 = vmatprep.subr.bf16.mxu1 %v22120_v23  ;;  %v22207_v23 = vld [vmem:[%s23776_s24 + $0x134] ss:$24 sps:$4 sm:$0xff]  }
0x1960   : > { %14652 = vmatpush1.bf16.msra.mxu0 %v22115_v30  ;;  %v22202_v30 = vld [vmem:[%s23776_s24 + $0x460] ss:$24 sps:$4 sm:$0xff]  }
0x1961   : > { %14653 = vmatprep.subr.bf16.mxu0 %v22123_v39  ;;  %v22210_v39 = vld [vmem:[%s23776_s24 + $0x434] ss:$24 sps:$4 sm:$0xff]  }
0x1962   : > { %14695 = vmatpush1.bf16.msra.mxu1 %v22118_v61  ;;  %v22205_v61 = vld [vmem:[%s23776_s24 + $0x130] ss:$24 sps:$4 sm:$0xff]  }
0x1963   : > { %14696 = vmatprep.subr.bf16.mxu1 %v22126_v3  ;;  %v22213_v3 = vld [vmem:[%s23776_s24 + $0x104] ss:$24 sps:$4 sm:$0xff]  }
0x1964   : > { %14654 = vmatpush1.bf16.msra.mxu0 %v22121_v10  ;;  %v22208_v10 = vld [vmem:[%s23776_s24 + $0x430] ss:$24 sps:$4 sm:$0xff]  }
0x1965   : > { %14655 = vmatprep.subr.bf16.mxu0 %v22129_v36  ;;  %v22216_v36 = vld [vmem:[%s23776_s24 + $0x404] ss:$24 sps:$4 sm:$0xff]  }
0x1966   : > { %14697 = vmatpush1.bf16.msra.mxu1 %v22124_v15  ;;  %v22211_v15 = vld [vmem:[%s23776_s24 + $0x100] ss:$24 sps:$4 sm:$0xff]  }
0x1967   : > { %14698 = vmatprep.subr.bf16.mxu1 %v22132_v63  ;;  %v22214_v63 = vld [vmem:[%s23776_s24 + $0x400] ss:$24 sps:$4 sm:$0xff]  }
0x1968   : > { %14656 = vmatpush1.bf16.msra.mxu0 %v22127_v20  ;;  %v22222_v20 = vld [vmem:[%s23776_s24 + $0x3d4] ss:$24 sps:$4 sm:$0xff]  }
0x1969   : > { %14657 = vmatprep.subr.bf16.mxu0 %v22135_v56  ;;  %v22217_v56 = vld [vmem:[%s23776_s24 + $0xd0] ss:$24 sps:$4 sm:$0xff]  }
0x196a   : > { %14699 = vmatpush1.bf16.msra.mxu1 %v22130_v50  ;;  %v22220_v50 = vld [vmem:[%s23776_s24 + $0x3d0] ss:$24 sps:$4 sm:$0xff]  }
0x196b   : > { %14700 = vmatprep.subr.bf16.mxu1 %v22138_v32  ;;  %v22228_v32 = vld [vmem:[%s23776_s24 + $0x3a4] ss:$24 sps:$4 sm:$0xff]  }
0x196c   : > { %14658 = vmatpush1.bf16.msra.mxu0 %v22133_v2  ;;  %v22223_v2 = vld [vmem:[%s23776_s24 + $0xa0] ss:$24 sps:$4 sm:$0xff]  }
0x196d   : > { %14659 = vmatprep.subr.bf16.mxu0 %v22141_v43  ;;  %v22231_v43 = vld [vmem:[%s23776_s24 + $0x74] ss:$24 sps:$4 sm:$0xff]  }
0x196e   : > { %14701 = vmatpush1.bf16.msra.mxu1 %v22136_v25  ;;  %v22226_v25 = vld [vmem:[%s23776_s24 + $0x3a0] ss:$24 sps:$4 sm:$0xff]  }
0x196f   : > { %14702 = vmatprep.subr.bf16.mxu1 %v22144_v53  ;;  %v22229_v53 = vld [vmem:[%s23776_s24 + $0x70] ss:$24 sps:$4 sm:$0xff]  }
0x1970   : > { %14660 = vmatpush1.bf16.msra.mxu0 %v22139_v42  ;;  %v22234_v42 = vld [vmem:[%s23776_s24 + $0x374] ss:$24 sps:$4 sm:$0xff]  }
0x1971   : > { %14661 = vmatprep.subr.bf16.mxu0 %v22147_v52  ;;  %v22232_v52 = vld [vmem:[%s23776_s24 + $0x370] ss:$24 sps:$4 sm:$0xff]  }
0x1972   : > { %14703 = vmatpush1.bf16.msra.mxu1 %v22142_v5  ;;  %v22237_v5 = vld [vmem:[%s23776_s24 + $0x44] ss:$24 sps:$4 sm:$0xff]  }
0x1973   : > { %14704 = vmatprep.subr.bf16.mxu1 %v22150_v14  ;;  %v22235_v14 = vld [vmem:[%s23776_s24 + $0x40] ss:$24 sps:$4 sm:$0xff]  }
0x1974   : > { %14662 = vmatpush1.bf16.msra.mxu0 %v22145_v35  ;;  %v22240_v35 = vld [vmem:[%s23776_s24 + $0x344] ss:$24 sps:$4 sm:$0xff]  }
0x1975   : > { %14663 = vmatprep.subr.bf16.mxu0 %v22153_v27  ;;  %v22238_v27 = vld [vmem:[%s23776_s24 + $0x340] ss:$24 sps:$4 sm:$0xff]  }
0x1976   : > { %14705 = vmatpush1.bf16.msra.mxu1 %v22148_v54  ;;  %v22243_v54 = vld [vmem:[%s23776_s24 + $0x14] ss:$24 sps:$4 sm:$0xff]  }
0x1977   : > { %14706 = vmatprep.subr.bf16.mxu1 %v22156_v24  ;;  %v22241_v24 = vld [vmem:[%s23776_s24 + $0x10] ss:$24 sps:$4 sm:$0xff]  }
0x1978   : > { %14664 = vmatpush2.bf16.msra.mxu0 %v22151_v44  ;;  %v22246_v44 = vld [vmem:[%s23776_s24 + $0x314] ss:$24 sps:$4 sm:$0xff]  }
0x1979   : > { %14665 = vmatprep.subr.bf16.mxu0 %v22159_v29  ;;  %v22244_v29 = vld [vmem:[%s23776_s24 + $0x310] ss:$24 sps:$4 sm:$0xff]  }
0x197a   : > { %14707 = vmatpush2.bf16.msra.mxu1 %v22154_v7  ;;  %v22249_v7 = vld [vmem:[%s23776_s24 + $0x2e4] ss:$24 sps:$4 sm:$0xff]  }
0x197b   : > { %14708 = vmatprep.subr.bf16.mxu1 %v22162_v8  ;;  %v22247_v8 = vld [vmem:[%s23776_s24 + $0x2e0] ss:$24 sps:$4 sm:$0xff]  }
0x197c   : > { %14666 = vmatpush2.bf16.msra.mxu0 %v22157_v4  ;;  %v22252_v4 = vld [vmem:[%s23776_s24 + $0x5e4] ss:$24 sps:$4 sm:$0xff]  }
0x197d   : > { %14667 = vmatprep.subr.bf16.mxu0 %v22165_v34  ;;  %v22250_v34 = vld [vmem:[%s23776_s24 + $0x5e0] ss:$24 sps:$4 sm:$0xff]  }
0x197e   : > { %14709 = vmatpush2.bf16.msra.mxu1 %v22160_v16  ;;  %v22255_v16 = vld [vmem:[%s23776_s24 + $0x2b4] ss:$24 sps:$4 sm:$0xff]  }
0x197f   : > { %14710 = vmatprep.subr.bf16.mxu1 %v22168_v13  ;;  %v22253_v13 = vld [vmem:[%s23776_s24 + $0x2b0] ss:$24 sps:$4 sm:$0xff]  }
0x1980   : > { %14668 = vmatpush2.bf16.msra.mxu0 %v22163_v21  ;;  %v22258_v21 = vld [vmem:[%s23776_s24 + $0x5b4] ss:$24 sps:$4 sm:$0xff]  }
0x1981   : > { %14669 = vmatprep.subr.bf16.mxu0 %v22171_v45  ;;  %v22256_v45 = vld [vmem:[%s23776_s24 + $0x5b0] ss:$24 sps:$4 sm:$0xff]  }
0x1982   : > { %14711 = vmatpush2.bf16.msra.mxu1 %v22166_v41  ;;  %v22261_v41 = vld [vmem:[%s23776_s24 + $0x284] ss:$24 sps:$4 sm:$0xff]  }
0x1983   : > { %14712 = vmatprep.subr.bf16.mxu1 %v22174_v47  ;;  %v22259_v47 = vld [vmem:[%s23776_s24 + $0x280] ss:$24 sps:$4 sm:$0xff]  }
0x1984   : > { %14670 = vmatpush2.bf16.msra.mxu0 %v22169_v6  ;;  %v22264_v6 = vld [vmem:[%s23776_s24 + $0x584] ss:$24 sps:$4 sm:$0xff]  }
0x1985   : > { %14671 = vmatprep.subr.bf16.mxu0 %v22177_v19  ;;  %v22267_v19 = vld [vmem:[%s23776_s24 + $0x254] ss:$24 sps:$4 sm:$0xff]  }
0x1986   : > { %14713 = vmatpush2.bf16.msra.mxu1 %v22172_v57  ;;  %v22262_v57 = vld [vmem:[%s23776_s24 + $0x580] ss:$24 sps:$4 sm:$0xff]  }
0x1987   : > { %14714 = vmatprep.subr.bf16.mxu1 %v22180_v37  ;;  %v22270_v37 = vld [vmem:[%s23776_s24 + $0x554] ss:$24 sps:$4 sm:$0xff]  }
0x1988   : > { %14672 = vmatpush2.bf16.msra.mxu0 %v22175_v46  ;;  %v22265_v46 = vld [vmem:[%s23776_s24 + $0x250] ss:$24 sps:$4 sm:$0xff]  }
0x1989   : > { %14673 = vmatprep.subr.bf16.mxu0 %v22183_v0  ;;  %v22273_v0 = vld [vmem:[%s23776_s24 + $0x224] ss:$24 sps:$4 sm:$0xff]  }
0x198a   : > { %14715 = vmatpush2.bf16.msra.mxu1 %v22178_v26  ;;  %v22268_v26 = vld [vmem:[%s23776_s24 + $0x550] ss:$24 sps:$4 sm:$0xff]  }
0x198b   : > { %14716 = vmatprep.subr.bf16.mxu1 %v22186_v18  ;;  %v22276_v18 = vld [vmem:[%s23776_s24 + $0x524] ss:$24 sps:$4 sm:$0xff]  }
0x198c   : > { %14674 = vmatpush2.bf16.msra.mxu0 %v22181_v51  ;;  %v22271_v51 = vld [vmem:[%s23776_s24 + $0x220] ss:$24 sps:$4 sm:$0xff]  }
0x198d   : > { %14675 = vmatprep.subr.bf16.mxu0 %v22189_v55  ;;  %v22274_v55 = vld [vmem:[%s23776_s24 + $0x520] ss:$24 sps:$4 sm:$0xff]  }
0x198e   : > { %14717 = vmatpush2.bf16.msra.mxu1 %v22184_v1  ;;  %v22279_v1 = vld [vmem:[%s23776_s24 + $0x1f4] ss:$24 sps:$4 sm:$0xff]  }
0x198f   : > { %14718 = vmatprep.subr.bf16.mxu1 %v22192_v33  ;;  %v22282_v33 = vld [vmem:[%s23776_s24 + $0x4f4] ss:$24 sps:$4 sm:$0xff]  }
0x1990   : > { %14676 = vmatpush2.bf16.msra.mxu0 %v22187_v9  ;;  %v22277_v9 = vld [vmem:[%s23776_s24 + $0x1f0] ss:$24 sps:$4 sm:$0xff]  }
0x1991   : > { %14677 = vmatprep.subr.bf16.mxu0 %v22195_v60  ;;  %v22285_v60 = vld [vmem:[%s23776_s24 + $0x1c4] ss:$24 sps:$4 sm:$0xff]  }
0x1992   : > { %14719 = vmatpush2.bf16.msra.mxu1 %v22190_v62  ;;  %v22280_v62 = vld [vmem:[%s23776_s24 + $0x4f0] ss:$24 sps:$4 sm:$0xff]  }
0x1993   : > { %14720 = vmatprep.subr.bf16.mxu1 %v22198_v31  ;;  %v22288_v31 = vld [vmem:[%s23776_s24 + $0x4c4] ss:$24 sps:$4 sm:$0xff]  }
0x1994   : > { %14678 = vmatpush2.bf16.msra.mxu0 %v22193_v22  ;;  %v22283_v22 = vld [vmem:[%s23776_s24 + $0x1c0] ss:$24 sps:$4 sm:$0xff]  }
0x1995   : > { %14733 = vmatprep.subr.bf16.mxu0 %v22201_v48  ;;  %v22291_v48 = vld [vmem:[%s23776_s24 + $0x194] ss:$24 sps:$4 sm:$0xff]  }
0x1996   : > { %14721 = vmatpush2.bf16.msra.mxu1 %v22196_v58  ;;  %v22286_v58 = vld [vmem:[%s23776_s24 + $0x4c0] ss:$24 sps:$4 sm:$0xff]  }
0x1997   : > { %14680 = vmatmul.mubr.bf16.vlgmr.msra.gmra.mxu0 %v25942_v40  ;;  %14776 = vmatprep.subr.bf16.mxu1 %v22204_v49  ;;  %v22294_v49 = vld [vmem:[%s23776_s24 + $0x494] ss:$24 sps:$4 sm:$0xff]  }
0x1998   : > { %14734 = vmatpush1.bf16.msra.mxu0 %v22199_v17  ;;  %14765 = vmatprep.mubr.bf16.mxu0 %v25914_v12  ;;  %v22219_v12 = vld [vmem:[%s23776_s24 + $0xd4] ss:$24 sps:$4 sm:$0xff]   ;;  %v22289_v17 = vld [vmem:[%s23776_s24 + $0x190] ss:$24 sps:$4 sm:$0xff]  }
0x1999   : > { %14723 = vmatmul.mubr.bf16.vlgmr.msra.gmra.mxu1 %v26012_v11  ;;  %14735 = vmatprep.subr.bf16.mxu0 %v22207_v23  ;;  %v22297_v23 = vld [vmem:[%s23776_s24 + $0x764] ss:$24 sps:$4 sm:$0xff]  }
0x199a   : > { %14777 = vmatpush1.bf16.msra.mxu1 %v22202_v30  ;;  %14808 = vmatprep.mubr.bf16.mxu1 %v25920_v59  ;;  %v22225_v59 = vld [vmem:[%s23776_s24 + $0xa4] ss:$24 sps:$4 sm:$0xff]   ;;  %v22292_v30 = vld [vmem:[%s23776_s24 + $0x490] ss:$24 sps:$4 sm:$0xff]  }
0x199b   : > { %14778 = vmatprep.subr.bf16.mxu1 %v22210_v39  ;;  %v22330_v39 = vld [vmem:[%s23785_s23 + $0x154] ss:$24 sps:$4 sm:$0xff]  }
0x199c   : > { %14736 = vmatpush1.bf16.msra.mxu0 %v22205_v61  ;;  %v22295_v61 = vld [vmem:[%s23776_s24 + $0x760] ss:$24 sps:$4 sm:$0xff]  }
0x199d   : > { %14737 = vmatprep.subr.bf16.mxu0 %v22213_v3  ;;  %v22300_v3 = vld [vmem:[%s23776_s24 + $0x734] ss:$24 sps:$4 sm:$0xff]  }
0x199e   : > { %14779 = vmatpush1.bf16.msra.mxu1 %v22208_v10  ;;  %v22328_v10 = vld [vmem:[%s23785_s23 + $0x150] ss:$24 sps:$4 sm:$0xff]  }
0x199f   : > { %14780 = vmatprep.subr.bf16.mxu1 %v22216_v36  ;;  %v22336_v36 = vld [vmem:[%s23785_s23 + $0x124] ss:$24 sps:$4 sm:$0xff]  }
0x19a0   : > { %14738 = vmatpush1.bf16.msra.mxu0 %v22211_v15  ;;  %v22298_v15 = vld [vmem:[%s23776_s24 + $0x730] ss:$24 sps:$4 sm:$0xff]  }
0x19a1   : > { %14739 = vmatprep.subr.bf16.mxu0 %v22219_v12  ;;  %v22303_v12 = vld [vmem:[%s23776_s24 + $0x704] ss:$24 sps:$4 sm:$0xff]  }
0x19a2   : > { %14781 = vmatpush1.bf16.msra.mxu1 %v22214_v63  ;;  %v22334_v63 = vld [vmem:[%s23785_s23 + $0x120] ss:$24 sps:$4 sm:$0xff]  }
0x19a3   : > { %14782 = vmatprep.subr.bf16.mxu1 %v22222_v20  ;;  %v22342_v20 = vld [vmem:[%s23785_s23 + $0xf4] ss:$24 sps:$4 sm:$0xff]  }
0x19a4   : > { %14740 = vmatpush1.bf16.msra.mxu0 %v22217_v56  ;;  %v22301_v56 = vld [vmem:[%s23776_s24 + $0x700] ss:$24 sps:$4 sm:$0xff]  }
0x19a5   : > { %14741 = vmatprep.subr.bf16.mxu0 %v22225_v59  ;;  %v22306_v59 = vld [vmem:[%s23776_s24 + $0x6d4] ss:$24 sps:$4 sm:$0xff]  }
0x19a6   : > { %14783 = vmatpush1.bf16.msra.mxu1 %v22220_v50  ;;  %v22348_v50 = vld [vmem:[%s23785_s23 + $0xc4] ss:$24 sps:$4 sm:$0xff]  }
0x19a7   : > { %14784 = vmatprep.subr.bf16.mxu1 %v22228_v32  ;;  %v22304_v32 = vld [vmem:[%s23776_s24 + $0x6d0] ss:$24 sps:$4 sm:$0xff]  }
0x19a8   : > { %14742 = vmatpush1.bf16.msra.mxu0 %v22223_v2  ;;  %v22354_v2 = vld [vmem:[%s23785_s23 + $0x94] ss:$24 sps:$4 sm:$0xff]  }
0x19a9   : > { %14743 = vmatprep.subr.bf16.mxu0 %v22231_v43  ;;  %v22307_v43 = vld [vmem:[%s23776_s24 + $0x6a0] ss:$24 sps:$4 sm:$0xff]  }
0x19aa   : > { %14785 = vmatpush1.bf16.msra.mxu1 %v22226_v25  ;;  %v22312_v25 = vld [vmem:[%s23776_s24 + $0x674] ss:$24 sps:$4 sm:$0xff]  }
0x19ab   : > { %14786 = vmatprep.subr.bf16.mxu1 %v22234_v42  ;;  %v22360_v42 = vld [vmem:[%s23785_s23 + $0x64] ss:$24 sps:$4 sm:$0xff]  }
0x19ac   : > { %14744 = vmatpush1.bf16.msra.mxu0 %v22229_v53  ;;  %v22352_v53 = vld [vmem:[%s23785_s23 + $0x90] ss:$24 sps:$4 sm:$0xff]  }
0x19ad   : > { %14745 = vmatprep.subr.bf16.mxu0 %v22237_v5  ;;  %v22315_v5 = vld [vmem:[%s23776_s24 + $0x644] ss:$24 sps:$4 sm:$0xff]  }
0x19ae   : > { %14787 = vmatpush1.bf16.msra.mxu1 %v22232_v52  ;;  %v22310_v52 = vld [vmem:[%s23776_s24 + $0x670] ss:$24 sps:$4 sm:$0xff]  }
0x19af   : > { %14788 = vmatprep.subr.bf16.mxu1 %v22240_v35  ;;  %v22363_v35 = vld [vmem:[%s23785_s23 + $0x34] ss:$24 sps:$4 sm:$0xff]  }
0x19b0   : > { %14746 = vmatpush1.bf16.msra.mxu0 %v22235_v14  ;;  %v22358_v14 = vld [vmem:[%s23785_s23 + $0x60] ss:$24 sps:$4 sm:$0xff]  }
0x19b1   : > { %14747 = vmatprep.subr.bf16.mxu0 %v22243_v54  ;;  %v22318_v54 = vld [vmem:[%s23776_s24 + $0x614] ss:$24 sps:$4 sm:$0xff]  }
0x19b2   : > { %14789 = vmatpush1.bf16.msra.mxu1 %v22238_v27  ;;  %v22313_v27 = vld [vmem:[%s23776_s24 + $0x640] ss:$24 sps:$4 sm:$0xff]  }
0x19b3   : > { %14790 = vmatprep.subr.bf16.mxu1 %v22246_v44  ;;  %v22366_v44 = vld [vmem:[%s23785_s23 + $0x4] ss:$24 sps:$4 sm:$0xff]  }
0x19b4   : > { %14748 = vmatpush1.bf16.msra.mxu0 %v22241_v24  ;;  %v22361_v24 = vld [vmem:[%s23785_s23 + $0x30] ss:$24 sps:$4 sm:$0xff]  }
0x19b5   : > { %14749 = vmatprep.subr.bf16.mxu0 %v22249_v7  ;;  %v22321_v7 = vld [vmem:[%s23776_s24 + $0x8e4] ss:$24 sps:$4 sm:$0xff]  }
0x19b6   : > { %14791 = vmatpush1.bf16.msra.mxu1 %v22244_v29  ;;  %v22316_v29 = vld [vmem:[%s23776_s24 + $0x610] ss:$24 sps:$4 sm:$0xff]  }
0x19b7   : > { %14792 = vmatprep.subr.bf16.mxu1 %v22252_v4  ;;  %v22369_v4 = vld [vmem:[%s23785_s23 + $0x2d4] ss:$24 sps:$4 sm:$0xff]  }
0x19b8   : > { %14750 = vmatpush2.bf16.msra.mxu0 %v22247_v8  ;;  %v22364_v8 = vld [vmem:[%s23785_s23] ss:$24 sps:$4 sm:$0xff]  }
0x19b9   : > { %14751 = vmatprep.subr.bf16.mxu0 %v22255_v16  ;;  %v22324_v16 = vld [vmem:[%s23776_s24 + $0x8b4] ss:$24 sps:$4 sm:$0xff]  }
0x19ba   : > { %14793 = vmatpush2.bf16.msra.mxu1 %v22250_v34  ;;  %v22319_v34 = vld [vmem:[%s23776_s24 + $0x8e0] ss:$24 sps:$4 sm:$0xff]  }
0x19bb   : > { %14794 = vmatprep.subr.bf16.mxu1 %v22258_v21  ;;  %v22372_v21 = vld [vmem:[%s23785_s23 + $0x2a4] ss:$24 sps:$4 sm:$0xff]  }
0x19bc   : > { %14752 = vmatpush2.bf16.msra.mxu0 %v22253_v13  ;;  %v22367_v13 = vld [vmem:[%s23785_s23 + $0x2d0] ss:$24 sps:$4 sm:$0xff]  }
0x19bd   : > { %14753 = vmatprep.subr.bf16.mxu0 %v22261_v41  ;;  %v22327_v41 = vld [vmem:[%s23776_s24 + $0x884] ss:$24 sps:$4 sm:$0xff]  }
0x19be   : > { %14795 = vmatpush2.bf16.msra.mxu1 %v22256_v45  ;;  %v22322_v45 = vld [vmem:[%s23776_s24 + $0x8b0] ss:$24 sps:$4 sm:$0xff]  }
0x19bf   : > { %14796 = vmatprep.subr.bf16.mxu1 %v22264_v6  ;;  %v22375_v6 = vld [vmem:[%s23785_s23 + $0x274] ss:$24 sps:$4 sm:$0xff]  }
0x19c0   : > { %14754 = vmatpush2.bf16.msra.mxu0 %v22259_v47  ;;  %v22370_v47 = vld [vmem:[%s23785_s23 + $0x2a0] ss:$24 sps:$4 sm:$0xff]  }
0x19c1   : > { %14755 = vmatprep.subr.bf16.mxu0 %v22267_v19  ;;  %v22325_v19 = vld [vmem:[%s23776_s24 + $0x880] ss:$24 sps:$4 sm:$0xff]  }
0x19c2   : > { %14797 = vmatpush2.bf16.msra.mxu1 %v22262_v57  ;;  %v22333_v57 = vld [vmem:[%s23776_s24 + $0x854] ss:$24 sps:$4 sm:$0xff]  }
0x19c3   : > { %14798 = vmatprep.subr.bf16.mxu1 %v22270_v37  ;;  %v22373_v37 = vld [vmem:[%s23785_s23 + $0x270] ss:$24 sps:$4 sm:$0xff]  }
0x19c4   : > { %14756 = vmatpush2.bf16.msra.mxu0 %v22265_v46  ;;  %v22378_v46 = vld [vmem:[%s23785_s23 + $0x244] ss:$24 sps:$4 sm:$0xff]  }
0x19c5   : > { %14757 = vmatprep.subr.bf16.mxu0 %v22273_v0  ;;  %v22331_v0 = vld [vmem:[%s23776_s24 + $0x850] ss:$24 sps:$4 sm:$0xff]  }
0x19c6   : > { %14799 = vmatpush2.bf16.msra.mxu1 %v22268_v26  ;;  %v22339_v26 = vld [vmem:[%s23776_s24 + $0x824] ss:$24 sps:$4 sm:$0xff]  }
0x19c7   : > { %14800 = vmatprep.subr.bf16.mxu1 %v22276_v18  ;;  %v22376_v18 = vld [vmem:[%s23785_s23 + $0x240] ss:$24 sps:$4 sm:$0xff]  }
0x19c8   : > { %14758 = vmatpush2.bf16.msra.mxu0 %v22271_v51  ;;  %v22381_v51 = vld [vmem:[%s23785_s23 + $0x214] ss:$24 sps:$4 sm:$0xff]  }
0x19c9   : > { %14759 = vmatprep.subr.bf16.mxu0 %v22279_v1  ;;  %v22337_v1 = vld [vmem:[%s23776_s24 + $0x820] ss:$24 sps:$4 sm:$0xff]  }
0x19ca   : > { %14801 = vmatpush2.bf16.msra.mxu1 %v22274_v55  ;;  %v13005_v55 = vlaneseq }
0x19cb   : > { %14802 = vmatprep.subr.bf16.mxu1 %v22282_v33  ;;  %v22345_v33 = vld [vmem:[%s23776_s24 + $0x7f4] ss:$24 sps:$4 sm:$0xff]  }
0x19cc   : > { %14760 = vmatpush2.bf16.msra.mxu0 %v22277_v9  ;;  %v22379_v9 = vld [vmem:[%s23785_s23 + $0x210] ss:$24 sps:$4 sm:$0xff]  }
0x19cd   : > { %14761 = vmatprep.subr.bf16.mxu0 %v22285_v60  ;;  %v22384_v60 = vld [vmem:[%s23785_s23 + $0x1e4] ss:$24 sps:$4 sm:$0xff]  }
0x19ce   : > { %14803 = vmatpush2.bf16.msra.mxu1 %v22280_v62  ;;  %v26206_v62 = vshrl.u32 %v13005_v55, 7 }
0x19cf   : > { %14804 = vmatprep.subr.bf16.mxu1 %v22288_v31  ;;  %v22343_v31 = vld [vmem:[%s23776_s24 + $0x7f0] ss:$24 sps:$4 sm:$0xff]  }
0x19d0   : > { %14762 = vmatpush2.bf16.msra.mxu0 %v22283_v22  ;;  %v22351_v22 = vld [vmem:[%s23776_s24 + $0x7c4] ss:$24 sps:$4 sm:$0xff]  }
0x19d1   : > { %14763 = vmatprep.subr.bf16.mxu0 %v22291_v48  ;;  %v22382_v48 = vld [vmem:[%s23785_s23 + $0x1e0] ss:$24 sps:$4 sm:$0xff]  }
0x19d2   : > { %14805 = vmatpush2.bf16.msra.mxu1 %v22286_v58  ;;  %v26213_v58 = vld [vmem:[%s917_s15] sm:$0x3f] }
0x19d3   : > { %14806 = vmatprep.subr.bf16.mxu1 %v22294_v49 }
0x19d4   : > { %14764 = vmatpush2.bf16.msra.mxu0 %v22289_v17  ;;  %v22387_v17 = vld [vmem:[%s23785_s23 + $0x1b4] ss:$24 sps:$4 sm:$0xff]  }
0x19d5   : > { %14819 = vmatprep.subr.bf16.mxu0 %v22297_v23  ;;  %v13007_v23 = vsub.s32 0, %v26206_v62 }
0x19d6   : > { %14807 = vmatpush2.bf16.msra.mxu1 %v22292_v30  ;;  %v22349_v30 = vld [vmem:[%s23776_s24 + $0x7c0] ss:$24 sps:$4 sm:$0xff]  }
0x19d7   : > { %14766 = vmatmul.mubr.bf16.vlgmr.msra.gmra.mxu0 %v25938_v38  ;;  %16716 = vmatprep.subr.bf16.mxu1 %v22330_v39  ;;  %v22340_v38 = vld [vmem:[%s23785_s23 + $0xf0] ss:$24 sps:$4 sm:$0xff]   ;;  %v14509_v49 = vpop.f32.mrf.mxu0  ;;  %v13011_v39 = vsub.s32 1, %v26206_v62 }
0x19d8   : > { %14820 = vmatpush1.bf16.msra.mxu0 %v22295_v61  ;;  %14851 = vmatprep.mubr.bf16.mxu0 %v25973_v28  ;;  %v22346_v28 = vld [vmem:[%s23785_s23 + $0xc0] ss:$24 sps:$4 sm:$0xff]  }
0x19d9   : > { %14809 = vmatmul.mubr.bf16.vlgmr.msra.gmra.mxu1 %v25942_v40  ;;  %14821 = vmatprep.subr.bf16.mxu0 %v22300_v3  ;;  %v22309_v40 = vld [vmem:[%s23776_s24 + $0x6a4] ss:$24 sps:$4 sm:$0xff]   ;;  %v22357_v61 = vld [vmem:[%s23776_s24 + $0x794] ss:$24 sps:$4 sm:$0xff]  }
0x19da   : > { %16717 = vmatpush1.bf16.msra.mxu1 %v22328_v10  ;;  %v22385_v3 = vld [vmem:[%s23785_s23 + $0x1b0] ss:$24 sps:$4 sm:$0xff]   ;;  %v14511_v10 = vpop.f32.mrf.mxu0 }
0x19db   : > { %16718 = vmatprep.subr.bf16.mxu1 %v22336_v36  ;;  %v14552_v36 = vpop.f32.mrf.mxu1 }
0x19dc   : > { %14822 = vmatpush1.bf16.msra.mxu0 %v22298_v15  ;;  %v22390_v15 = vld [vmem:[%s23785_s23 + $0x184] ss:$24 sps:$4 sm:$0xff]  }
0x19dd   : > { %14823 = vmatprep.subr.bf16.mxu0 %v22303_v12  ;;  %v13008_v12 = vrot.slane %v26213_v58, %v13007_v23 }
0x19de   : > { %16719 = vmatpush1.bf16.msra.mxu1 %v22334_v63  ;;  %v13012_v63 = vrot.slane %v26213_v58, %v13011_v39  ;;  %v22406_v39 = vld [vmem:[%s23785_s23 + $0x360] ss:$24 sps:$4 sm:$0xff]  }
0x19df   : > { %16720 = vmatprep.subr.bf16.mxu1 %v22342_v20  ;;  %v22355_v20 = vld [vmem:[%s23776_s24 + $0x790] ss:$24 sps:$4 sm:$0xff]  }
0x19e0   : > { %14824 = vmatpush1.bf16.msra.mxu0 %v22301_v56  ;;  %v22393_v56 = vld [vmem:[%s23785_s23 + $0x454] ss:$24 sps:$4 sm:$0xff]  }
0x19e1   : > { %14825 = vmatprep.subr.bf16.mxu0 %v22306_v59  ;;  %v14513_v59 = vpop.f32.mrf.mxu0 }
0x19e2   : > { %16721 = vmatpush1.bf16.msra.mxu1 %v22340_v38  ;;  %v14554_v38 = vpop.f32.mrf.mxu1 }
0x19e3   : > { %16722 = vmatprep.subr.bf16.mxu1 %v22348_v50  ;;  %v14510_v50 = vadd.f32 %v14509_v49, %v13008_v12  ;;  %v22408_v49 = vld [vmem:[%s23785_s23 + $0x364] ss:$24 sps:$4 sm:$0xff]  }
0x19e4   : > { %14826 = vmatpush1.bf16.msra.mxu0 %v22304_v32  ;;  %v22388_v32 = vld [vmem:[%s23785_s23 + $0x180] ss:$24 sps:$4 sm:$0xff]  }
0x19e5   : > { %14827 = vmatprep.subr.bf16.mxu0 %v22309_v40  ;;  %v14512_v40 = vadd.f32 %v14511_v10, %v13012_v63  ;;  %v22414_v10 = vld [vmem:[%s23785_s23 + $0x304] ss:$24 sps:$4 sm:$0xff]  }
0x19e6   : > { %16723 = vmatpush1.bf16.msra.mxu1 %v22346_v28  ;;  %v22391_v28 = vld [vmem:[%s23785_s23 + $0x450] ss:$24 sps:$4 sm:$0xff]  }
0x19e7   : > { %16724 = vmatprep.subr.bf16.mxu1 %v22354_v2  ;;  %v14515_v2 = vpop.f32.mrf.mxu0 }
0x19e8   : > { %14828 = vmatpush1.bf16.msra.mxu0 %v22307_v43  ;;  %v14556_v43 = vpop.f32.mrf.mxu1 }
0x19e9   : > { %14829 = vmatprep.subr.bf16.mxu0 %v22312_v25  ;;  %v22396_v25 = vld [vmem:[%s23785_s23 + $0x424] ss:$24 sps:$4 sm:$0xff]  }
0x19ea   : > { %16725 = vmatpush1.bf16.msra.mxu1 %v22352_v53  ;;  %v14553_v53 = vadd.f32 %v14552_v36, %v14510_v50  ;;  %v22412_v36 = vld [vmem:[%s23785_s23 + $0x300] ss:$24 sps:$4 sm:$0xff]   ;;  %v22420_v50 = vld [vmem:[%s23785_s23 + $0x5a4] ss:$24 sps:$4 sm:$0xff]  }
0x19eb   : > { %16726 = vmatprep.subr.bf16.mxu1 %v22360_v42  ;;  %v14514_v42 = vadd.f32 %v14513_v59, %v13008_v12 }
0x19ec   : > { %14830 = vmatpush1.bf16.msra.mxu0 %v22310_v52 }
0x19ed   : > { %14831 = vmatprep.subr.bf16.mxu0 %v22315_v5  ;;  %v14555_v5 = vadd.f32 %v14554_v38, %v14512_v40 }
0x19ee   : > { %16727 = vmatpush1.bf16.msra.mxu1 %v22358_v14  ;;  %v14516_v14 = vadd.f32 %v14515_v2, %v13012_v63 }
0x19ef   : > { %16728 = vmatprep.subr.bf16.mxu1 %v22363_v35 }
0x19f0   : > { %14832 = vmatpush1.bf16.msra.mxu0 %v22313_v27  ;;  %v22394_v27 = vld [vmem:[%s23785_s23 + $0x420] ss:$24 sps:$4 sm:$0xff]  }
0x19f1   : > { %14833 = vmatprep.subr.bf16.mxu0 %v22318_v54  ;;  %v14558_v54 = vpop.f32.mrf.mxu1 }
0x19f2   : > { %16729 = vmatpush1.bf16.msra.mxu1 %v22361_v24 }
0x19f3   : > { %16730 = vmatprep.subr.bf16.mxu1 %v22366_v44  ;;  %v22399_v44 = vld [vmem:[%s23785_s23 + $0x3f4] ss:$24 sps:$4 sm:$0xff]  }
0x19f4   : > { %14834 = vmatpush1.bf16.msra.mxu0 %v22316_v29  ;;  %v14557_v29 = vadd.f32 %v14556_v43, %v14514_v42  ;;  %v22423_v42 = vld [vmem:[%s23785_s23 + $0x574] ss:$24 sps:$4 sm:$0xff]  }
0x19f5   : > { %14835 = vmatprep.subr.bf16.mxu0 %v22321_v7 }
0x19f6   : > { %16731 = vmatpush1.bf16.msra.mxu1 %v22364_v8 }
0x19f7   : > { %16732 = vmatprep.subr.bf16.mxu1 %v22369_v4 }
0x19f8   : > { %14836 = vmatpush2.bf16.msra.mxu0 %v22319_v34 }
0x19f9   : > { %14837 = vmatprep.subr.bf16.mxu0 %v22324_v16 }
0x19fa   : > { %16733 = vmatpush2.bf16.msra.mxu1 %v22367_v13 }
0x19fb   : > { %16734 = vmatprep.subr.bf16.mxu1 %v22372_v21  ;;  %v22397_v21 = vld [vmem:[%s23785_s23 + $0x3f0] ss:$24 sps:$4 sm:$0xff]  }
0x19fc   : > { %14838 = vmatpush2.bf16.msra.mxu0 %v22322_v45 }
0x19fd   : > { %14839 = vmatprep.subr.bf16.mxu0 %v22327_v41  ;;  %v22402_v41 = vld [vmem:[%s23785_s23 + $0x3c4] ss:$24 sps:$4 sm:$0xff]  }
0x19fe   : > { %16735 = vmatpush2.bf16.msra.mxu1 %v22370_v47 }
0x19ff   : > { %16736 = vmatprep.subr.bf16.mxu1 %v22375_v6 }
0x1a00   : > { %14840 = vmatpush2.bf16.msra.mxu0 %v22325_v19 }
0x1a01   : > { %14841 = vmatprep.subr.bf16.mxu0 %v22333_v57 }
0x1a02   : > { %16737 = vmatpush2.bf16.msra.mxu1 %v22373_v37 }
0x1a03   : > { %16738 = vmatprep.subr.bf16.mxu1 %v22378_v46 }
0x1a04   : > { %14842 = vmatpush2.bf16.msra.mxu0 %v22331_v0 }
0x1a05   : > { %14843 = vmatprep.subr.bf16.mxu0 %v22339_v26 }
0x1a06   : > { %16739 = vmatpush2.bf16.msra.mxu1 %v22376_v18  ;;  %v22400_v18 = vld [vmem:[%s23785_s23 + $0x3c0] ss:$24 sps:$4 sm:$0xff]  }
0x1a07   : > { %16740 = vmatprep.subr.bf16.mxu1 %v22381_v51  ;;  %v22405_v51 = vld [vmem:[%s23785_s23 + $0x394] ss:$24 sps:$4 sm:$0xff]  }
0x1a08   : > { %14844 = vmatpush2.bf16.msra.mxu0 %v22337_v1 }
0x1a09   : > { %14845 = vmatprep.subr.bf16.mxu0 %v22345_v33 }
0x1a0a   : > { %16741 = vmatpush2.bf16.msra.mxu1 %v22379_v9 }
0x1a0b   : > { %16742 = vmatprep.subr.bf16.mxu1 %v22384_v60 }
0x1a0c   : > { %14846 = vmatpush2.bf16.msra.mxu0 %v22343_v31 }
0x1a0d   : > { %14847 = vmatprep.subr.bf16.mxu0 %v22351_v22 }
0x1a0e   : > { %16743 = vmatpush2.bf16.msra.mxu1 %v22382_v48  ;;  %v22403_v48 = vld [vmem:[%s23785_s23 + $0x390] ss:$24 sps:$4 sm:$0xff]  }
0x1a0f   : > { %16744 = vmatprep.subr.bf16.mxu1 %v22387_v17 }
0x1a10   : > { %14848 = vmatpush2.bf16.msra.mxu0 %v22349_v30 }
0x1a11   : > { %14849 = vmatprep.subr.bf16.mxu0 %v22357_v61  ;;  %v22411_v61 = vld [vmem:[%s23785_s23 + $0x334] ss:$24 sps:$4 sm:$0xff]  }
0x1a12   : > { %16745 = vmatpush2.bf16.msra.mxu1 %v22385_v3  ;;  %v22409_v3 = vld [vmem:[%s23785_s23 + $0x330] ss:$24 sps:$4 sm:$0xff]  }
0x1a13   : > { %16746 = vmatprep.subr.bf16.mxu1 %v22390_v15  ;;  %v22417_v15 = vld [vmem:[%s23785_s23 + $0x5d4] ss:$24 sps:$4 sm:$0xff]  }
0x1a14   : > { %14850 = vmatpush2.bf16.msra.mxu0 %v22355_v20 }
0x1a15   : > { %16759 = vmatprep.subr.bf16.mxu0 %v22393_v56  ;;  %v22415_v56 = vld [vmem:[%s23785_s23 + $0x5d0] ss:$24 sps:$4 sm:$0xff]  }
0x1a16   : > { %16747 = vmatpush2.bf16.msra.mxu1 %v22388_v32 }
0x1a17   : > { %v14595_v52 = vpop.f32.mrf.mxu0  ;;  %14852 = vmatmul.mubr.bf16.vlgmr.msra.gmra.mxu0 %v26012_v11  ;;  %v14559_v11 = vadd.f32 %v14558_v54, %v14516_v14  ;;  %v22421_v54 = vld [vmem:[%s23785_s23 + $0x570] ss:$24 sps:$4 sm:$0xff]  }
0x1a18   : > { %v26230_v35 = vadd.f32 %v14595_v52, %v14553_v53  ;;  %16760 = vmatpush1.bf16.msra.mxu0 %v22391_v28 }
0x1a19   : > { %v14597_v24 = vpop.f32.mrf.mxu0  ;;  %16761 = vmatprep.subr.bf16.mxu0 %v22396_v25  ;;  %v22418_v25 = vld [vmem:[%s23785_s23 + $0x5a0] ss:$24 sps:$4 sm:$0xff]  }
0x1a1a   : > { %v14862_v7 = vmul.f32 %v26230_v35, %v26230_v35  ;;  %v26236_v8 = vadd.f32 %v14597_v24, %v14555_v5 }
0x1a1b   : > { %v14599_v4 = vpop.f32.mrf.mxu0 }
0x1a1c   : > { %v14874_v34 = vmul.f32 %v14862_v7, %v26230_v35  ;;  %v14863_v16 = vmul.f32 %v26236_v8, %v26236_v8  ;;  %v26241_v13 = vadd.f32 %v14599_v4, %v14557_v29  ;;  %16762 = vmatpush1.bf16.msra.mxu0 %v22394_v27  ;;  %v22489_v4 = vld [vmem:[%s23785_s23 + $0x754] ss:$24 sps:$4 sm:$0xff]  }
0x1a1d   : > { %v14601_v45 = vpop.f32.mrf.mxu0  ;;  %16763 = vmatprep.subr.bf16.mxu0 %v22399_v44  ;;  %v22426_v44 = vld [vmem:[%s23785_s23 + $0x544] ss:$24 sps:$4 sm:$0xff]   ;;  %16802 = vmatprep.subr.bf16.mxu1 %v22489_v4 }
0x1a1e   : > { %v14886_v47 = vmul.f32 0.044715, %v14874_v34  ;;  %v14875_v6 = vmul.f32 %v14863_v16, %v26236_v8  ;;  %v14868_v19 = vmul.f32 %v26241_v13, %v26241_v13  ;;  %v14602_v57 = vadd.f32 %v14601_v45, %v14559_v11  ;;  %v22487_v11 = vld [vmem:[%s23785_s23 + $0x750] ss:$24 sps:$4 sm:$0xff]   ;;  %v22495_v34 = vld [vmem:[%s23785_s23 + $0x724] ss:$24 sps:$4 sm:$0xff]  }
0x1a1f   : > { %v22427_v16 = vld [vmem:[%s23785_s23 + $0x510] ss:$24 sps:$4 sm:$0xff]   ;;  %v22501_v45 = vld [vmem:[%s23785_s23 + $0x6f4] ss:$24 sps:$4 sm:$0xff]  }
0x1a20   : > { %v14898_v37 = vadd.f32 %v14886_v47, %v26230_v35  ;;  %v14887_v46 = vmul.f32 0.044715, %v14875_v6  ;;  %v14880_v0 = vmul.f32 %v14868_v19, %v26241_v13  ;;  %v14869_v26 = vmul.f32 %v14602_v57, %v14602_v57  ;;  %16764 = vmatpush1.bf16.msra.mxu0 %v22397_v21  ;;  %v22432_v21 = vld [vmem:[%s23785_s23 + $0x4e4] ss:$24 sps:$4 sm:$0xff]   ;;  %v22499_v47 = vld [vmem:[%s23785_s23 + $0x6f0] ss:$24 sps:$4 sm:$0xff]   ;;  %v14638_v6 = vpop.f32.mrf.mxu1 }
0x1a21   : > { %16765 = vmatprep.subr.bf16.mxu0 %v22402_v41  ;;  %v22430_v41 = vld [vmem:[%s23785_s23 + $0x4e0] ss:$24 sps:$4 sm:$0xff]   ;;  %v22435_v19 = vld [vmem:[%s23785_s23 + $0x4b4] ss:$24 sps:$4 sm:$0xff]  }
0x1a22   : > { %v14910_v55 = vmul.f32 0.7978846, %v14898_v37  ;;  %v14899_v1 = vadd.f32 %v14887_v46, %v26236_v8  ;;  %v14892_v33 = vmul.f32 0.044715, %v14880_v0  ;;  %v14881_v9 = vmul.f32 %v14869_v26, %v14602_v57  ;;  %v22433_v46 = vld [vmem:[%s23785_s23 + $0x4b0] ss:$24 sps:$4 sm:$0xff]   ;;  %v14640_v26 = vpop.f32.mrf.mxu1 }
0x1a23   : > { %v13015_v37 = vsub.s32 2, %v26206_v62  ;;  %v22505_v0 = vld [vmem:[%s23785_s23 + $0x6c0] ss:$24 sps:$4 sm:$0xff]  }
0x1a24   : > { %v14911_v60 = vmul.f32 0.7978846, %v14899_v1  ;;  %v14904_v31 = vadd.f32 %v14892_v33, %v26241_v13  ;;  %v14893_v22 = vmul.f32 0.044715, %v14881_v9  ;;  %16766 = vmatpush1.bf16.msra.mxu0 %v22400_v18  ;;  %22775 = vtanh.f32 %v14910_v55  ;;  %v22438_v18 = vld [vmem:[%s23785_s23 + $0x484] ss:$24 sps:$4 sm:$0xff]  }
0x1a25   : > { %16767 = vmatprep.subr.bf16.mxu0 %v22405_v51  ;;  %v13019_v51 = vsub.s32 3, %v26206_v62  ;;  %v22513_v55 = vld [vmem:[%s23785_s23 + $0x694] ss:$24 sps:$4 sm:$0xff]   ;;  %v13016_v1 = vrot.slane %v26213_v58, %v13015_v37  ;;  %v22436_v33 = vld [vmem:[%s23785_s23 + $0x480] ss:$24 sps:$4 sm:$0xff]  }
0x1a26   : > { %22777 = vtanh.f32 %v14911_v60  ;;  %v14916_v17 = vmul.f32 0.7978846, %v14904_v31  ;;  %v14905_v23 = vadd.f32 %v14893_v22, %v14602_v57  ;;  %v22511_v9 = vld [vmem:[%s23785_s23 + $0x690] ss:$24 sps:$4 sm:$0xff]   ;;  %v14642_v60 = vpop.f32.mrf.mxu1  ;;  %v22441_v31 = vld [vmem:[%s23785_s23 + $0x15c] ss:$24 sps:$4 sm:$0xff]  }
0x1a27   : > { %v13020_v22 = vrot.slane %v26213_v58, %v13019_v51 }
0x1a28   : > { %22779 = vtanh.f32 %v14916_v17  ;;  %v14917_v30 = vmul.f32 0.7978846, %v14905_v23  ;;  %16768 = vmatpush1.bf16.msra.mxu0 %v22403_v48  ;;  %v22519_v48 = vld [vmem:[%s23785_s23 + $0x664] ss:$24 sps:$4 sm:$0xff]   ;;  %v22517_v17 = vld [vmem:[%s23785_s23 + $0x660] ss:$24 sps:$4 sm:$0xff]   ;;  %v14644_v23 = vpop.f32.mrf.mxu1 }
0x1a29   : > { %16769 = vmatprep.subr.bf16.mxu0 %v22408_v49  ;;  %v14639_v49 = vadd.f32 %v14638_v6, %v13016_v1  ;;  %v22541_v6 = vld [vmem:[%s23785_s23 + $0x8a0] ss:$24 sps:$4 sm:$0xff]  }
0x1a2a   : > { %22781 = vtanh.f32 %v14917_v30  ;;  %v14641_v30 = vadd.f32 %v14640_v26, %v13020_v22 }
0x1a2c   : > { %16770 = vmatpush1.bf16.msra.mxu0 %v22406_v39 }
0x1a2d   : > { %16771 = vmatprep.subr.bf16.mxu0 %v22411_v61  ;;  %v22525_v61 = vld [vmem:[%s23785_s23 + $0x634] ss:$24 sps:$4 sm:$0xff]  }
0x1a30   : > { %16772 = vmatpush1.bf16.msra.mxu0 %v22409_v3 }
0x1a31   : > { %16773 = vmatprep.subr.bf16.mxu0 %v22414_v10  ;;  %v22776_v12 = vpop.eup %22775  ;;  %v22523_v10 = vld [vmem:[%s23785_s23 + $0x630] ss:$24 sps:$4 sm:$0xff]  }
0x1a32   : > { %v14934_v38 = vadd.f32 1.0, %v22776_v12  ;;  %v14643_v12 = vadd.f32 %v14642_v60, %v13016_v1  ;;  %v22553_v1 = vld [vmem:[%s23785_s23 + $0x840] ss:$24 sps:$4 sm:$0xff]   ;;  %v22567_v60 = vld [vmem:[%s23785_s23 + $0x7e4] ss:$24 sps:$4 sm:$0xff]  }
0x1a33   : > { %v22778_v63 = vpop.eup %22777 }
0x1a34   : > { %v14935_v20 = vadd.f32 1.0, %v22778_v63  ;;  %16774 = vmatpush1.bf16.msra.mxu0 %v22412_v36  ;;  %v14946_v53 = vmul.f32 0.5, %v14934_v38  ;;  %v22531_v38 = vld [vmem:[%s23785_s23 + $0x604] ss:$24 sps:$4 sm:$0xff]  }
0x1a35   : > { %v22780_v59 = vpop.eup %22779  ;;  %16775 = vmatprep.subr.bf16.mxu0 %v22417_v15 }
0x1a36   : > { %v14940_v32 = vadd.f32 1.0, %v22780_v59  ;;  %v14947_v43 = vmul.f32 0.5, %v14935_v20  ;;  %v14958_v24 = vmul.f32 %v14946_v53, %v26230_v35  ;;  %v22429_v35 = vld [vmem:[%s23785_s23 + $0x514] ss:$24 sps:$4 sm:$0xff]  }
0x1a37   : > { %v22782_v40 = vpop.eup %22781 }
0x1a38   : > { %v14952_v28 = vmul.f32 0.5, %v14940_v32  ;;  %v14941_v2 = vadd.f32 1.0, %v22782_v40  ;;  %16776 = vmatpush2.bf16.msra.mxu0 %v22415_v56  ;;  %v14959_v14 = vmul.f32 %v14947_v43, %v26236_v8  ;;  %v22424_v8 = vld [vmem:[%s23785_s23 + $0x540] ss:$24 sps:$4 sm:$0xff]  }
0x1a39   : > { %16777 = vmatprep.subr.bf16.mxu0 %v22420_v50  ;;  %v14645_v50 = vadd.f32 %v14644_v23, %v13020_v22  ;;  %v22565_v22 = vld [vmem:[%s23785_s23 + $0x7e0] ss:$24 sps:$4 sm:$0xff]  }
0x1a3a   : > { %v14953_v52 = vmul.f32 0.5, %v14941_v2  ;;  %v14964_v5 = vmul.f32 %v14952_v28, %v26241_v13  ;;  %v22493_v13 = vld [vmem:[%s23785_s23 + $0x720] ss:$24 sps:$4 sm:$0xff]  }
0x1a3b   : > { %v22529_v2 = vld [vmem:[%s23785_s23 + $0x600] ss:$24 sps:$4 sm:$0xff]  }
0x1a3c   : > { %v14965_v27 = vmul.f32 %v14953_v52, %v14602_v57  ;;  %16778 = vmatpush2.bf16.msra.mxu0 %v22418_v25  ;;  %v26273_v7 = vpack.c.bf16 %v14964_v5, %v14958_v24  ;;  %v22507_v57 = vld [vmem:[%s23785_s23 + $0x6c4] ss:$24 sps:$4 sm:$0xff]  }
0x1a3d   : > { %16779 = vmatprep.subr.bf16.mxu0 %v22423_v42 }
0x1a3e   : > { %v26271_v29 = vpack.c.bf16 %v14965_v27, %v14959_v14  ;;  %v22537_v27 = vld [vmem:[%s23785_s23 + $0x8d4] ss:$24 sps:$4 sm:$0xff]  }
0x1a40   : > { %16748 = vmatprep.mubr.bf16.mxu1 %v26271_v29  ;;  %16780 = vmatpush2.bf16.msra.mxu0 %v22421_v54 }
0x1a41   : > { %16749 = vmatmul.mubr.bf16.vlgmr.msra.gmra.mxu1 %v26273_v7  ;;  %16781 = vmatprep.subr.bf16.mxu0 %v22426_v44 }
0x1a42   : > { %16803 = vmatpush1.bf16.msra.mxu1 %v22487_v11 }
0x1a43   : > { %16804 = vmatprep.subr.bf16.mxu1 %v22495_v34 }
0x1a44   : > { %16782 = vmatpush2.bf16.msra.mxu0 %v22424_v8  ;;  %v22535_v8 = vld [vmem:[%s23785_s23 + $0x8d0] ss:$24 sps:$4 sm:$0xff]  }
0x1a45   : > { %16783 = vmatprep.subr.bf16.mxu0 %v22429_v35 }
0x1a46   : > { %16805 = vmatpush1.bf16.msra.mxu1 %v22493_v13  ;;  %v22543_v13 = vld [vmem:[%s23785_s23 + $0x8a4] ss:$24 sps:$4 sm:$0xff]  }
0x1a47   : > { %16806 = vmatprep.subr.bf16.mxu1 %v22501_v45 }
0x1a48   : > { %16784 = vmatpush2.bf16.msra.mxu0 %v22427_v16 }
0x1a49   : > { %16785 = vmatprep.subr.bf16.mxu0 %v22432_v21 }
0x1a4a   : > { %16807 = vmatpush1.bf16.msra.mxu1 %v22499_v47 }
0x1a4b   : > { %16808 = vmatprep.subr.bf16.mxu1 %v22507_v57 }
0x1a4c   : > { %16786 = vmatpush2.bf16.msra.mxu0 %v22430_v41 }
0x1a4d   : > { %16787 = vmatprep.subr.bf16.mxu0 %v22435_v19 }
0x1a4e   : > { %16809 = vmatpush1.bf16.msra.mxu1 %v22505_v0 }
0x1a4f   : > { %16810 = vmatprep.subr.bf16.mxu1 %v22513_v55  ;;  %v22555_v55 = vld [vmem:[%s23785_s23 + $0x844] ss:$24 sps:$4 sm:$0xff]  }
0x1a50   : > { %16788 = vmatpush2.bf16.msra.mxu0 %v22433_v46  ;;  %v22549_v46 = vld [vmem:[%s23785_s23 + $0x874] ss:$24 sps:$4 sm:$0xff]  }
0x1a51   : > { %16789 = vmatprep.subr.bf16.mxu0 %v22438_v18  ;;  %v22547_v18 = vld [vmem:[%s23785_s23 + $0x870] ss:$24 sps:$4 sm:$0xff]  }
0x1a52   : > { %16811 = vmatpush1.bf16.msra.mxu1 %v22511_v9  ;;  %v22559_v9 = vld [vmem:[%s23785_s23 + $0x810] ss:$24 sps:$4 sm:$0xff]  }
0x1a53   : > { %16812 = vmatprep.subr.bf16.mxu1 %v22519_v48 }
0x1a54   : > { %16790 = vmatpush2.bf16.msra.mxu0 %v22436_v33  ;;  %v22561_v33 = vld [vmem:[%s23785_s23 + $0x814] ss:$24 sps:$4 sm:$0xff]  }
0x1a55   : > { %16845 = vmatprep.subr.bf16.mxu0 %v22441_v31 }
0x1a56   : > { %16813 = vmatpush1.bf16.msra.mxu1 %v22517_v17 }
0x1a57   : > { %v14681_v39 = vpop.f32.mrf.mxu0  ;;  %16814 = vmatprep.subr.bf16.mxu1 %v22525_v61  ;;  %v22571_v61 = vld [vmem:[%s23785_s23 + $0x7b0] ss:$24 sps:$4 sm:$0xff]  }
0x1a58   : > { %v14682_v3 = vadd.f32 %v14681_v39, %v14639_v49 }
0x1a59   : > { %v14683_v36 = vpop.f32.mrf.mxu0  ;;  %v14724_v15 = vpop.f32.mrf.mxu1 }
0x1a5a   : > { %v14684_v63 = vadd.f32 %v14683_v36, %v14641_v30  ;;  %v26305_v20 = vadd.f32 %v14724_v15, %v14682_v3  ;;  %16815 = vmatpush1.bf16.msra.mxu1 %v22523_v10  ;;  %v22573_v30 = vld [vmem:[%s23785_s23 + $0x7b4] ss:$24 sps:$4 sm:$0xff]  }
0x1a5b   : > { %v14685_v56 = vpop.f32.mrf.mxu0  ;;  %v14726_v59 = vpop.f32.mrf.mxu1  ;;  %16816 = vmatprep.subr.bf16.mxu1 %v22531_v38 }
0x1a5c   : > { %v14864_v32 = vmul.f32 %v26305_v20, %v26305_v20  ;;  %v14686_v40 = vadd.f32 %v14685_v56, %v14643_v12  ;;  %v26310_v28 = vadd.f32 %v14726_v59, %v14684_v63  ;;  %v22579_v63 = vld [vmem:[%s23785_s23 + $0x784] ss:$24 sps:$4 sm:$0xff]   ;;  %v22577_v59 = vld [vmem:[%s23785_s23 + $0x780] ss:$24 sps:$4 sm:$0xff]  }
0x1a5d   : > { %v14687_v43 = vpop.f32.mrf.mxu0  ;;  %v14728_v25 = vpop.f32.mrf.mxu1 }
0x1a5e   : > { %v14876_v53 = vmul.f32 %v14864_v32, %v26305_v20  ;;  %v14865_v42 = vmul.f32 %v26310_v28, %v26310_v28  ;;  %v14688_v52 = vadd.f32 %v14687_v43, %v14645_v50  ;;  %v26316_v5 = vadd.f32 %v14728_v25, %v14686_v40  ;;  %16817 = vmatpush1.bf16.msra.mxu1 %v22529_v2  ;;  %v22585_v2 = vld [vmem:[%s23785_s23 + $0x45c] ss:$24 sps:$4 sm:$0xff]   ;;  %v22439_v25 = vld [vmem:[%s23785_s23 + $0x158] ss:$24 sps:$4 sm:$0xff]  }
0x1a5f   : > { %v14730_v14 = vpop.f32.mrf.mxu1  ;;  %16818 = vmatprep.subr.bf16.mxu1 %v22537_v27  ;;  %v22453_v27 = vld [vmem:[%s23785_s23 + $0x9c] ss:$24 sps:$4 sm:$0xff]  }
0x1a60   : > { %v14888_v54 = vmul.f32 0.044715, %v14876_v53  ;;  %v14877_v24 = vmul.f32 %v14865_v42, %v26310_v28  ;;  %v14870_v44 = vmul.f32 %v26316_v5, %v26316_v5  ;;  %v26322_v4 = vadd.f32 %v14730_v14, %v14688_v52  ;;  %v22444_v42 = vld [vmem:[%s23785_s23 + $0x12c] ss:$24 sps:$4 sm:$0xff]   ;;  %v22445_v52 = vld [vmem:[%s23785_s23 + $0xf8] ss:$24 sps:$4 sm:$0xff]  }
0x1a61   : > { %v22448_v14 = vld [vmem:[%s23785_s23 + $0xc8] ss:$24 sps:$4 sm:$0xff]  }
0x1a62   : > { %v14900_v11 = vadd.f32 %v14888_v54, %v26305_v20  ;;  %v14889_v35 = vmul.f32 0.044715, %v14877_v24  ;;  %v14882_v34 = vmul.f32 %v14870_v44, %v26316_v5  ;;  %v14871_v16 = vmul.f32 %v26322_v4, %v26322_v4  ;;  %16819 = vmatpush2.bf16.msra.mxu1 %v22535_v8  ;;  %v22451_v54 = vld [vmem:[%s23785_s23 + $0x98] ss:$24 sps:$4 sm:$0xff]   ;;  %v22456_v24 = vld [vmem:[%s23785_s23 + $0x6c] ss:$24 sps:$4 sm:$0xff]  }
0x1a63   : > { %16820 = vmatprep.subr.bf16.mxu1 %v22543_v13  ;;  %v22454_v44 = vld [vmem:[%s23785_s23 + $0x68] ss:$24 sps:$4 sm:$0xff]   ;;  %v22457_v8 = vld [vmem:[%s23785_s23 + $0x38] ss:$24 sps:$4 sm:$0xff]   ;;  %v22468_v13 = vld [vmem:[%s23785_s23 + $0x2ac] ss:$24 sps:$4 sm:$0xff]  }
0x1a64   : > { %v14912_v21 = vmul.f32 0.7978846, %v14900_v11  ;;  %v14901_v45 = vadd.f32 %v14889_v35, %v26310_v28  ;;  %v14894_v41 = vmul.f32 0.044715, %v14882_v34  ;;  %v14883_v47 = vmul.f32 %v14871_v16, %v26322_v4  ;;  %v22462_v11 = vld [vmem:[%s23785_s23 + $0xc] ss:$24 sps:$4 sm:$0xff]  }
0x1a65   : > { %v22460_v35 = vld [vmem:[%s23785_s23 + $0x8] ss:$24 sps:$4 sm:$0xff]   ;;  %v22465_v34 = vld [vmem:[%s23785_s23 + $0x2dc] ss:$24 sps:$4 sm:$0xff]   ;;  %v22463_v16 = vld [vmem:[%s23785_s23 + $0x2d8] ss:$24 sps:$4 sm:$0xff]  }
0x1a66   : > { %v14913_v19 = vmul.f32 0.7978846, %v14901_v45  ;;  %v14906_v57 = vadd.f32 %v14894_v41, %v26316_v5  ;;  %v14895_v37 = vmul.f32 0.044715, %v14883_v47  ;;  %22783 = vtanh.f32 %v14912_v21  ;;  %16821 = vmatpush2.bf16.msra.mxu1 %v22541_v6  ;;  %v22466_v21 = vld [vmem:[%s23785_s23 + $0x2a8] ss:$24 sps:$4 sm:$0xff]  }
0x1a67   : > { %16822 = vmatprep.subr.bf16.mxu1 %v22549_v46  ;;  %v22471_v45 = vld [vmem:[%s23785_s23 + $0x27c] ss:$24 sps:$4 sm:$0xff]   ;;  %v22469_v41 = vld [vmem:[%s23785_s23 + $0x278] ss:$24 sps:$4 sm:$0xff]   ;;  %v22474_v47 = vld [vmem:[%s23785_s23 + $0x24c] ss:$24 sps:$4 sm:$0xff]  }
0x1a68   : > { %22785 = vtanh.f32 %v14913_v19  ;;  %v14918_v0 = vmul.f32 0.7978846, %v14906_v57  ;;  %v14907_v26 = vadd.f32 %v14895_v37, %v26322_v4  ;;  %v22472_v6 = vld [vmem:[%s23785_s23 + $0x248] ss:$24 sps:$4 sm:$0xff]   ;;  %v22477_v19 = vld [vmem:[%s23785_s23 + $0x21c] ss:$24 sps:$4 sm:$0xff]  }
0x1a69   : > { %v22475_v57 = vld [vmem:[%s23785_s23 + $0x218] ss:$24 sps:$4 sm:$0xff]   ;;  %v22480_v37 = vld [vmem:[%s23785_s23 + $0x1ec] ss:$24 sps:$4 sm:$0xff]   ;;  %v22478_v46 = vld [vmem:[%s23785_s23 + $0x1e8] ss:$24 sps:$4 sm:$0xff]  }
0x1a6a   : > { %22787 = vtanh.f32 %v14918_v0  ;;  %v14919_v51 = vmul.f32 0.7978846, %v14907_v26  ;;  %16823 = vmatpush2.bf16.msra.mxu1 %v22547_v18  ;;  %v22483_v0 = vld [vmem:[%s23785_s23 + $0x1bc] ss:$24 sps:$4 sm:$0xff]   ;;  %v22481_v26 = vld [vmem:[%s23785_s23 + $0x1b8] ss:$24 sps:$4 sm:$0xff]  }
0x1a6b   : > { %16824 = vmatprep.subr.bf16.mxu1 %v22555_v55  ;;  %v22486_v18 = vld [vmem:[%s23785_s23 + $0x18c] ss:$24 sps:$4 sm:$0xff]   ;;  %v22492_v55 = vld [vmem:[%s23785_s23 + $0x75c] ss:$24 sps:$4 sm:$0xff]  }
0x1a6c   : > { %22789 = vtanh.f32 %v14919_v51  ;;  %v22484_v51 = vld [vmem:[%s23785_s23 + $0x188] ss:$24 sps:$4 sm:$0xff]  }
0x1a6e   : > { %16825 = vmatpush2.bf16.msra.mxu1 %v22553_v1  ;;  %v22490_v1 = vld [vmem:[%s23785_s23 + $0x758] ss:$24 sps:$4 sm:$0xff]  }
0x1a6f   : > { %16826 = vmatprep.subr.bf16.mxu1 %v22561_v33  ;;  %v22498_v33 = vld [vmem:[%s23785_s23 + $0x72c] ss:$24 sps:$4 sm:$0xff]  }
0x1a72   : > { %16827 = vmatpush2.bf16.msra.mxu1 %v22559_v9  ;;  %v22496_v9 = vld [vmem:[%s23785_s23 + $0x728] ss:$24 sps:$4 sm:$0xff]  }
0x1a73   : > { %v22784_v31 = vpop.eup %22783  ;;  %16828 = vmatprep.subr.bf16.mxu1 %v22567_v60  ;;  %v22504_v60 = vld [vmem:[%s23785_s23 + $0x6fc] ss:$24 sps:$4 sm:$0xff]  }
0x1a74   : > { %v14936_v23 = vadd.f32 1.0, %v22784_v31  ;;  %v22502_v31 = vld [vmem:[%s23785_s23 + $0x6f8] ss:$24 sps:$4 sm:$0xff]  }
0x1a75   : > { %v22786_v48 = vpop.eup %22785 }
0x1a76   : > { %v14937_v49 = vadd.f32 1.0, %v22786_v48  ;;  %16829 = vmatpush2.bf16.msra.mxu1 %v22565_v22  ;;  %v14948_v12 = vmul.f32 0.5, %v14936_v23  ;;  %v22510_v48 = vld [vmem:[%s23785_s23 + $0x6cc] ss:$24 sps:$4 sm:$0xff]   ;;  %v22508_v23 = vld [vmem:[%s23785_s23 + $0x6c8] ss:$24 sps:$4 sm:$0xff]  }
0x1a77   : > { %v22788_v17 = vpop.eup %22787  ;;  %16830 = vmatprep.subr.bf16.mxu1 %v22573_v30 }
0x1a78   : > { %v14942_v39 = vadd.f32 1.0, %v22788_v17  ;;  %v14949_v15 = vmul.f32 0.5, %v14937_v49  ;;  %v14960_v40 = vmul.f32 %v14948_v12, %v26305_v20  ;;  %v22442_v20 = vld [vmem:[%s23785_s23 + $0x128] ss:$24 sps:$4 sm:$0xff]   ;;  %v13023_v49 = vsub.s32 4, %v26206_v62 }
0x1a79   : > { %v22790_v3 = vpop.eup %22789  ;;  %v13027_v17 = vsub.s32 5, %v26206_v62 }
0x1a7a   : > { %v14954_v10 = vmul.f32 0.5, %v14942_v39  ;;  %v14943_v36 = vadd.f32 1.0, %v22790_v3  ;;  %16831 = vmatpush2.bf16.msra.mxu1 %v22571_v61  ;;  %v14961_v50 = vmul.f32 %v14949_v15, %v26310_v28  ;;  %v22447_v28 = vld [vmem:[%s23785_s23 + $0xfc] ss:$24 sps:$4 sm:$0xff]   ;;  %v13024_v3 = vrot.slane %v26213_v58, %v13023_v49 }
0x1a7b   : > { %16832 = vmatprep.subr.bf16.mxu1 %v22579_v63  ;;  %v22516_v61 = vld [vmem:[%s23785_s23 + $0x69c] ss:$24 sps:$4 sm:$0xff]   ;;  %v22522_v63 = vld [vmem:[%s23785_s23 + $0x66c] ss:$24 sps:$4 sm:$0xff]  }
0x1a7c   : > { %v14955_v56 = vmul.f32 0.5, %v14943_v36  ;;  %v14966_v38 = vmul.f32 %v14954_v10, %v26316_v5  ;;  %v22450_v5 = vld [vmem:[%s23785_s23 + $0xcc] ss:$24 sps:$4 sm:$0xff]   ;;  %v13028_v10 = vrot.slane %v26213_v58, %v13027_v17  ;;  %v22514_v36 = vld [vmem:[%s23785_s23 + $0x698] ss:$24 sps:$4 sm:$0xff]  }
0x1a7d   : > { %v22550_v17 = vld [vmem:[%s23785_s23 + $0x878] ss:$24 sps:$4 sm:$0xff]  }
0x1a7e   : > { %v14967_v32 = vmul.f32 %v14955_v56, %v26322_v4  ;;  %16833 = vmatpush2.bf16.msra.mxu1 %v22577_v59  ;;  %v26355_v53 = vpack.c.bf16 %v14966_v38, %v14960_v40  ;;  %v22459_v4 = vld [vmem:[%s23785_s23 + $0x3c] ss:$24 sps:$4 sm:$0xff]   ;;  %v22520_v59 = vld [vmem:[%s23785_s23 + $0x668] ss:$24 sps:$4 sm:$0xff]  }
0x1a7f   : > { %16888 = vmatprep.subr.bf16.mxu1 %v22585_v2 }
0x1a80   : > { %v26352_v43 = vpack.c.bf16 %v14967_v32, %v14961_v50  ;;  %v22528_v32 = vld [vmem:[%s23785_s23 + $0x63c] ss:$24 sps:$4 sm:$0xff]  }
0x1a82   : > { %16791 = vmatprep.mubr.bf16.mxu0 %v26352_v43 }
0x1a83   : > { %16792 = vmatmul.mubr.bf16.vlgmr.msra.gmra.mxu0 %v26355_v53 }
0x1a84   : > { %16846 = vmatpush1.bf16.msra.mxu0 %v22439_v25  ;;  %16877 = vmatprep.mubr.bf16.mxu0 %v26271_v29 }
0x1a85   : > { %16847 = vmatprep.subr.bf16.mxu0 %v22444_v42 }
0x1a88   : > { %16848 = vmatpush1.bf16.msra.mxu0 %v22442_v20 }
0x1a89   : > { %16849 = vmatprep.subr.bf16.mxu0 %v22447_v28  ;;  %v22526_v28 = vld [vmem:[%s23785_s23 + $0x638] ss:$24 sps:$4 sm:$0xff]  }
0x1a8c   : > { %16850 = vmatpush1.bf16.msra.mxu0 %v22445_v52 }
0x1a8d   : > { %16851 = vmatprep.subr.bf16.mxu0 %v22450_v5 }
0x1a90   : > { %16852 = vmatpush1.bf16.msra.mxu0 %v22448_v14  ;;  %v22534_v14 = vld [vmem:[%s23785_s23 + $0x60c] ss:$24 sps:$4 sm:$0xff]  }
0x1a91   : > { %16853 = vmatprep.subr.bf16.mxu0 %v22453_v27 }
0x1a94   : > { %16854 = vmatpush1.bf16.msra.mxu0 %v22451_v54 }
0x1a95   : > { %16855 = vmatprep.subr.bf16.mxu0 %v22456_v24 }
0x1a97   : > { %v14767_v22 = vpop.f32.mrf.mxu0 }
0x1a98   : > { %16856 = vmatpush1.bf16.msra.mxu0 %v22454_v44  ;;  %v14768_v62 = vadd.f32 %v14767_v22, %v13024_v3 }
0x1a99   : > { %16857 = vmatprep.subr.bf16.mxu0 %v22459_v4  ;;  %v14769_v30 = vpop.f32.mrf.mxu0  ;;  %v14810_v39 = vpop.f32.mrf.mxu1 }
0x1a9a   : > { %v14770_v56 = vadd.f32 %v14769_v30, %v13028_v10  ;;  %v14811_v40 = vadd.f32 %v14810_v39, %v14768_v62  ;;  %v22556_v30 = vld [vmem:[%s23785_s23 + $0x848] ss:$24 sps:$4 sm:$0xff]   ;;  %v22564_v39 = vld [vmem:[%s23785_s23 + $0x81c] ss:$24 sps:$4 sm:$0xff]  }
0x1a9b   : > { %v14771_v15 = vpop.f32.mrf.mxu0  ;;  %v14812_v12 = vpop.f32.mrf.mxu1 }
0x1a9c   : > { %16858 = vmatpush1.bf16.msra.mxu0 %v22457_v8  ;;  %v14772_v2 = vadd.f32 %v14771_v15, %v13024_v3  ;;  %v14813_v58 = vadd.f32 %v14812_v12, %v14770_v56  ;;  %v22570_v3 = vld [vmem:[%s23785_s23 + $0x7ec] ss:$24 sps:$4 sm:$0xff]   ;;  %v22568_v15 = vld [vmem:[%s23785_s23 + $0x7e8] ss:$24 sps:$4 sm:$0xff]   ;;  %v22576_v56 = vld [vmem:[%s23785_s23 + $0x7bc] ss:$24 sps:$4 sm:$0xff]  }
0x1a9d   : > { %16859 = vmatprep.subr.bf16.mxu0 %v22462_v11  ;;  %v14773_v38 = vpop.f32.mrf.mxu0  ;;  %v14814_v50 = vpop.f32.mrf.mxu1 }
0x1a9e   : > { %v14774_v42 = vadd.f32 %v14773_v38, %v13028_v10  ;;  %v14815_v27 = vadd.f32 %v14814_v50, %v14772_v2 }
0x1a9f   : > { %v14816_v52 = vpop.f32.mrf.mxu1 }
0x1aa0   : > { %16860 = vmatpush1.bf16.msra.mxu0 %v22460_v35  ;;  %v14817_v4 = vadd.f32 %v14816_v52, %v14774_v42  ;;  %v22580_v52 = vld [vmem:[%s23785_s23 + $0x788] ss:$24 sps:$4 sm:$0xff]  }
0x1aa1   : > { %16861 = vmatprep.subr.bf16.mxu0 %v22465_v34  ;;  %v22532_v34 = vld [vmem:[%s23785_s23 + $0x608] ss:$24 sps:$4 sm:$0xff]  }
0x1aa4   : > { %16862 = vmatpush2.bf16.msra.mxu0 %v22463_v16 }
0x1aa5   : > { %16863 = vmatprep.subr.bf16.mxu0 %v22468_v13  ;;  %v22540_v13 = vld [vmem:[%s23785_s23 + $0x8dc] ss:$24 sps:$4 sm:$0xff]  }
0x1aa8   : > { %16864 = vmatpush2.bf16.msra.mxu0 %v22466_v21 }
0x1aa9   : > { %16865 = vmatprep.subr.bf16.mxu0 %v22471_v45 }
0x1aac   : > { %16866 = vmatpush2.bf16.msra.mxu0 %v22469_v41 }
0x1aad   : > { %16867 = vmatprep.subr.bf16.mxu0 %v22474_v47 }
0x1ab0   : > { %16868 = vmatpush2.bf16.msra.mxu0 %v22472_v6 }
0x1ab1   : > { %16869 = vmatprep.subr.bf16.mxu0 %v22477_v19 }
0x1ab4   : > { %16870 = vmatpush2.bf16.msra.mxu0 %v22475_v57 }
0x1ab5   : > { %16871 = vmatprep.subr.bf16.mxu0 %v22480_v37 }
0x1ab8   : > { %16872 = vmatpush2.bf16.msra.mxu0 %v22478_v46  ;;  %v22538_v46 = vld [vmem:[%s23785_s23 + $0x8d8] ss:$24 sps:$4 sm:$0xff]  }
0x1ab9   : > { %16873 = vmatprep.subr.bf16.mxu0 %v22483_v0  ;;  %v22546_v0 = vld [vmem:[%s23785_s23 + $0x8ac] ss:$24 sps:$4 sm:$0xff]  }
0x1abc   : > { %16874 = vmatpush2.bf16.msra.mxu0 %v22481_v26 }
0x1abd   : > { %16875 = vmatprep.subr.bf16.mxu0 %v22486_v18 }
0x1ac0   : > { %16876 = vmatpush2.bf16.msra.mxu0 %v22484_v51 }
0x1ac1   : > { %16931 = vmatprep.subr.bf16.mxu0 %v22492_v55 }
0x1ac3   : > { %16878 = vmatmul.mubr.bf16.vlgmr.msra.gmra.mxu0 %v26273_v7 }
0x1ac4   : > { %16932 = vmatpush1.bf16.msra.mxu0 %v22490_v1 }
0x1ac5   : > { %16933 = vmatprep.subr.bf16.mxu0 %v22498_v33 }
0x1ac8   : > { %16934 = vmatpush1.bf16.msra.mxu0 %v22496_v9 }
0x1ac9   : > { %16935 = vmatprep.subr.bf16.mxu0 %v22504_v60  ;;  %v22544_v60 = vld [vmem:[%s23785_s23 + $0x8a8] ss:$24 sps:$4 sm:$0xff]  }
0x1acc   : > { %16936 = vmatpush1.bf16.msra.mxu0 %v22502_v31  ;;  %v22552_v31 = vld [vmem:[%s23785_s23 + $0x87c] ss:$24 sps:$4 sm:$0xff]  }
0x1acd   : > { %16937 = vmatprep.subr.bf16.mxu0 %v22510_v48 }
0x1ad0   : > { %16938 = vmatpush1.bf16.msra.mxu0 %v22508_v23  ;;  %v22558_v23 = vld [vmem:[%s23785_s23 + $0x84c] ss:$24 sps:$4 sm:$0xff]  }
0x1ad1   : > { %16939 = vmatprep.subr.bf16.mxu0 %v22516_v61  ;;  %v22562_v61 = vld [vmem:[%s23785_s23 + $0x818] ss:$24 sps:$4 sm:$0xff]  }
0x1ad4   : > { %16940 = vmatpush1.bf16.msra.mxu0 %v22514_v36 }
0x1ad5   : > { %16941 = vmatprep.subr.bf16.mxu0 %v22522_v63 }
0x1ad7   : > { %v14853_v25 = vpop.f32.mrf.mxu0 }
0x1ad8   : > { %v26408_v20 = vadd.f32 %v14853_v25, %v14811_v40  ;;  %16942 = vmatpush1.bf16.msra.mxu0 %v22520_v59 }
0x1ad9   : > { %v14855_v5 = vpop.f32.mrf.mxu0  ;;  %16943 = vmatprep.subr.bf16.mxu0 %v22528_v32  ;;  %v22574_v32 = vld [vmem:[%s23785_s23 + $0x7b8] ss:$24 sps:$4 sm:$0xff]  }
0x1ada   : > { %v14866_v54 = vmul.f32 %v26408_v20, %v26408_v20  ;;  %v26414_v24 = vadd.f32 %v14855_v5, %v14813_v58  ;;  %v22582_v58 = vld [vmem:[%s23785_s23 + $0x78c] ss:$24 sps:$4 sm:$0xff]  }
0x1adb   : > { %v14857_v44 = vpop.f32.mrf.mxu0 }
0x1adc   : > { %v14878_v8 = vmul.f32 %v14866_v54, %v26408_v20  ;;  %v14867_v11 = vmul.f32 %v26414_v24, %v26414_v24  ;;  %v26419_v35 = vadd.f32 %v14857_v44, %v14815_v27  ;;  %16944 = vmatpush1.bf16.msra.mxu0 %v22526_v28  ;;  %v22583_v44 = vld [vmem:[%s23785_s23 + $0x458] ss:$24 sps:$4 sm:$0xff]  }
0x1add   : > { %v14859_v16 = vpop.f32.mrf.mxu0  ;;  %16945 = vmatprep.subr.bf16.mxu0 %v22534_v14 }
0x1ade   : > { %v14890_v21 = vmul.f32 0.044715, %v14878_v8  ;;  %v14879_v45 = vmul.f32 %v14867_v11, %v26414_v24  ;;  %v14872_v41 = vmul.f32 %v26419_v35, %v26419_v35  ;;  %v26426_v47 = vadd.f32 %v14859_v16, %v14817_v4  ;;  %v22588_v8 = vld [vmem:[%s23785_s23 + $0x464] ss:$24 sps:$4 sm:$0xff]   ;;  %v22586_v11 = vld [vmem:[%s23785_s23 + $0x460] ss:$24 sps:$4 sm:$0xff]  }
0x1adf   : > { %v22592_v16 = vld [vmem:[%s23785_s23 + $0x430] ss:$24 sps:$4 sm:$0xff]  }
0x1ae0   : > { %v14902_v6 = vadd.f32 %v14890_v21, %v26408_v20  ;;  %v14891_v19 = vmul.f32 0.044715, %v14879_v45  ;;  %v14884_v57 = vmul.f32 %v14872_v41, %v26419_v35  ;;  %v14873_v37 = vmul.f32 %v26426_v47, %v26426_v47  ;;  %16946 = vmatpush1.bf16.msra.mxu0 %v22532_v34  ;;  %v22597_v34 = vld [vmem:[%s23785_s23 + $0x3fc] ss:$24 sps:$4 sm:$0xff]   ;;  %v22595_v21 = vld [vmem:[%s23785_s23 + $0x3f8] ss:$24 sps:$4 sm:$0xff]  }
0x1ae1   : > { %16947 = vmatprep.subr.bf16.mxu0 %v22540_v13  ;;  %v22600_v13 = vld [vmem:[%s23785_s23 + $0x404] ss:$24 sps:$4 sm:$0xff]   ;;  %v22598_v41 = vld [vmem:[%s23785_s23 + $0x400] ss:$24 sps:$4 sm:$0xff]  }
0x1ae2   : > { %v14914_v26 = vmul.f32 0.7978846, %v14902_v6  ;;  %v14903_v18 = vadd.f32 %v14891_v19, %v26414_v24  ;;  %v14896_v51 = vmul.f32 0.044715, %v14884_v57  ;;  %v14885_v55 = vmul.f32 %v14873_v37, %v26426_v47  ;;  %v22603_v45 = vld [vmem:[%s23785_s23 + $0x3cc] ss:$24 sps:$4 sm:$0xff]  }
0x1ae3   : > { %v22609_v6 = vld [vmem:[%s23785_s23 + $0x39c] ss:$24 sps:$4 sm:$0xff]   ;;  %v22604_v19 = vld [vmem:[%s23785_s23 + $0x3d0] ss:$24 sps:$4 sm:$0xff]  }
0x1ae4   : > { %v14915_v1 = vmul.f32 0.7978846, %v14903_v18  ;;  %v14908_v33 = vadd.f32 %v14896_v51, %v26419_v35  ;;  %v14897_v9 = vmul.f32 0.044715, %v14885_v55  ;;  %16948 = vmatpush2.bf16.msra.mxu0 %v22538_v46  ;;  %22791 = vtanh.f32 %v14914_v26  ;;  %v22612_v57 = vld [vmem:[%s23785_s23 + $0x3a4] ss:$24 sps:$4 sm:$0xff]  }
0x1ae5   : > { %16949 = vmatprep.subr.bf16.mxu0 %v22546_v0  ;;  %v22607_v37 = vld [vmem:[%s23785_s23 + $0x398] ss:$24 sps:$4 sm:$0xff]   ;;  %v22615_v46 = vld [vmem:[%s23785_s23 + $0x36c] ss:$24 sps:$4 sm:$0xff]   ;;  %v22613_v18 = vld [vmem:[%s23785_s23 + $0x368] ss:$24 sps:$4 sm:$0xff]  }
0x1ae6   : > { %22793 = vtanh.f32 %v14915_v1  ;;  %v14920_v22 = vmul.f32 0.7978846, %v14908_v33  ;;  %v14909_v48 = vadd.f32 %v14897_v9, %v26426_v47  ;;  %v22610_v0 = vld [vmem:[%s23785_s23 + $0x3a0] ss:$24 sps:$4 sm:$0xff]   ;;  %v22618_v26 = vld [vmem:[%s23785_s23 + $0x374] ss:$24 sps:$4 sm:$0xff]  }
0x1ae7   : > { %v22621_v51 = vld [vmem:[%s23785_s23 + $0x33c] ss:$24 sps:$4 sm:$0xff]   ;;  %v22616_v55 = vld [vmem:[%s23785_s23 + $0x370] ss:$24 sps:$4 sm:$0xff]   ;;  %v22627_v9 = vld [vmem:[%s23785_s23 + $0x30c] ss:$24 sps:$4 sm:$0xff]  }
0x1ae8   : > { %22795 = vtanh.f32 %v14920_v22  ;;  %v14921_v49 = vmul.f32 0.7978846, %v14909_v48  ;;  %16950 = vmatpush2.bf16.msra.mxu0 %v22544_v60  ;;  %v22624_v1 = vld [vmem:[%s23785_s23 + $0x344] ss:$24 sps:$4 sm:$0xff]   ;;  %v22619_v33 = vld [vmem:[%s23785_s23 + $0x338] ss:$24 sps:$4 sm:$0xff]  }
0x1ae9   : > { %16951 = vmatprep.subr.bf16.mxu0 %v22552_v31  ;;  %v22622_v60 = vld [vmem:[%s23785_s23 + $0x340] ss:$24 sps:$4 sm:$0xff]   ;;  %v22630_v31 = vld [vmem:[%s23785_s23 + $0x314] ss:$24 sps:$4 sm:$0xff]  }
0x1aea   : > { %22797 = vtanh.f32 %v14921_v49  ;;  %v22625_v22 = vld [vmem:[%s23785_s23 + $0x308] ss:$24 sps:$4 sm:$0xff]   ;;  %v22633_v48 = vld [vmem:[%s23785_s23 + $0x5dc] ss:$24 sps:$4 sm:$0xff]  }
0x1aeb   : > { %v22628_v49 = vld [vmem:[%s23785_s23 + $0x310] ss:$24 sps:$4 sm:$0xff]  }
0x1aec   : > { %16952 = vmatpush2.bf16.msra.mxu0 %v22550_v17  ;;  %v22636_v17 = vld [vmem:[%s23785_s23 + $0x5e4] ss:$24 sps:$4 sm:$0xff]  }
0x1aed   : > { %16953 = vmatprep.subr.bf16.mxu0 %v22558_v23  ;;  %v22631_v23 = vld [vmem:[%s23785_s23 + $0x5d8] ss:$24 sps:$4 sm:$0xff]  }
0x1af0   : > { %16954 = vmatpush2.bf16.msra.mxu0 %v22556_v30  ;;  %v22639_v30 = vld [vmem:[%s23785_s23 + $0x5ac] ss:$24 sps:$4 sm:$0xff]  }
0x1af1   : > { %16955 = vmatprep.subr.bf16.mxu0 %v22564_v39  ;;  %v22792_v10 = vpop.eup %22791  ;;  %v22634_v39 = vld [vmem:[%s23785_s23 + $0x5e0] ss:$24 sps:$4 sm:$0xff]  }
0x1af2   : > { %v14938_v62 = vadd.f32 1.0, %v22792_v10  ;;  %v22645_v10 = vld [vmem:[%s23785_s23 + $0x57c] ss:$24 sps:$4 sm:$0xff]  }
0x1af3   : > { %v22794_v36 = vpop.eup %22793 }
0x1af4   : > { %16956 = vmatpush2.bf16.msra.mxu0 %v22562_v61  ;;  %v14939_v12 = vadd.f32 1.0, %v22794_v36  ;;  %v14950_v25 = vmul.f32 0.5, %v14938_v62  ;;  %v22642_v61 = vld [vmem:[%s23785_s23 + $0x5b4] ss:$24 sps:$4 sm:$0xff]   ;;  %v22640_v36 = vld [vmem:[%s23785_s23 + $0x5b0] ss:$24 sps:$4 sm:$0xff]  }
0x1af5   : > { %v22796_v63 = vpop.eup %22795  ;;  %16957 = vmatprep.subr.bf16.mxu0 %v22570_v3  ;;  %v22637_v3 = vld [vmem:[%s23785_s23 + $0x5a8] ss:$24 sps:$4 sm:$0xff]  }
0x1af6   : > { %v14944_v59 = vadd.f32 1.0, %v22796_v63  ;;  %v14951_v2 = vmul.f32 0.5, %v14939_v12  ;;  %v14962_v27 = vmul.f32 %v14950_v25, %v26408_v20  ;;  %v22591_v20 = vld [vmem:[%s23785_s23 + $0x42c] ss:$24 sps:$4 sm:$0xff]   ;;  %v22643_v12 = vld [vmem:[%s23785_s23 + $0x578] ss:$24 sps:$4 sm:$0xff]  }
0x1af7   : > { %v22798_v38 = vpop.eup %22797  ;;  %v22651_v63 = vld [vmem:[%s23785_s23 + $0x54c] ss:$24 sps:$4 sm:$0xff]   ;;  %v22646_v62 = vld [vmem:[%s23785_s23 + $0x580] ss:$24 sps:$4 sm:$0xff]  }
0x1af8   : > { %v14956_v50 = vmul.f32 0.5, %v14944_v59  ;;  %16958 = vmatpush2.bf16.msra.mxu0 %v22568_v15  ;;  %v14945_v40 = vadd.f32 1.0, %v22798_v38  ;;  %v14963_v5 = vmul.f32 %v14951_v2, %v26414_v24  ;;  %v22594_v24 = vld [vmem:[%s23785_s23 + $0x434] ss:$24 sps:$4 sm:$0xff]   ;;  %v22648_v15 = vld [vmem:[%s23785_s23 + $0x584] ss:$24 sps:$4 sm:$0xff]  }
0x1af9   : > { %16959 = vmatprep.subr.bf16.mxu0 %v22576_v56  ;;  %v22654_v56 = vld [vmem:[%s23785_s23 + $0x554] ss:$24 sps:$4 sm:$0xff]   ;;  %v22649_v59 = vld [vmem:[%s23785_s23 + $0x548] ss:$24 sps:$4 sm:$0xff]  }
0x1afa   : > { %v14957_v42 = vmul.f32 0.5, %v14945_v40  ;;  %v14968_v28 = vmul.f32 %v14956_v50, %v26419_v35  ;;  %v22589_v35 = vld [vmem:[%s23785_s23 + $0x428] ss:$24 sps:$4 sm:$0xff]   ;;  %v22657_v38 = vld [vmem:[%s23785_s23 + $0x51c] ss:$24 sps:$4 sm:$0xff]  }
0x1afb   : > { %v22652_v50 = vld [vmem:[%s23785_s23 + $0x550] ss:$24 sps:$4 sm:$0xff]   ;;  %v22663_v2 = vld [vmem:[%s23785_s23 + $0x4ec] ss:$24 sps:$4 sm:$0xff]   ;;  %v22658_v25 = vld [vmem:[%s23785_s23 + $0x520] ss:$24 sps:$4 sm:$0xff]  }
0x1afc   : > { %16960 = vmatpush2.bf16.msra.mxu0 %v22574_v32  ;;  %v14969_v14 = vmul.f32 %v14957_v42, %v26426_v47  ;;  %v26458_v4 = vpack.c.bf16 %v14968_v28, %v14962_v27  ;;  %v22606_v47 = vld [vmem:[%s23785_s23 + $0x3d4] ss:$24 sps:$4 sm:$0xff]   ;;  %v22660_v32 = vld [vmem:[%s23785_s23 + $0x524] ss:$24 sps:$4 sm:$0xff]   ;;  %v22655_v40 = vld [vmem:[%s23785_s23 + $0x518] ss:$24 sps:$4 sm:$0xff]  }
0x1afd   : > { %16961 = vmatprep.subr.bf16.mxu0 %v22582_v58  ;;  %v22666_v58 = vld [vmem:[%s23785_s23 + $0x4f4] ss:$24 sps:$4 sm:$0xff]   ;;  %v22661_v42 = vld [vmem:[%s23785_s23 + $0x4e8] ss:$24 sps:$4 sm:$0xff]  }
0x1afe   : > { %v26455_v54 = vpack.c.bf16 %v14969_v14, %v14963_v5  ;;  %v22669_v28 = vld [vmem:[%s23785_s23 + $0x4bc] ss:$24 sps:$4 sm:$0xff]   ;;  %v22667_v14 = vld [vmem:[%s23785_s23 + $0x4b8] ss:$24 sps:$4 sm:$0xff]   ;;  %v22675_v27 = vld [vmem:[%s23785_s23 + $0x48c] ss:$24 sps:$4 sm:$0xff]  }
0x1aff   : > { %v22672_v5 = vld [vmem:[%s23785_s23 + $0x4c4] ss:$24 sps:$4 sm:$0xff]  }
0x1b00   : > { %16962 = vmatpush2.bf16.msra.mxu0 %v22580_v52  ;;  %16834 = vmatprep.mubr.bf16.mxu1 %v26455_v54  ;;  %v22664_v52 = vld [vmem:[%s23785_s23 + $0x4f0] ss:$24 sps:$4 sm:$0xff]  }
0x1b01   : > { %16963 = vmatprep.mubr.bf16.mxu0 %v26455_v54  ;;  %16835 = vmatmul.mubr.bf16.vlgmr.msra.gmra.mxu1 %v26458_v4 }
0x1b02   : > { %16889 = vmatpush1.bf16.msra.mxu1 %v22583_v44  ;;  %16920 = vmatprep.mubr.bf16.mxu1 %v26352_v43  ;;  %v22670_v44 = vld [vmem:[%s23785_s23 + $0x4c0] ss:$24 sps:$4 sm:$0xff]  }
0x1b03   : > { %16964 = vmatmul.mubr.bf16.vlgmr.msra.gmra.mxu0 %v26458_v4  ;;  %17017 = vmatprep.subr.bf16.mxu0 %v22588_v8  ;;  %v22678_v8 = vld [vmem:[%s23785_s23 + $0x494] ss:$24 sps:$4 sm:$0xff]  }
0x1b04   : > { %17018 = vmatpush1.bf16.msra.mxu0 %v22586_v11  ;;  %17049 = vmatprep.mubr.bf16.mxu0 %v26352_v43  ;;  %v22601_v43 = vld [vmem:[%s23785_s23 + $0x3c8] ss:$24 sps:$4 sm:$0xff]  }
0x1b05   : > { %16890 = vmatprep.subr.bf16.mxu1 %v22591_v20  ;;  %17019 = vmatprep.subr.bf16.mxu0 %v22594_v24  ;;  %v22673_v11 = vld [vmem:[%s23785_s23 + $0x488] ss:$24 sps:$4 sm:$0xff]   ;;  %v22681_v20 = vld [vmem:[%s23785_s23 + $0x164] ss:$24 sps:$4 sm:$0xff]  }
0x1b06   : > { %16891 = vmatpush1.bf16.msra.mxu1 %v22589_v35  ;;  %v22676_v24 = vld [vmem:[%s23785_s23 + $0x490] ss:$24 sps:$4 sm:$0xff]   ;;  %v22679_v35 = vld [vmem:[%s23785_s23 + $0x160] ss:$24 sps:$4 sm:$0xff]  }
0x1b07   : > { %16892 = vmatprep.subr.bf16.mxu1 %v22597_v34  ;;  %v22684_v34 = vld [vmem:[%s23785_s23 + $0x134] ss:$24 sps:$4 sm:$0xff]  }
0x1b08   : > { %17020 = vmatpush1.bf16.msra.mxu0 %v22592_v16  ;;  %v22682_v16 = vld [vmem:[%s23785_s23 + $0x130] ss:$24 sps:$4 sm:$0xff]  }
0x1b09   : > { %17021 = vmatprep.subr.bf16.mxu0 %v22600_v13  ;;  %v22687_v13 = vld [vmem:[%s23785_s23 + $0x104] ss:$24 sps:$4 sm:$0xff]  }
0x1b0a   : > { %16893 = vmatpush1.bf16.msra.mxu1 %v22595_v21  ;;  %v22685_v21 = vld [vmem:[%s23785_s23 + $0x100] ss:$24 sps:$4 sm:$0xff]  }
0x1b0b   : > { %16894 = vmatprep.subr.bf16.mxu1 %v22603_v45  ;;  %v22690_v45 = vld [vmem:[%s23785_s23 + $0xd4] ss:$24 sps:$4 sm:$0xff]  }
0x1b0c   : > { %17022 = vmatpush1.bf16.msra.mxu0 %v22598_v41  ;;  %v22688_v41 = vld [vmem:[%s23785_s23 + $0xd0] ss:$24 sps:$4 sm:$0xff]  }
0x1b0d   : > { %17023 = vmatprep.subr.bf16.mxu0 %v22606_v47  ;;  %v22693_v47 = vld [vmem:[%s23785_s23 + $0xa4] ss:$24 sps:$4 sm:$0xff]  }
0x1b0e   : > { %16895 = vmatpush1.bf16.msra.mxu1 %v22601_v43  ;;  %v22694_v43 = vld [vmem:[%s23785_s23 + $0x70] ss:$24 sps:$4 sm:$0xff]  }
0x1b0f   : > { %16896 = vmatprep.subr.bf16.mxu1 %v22609_v6  ;;  %v22699_v6 = vld [vmem:[%s23785_s23 + $0x44] ss:$24 sps:$4 sm:$0xff]  }
0x1b10   : > { %17024 = vmatpush1.bf16.msra.mxu0 %v22604_v19  ;;  %v22697_v19 = vld [vmem:[%s23785_s23 + $0x40] ss:$24 sps:$4 sm:$0xff]  }
0x1b11   : > { %17025 = vmatprep.subr.bf16.mxu0 %v22612_v57  ;;  %v22702_v57 = vld [vmem:[%s23785_s23 + $0x14] ss:$24 sps:$4 sm:$0xff]  }
0x1b12   : > { %16897 = vmatpush1.bf16.msra.mxu1 %v22607_v37  ;;  %v22700_v37 = vld [vmem:[%s23785_s23 + $0x10] ss:$24 sps:$4 sm:$0xff]  }
0x1b13   : > { %16898 = vmatprep.subr.bf16.mxu1 %v22615_v46  ;;  %v22705_v46 = vld [vmem:[%s23785_s23 + $0x2e4] ss:$24 sps:$4 sm:$0xff]  }
0x1b14   : > { %17026 = vmatpush1.bf16.msra.mxu0 %v22610_v0  ;;  %v22703_v0 = vld [vmem:[%s23785_s23 + $0x2e0] ss:$24 sps:$4 sm:$0xff]  }
0x1b15   : > { %17027 = vmatprep.subr.bf16.mxu0 %v22618_v26  ;;  %v22708_v26 = vld [vmem:[%s23785_s23 + $0x2b4] ss:$24 sps:$4 sm:$0xff]  }
0x1b16   : > { %16899 = vmatpush1.bf16.msra.mxu1 %v22613_v18  ;;  %v22706_v18 = vld [vmem:[%s23785_s23 + $0x2b0] ss:$24 sps:$4 sm:$0xff]  }
0x1b17   : > { %16900 = vmatprep.subr.bf16.mxu1 %v22621_v51  ;;  %v22711_v51 = vld [vmem:[%s23785_s23 + $0x284] ss:$24 sps:$4 sm:$0xff]  }
0x1b18   : > { %17028 = vmatpush1.bf16.msra.mxu0 %v22616_v55  ;;  %v22709_v55 = vld [vmem:[%s23785_s23 + $0x280] ss:$24 sps:$4 sm:$0xff]  }
0x1b19   : > { %17029 = vmatprep.subr.bf16.mxu0 %v22624_v1  ;;  %v22714_v1 = vld [vmem:[%s23785_s23 + $0x254] ss:$24 sps:$4 sm:$0xff]  }
0x1b1a   : > { %16901 = vmatpush1.bf16.msra.mxu1 %v22619_v33  ;;  %v22712_v33 = vld [vmem:[%s23785_s23 + $0x250] ss:$24 sps:$4 sm:$0xff]  }
0x1b1b   : > { %16902 = vmatprep.subr.bf16.mxu1 %v22627_v9  ;;  %v22717_v9 = vld [vmem:[%s23785_s23 + $0x224] ss:$24 sps:$4 sm:$0xff]  }
0x1b1c   : > { %17030 = vmatpush1.bf16.msra.mxu0 %v22622_v60  ;;  %v22715_v60 = vld [vmem:[%s23785_s23 + $0x220] ss:$24 sps:$4 sm:$0xff]  }
0x1b1d   : > { %17031 = vmatprep.subr.bf16.mxu0 %v22630_v31  ;;  %v22720_v31 = vld [vmem:[%s23785_s23 + $0x1f4] ss:$24 sps:$4 sm:$0xff]  }
0x1b1e   : > { %16903 = vmatpush1.bf16.msra.mxu1 %v22625_v22  ;;  %v22718_v22 = vld [vmem:[%s23785_s23 + $0x1f0] ss:$24 sps:$4 sm:$0xff]  }
0x1b1f   : > { %16904 = vmatprep.subr.bf16.mxu1 %v22633_v48  ;;  %v22723_v48 = vld [vmem:[%s23785_s23 + $0x1c4] ss:$24 sps:$4 sm:$0xff]  }
0x1b20   : > { %17032 = vmatpush1.bf16.msra.mxu0 %v22628_v49  ;;  %v22721_v49 = vld [vmem:[%s23785_s23 + $0x1c0] ss:$24 sps:$4 sm:$0xff]  }
0x1b21   : > { %17033 = vmatprep.subr.bf16.mxu0 %v22636_v17  ;;  %v22726_v17 = vld [vmem:[%s23785_s23 + $0x194] ss:$24 sps:$4 sm:$0xff]  }
0x1b22   : > { %16905 = vmatpush2.bf16.msra.mxu1 %v22631_v23  ;;  %v22724_v23 = vld [vmem:[%s23785_s23 + $0x190] ss:$24 sps:$4 sm:$0xff]  }
0x1b23   : > { %16906 = vmatprep.subr.bf16.mxu1 %v22639_v30  ;;  %v22729_v30 = vld [vmem:[%s23785_s23 + $0x764] ss:$24 sps:$4 sm:$0xff]  }
0x1b24   : > { %17034 = vmatpush2.bf16.msra.mxu0 %v22634_v39  ;;  %v22727_v39 = vld [vmem:[%s23785_s23 + $0x760] ss:$24 sps:$4 sm:$0xff]  }
0x1b25   : > { %17035 = vmatprep.subr.bf16.mxu0 %v22642_v61  ;;  %v22732_v61 = vld [vmem:[%s23785_s23 + $0x734] ss:$24 sps:$4 sm:$0xff]  }
0x1b26   : > { %16907 = vmatpush2.bf16.msra.mxu1 %v22637_v3  ;;  %v22730_v3 = vld [vmem:[%s23785_s23 + $0x730] ss:$24 sps:$4 sm:$0xff]  }
0x1b27   : > { %16908 = vmatprep.subr.bf16.mxu1 %v22645_v10  ;;  %v22735_v10 = vld [vmem:[%s23785_s23 + $0x704] ss:$24 sps:$4 sm:$0xff]  }
0x1b28   : > { %17036 = vmatpush2.bf16.msra.mxu0 %v22640_v36  ;;  %v22733_v36 = vld [vmem:[%s23785_s23 + $0x700] ss:$24 sps:$4 sm:$0xff]  }
0x1b29   : > { %17037 = vmatprep.subr.bf16.mxu0 %v22648_v15  ;;  %v22738_v15 = vld [vmem:[%s23785_s23 + $0x6d4] ss:$24 sps:$4 sm:$0xff]  }
0x1b2a   : > { %16909 = vmatpush2.bf16.msra.mxu1 %v22643_v12  ;;  %v22736_v12 = vld [vmem:[%s23785_s23 + $0x6d0] ss:$24 sps:$4 sm:$0xff]  }
0x1b2b   : > { %16910 = vmatprep.subr.bf16.mxu1 %v22651_v63  ;;  %v22739_v63 = vld [vmem:[%s23785_s23 + $0x6a0] ss:$24 sps:$4 sm:$0xff]  }
0x1b2c   : > { %17038 = vmatpush2.bf16.msra.mxu0 %v22646_v62  ;;  %v22742_v62 = vld [vmem:[%s23785_s23 + $0x670] ss:$24 sps:$4 sm:$0xff]  }
0x1b2d   : > { %17039 = vmatprep.subr.bf16.mxu0 %v22654_v56  ;;  %v22747_v56 = vld [vmem:[%s23785_s23 + $0x644] ss:$24 sps:$4 sm:$0xff]  }
0x1b2e   : > { %16911 = vmatpush2.bf16.msra.mxu1 %v22649_v59  ;;  %v22745_v59 = vld [vmem:[%s23785_s23 + $0x640] ss:$24 sps:$4 sm:$0xff]  }
0x1b2f   : > { %16912 = vmatprep.subr.bf16.mxu1 %v22657_v38  ;;  %v22750_v38 = vld [vmem:[%s23785_s23 + $0x614] ss:$24 sps:$4 sm:$0xff]  }
0x1b30   : > { %17040 = vmatpush2.bf16.msra.mxu0 %v22652_v50  ;;  %v22748_v50 = vld [vmem:[%s23785_s23 + $0x610] ss:$24 sps:$4 sm:$0xff]  }
0x1b31   : > { %17041 = vmatprep.subr.bf16.mxu0 %v22660_v32  ;;  %v22753_v32 = vld [vmem:[%s23785_s23 + $0x8e4] ss:$24 sps:$4 sm:$0xff]  }
0x1b32   : > { %16913 = vmatpush2.bf16.msra.mxu1 %v22655_v40  ;;  %v22751_v40 = vld [vmem:[%s23785_s23 + $0x8e0] ss:$24 sps:$4 sm:$0xff]  }
0x1b33   : > { %16914 = vmatprep.subr.bf16.mxu1 %v22663_v2  ;;  %v22756_v2 = vld [vmem:[%s23785_s23 + $0x8b4] ss:$24 sps:$4 sm:$0xff]  }
0x1b34   : > { %17042 = vmatpush2.bf16.msra.mxu0 %v22658_v25  ;;  %v22754_v25 = vld [vmem:[%s23785_s23 + $0x8b0] ss:$24 sps:$4 sm:$0xff]  }
0x1b35   : > { %17043 = vmatprep.subr.bf16.mxu0 %v22666_v58  ;;  %v22759_v58 = vld [vmem:[%s23785_s23 + $0x884] ss:$24 sps:$4 sm:$0xff]  }
0x1b36   : > { %16915 = vmatpush2.bf16.msra.mxu1 %v22661_v42  ;;  %v22757_v42 = vld [vmem:[%s23785_s23 + $0x880] ss:$24 sps:$4 sm:$0xff]  }
0x1b37   : > { %16916 = vmatprep.subr.bf16.mxu1 %v22669_v28  ;;  %v22762_v28 = vld [vmem:[%s23785_s23 + $0x854] ss:$24 sps:$4 sm:$0xff]  }
0x1b38   : > { %17044 = vmatpush2.bf16.msra.mxu0 %v22664_v52  ;;  %v22760_v52 = vld [vmem:[%s23785_s23 + $0x850] ss:$24 sps:$4 sm:$0xff]  }
0x1b39   : > { %17045 = vmatprep.subr.bf16.mxu0 %v22672_v5  ;;  %v22765_v5 = vld [vmem:[%s23785_s23 + $0x824] ss:$24 sps:$4 sm:$0xff]  }
0x1b3a   : > { %16917 = vmatpush2.bf16.msra.mxu1 %v22667_v14  ;;  %v22763_v14 = vld [vmem:[%s23785_s23 + $0x820] ss:$24 sps:$4 sm:$0xff]  }
0x1b3b   : > { %16918 = vmatprep.subr.bf16.mxu1 %v22675_v27  ;;  %v22768_v27 = vld [vmem:[%s23785_s23 + $0x7f4] ss:$24 sps:$4 sm:$0xff]  }
0x1b3c   : > { %17046 = vmatpush2.bf16.msra.mxu0 %v22670_v44  ;;  %v22766_v44 = vld [vmem:[%s23785_s23 + $0x7f0] ss:$24 sps:$4 sm:$0xff]  }
0x1b3d   : > { %17047 = vmatprep.subr.bf16.mxu0 %v22678_v8  ;;  %v16750_v8 = vpop.f32.mrf.mxu1 }
0x1b3e   : > { %16919 = vmatpush2.bf16.msra.mxu1 %v22673_v11  ;;  %v22771_v11 = vld [vmem:[%s23785_s23 + $0x7c4] ss:$24 sps:$4 sm:$0xff]  }
0x1b3f   : > { %16974 = vmatprep.subr.bf16.mxu1 %v22681_v20  ;;  %v22769_v20 = vld [vmem:[%s23785_s23 + $0x7c0] ss:$24 sps:$4 sm:$0xff]  }
0x1b40   : > { %17048 = vmatpush2.bf16.msra.mxu0 %v22676_v24  ;;  %v16752_v24 = vpop.f32.mrf.mxu1 }
0x1b41   : > { %16921 = vmatmul.mubr.bf16.vlgmr.msra.gmra.mxu1 %v26355_v53 }
0x1b42   : > { %16975 = vmatpush1.bf16.msra.mxu1 %v22679_v35  ;;  %17006 = vmatprep.mubr.bf16.mxu1 %v26271_v29  ;;  %v22691_v29 = vld [vmem:[%s23785_s23 + $0xa0] ss:$24 sps:$4 sm:$0xff]  }
0x1b43   : > { %17050 = vmatmul.mubr.bf16.vlgmr.msra.gmra.mxu0 %v26355_v53  ;;  %16976 = vmatprep.subr.bf16.mxu1 %v22684_v34  ;;  %v22696_v53 = vld [vmem:[%s23785_s23 + $0x74] ss:$24 sps:$4 sm:$0xff]   ;;  %v16793_v35 = vpop.f32.mrf.mxu0 }
0x1b44   : > { %v22774_v34 = vld [vmem:[%s23785_s23 + $0x794] ss:$24 sps:$4 sm:$0xff]  }
0x1b46   : > { %16977 = vmatpush1.bf16.msra.mxu1 %v22682_v16  ;;  %v22772_v16 = vld [vmem:[%s23785_s23 + $0x790] ss:$24 sps:$4 sm:$0xff]  }
0x1b47   : > { %16978 = vmatprep.subr.bf16.mxu1 %v22687_v13  ;;  %v16754_v13 = vpop.f32.mrf.mxu1 }
0x1b4a   : > { %16979 = vmatpush1.bf16.msra.mxu1 %v22685_v21  ;;  %v16795_v21 = vpop.f32.mrf.mxu0 }
0x1b4b   : > { %16980 = vmatprep.subr.bf16.mxu1 %v22690_v45  ;;  %v16756_v45 = vpop.f32.mrf.mxu1 }
0x1b4e   : > { %16981 = vmatpush1.bf16.msra.mxu1 %v22688_v41  ;;  %v16797_v41 = vpop.f32.mrf.mxu0 }
0x1b4f   : > { %16982 = vmatprep.subr.bf16.mxu1 %v22693_v47  ;;  %v16794_v47 = vadd.f32 %v16793_v35, %v16750_v8  ;;  %v14974_v35 = vld [vmem:[#allocation5 + $0x8] sm:$0xff] }
0x1b52   : > { %16983 = vmatpush1.bf16.msra.mxu1 %v22691_v29  ;;  %v14970_v29 = vld [vmem:[#allocation5 + $0x48] sm:$0xff] }
0x1b53   : > { %16984 = vmatprep.subr.bf16.mxu1 %v22696_v53 }
0x1b56   : > { %16985 = vmatpush1.bf16.msra.mxu1 %v22694_v43  ;;  %v16796_v43 = vadd.f32 %v16795_v21, %v16752_v24  ;;  %v14975_v21 = vld [vmem:[#allocation5 + $0x20] sm:$0xff] }
0x1b57   : > { %16986 = vmatprep.subr.bf16.mxu1 %v22699_v6 }
0x1b5a   : > { %16987 = vmatpush1.bf16.msra.mxu1 %v22697_v19  ;;  %v16799_v19 = vpop.f32.mrf.mxu0 }
0x1b5b   : > { %16988 = vmatprep.subr.bf16.mxu1 %v22702_v57  ;;  %v14971_v57 = vld [vmem:[#allocation5] sm:$0xff] }
0x1b5e   : > { %16989 = vmatpush1.bf16.msra.mxu1 %v22700_v37 }
0x1b5f   : > { %16990 = vmatprep.subr.bf16.mxu1 %v22705_v46  ;;  %v16798_v46 = vadd.f32 %v16797_v41, %v16754_v13 }
0x1b62   : > { %16991 = vmatpush2.bf16.msra.mxu1 %v22703_v0 }
0x1b63   : > { %16992 = vmatprep.subr.bf16.mxu1 %v22708_v26 }
0x1b66   : > { %16993 = vmatpush2.bf16.msra.mxu1 %v22706_v18  ;;  %v14976_v18 = vld [vmem:[#allocation5 + $0x18] sm:$0xff] }
0x1b67   : > { %16994 = vmatprep.subr.bf16.mxu1 %v22711_v51 }
0x1b6a   : > { %16995 = vmatpush2.bf16.msra.mxu1 %v22709_v55  ;;  %v16800_v55 = vadd.f32 %v16799_v19, %v16756_v45 }
0x1b6b   : > { %16996 = vmatprep.subr.bf16.mxu1 %v22714_v1 }
0x1b6e   : > { %16997 = vmatpush2.bf16.msra.mxu1 %v22712_v33 }
0x1b6f   : > { %16998 = vmatprep.subr.bf16.mxu1 %v22717_v9  ;;  %v14977_v9 = vld [vmem:[#allocation5 + $0x40] sm:$0xff] }
0x1b72   : > { %16999 = vmatpush2.bf16.msra.mxu1 %v22715_v60 }
0x1b73   : > { %17000 = vmatprep.subr.bf16.mxu1 %v22720_v31 }
0x1b76   : > { %17001 = vmatpush2.bf16.msra.mxu1 %v22718_v22 }
0x1b77   : > { %17002 = vmatprep.subr.bf16.mxu1 %v22723_v48 }
0x1b7a   : > { %17003 = vmatpush2.bf16.msra.mxu1 %v22721_v49 }
0x1b7b   : > { %17004 = vmatprep.subr.bf16.mxu1 %v22726_v17 }
0x1b7e   : > { %17005 = vmatpush2.bf16.msra.mxu1 %v22724_v23 }
0x1b7f   : > { %17060 = vmatprep.subr.bf16.mxu1 %v22729_v30 }
0x1b81   : > { %17007 = vmatmul.mubr.bf16.vlgmr.msra.gmra.mxu1 %v26273_v7  ;;  %v22741_v7 = vld [vmem:[%s23785_s23 + $0x6a4] ss:$24 sps:$4 sm:$0xff]  }
0x1b82   : > { %17061 = vmatpush1.bf16.msra.mxu1 %v22727_v39  ;;  %17092 = vmatprep.mubr.bf16.mxu1 %v26455_v54  ;;  %v22744_v54 = vld [vmem:[%s23785_s23 + $0x674] ss:$24 sps:$4 sm:$0xff]  }
0x1b83   : > { %17062 = vmatprep.subr.bf16.mxu1 %v22732_v61  ;;  %v16879_v48 = vpop.f32.mrf.mxu0 }
0x1b85   : > { %v16881_v49 = vpop.f32.mrf.mxu0 }
0x1b86   : > { %17063 = vmatpush1.bf16.msra.mxu1 %v22730_v3 }
0x1b87   : > { %17064 = vmatprep.subr.bf16.mxu1 %v22735_v10  ;;  %v16883_v17 = vpop.f32.mrf.mxu0  ;;  %v14972_v10 = vld [vmem:[#allocation5 + $0x50] sm:$0xff] }
0x1b89   : > { %v16885_v23 = vpop.f32.mrf.mxu0 }
0x1b8a   : > { %17065 = vmatpush1.bf16.msra.mxu1 %v22733_v36 }
0x1b8b   : > { %17066 = vmatprep.subr.bf16.mxu1 %v22738_v15 }
0x1b8e   : > { %17067 = vmatpush1.bf16.msra.mxu1 %v22736_v12 }
0x1b8f   : > { %17068 = vmatprep.subr.bf16.mxu1 %v22741_v7 }
0x1b92   : > { %17069 = vmatpush1.bf16.msra.mxu1 %v22739_v63  ;;  %v14973_v63 = vld [vmem:[#allocation5 + $0x30] sm:$0xff] }
0x1b93   : > { %17070 = vmatprep.subr.bf16.mxu1 %v22744_v54 }
0x1b96   : > { %17071 = vmatpush1.bf16.msra.mxu1 %v22742_v62 }
0x1b97   : > { %17072 = vmatprep.subr.bf16.mxu1 %v22747_v56 }
0x1b9a   : > { %17073 = vmatpush1.bf16.msra.mxu1 %v22745_v59 }
0x1b9b   : > { %17074 = vmatprep.subr.bf16.mxu1 %v22750_v38  ;;  %v14978_v38 = vld [vmem:[#allocation5 + $0x38] sm:$0xff] }
0x1b9e   : > { %17075 = vmatpush1.bf16.msra.mxu1 %v22748_v50 }
0x1b9f   : > { %17076 = vmatprep.subr.bf16.mxu1 %v22753_v32 }
0x1ba2   : > { %17077 = vmatpush2.bf16.msra.mxu1 %v22751_v40 }
0x1ba3   : > { %17078 = vmatprep.subr.bf16.mxu1 %v22756_v2 }
0x1ba6   : > { %17079 = vmatpush2.bf16.msra.mxu1 %v22754_v25 }
0x1ba7   : > { %17080 = vmatprep.subr.bf16.mxu1 %v22759_v58  ;;  %v14979_v58 = vld [vmem:[#allocation5 + $0x28] sm:$0xff] }
0x1baa   : > { %17081 = vmatpush2.bf16.msra.mxu1 %v22757_v42 }
0x1bab   : > { %17082 = vmatprep.subr.bf16.mxu1 %v22762_v28 }
0x1bae   : > { %17083 = vmatpush2.bf16.msra.mxu1 %v22760_v52 }
0x1baf   : > { %17084 = vmatprep.subr.bf16.mxu1 %v22765_v5 }
0x1bb2   : > { %17085 = vmatpush2.bf16.msra.mxu1 %v22763_v14 }
0x1bb3   : > { %17086 = vmatprep.subr.bf16.mxu1 %v22768_v27 }
0x1bb6   : > { %17087 = vmatpush2.bf16.msra.mxu1 %v22766_v44 }
0x1bb7   : > { %17088 = vmatprep.subr.bf16.mxu1 %v22771_v11 }
0x1bba   : > { %17089 = vmatpush2.bf16.msra.mxu1 %v22769_v20 }
0x1bbb   : > { %17090 = vmatprep.subr.bf16.mxu1 %v22774_v34 }
0x1bbe   : > { %17091 = vmatpush2.bf16.msra.mxu1 %v22772_v16 }
0x1bc1   : > { %17093 = vmatmul.mubr.bf16.vlgmr.msra.gmra.mxu1 %v26458_v4  ;;  %v16836_v53 = vpop.f32.mrf.mxu1 }
0x1bc2   : > { %v16837_v6 = vadd.f32 %v16836_v53, %v16794_v47 }
0x1bc3   : > { %v16838_v37 = vpop.f32.mrf.mxu1  ;;  %v16965_v30 = vpop.f32.mrf.mxu0 }
0x1bc4   : > { %v17103_v0 = vadd.f32 %v16837_v6, %v14970_v29  ;;  %v16839_v26 = vadd.f32 %v16838_v37, %v16796_v43  ;;  %v14980_v43 = vld [vmem:[#allocation5 + $0x58] sm:$0xff] }
0x1bc5   : > { %v16840_v51 = vpop.f32.mrf.mxu1  ;;  %v16967_v39 = vpop.f32.mrf.mxu0 }
0x1bc6   : > { %17115 = vst [vmem:[#allocation5 + $0x48] sm:$0xff] %v17103_v0  ;;  %v17104_v1 = vadd.f32 %v16839_v26, %v14971_v57  ;;  %v16841_v33 = vadd.f32 %v16840_v51, %v16798_v46  ;;  %v14981_v46 = vld [vmem:[#allocation5 + $0x10] sm:$0xff] }
0x1bc7   : > { %v16842_v60 = vpop.f32.mrf.mxu1  ;;  %v16969_v7 = vpop.f32.mrf.mxu0 }
0x1bc8   : > { %17116 = vst [vmem:[#allocation5] sm:$0xff] %v17104_v1  ;;  %v17109_v4 = vadd.f32 %v16841_v33, %v14976_v18  ;;  %v16843_v31 = vadd.f32 %v16842_v60, %v16800_v55 }
0x1bc9   : > { %v16971_v25 = vpop.f32.mrf.mxu0 }
0x1bca   : > { %17121 = vst [vmem:[#allocation5 + $0x18] sm:$0xff] %v17109_v4  ;;  %v17110_v22 = vadd.f32 %v16843_v31, %v14977_v9 }
0x1bcc   : > { %17122 = vst [vmem:[#allocation5 + $0x40] sm:$0xff] %v17110_v22 }
0x1c01   : > { %v16922_v61 = vpop.f32.mrf.mxu1 }
0x1c02   : > { %v16923_v3 = vadd.f32 %v16922_v61, %v16879_v48 }
0x1c03   : > { %v16924_v36 = vpop.f32.mrf.mxu1  ;;  %v17051_v27 = vpop.f32.mrf.mxu0 }
0x1c04   : > { %v16966_v15 = vadd.f32 %v16965_v30, %v16923_v3  ;;  %v16925_v12 = vadd.f32 %v16924_v36, %v16881_v49 }
0x1c05   : > { %v16926_v54 = vpop.f32.mrf.mxu1  ;;  %v17053_v8 = vpop.f32.mrf.mxu0 }
0x1c06   : > { %v17105_v62 = vadd.f32 %v16966_v15, %v14972_v10  ;;  %v16968_v56 = vadd.f32 %v16967_v39, %v16925_v12  ;;  %v16927_v59 = vadd.f32 %v16926_v54, %v16883_v17 }
0x1c07   : > { %v16928_v50 = vpop.f32.mrf.mxu1  ;;  %v17055_v24 = vpop.f32.mrf.mxu0 }
0x1c08   : > { %17117 = vst [vmem:[#allocation5 + $0x50] sm:$0xff] %v17105_v62  ;;  %v17106_v32 = vadd.f32 %v16968_v56, %v14973_v63  ;;  %v16970_v40 = vadd.f32 %v16969_v7, %v16927_v59  ;;  %v16929_v2 = vadd.f32 %v16928_v50, %v16885_v23 }
0x1c09   : > { %v17057_v53 = vpop.f32.mrf.mxu0 }
0x1c0a   : > { %17118 = vst [vmem:[#allocation5 + $0x30] sm:$0xff] %v17106_v32  ;;  %v17111_v42 = vadd.f32 %v16970_v40, %v14978_v38  ;;  %v16972_v28 = vadd.f32 %v16971_v25, %v16929_v2 }
0x1c0c   : > { %17123 = vst [vmem:[#allocation5 + $0x38] sm:$0xff] %v17111_v42  ;;  %v17112_v52 = vadd.f32 %v16972_v28, %v14979_v58 }
0x1c0e   : > { %17124 = vst [vmem:[#allocation5 + $0x28] sm:$0xff] %v17112_v52 }
0x1c41   : > { %v17008_v5 = vpop.f32.mrf.mxu1 }
0x1c42   : > { %v17052_v20 = vadd.f32 %v17051_v27, %v17008_v5 }
0x1c43   : > { %v17010_v14 = vpop.f32.mrf.mxu1 }
0x1c44   : > { %v17054_v16 = vadd.f32 %v17053_v8, %v17010_v14 }
0x1c45   : > { %v17012_v44 = vpop.f32.mrf.mxu1 }
0x1c46   : > { %v17056_v41 = vadd.f32 %v17055_v24, %v17012_v44 }
0x1c47   : > { %v17014_v11 = vpop.f32.mrf.mxu1 }
0x1c48   : > { %v17058_v19 = vadd.f32 %v17057_v53, %v17014_v11 }
0x1c81   : > { %v17094_v34 = vpop.f32.mrf.mxu1 }
0x1c82   : > { %v17095_v13 = vadd.f32 %v17094_v34, %v17052_v20 }
0x1c83   : > { %v17096_v45 = vpop.f32.mrf.mxu1 }
0x1c84   : > { %v17107_v47 = vadd.f32 %v17095_v13, %v14974_v35  ;;  %v17097_v29 = vadd.f32 %v17096_v45, %v17054_v16 }
0x1c85   : > { %v17098_v6 = vpop.f32.mrf.mxu1 }
0x1c86   : > { %17119 = vst [vmem:[#allocation5 + $0x8] sm:$0xff] %v17107_v47  ;;  %v17108_v57 = vadd.f32 %v17097_v29, %v14975_v21  ;;  %v17099_v37 = vadd.f32 %v17098_v6, %v17056_v41 }
0x1c87   : > { %v17100_v0 = vpop.f32.mrf.mxu1 }
0x1c88   : > { %17120 = vst [vmem:[#allocation5 + $0x20] sm:$0xff] %v17108_v57  ;;  %v17113_v26 = vadd.f32 %v17099_v37, %v14980_v43  ;;  %v17101_v18 = vadd.f32 %v17100_v0, %v17058_v19 }
0x1c8a   : > { %17125 = vst [vmem:[#allocation5 + $0x58] sm:$0xff] %v17113_v26  ;;  %v17114_v51 = vadd.f32 %v17101_v18, %v14981_v46 }
0x1c8c   : > { %17126 = vst [vmem:[#allocation5 + $0x10] sm:$0xff] %v17114_v51 }
0x1c8d PF: > { %s26829_s3 = sld [smem:[#allocation33_spill]] }
0x1c93   : > { %p17127_p12 = scmp.eq.s32.totalorder %s26829_s3, 4  ;;  %p19612_p7 = scmp.ne.s32.totalorder %s26829_s3, 4 }
0x1c95   : > { %17130 = sbr.rel (%p19612_p7) target bundleno = 7666 (0x1df2), region = 168 }
0x1c9a   : > { %v17169_v55 = vlaneseq  ;;  %v17131_v1 = vld [vmem:[#allocation2 + $0x30] sm:$0xff]  ;;  %v17132_v33 = vld [vmem:[#allocation2] sm:$0xff]  ;;  %v17133_v9 = vld [vmem:[#allocation2 + $0x58] sm:$0xff] }
0x1c9b   : > { %v17143_v60 = vld [vmem:[#allocation5 + $0x48] sm:$0xff]  ;;  %v17144_v4 = vld [vmem:[#allocation5] sm:$0xff]  ;;  %v17145_v31 = vld [vmem:[#allocation5 + $0x50] sm:$0xff] }
0x1c9c   : > { %v17170_v22 = vshrl.u32 %v17169_v55, 7  ;;  %v17134_v48 = vld [vmem:[#allocation2 + $0x18] sm:$0xff]  ;;  %v17146_v49 = vld [vmem:[#allocation5 + $0x30] sm:$0xff]  ;;  %v17155_v17 = vadd.f32 %v17143_v60, %v17131_v1  ;;  %v17156_v23 = vadd.f32 %v17144_v4, %v17132_v33  ;;  %v17157_v30 = vadd.f32 %v17145_v31, %v17133_v9  ;;  %v17167_v39 = vld [vmem:[%s935_s18] sm:$0x3f] }
0x1c9d   : > { %v17135_v12 = vld [vmem:[#allocation2 + $0x50] sm:$0xff]  ;;  %v17147_v7 = vld [vmem:[#allocation5 + $0x8] sm:$0xff]  ;;  %v17158_v63 = vadd.f32 %v17146_v49, %v17134_v48  ;;  %v17136_v62 = vld [vmem:[#allocation2 + $0x20] sm:$0xff] }
0x1c9e   : > { %v26602_v61 = vsub.s32 0, %v17170_v22  ;;  %v26604_v3 = vsub.s32 1, %v17170_v22  ;;  %v26606_v10 = vsub.s32 2, %v17170_v22  ;;  %v26608_v36 = vsub.s32 3, %v17170_v22  ;;  %v17148_v32 = vld [vmem:[#allocation5 + $0x20] sm:$0xff]  ;;  %v17137_v2 = vld [vmem:[#allocation2 + $0x8] sm:$0xff] }
0x1c9f   : > { %v26610_v15 = vsub.s32 4, %v17170_v22  ;;  %v26616_v50 = vsub.s32 5, %v17170_v22  ;;  %v17138_v25 = vld [vmem:[#allocation2 + $0x38] sm:$0xff]  ;;  %v17159_v58 = vadd.f32 %v17147_v7, %v17135_v12  ;;  %v17139_v5 = vld [vmem:[#allocation2 + $0x28] sm:$0xff]  ;;  %v17150_v27 = vld [vmem:[#allocation5 + $0x40] sm:$0xff]  ;;  %v17160_v20 = vadd.f32 %v17148_v32, %v17136_v62 }
0x1ca0   : > { %v17172_v54 = vrot.slane %v17167_v39, %v26602_v61  ;;  %v17176_v56 = vrot.slane %v17167_v39, %v26604_v3  ;;  %v17180_v59 = vrot.slane %v17167_v39, %v26606_v10  ;;  %v17184_v38 = vrot.slane %v17167_v39, %v26608_v36  ;;  %v17149_v14 = vld [vmem:[#allocation5 + $0x18] sm:$0xff]  ;;  %v17140_v44 = vld [vmem:[#allocation2 + $0x48] sm:$0xff]  ;;  %v17141_v16 = vld [vmem:[#allocation2 + $0x10] sm:$0xff] }
0x1ca1   : > { %v17188_v42 = vrot.slane %v17167_v39, %v26610_v15  ;;  %v17151_v8 = vld [vmem:[#allocation5 + $0x38] sm:$0xff]  ;;  %v17152_v11 = vld [vmem:[#allocation5 + $0x28] sm:$0xff]  ;;  %v17192_v24 = vrot.slane %v17167_v39, %v26616_v50  ;;  %v17161_v21 = vadd.f32 %v17149_v14, %v17137_v2  ;;  %v17162_v45 = vadd.f32 %v17150_v27, %v17138_v25  ;;  %v17142_v29 = vld [vmem:[#allocation2 + $0x40] sm:$0xff] }
0x1ca2   : > { %v17199_v40 = vadd.f32 %v17172_v54, %v17155_v17  ;;  %v17200_v28 = vadd.f32 %v17176_v56, %v17156_v23  ;;  %v17201_v52 = vadd.f32 %v17180_v59, %v17157_v30  ;;  %v17202_v35 = vadd.f32 %v17184_v38, %v17158_v63  ;;  %v17153_v13 = vld [vmem:[#allocation5 + $0x58] sm:$0xff]  ;;  %v17154_v53 = vld [vmem:[#allocation5 + $0x10] sm:$0xff] }
0x1ca3   : > { %v17203_v41 = vadd.f32 %v17188_v42, %v17159_v58  ;;  %v17163_v43 = vadd.f32 %v17151_v8, %v17139_v5  ;;  %v17164_v6 = vadd.f32 %v17152_v11, %v17140_v44  ;;  %v17165_v19 = vadd.f32 %v17153_v13, %v17141_v16 }
0x1ca4   : > { %v17213_v34 = vadd.f32 %v17200_v28, %v17199_v40  ;;  %v17205_v57 = vadd.f32 %v17172_v54, %v17161_v21  ;;  %v17206_v37 = vadd.f32 %v17176_v56, %v17162_v45  ;;  %v17204_v46 = vadd.f32 %v17192_v24, %v17160_v20 }
0x1ca5   : > { %v17207_v26 = vadd.f32 %v17180_v59, %v17163_v43  ;;  %v17166_v18 = vadd.f32 %v17154_v53, %v17142_v29  ;;  %v17208_v51 = vadd.f32 %v17184_v38, %v17164_v6  ;;  %v17209_v33 = vadd.f32 %v17188_v42, %v17165_v19 }
0x1ca6   : > { %v17214_v47 = vadd.f32 %v17213_v34, %v17201_v52  ;;  %v17220_v55 = vadd.f32 %v17206_v37, %v17205_v57 }
0x1ca7   : > { %v17210_v4 = vadd.f32 %v17192_v24, %v17166_v18 }
0x1ca8   : > { %v17215_v0 = vadd.f32 %v17214_v47, %v17202_v35  ;;  %v17221_v9 = vadd.f32 %v17220_v55, %v17207_v26 }
0x1caa   : > { %v17216_v1 = vadd.f32 %v17215_v0, %v17203_v41  ;;  %v17222_v31 = vadd.f32 %v17221_v9, %v17208_v51  ;;  %v17212_v0 = vld [vmem:[%s953_s11] sm:$0x3f] }
0x1cab   : > { %v17333_v18 = vrot.slane %v17212_v0, %v26602_v61 }
0x1cac   : > { %v17217_v60 = vadd.f32 %v17216_v1, %v17204_v46  ;;  %v17223_v22 = vadd.f32 %v17222_v31, %v17209_v33  ;;  %v17341_v31 = vrot.slane %v17212_v0, %v26606_v10 }
0x1cae   : > { %17218 = vadd.xlane.f32.xlu0 %v17217_v60  ;;  %v17224_v48 = vadd.f32 %v17223_v22, %v17210_v4  ;;  %v17345_v22 = vrot.slane %v17212_v0, %v26608_v36 }
0x1cb2   : > { %17225 = vadd.xlane.f32.xlu0 %v17224_v48 }
0x1d37   : > { %v17219_v49 = vpop.xlane.xlu0 %17218 }
0x1d38   : > { %v17228_v17 = vmul.f32 0.0013020834, %v17219_v49 }
0x1d3a   : > { %v17230_v23 = vsub.f32 %v17199_v40, %v17228_v17  ;;  %v17231_v30 = vsub.f32 %v17200_v28, %v17228_v17  ;;  %v17232_v39 = vsub.f32 %v17201_v52, %v17228_v17  ;;  %v17233_v7 = vsub.f32 %v17202_v35, %v17228_v17 }
0x1d3b   : > { %v17226_v12 = vpop.xlane.xlu0 %17225  ;;  %v17234_v56 = vsub.f32 %v17203_v41, %v17228_v17  ;;  %v17235_v58 = vsub.f32 %v17204_v46, %v17228_v17  ;;  %v17211_v46 = vld [vmem:[%s944_s20] sm:$0x3f] }
0x1d3c   : > { %v17242_v63 = vmul.f32 %v17230_v23, %v17230_v23  ;;  %v17243_v54 = vmul.f32 %v17231_v30, %v17231_v30  ;;  %v17229_v62 = vmul.f32 0.0013020834, %v17226_v12  ;;  %v17244_v59 = vmul.f32 %v17232_v39, %v17232_v39 }
0x1d3d   : > { %v17245_v42 = vmul.f32 %v17233_v7, %v17233_v7  ;;  %v17246_v14 = vmul.f32 %v17234_v56, %v17234_v56  ;;  %v17247_v20 = vmul.f32 %v17235_v58, %v17235_v58  ;;  %v17298_v55 = vrot.slane %v17211_v46, %v26606_v10 }
0x1d3e   : > { %v17254_v38 = vadd.f32 %v17243_v54, %v17242_v63  ;;  %v26620_v32 = vsub.f32 %v17205_v57, %v17229_v62  ;;  %v26622_v2 = vsub.f32 %v17206_v37, %v17229_v62  ;;  %v26624_v25 = vsub.f32 %v17207_v26, %v17229_v62 }
0x1d3f   : > { %v26626_v40 = vsub.f32 %v17208_v51, %v17229_v62  ;;  %v26632_v44 = vsub.f32 %v17209_v33, %v17229_v62  ;;  %v17241_v35 = vsub.f32 %v17210_v4, %v17229_v62  ;;  %v17290_v26 = vrot.slane %v17211_v46, %v26602_v61 }
0x1d40   : > { %v17255_v5 = vadd.f32 %v17254_v38, %v17244_v59  ;;  %v17248_v28 = vmul.f32 %v26620_v32, %v26620_v32  ;;  %v17249_v52 = vmul.f32 %v26622_v2, %v26622_v2  ;;  %v17250_v8 = vmul.f32 %v26624_v25, %v26624_v25 }
0x1d41   : > { %v17251_v34 = vmul.f32 %v26626_v40, %v26626_v40  ;;  %v17252_v21 = vmul.f32 %v26632_v44, %v26632_v44  ;;  %v17253_v41 = vmul.f32 %v17241_v35, %v17241_v35  ;;  %v17294_v51 = vrot.slane %v17211_v46, %v26604_v3 }
0x1d42   : > { %v17256_v27 = vadd.f32 %v17255_v5, %v17245_v42  ;;  %v17261_v11 = vadd.f32 %v17249_v52, %v17248_v28  ;;  %v17302_v1 = vrot.slane %v17211_v46, %v26608_v36  ;;  %v17306_v33 = vrot.slane %v17211_v46, %v26610_v15 }
0x1d43   : > { %v17310_v60 = vrot.slane %v17211_v46, %v26616_v50  ;;  %v17337_v4 = vrot.slane %v17212_v0, %v26604_v3  ;;  %v17349_v12 = vrot.slane %v17212_v0, %v26610_v15  ;;  %v17353_v63 = vrot.slane %v17212_v0, %v26616_v50 }
0x1d44   : > { %v17257_v24 = vadd.f32 %v17256_v27, %v17246_v14  ;;  %v17262_v16 = vadd.f32 %v17261_v11, %v17250_v8 }
0x1d46   : > { %v17258_v13 = vadd.f32 %v17257_v24, %v17247_v20  ;;  %v17263_v45 = vadd.f32 %v17262_v16, %v17251_v34 }
0x1d48   : > { %17259 = vadd.xlane.f32.xlu1 %v17258_v13  ;;  %v17264_v47 = vadd.f32 %v17263_v45, %v17252_v21 }
0x1d4a   : > { %v17265_v29 = vadd.f32 %v17264_v47, %v17253_v41 }
0x1d4c   : > { %17266 = vadd.xlane.f32.xlu1 %v17265_v29 }
0x1dd1   : > { %v17260_v53 = vpop.xlane.xlu1 %17259 }
0x1dd2   : > { %v17268_v43 = vmul.f32 0.0013020834, %v17260_v53 }
0x1dd4   : > { %v17270_v6 = vadd.f32 1e-12, %v17268_v43 }
0x1dd5   : > { %v17267_v19 = vpop.xlane.xlu1 %17266 }
0x1dd6   : > { %22799 = vrsqrt.f32 %v17270_v6  ;;  %v17269_v57 = vmul.f32 0.0013020834, %v17267_v19 }
0x1dd8   : > { %v17271_v37 = vadd.f32 1e-12, %v17269_v57 }
0x1dda   : > { %22801 = vrsqrt.f32 %v17271_v37 }
0x1de3   : > { %v22800_v9 = vpop.eup %22799 }
0x1de4   : > { %v17274_v48 = vmul.f32 %v22800_v9, %v17230_v23  ;;  %v17275_v49 = vmul.f32 %v22800_v9, %v17231_v30  ;;  %v17276_v61 = vmul.f32 %v22800_v9, %v17232_v39  ;;  %v17277_v17 = vmul.f32 %v22800_v9, %v17233_v7 }
0x1de5   : > { %v17278_v54 = vmul.f32 %v22800_v9, %v17234_v56  ;;  %v17279_v62 = vmul.f32 %v22800_v9, %v17235_v58 }
0x1de6   : > { %v17317_v59 = vmul.f32 %v17290_v26, %v17274_v48  ;;  %v17318_v38 = vmul.f32 %v17294_v51, %v17275_v49  ;;  %v17319_v42 = vmul.f32 %v17298_v55, %v17276_v61  ;;  %v17320_v5 = vmul.f32 %v17302_v1, %v17277_v17 }
0x1de7   : > { %v17321_v28 = vmul.f32 %v17306_v33, %v17278_v54  ;;  %v17322_v3 = vmul.f32 %v17310_v60, %v17279_v62  ;;  %v22802_v52 = vpop.eup %22801 }
0x1de8   : > { %v17360_v10 = vadd.f32 %v17333_v18, %v17317_v59  ;;  %v17361_v14 = vadd.f32 %v17337_v4, %v17318_v38  ;;  %v17362_v36 = vadd.f32 %v17341_v31, %v17319_v42  ;;  %v17363_v23 = vadd.f32 %v17345_v22, %v17320_v5 }
0x1de9   : > { %v17364_v30 = vadd.f32 %v17349_v12, %v17321_v28  ;;  %v17365_v39 = vadd.f32 %v17353_v63, %v17322_v3  ;;  %v17280_v7 = vmul.f32 %v22802_v52, %v26620_v32  ;;  %v17281_v15 = vmul.f32 %v22802_v52, %v26622_v2 }
0x1dea   : > { %17372 = vst [vmem:[#allocation2 + $0x30] sm:$0xff] %v17360_v10  ;;  %17373 = vst [vmem:[#allocation2] sm:$0xff] %v17361_v14  ;;  %v17282_v50 = vmul.f32 %v22802_v52, %v26624_v25  ;;  %v17283_v56 = vmul.f32 %v22802_v52, %v26626_v40  ;;  %v17284_v58 = vmul.f32 %v22802_v52, %v26632_v44 }
0x1deb   : > { %17374 = vst [vmem:[#allocation2 + $0x58] sm:$0xff] %v17362_v36  ;;  %17375 = vst [vmem:[#allocation2 + $0x18] sm:$0xff] %v17363_v23  ;;  %v17285_v27 = vmul.f32 %v22802_v52, %v17241_v35  ;;  %v17323_v8 = vmul.f32 %v17290_v26, %v17280_v7  ;;  %v17324_v11 = vmul.f32 %v17294_v51, %v17281_v15 }
0x1dec   : > { %17376 = vst [vmem:[#allocation2 + $0x50] sm:$0xff] %v17364_v30  ;;  %17377 = vst [vmem:[#allocation2 + $0x20] sm:$0xff] %v17365_v39  ;;  %v17325_v20 = vmul.f32 %v17298_v55, %v17282_v50  ;;  %v17326_v24 = vmul.f32 %v17302_v1, %v17283_v56  ;;  %v17327_v32 = vmul.f32 %v17306_v33, %v17284_v58 }
0x1ded   : > { %v17328_v34 = vmul.f32 %v17310_v60, %v17285_v27  ;;  %v17366_v2 = vadd.f32 %v17333_v18, %v17323_v8  ;;  %v17367_v16 = vadd.f32 %v17337_v4, %v17324_v11 }
0x1dee   : > { %v17368_v13 = vadd.f32 %v17341_v31, %v17325_v20  ;;  %v17369_v21 = vadd.f32 %v17345_v22, %v17326_v24  ;;  %v17370_v45 = vadd.f32 %v17349_v12, %v17327_v32 }
0x1def   : > { %v17371_v41 = vadd.f32 %v17353_v63, %v17328_v34  ;;  %17378 = vst [vmem:[#allocation2 + $0x8] sm:$0xff] %v17366_v2  ;;  %17379 = vst [vmem:[#allocation2 + $0x38] sm:$0xff] %v17367_v16 }
0x1df0   : > { %17380 = vst [vmem:[#allocation2 + $0x28] sm:$0xff] %v17368_v13  ;;  %17381 = vst [vmem:[#allocation2 + $0x48] sm:$0xff] %v17369_v21 }
0x1df1   : > { %17382 = vst [vmem:[#allocation2 + $0x10] sm:$0xff] %v17370_v45  ;;  %17383 = vst [vmem:[#allocation2 + $0x40] sm:$0xff] %v17371_v41 }
0x1df2 PF: > { %s26830_s10 = sld [smem:[#allocation34_spill]] }
0x1df8   : > { %p17384_p5 = scmp.eq.s32.totalorder %s26830_s10, 5 }
0x1dfa   : > { %p17385_p3 = pnand %p17384_p5, %p17127_p12 }
0x1dfb   : > { %s26832_s25 = sld [smem:[#allocation61_spill]] (!%p17385_p3) }
0x1dfc   : > { %17388 = sbr.rel (%p17385_p3) target bundleno = 7846 (0x1ea6), region = 172 }
0x1e01   : > { %v17403_v25 = vlaneseq  ;;  %v17401_v44 = vld [vmem:[#allocation23] sm:$0x3f]  ;;  %v17389_v43 = vld [vmem:[#allocation2 + $0x30] sm:$0xff]  ;;  %v17391_v19 = vld [vmem:[#allocation2 + $0x58] sm:$0xff]  ;;  %vm17468_vm3 = vcmask 7168  }
0x1e02   : > { %v17390_v6 = vld [vmem:[#allocation2] sm:$0xff]  ;;  %v17395_v51 = vld [vmem:[#allocation2 + $0x8] sm:$0xff]  ;;  %v17396_v55 = vld [vmem:[#allocation2 + $0x38] sm:$0xff] }
0x1e03   : > { %v17404_v40 = vshrl.u32 %v17403_v25, 7  ;;  %v17392_v1 = vld [vmem:[#allocation2 + $0x18] sm:$0xff]  ;;  %v17397_v33 = vld [vmem:[#allocation2 + $0x28] sm:$0xff]  ;;  %v17393_v48 = vld [vmem:[#allocation2 + $0x50] sm:$0xff] }
0x1e04   : > { %v17398_v22 = vld [vmem:[#allocation2 + $0x48] sm:$0xff]  ;;  %v17399_v54 = vld [vmem:[#allocation2 + $0x10] sm:$0xff]  ;;  %v17394_v59 = vld [vmem:[#allocation2 + $0x20] sm:$0xff] }
0x1e05   : > { %v17405_v35 = vsub.s32 0, %v17404_v40  ;;  %v17409_v47 = vsub.s32 1, %v17404_v40  ;;  %v17413_v29 = vsub.s32 2, %v17404_v40  ;;  %v17417_v53 = vsub.s32 3, %v17404_v40  ;;  %v17400_v3 = vld [vmem:[#allocation2 + $0x40] sm:$0xff] }
0x1e06   : > { %v17421_v57 = vsub.s32 4, %v17404_v40  ;;  %v17425_v37 = vsub.s32 5, %v17404_v40  ;;  %v19613_v56 = vld [vmem:[#allocation6] ss:$0 sm:$0xff] }
0x1e07   : > { %v17406_v46 = vrot.slane %v17401_v44, %v17405_v35  ;;  %v17410_v0 = vrot.slane %v17401_v44, %v17409_v47  ;;  %v17414_v26 = vrot.slane %v17401_v44, %v17413_v29  ;;  %v17418_v18 = vrot.slane %v17401_v44, %v17417_v53 }
0x1e08   : > { %v17422_v9 = vrot.slane %v17401_v44, %v17421_v57  ;;  %v17426_v17 = vrot.slane %v17401_v44, %v17425_v37 }
0x1e09   : > { %v17433_v60 = vmul.f32 %v17406_v46, %v17389_v43  ;;  %v17434_v4 = vmul.f32 %v17410_v0, %v17390_v6  ;;  %v17435_v31 = vmul.f32 %v17414_v26, %v17391_v19  ;;  %v17439_v49 = vmul.f32 %v17406_v46, %v17395_v51 }
0x1e0a   : > { %v17440_v61 = vmul.f32 %v17410_v0, %v17396_v55  ;;  %v17436_v12 = vmul.f32 %v17418_v18, %v17392_v1  ;;  %v17441_v62 = vmul.f32 %v17414_v26, %v17397_v33  ;;  %v17442_v38 = vmul.f32 %v17418_v18, %v17398_v22 }
0x1e0b   : > { %v17445_v63 = vadd.f32 %v17434_v4, %v17433_v60  ;;  %v17437_v5 = vmul.f32 %v17422_v9, %v17393_v48  ;;  %v17443_v52 = vmul.f32 %v17422_v9, %v17399_v54  ;;  %v17438_v14 = vmul.f32 %v17426_v17, %v17394_v59 }
0x1e0c   : > { %v17452_v42 = vadd.f32 %v17440_v61, %v17439_v49  ;;  %v17444_v39 = vmul.f32 %v17426_v17, %v17400_v3 }
0x1e0d   : > { %v17446_v28 = vadd.f32 %v17445_v63, %v17435_v31 }
0x1e0e   : > { %v17453_v10 = vadd.f32 %v17452_v42, %v17441_v62 }
0x1e0f   : > { %v17447_v36 = vadd.f32 %v17446_v28, %v17436_v12 }
0x1e10   : > { %v17454_v23 = vadd.f32 %v17453_v10, %v17442_v38 }
0x1e11   : > { %v17448_v30 = vadd.f32 %v17447_v36, %v17437_v5 }
0x1e12   : > { %v17455_v7 = vadd.f32 %v17454_v23, %v17443_v52 }
0x1e13   : > { %v17449_v15 = vadd.f32 %v17448_v30, %v17438_v14 }
0x1e14   : > { %v17456_v50 = vadd.f32 %v17455_v7, %v17444_v39 }
0x1e15   : > { %17450 = vadd.xlane.f32.xlu0 %v17449_v15 }
0x1e19   : > { %17457 = vadd.xlane.f32.xlu0 %v17456_v50 }
0x1e9e   : > { %v17451_v58 = vpop.xlane.xlu0 %17450 }
0x1e9f   : > { %v17466_v27 = vadd.f32 %v19613_v56, %v17451_v58 }
0x1ea1   : > { %17469 = vst.msk [vmem:[%s26832_s25] sm:$0xff] %vm17468_vm3, %v17466_v27 }
0x1ea2   : > { %v17458_v8 = vpop.xlane.xlu0 %17457 }
0x1ea3   : > { %v17467_v11 = vadd.f32 %v19613_v56, %v17458_v8 }
0x1ea5   : > { %17470 = vst.msk [vmem:[%s26832_s25 + $0x8] sm:$0xff] %vm17468_vm3, %v17467_v11 }
0x1ea6 PF: > { %s26833_s18 = sld [smem:[#allocation36_spill]]  ;;  %s26842_s30 = smov %s23271_s0 }
0x1ea7   : > { %s26834_s29 = sld [smem:[#allocation30_spill]]  ;;  %s26845_s22 = smov %s23299_s2 }
0x1ea8   : > { %s26835_s20 = sld [smem:[#allocation43_spill]] }
0x1ea9   : > { %s26836_s19 = sld [smem:[#allocation31_spill]] }
0x1eaa   : > { %s26837_s1 = sld [smem:[#allocation32_spill]] }
0x1eab   : > { %s26838_s11 = sld [smem:[#allocation41_spill]] }
0x1eac   : > { %s32_s23 = sadd.s32 1, %s26833_s18   ;;  %s26839_s21 = sld [smem:[#allocation35_spill]] }
0x1ead   : > { %p29_p1 = scmp.ge.s32.totalorder %s32_s23, 32   ;;  %s26840_s17 = sld [smem:[#allocation37_spill]] }
0x1eae   : > { %s26841_s5 = sld [smem:[#allocation39_spill]]  ;;  %s26843_s0 = smov %s26835_s20 }
0x1eb0   :  { %31 = sbr.rel (!%p29_p1) target bundleno = 25 (0x19), region = 280 }
0x1eb1   : > { %s26844_s20 = smov %s26838_s11 }
0x1eb4   : > { %s26846_s2 = smov %s26841_s5 }
0x1eb5   :  { %17482 = vsyncpa [#allocation8], 1 }
0x1eb6   :  { %17484 = vsyncpa [#allocation8 + $0x1], 1 }
0x1eb7   :  { %17485 = vsyncpa [#allocation10], 1 }

</bundles_post_ra>
